<compile_context>
chip_gen: v7x
topology: tpu7x:2x2x1
jax: 0.10.0
libtpu: 0.0.40
codegen_flags: <defaults>
</compile_context>

<pallas_src>
import functools

import jax
import jax.numpy as jnp
import numpy as np
from jax import lax
from jax.experimental import pallas as pl
from jax.experimental.pallas import tpu as pltpu

# 36x36 input -> 9x9 grid of 4x4-pixel cells; after two 2x2 pools -> 9x9 map.
_GRID = 9
_STRIDE = 10        # padded row stride of the cell grid (shared horiz. pad col)
_DATA = 89          # rows per image covering the 9x9 data region (incl. 8 pads)
_SEG = 100          # rows per image segment (89 data-region + 11 zero gap rows)
_BASE = 16          # leading zero rows per grid block (>= 11, sublane aligned)
_C1 = 16            # conv1 out channels (fc1 in_features = 5184 fixes 16/64)
_C2 = 64            # conv2 out channels
_CIN = 64           # per-tap lanes for both stages (conv1 input padded 48->64)
_K_IM2COL = 9 * _CIN
_TAPS = tuple((dh, dw) for dh in (-1, 0, 1) for dw in (-1, 0, 1))


def _softplus(x):
    # matches torch.nn.Softplus(beta=1, threshold=20)
    return jnp.where(x > 20.0, x, jnp.log(1.0 + jnp.exp(jnp.minimum(x, 20.0))))


def _pool4(y):
    # output lanes are pool-candidate-major: the 2x2 max-pool is an
    # elementwise max of four contiguous 64-lane groups.
    return jnp.maximum(jnp.maximum(y[:, 0:64], y[:, 64:128]),
                       jnp.maximum(y[:, 128:192], y[:, 192:256]))


# ---------------------------- Pallas kernels ----------------------------


def _conv_stack_kernel(x_ref, w1_ref, b1_ref, w2_ref, b2_ref, out_ref,
                       im1_ref, s2_ref, im2_ref, *, nb):
    """conv1+softplus+pool1 + conv2+softplus+pool2 for NB images (im2col GEMM)."""
    m = nb * _SEG - 11
    tot = _BASE + nb * _SEG

    # Valid-row mask for the 10-stride padded layout: GEMM row i corresponds
    # to padded row _BASE + i; within each 100-row segment, rows with
    # r % 10 == 9 (shared horizontal pad) or r >= 89 (inter-image gap) are
    # not real cells.
    r = lax.broadcasted_iota(jnp.int32, (m, 1), 0) % _SEG
    valid = ((r % _STRIDE) != (_STRIDE - 1)) & (r < _DATA)

    def im2col(src_ref, dst_ref):
        for t, (dh, dw) in enumerate(_TAPS):
            off = _BASE + dh * _STRIDE + dw                   # static offset
            dst_ref[:, t * _CIN:(t + 1) * _CIN] = src_ref[pl.ds(off, m), :]

    # ---- conv1 (+ fused 2x2 max-pool; bias & softplus after the max) ----
    im2col(x_ref, im1_ref)
    y1 = jnp.dot(im1_ref[...].astype(jnp.bfloat16), w1_ref[...],
                 preferred_element_type=jnp.float32)          # (m, 256)
    p1 = _softplus(_pool4(y1) + b1_ref[...])                  # (m, 64)
    p1 = jnp.where(valid, p1, 0.0)                            # zero pad rows

    # ---- stage-2 padded scratch: only the 27 leading/trailing pad rows are
    # zeroed (every step -> megacore safe); the data region is fully
    # overwritten, so no full-scratch memset. ----
    s2_ref[pl.ds(0, _BASE), :] = jnp.zeros((_BASE, _C2), jnp.float32)
    s2_ref[pl.ds(_BASE + m, tot - _BASE - m), :] = jnp.zeros(
        (tot - _BASE - m, _C2), jnp.float32)
    s2_ref[pl.ds(_BASE, m), :] = p1

    # ---- conv2 (+ fused pool) ----
    im2col(s2_ref, im2_ref)
    y2 = jnp.dot(im2_ref[...].astype(jnp.bfloat16), w2_ref[...],
                 preferred_element_type=jnp.float32)
    p2 = _softplus(_pool4(y2) + b2_ref[...])
    out_ref[...] = jnp.where(valid, p2, 0.0)


def _fc_head_kernel(x_ref, w1_ref, b1_ref, wh_ref, bh_ref, out_ref, *, z):
    # fc1 -> softplus -> merged [fc21 | fc22] head, all lane-padded to 128.
    h = _softplus(jnp.dot(x_ref[...], w1_ref[...],
                          preferred_element_type=jnp.float32) + b1_ref[...])
    raw = jnp.dot(h, wh_ref[...],
                  preferred_element_type=jnp.float32) + bh_ref[...]
    lane = lax.broadcasted_iota(jnp.int32, raw.shape, 1)
    out_ref[...] = jnp.where((lane >= z) & (lane < 2 * z), jnp.exp(raw), raw)


# ---------------------------- pallas_call wrappers ----------------------------


def _conv_stack(x_pad, w1eff, b1, w2eff, b2, nb):
    g, tot, cin = x_pad.shape
    assert tot == _BASE + nb * _SEG and cin == _CIN
    m = nb * _SEG - 11
    kernel = functools.partial(_conv_stack_kernel, nb=nb)
    return pl.pallas_call(
        kernel,
        out_shape=jax.ShapeDtypeStruct((g, m, _C2), jnp.float32),
        grid=(g,),
        in_specs=[
            pl.BlockSpec((None, tot, cin), lambda i: (i, 0, 0)),
            pl.BlockSpec((_K_IM2COL, 256), lambda i: (0, 0)),
            pl.BlockSpec((1, 64), lambda i: (0, 0)),
            pl.BlockSpec((_K_IM2COL, 256), lambda i: (0, 0)),
            pl.BlockSpec((1, 64), lambda i: (0, 0)),
        ],
        out_specs=pl.BlockSpec((None, m, _C2), lambda i: (i, 0, 0)),
        scratch_shapes=[
            pltpu.VMEM((m, _K_IM2COL), jnp.float32),   # conv1 im2col
            pltpu.VMEM((tot, _C2), jnp.float32),       # padded stage-2 acts
            pltpu.VMEM((m, _K_IM2COL), jnp.float32),   # conv2 im2col
        ],
        compiler_params=pltpu.CompilerParams(
            dimension_semantics=("parallel",)),
    )(x_pad, w1eff, b1, w2eff, b2)


def _fc_head(flat, wfc1, bfc1, whead, bhead, z):
    b, k = flat.shape
    hp = wfc1.shape[1]
    npad = whead.shape[1]
    kernel = functools.partial(_fc_head_kernel, z=z)
    return pl.pallas_call(
        kernel,
        out_shape=jax.ShapeDtypeStruct((b, npad), jnp.float32),
        grid=(1,),
        in_specs=[pl.BlockSpec((b, k), lambda i: (0, 0)),
                  pl.BlockSpec((k, hp), lambda i: (0, 0)),
                  pl.BlockSpec((1, hp), lambda i: (0, 0)),
                  pl.BlockSpec((hp, npad), lambda i: (0, 0)),
                  pl.BlockSpec((1, npad), lambda i: (0, 0))],
        out_specs=pl.BlockSpec((b, npad), lambda i: (0, 0)),
    )(flat, wfc1, bfc1, whead, bhead)


# ---------------------------- host-side glue ----------------------------


def _space_to_cells_padded(x_nchw, nb):
    """(B,3,36,36) NCHW -> (G, 16 + nb*100, 64) zero-padded 10-stride layout."""
    b, c = x_nchw.shape[0], x_nchw.shape[1]
    g = -(-b // nb)
    bp = g * nb
    x = jnp.transpose(x_nchw, (0, 2, 3, 1)).astype(jnp.float32)        # NHWC
    x = x.reshape(b, _GRID, 4, _GRID, 4, c)
    x = jnp.transpose(x, (0, 1, 3, 2, 4, 5)).reshape(b, _GRID, _GRID, 16 * c)
    # pad: batch -> bp, shared horizontal pad column (9 -> 10), lanes 48 -> 64.
    x = jnp.pad(x, ((0, bp - b), (0, 0), (0, 1), (0, _CIN - 16 * c)))
    x = x.reshape(bp, _GRID * _STRIDE, _CIN)                           # (bp, 90, 64)
    x = jnp.pad(x, ((0, 0), (0, _SEG - _GRID * _STRIDE), (0, 0)))      # (bp, 100, 64)
    x = x.reshape(g, nb * _SEG, _CIN)
    x = jnp.pad(x, ((0, 0), (_BASE, 0), (0, 0)))                       # leading zeros
    return x


def prepare_params(params):
    """One-time transform of torch-layout params into kernel-ready tensors."""
    w1 = np.asarray(params["conv1_w"], np.float32)   # (16, 3, 3, 3) OIHW
    b1 = np.asarray(params["conv1_b"], np.float32)
    w2 = np.asarray(params["conv2_w"], np.float32)   # (64, 16, 3, 3)
    b2 = np.asarray(params["conv2_b"], np.float32)
    wf1 = np.asarray(params["fc1_w"], np.float32)    # (hidden, 5184)
    bf1 = np.asarray(params["fc1_b"], np.float32)
    w21 = np.asarray(params["fc21_w"], np.float32)   # (z, hidden)
    b21 = np.asarray(params["fc21_b"], np.float32)
    w22 = np.asarray(params["fc22_w"], np.float32)
    b22 = np.asarray(params["fc22_b"], np.float32)

    co1, ci1 = w1.shape[0], w1.shape[1]
    co2, ci2 = w2.shape[0], w2.shape[1]
    assert (co1, co2) == (_C1, _C2), "fc1 in_features=5184 fixes channels (16, 64)"

    # conv1 effective weights in im2col (tap-major) K layout.
    #   K index  = t*64 + (ph*4 + pw)*3 + ci   (lanes 48..63 are zero pad)
    #   N index  = u*64 + v*16 + co, u = pool candidate, v = pooled pixel
    w1eff = np.zeros((9, _CIN, 256), np.float32)
    for a in range(4):
        for bb in range(4):
            u = (a % 2) * 2 + (bb % 2)
            v = (a // 2) * 2 + (bb // 2)
            for kh in range(3):
                dh, ph = divmod(a + kh - 1, 4)
                for kw in range(3):
                    dw, pw = divmod(bb + kw - 1, 4)
                    t = (dh + 1) * 3 + (dw + 1)
                    rr = (ph * 4 + pw) * ci1
                    cc = u * 64 + v * 16
                    w1eff[t, rr:rr + ci1, cc:cc + co1] += w1[:, :, kh, kw].T

    # conv2 effective weights: cell lanes hold the 2x2 pooled stage-1 pixels.
    #   K index = t*64 + (sh*2 + sw)*16 + ci ; N index = (i2*2 + j2)*64 + co
    w2eff = np.zeros((9, _CIN, 256), np.float32)
    for i2 in range(2):
        for j2 in range(2):
            for kh in range(3):
                dh, sh = divmod(i2 + kh - 1, 2)
                for kw in range(3):
                    dw, sw = divmod(j2 + kw - 1, 2)
                    t = (dh + 1) * 3 + (dw + 1)
                    rr = (sh * 2 + sw) * ci2
                    cc = (i2 * 2 + j2) * co2
                    w2eff[t, rr:rr + ci2, cc:cc + co2] += w2[:, :, kh, kw].T

    # fc1: absorb torch's (C, H, W) flatten order AND the kernel's 10-stride
    # row layout (89 rows/image, 8 of them zero pads) into the weight; pad the
    # hidden dim to 128 lanes so all fc loads/stores are lane-dense.
    hidden = wf1.shape[0]
    z = w21.shape[0]
    assert hidden <= 128 and 2 * z <= 128
    wt = wf1.reshape(hidden, co2, _GRID, _GRID)              # [j, c, y, x]
    wr = np.zeros((_DATA, co2, hidden), np.float32)
    for y in range(_GRID):
        wr[y * _STRIDE:y * _STRIDE + _GRID] = np.transpose(
            wt[:, :, y, :], (2, 1, 0))                       # [x, c, j]
    hp = 128
    wfc1 = np.zeros((_DATA * co2, hp), np.float32)
    wfc1[:, :hidden] = wr.reshape(_DATA * co2, hidden)
    bfc1 = np.zeros((1, hp), np.float32)
    bfc1[0, :hidden] = bf1

    # merged, lane-padded heads: columns [0:z) = fc21 (mu), [z:2z) = fc22.
    npad = 128
    whead = np.zeros((hp, npad), np.float32)
    whead[:hidden, :z] = w21.T
    whead[:hidden, z:2 * z] = w22.T
    bhead = np.zeros((1, npad), np.float32)
    bhead[0, :z] = b21
    bhead[0, z:2 * z] = b22

    return {
        "w1eff": jnp.asarray(w1eff.reshape(_K_IM2COL, 256), jnp.bfloat16),
        "b1": jnp.asarray(np.tile(b1, 4)[None, :]),           # (1, 64)
        "w2eff": jnp.asarray(w2eff.reshape(_K_IM2COL, 256), jnp.bfloat16),
        "b2": jnp.asarray(b2[None, :]),                       # (1, 64)
        "wfc1": jnp.asarray(wfc1),
        "bfc1": jnp.asarray(bfc1),
        "whead": jnp.asarray(whead),
        "bhead": jnp.asarray(bhead),
        "z_dim": z,
    }


@functools.partial(jax.jit, static_argnames=("nb", "z"))
def _encoder_forward_impl(x_nchw, prep, nb, z):
    b = x_nchw.shape[0]
    g = -(-b // nb)
    x_pad = _space_to_cells_padded(x_nchw, nb)
    pooled = _conv_stack(x_pad, prep["w1eff"], prep["b1"],
                         prep["w2eff"], prep["b2"], nb)       # (g, nb*100-11, 64)
    pooled = jnp.pad(pooled, ((0, 0), (0, 11), (0, 0)))       # (g, nb*100, 64)
    pooled = pooled.reshape(g, nb, _SEG, _C2)[:, :, :_DATA, :]
    flat = pooled.reshape(g * nb, _DATA * _C2)[:b]            # (B, 5696)
    y = _fc_head(flat, prep["wfc1"], prep["bfc1"],
                 prep["whead"], prep["bhead"], z)             # (B, 128)
    return y[:, :z], y[:, z:2 * z]


def encoder_forward(x_nchw, prep):
    b = x_nchw.shape[0]
    nb = max(1, min(8, b // 2))          # keep >= 2 grid steps when B >= 2
    arrays = {k: v for k, v in prep.items() if k != "z_dim"}
    return _encoder_forward_impl(x_nchw, arrays, nb, prep["z_dim"])


# ---------------------------- params & reference ----------------------------


def init_params(key, hidden_channels=(16, 64), hidden_dim=32, z_dim=8):
    ks = jax.random.split(key, 10)
    s = 0.02
    hc0, hc1 = hidden_channels
    return {
        "conv1_w": s * jax.random.normal(ks[0], (hc0, 3, 3, 3), jnp.float32),
        "conv1_b": s * jax.random.normal(ks[1], (hc0,), jnp.float32),
        "conv2_w": s * jax.random.normal(ks[2], (hc1, hc0, 3, 3), jnp.float32),
        "conv2_b": s * jax.random.normal(ks[3], (hc1,), jnp.float32),
        "fc1_w": s * jax.random.normal(ks[4], (hidden_dim, 5184), jnp.float32),
        "fc1_b": s * jax.random.normal(ks[5], (hidden_dim,), jnp.float32),
        "fc21_w": s * jax.random.normal(ks[6], (z_dim, hidden_dim), jnp.float32),
        "fc21_b": s * jax.random.normal(ks[7], (z_dim,), jnp.float32),
        "fc22_w": s * jax.random.normal(ks[8], (z_dim, hidden_dim), jnp.float32),
        "fc22_b": s * jax.random.normal(ks[9], (z_dim,), jnp.float32),
    }


def encoder_reference(x_nchw, params):
    # pure-JAX reference (XLA conv / reduce_window) for correctness check
    def conv(x, w, b):
        y = lax.conv_general_dilated(
            x, w, window_strides=(1, 1), padding=((1, 1), (1, 1)),
            dimension_numbers=("NCHW", "OIHW", "NCHW"))
        return y + b[None, :, None, None]

    def pool(x):
        return lax.reduce_window(x, -jnp.inf, lax.max,
                                 (1, 1, 2, 2), (1, 1, 2, 2), "VALID")

    x = pool(_softplus(conv(x_nchw, params["conv1_w"], params["conv1_b"])))
    x = pool(_softplus(conv(x, params["conv2_w"], params["conv2_b"])))
    x = x.reshape(x.shape[0], -1)
    h = _softplus(x @ params["fc1_w"].T + params["fc1_b"])
    mu = h @ params["fc21_w"].T + params["fc21_b"]
    sigma = jnp.exp(h @ params["fc22_w"].T + params["fc22_b"])
    return mu, sigma


if __name__ == "__main__":
    key = jax.random.PRNGKey(0)
    kx, kp = jax.random.split(key)
    # 36x36 input so that after two 2x2 pools: 64 * 9 * 9 == 5184
    # (fc1 in_features is hardcoded to 5184 in the module).
    x = jax.random.normal(kx, (2, 3, 36, 36), jnp.float32)
    params = init_params(kp, hidden_channels=(16, 64), hidden_dim=32, z_dim=8)
    prep = prepare_params(params)

    mu, sigma = jax.block_until_ready(encoder_forward(x, prep))
    mu_r, sigma_r = jax.block_until_ready(encoder_reference(x, params))

    np.testing.assert_allclose(np.asarray(mu), np.asarray(mu_r),
                               rtol=1e-3, atol=1e-3)
    np.testing.assert_allclose(np.asarray(sigma), np.asarray(sigma_r),
                               rtol=1e-3, atol=1e-3)
    print("KERNEL_OK")
</pallas_src>

<mosaic_0001>
module attributes {stable_mosaic.version = 11 : i64} {
  func.func @_conv_stack_kernel(%arg0: i32, %arg1: memref<1x116x64xf32, #tpu.memory_space<vmem>>, %arg2: memref<576x256xbf16, #tpu.memory_space<vmem>>, %arg3: memref<1x64xf32, #tpu.memory_space<vmem>>, %arg4: memref<576x256xbf16, #tpu.memory_space<vmem>>, %arg5: memref<1x64xf32, #tpu.memory_space<vmem>>, %arg6: memref<1x89x64xf32, #tpu.memory_space<vmem>>, %arg7: memref<89x576xf32, #tpu.memory_space<vmem>>, %arg8: memref<116x64xf32, #tpu.memory_space<vmem>>, %arg9: memref<89x576xf32, #tpu.memory_space<vmem>>) attributes {dimension_semantics = [#tpu.dimension_semantics<parallel>], iteration_bounds = array<i64: 2>, scalar_prefetch = 0 : i64, scratch_operands = 3 : i64, tpu.core_type = #tpu.core_type<tc>, window_params = [{transform_indices = @transform_0, window_bounds = array<i64: 1, 116, 64>}, {pipeline_mode = #tpu.pipeline_mode<synchronous>, transform_indices = @transform_1, window_bounds = array<i64: 576, 256>}, {pipeline_mode = #tpu.pipeline_mode<synchronous>, transform_indices = @transform_2, window_bounds = array<i64: 1, 64>}, {pipeline_mode = #tpu.pipeline_mode<synchronous>, transform_indices = @transform_3, window_bounds = array<i64: 576, 256>}, {pipeline_mode = #tpu.pipeline_mode<synchronous>, transform_indices = @transform_4, window_bounds = array<i64: 1, 64>}, {transform_indices = @transform_5, window_bounds = array<i64: 1, 89, 64>}]} {
    %0 = tpu.iota {dimensions = array<i32: 0>} : vector<89x1xi32>
    %c100_i32 = arith.constant 100 : i32
    %c0_i32 = arith.constant 0 : i32
    %1 = arith.cmpi eq, %c100_i32, %c0_i32 : i32
    %c1_i32 = arith.constant 1 : i32
    %2 = arith.select %1, %c1_i32, %c100_i32 : i32
    %3 = vector.broadcast %2 : i32 to vector<89x1xi32>
    %4 = arith.remsi %0, %3 : vector<89x1xi32>
    %c0_i32_0 = arith.constant 0 : i32
    %5 = vector.broadcast %c0_i32_0 : i32 to vector<89x1xi32>
    %6 = arith.cmpi ne, %4, %5 : vector<89x1xi32>
    %c0_i32_1 = arith.constant 0 : i32
    %7 = vector.broadcast %c0_i32_1 : i32 to vector<89x1xi32>
    %8 = arith.cmpi slt, %4, %7 : vector<89x1xi32>
    %c0_i32_2 = arith.constant 0 : i32
    %9 = arith.cmpi slt, %2, %c0_i32_2 : i32
    %10 = vector.broadcast %9 : i1 to vector<89x1xi1>
    %11 = vector.broadcast %10 : vector<89x1xi1> to vector<89x1xi1>
    %12 = arith.xori %8, %11 : vector<89x1xi1>
    %13 = arith.andi %12, %6 : vector<89x1xi1>
    %14 = vector.broadcast %2 : i32 to vector<89x1xi32>
    %15 = arith.addi %4, %14 : vector<89x1xi32>
    %16 = arith.select %13, %15, %4 : vector<89x1xi1>, vector<89x1xi32>
    %c10_i32 = arith.constant 10 : i32
    %c0_i32_3 = arith.constant 0 : i32
    %17 = arith.cmpi eq, %c10_i32, %c0_i32_3 : i32
    %c1_i32_4 = arith.constant 1 : i32
    %18 = arith.select %17, %c1_i32_4, %c10_i32 : i32
    %19 = vector.broadcast %18 : i32 to vector<89x1xi32>
    %20 = arith.remsi %16, %19 : vector<89x1xi32>
    %c0_i32_5 = arith.constant 0 : i32
    %21 = vector.broadcast %c0_i32_5 : i32 to vector<89x1xi32>
    %22 = arith.cmpi ne, %20, %21 : vector<89x1xi32>
    %c0_i32_6 = arith.constant 0 : i32
    %23 = vector.broadcast %c0_i32_6 : i32 to vector<89x1xi32>
    %24 = arith.cmpi slt, %20, %23 : vector<89x1xi32>
    %c0_i32_7 = arith.constant 0 : i32
    %25 = arith.cmpi slt, %18, %c0_i32_7 : i32
    %26 = vector.broadcast %25 : i1 to vector<89x1xi1>
    %27 = vector.broadcast %26 : vector<89x1xi1> to vector<89x1xi1>
    %28 = arith.xori %24, %27 : vector<89x1xi1>
    %29 = arith.andi %28, %22 : vector<89x1xi1>
    %30 = vector.broadcast %18 : i32 to vector<89x1xi32>
    %31 = arith.addi %20, %30 : vector<89x1xi32>
    %32 = arith.select %29, %31, %20 : vector<89x1xi1>, vector<89x1xi32>
    %c9_i32 = arith.constant 9 : i32
    %33 = vector.broadcast %c9_i32 : i32 to vector<89x1xi32>
    %34 = arith.cmpi ne, %32, %33 : vector<89x1xi32>
    %c89_i32 = arith.constant 89 : i32
    %35 = vector.broadcast %c89_i32 : i32 to vector<89x1xi32>
    %36 = arith.cmpi slt, %16, %35 : vector<89x1xi32>
    %37 = arith.andi %34, %36 : vector<89x1xi1>
    %c0 = arith.constant 0 : index
    %c5 = arith.constant 5 : index
    %c0_8 = arith.constant 0 : index
    %38 = vector.load %arg1[%c0, %c5, %c0_8] : memref<1x116x64xf32, #tpu.memory_space<vmem>>, vector<1x89x64xf32>
    %39 = vector.shape_cast %38 : vector<1x89x64xf32> to vector<89x64xf32>
    %c0_9 = arith.constant 0 : index
    %c0_10 = arith.constant 0 : index
    %40 = vector.load %arg7[%c0_9, %c0_10] : memref<89x576xf32, #tpu.memory_space<vmem>>, vector<89x64xf32>
    tpu.vector_store %arg7[%c0_9, %c0_10], %39 {strides = array<i32>} : memref<89x576xf32, #tpu.memory_space<vmem>>, vector<89x64xf32>,
    %c0_11 = arith.constant 0 : index
    %c6 = arith.constant 6 : index
    %c0_12 = arith.constant 0 : index
    %41 = vector.load %arg1[%c0_11, %c6, %c0_12] : memref<1x116x64xf32, #tpu.memory_space<vmem>>, vector<1x89x64xf32>
    %42 = vector.shape_cast %41 : vector<1x89x64xf32> to vector<89x64xf32>
    %c0_13 = arith.constant 0 : index
    %c64 = arith.constant 64 : index
    %43 = vector.load %arg7[%c0_13, %c64] : memref<89x576xf32, #tpu.memory_space<vmem>>, vector<89x64xf32>
    tpu.vector_store %arg7[%c0_13, %c64], %42 {strides = array<i32>} : memref<89x576xf32, #tpu.memory_space<vmem>>, vector<89x64xf32>,
    %c0_14 = arith.constant 0 : index
    %c7 = arith.constant 7 : index
    %c0_15 = arith.constant 0 : index
    %44 = vector.load %arg1[%c0_14, %c7, %c0_15] : memref<1x116x64xf32, #tpu.memory_space<vmem>>, vector<1x89x64xf32>
    %45 = vector.shape_cast %44 : vector<1x89x64xf32> to vector<89x64xf32>
    %c0_16 = arith.constant 0 : index
    %c128 = arith.constant 128 : index
    %46 = vector.load %arg7[%c0_16, %c128] : memref<89x576xf32, #tpu.memory_space<vmem>>, vector<89x64xf32>
    tpu.vector_store %arg7[%c0_16, %c128], %45 {strides = array<i32>} : memref<89x576xf32, #tpu.memory_space<vmem>>, vector<89x64xf32>,
    %c0_17 = arith.constant 0 : index
    %c15 = arith.constant 15 : index
    %c0_18 = arith.constant 0 : index
    %47 = vector.load %arg1[%c0_17, %c15, %c0_18] : memref<1x116x64xf32, #tpu.memory_space<vmem>>, vector<1x89x64xf32>
    %48 = vector.shape_cast %47 : vector<1x89x64xf32> to vector<89x64xf32>
    %c0_19 = arith.constant 0 : index
    %c192 = arith.constant 192 : index
    %49 = vector.load %arg7[%c0_19, %c192] : memref<89x576xf32, #tpu.memory_space<vmem>>, vector<89x64xf32>
    tpu.vector_store %arg7[%c0_19, %c192], %48 {strides = array<i32>} : memref<89x576xf32, #tpu.memory_space<vmem>>, vector<89x64xf32>,
    %c0_20 = arith.constant 0 : index
    %c16 = arith.constant 16 : index
    %c0_21 = arith.constant 0 : index
    %50 = vector.load %arg1[%c0_20, %c16, %c0_21] : memref<1x116x64xf32, #tpu.memory_space<vmem>>, vector<1x89x64xf32>
    %51 = vector.shape_cast %50 : vector<1x89x64xf32> to vector<89x64xf32>
    %c0_22 = arith.constant 0 : index
    %c256 = arith.constant 256 : index
    %52 = vector.load %arg7[%c0_22, %c256] : memref<89x576xf32, #tpu.memory_space<vmem>>, vector<89x64xf32>
    tpu.vector_store %arg7[%c0_22, %c256], %51 {strides = array<i32>} : memref<89x576xf32, #tpu.memory_space<vmem>>, vector<89x64xf32>,
    %c0_23 = arith.constant 0 : index
    %c17 = arith.constant 17 : index
    %c0_24 = arith.constant 0 : index
    %53 = vector.load %arg1[%c0_23, %c17, %c0_24] : memref<1x116x64xf32, #tpu.memory_space<vmem>>, vector<1x89x64xf32>
    %54 = vector.shape_cast %53 : vector<1x89x64xf32> to vector<89x64xf32>
    %c0_25 = arith.constant 0 : index
    %c320 = arith.constant 320 : index
    %55 = vector.load %arg7[%c0_25, %c320] : memref<89x576xf32, #tpu.memory_space<vmem>>, vector<89x64xf32>
    tpu.vector_store %arg7[%c0_25, %c320], %54 {strides = array<i32>} : memref<89x576xf32, #tpu.memory_space<vmem>>, vector<89x64xf32>,
    %c0_26 = arith.constant 0 : index
    %c25 = arith.constant 25 : index
    %c0_27 = arith.constant 0 : index
    %56 = vector.load %arg1[%c0_26, %c25, %c0_27] : memref<1x116x64xf32, #tpu.memory_space<vmem>>, vector<1x89x64xf32>
    %57 = vector.shape_cast %56 : vector<1x89x64xf32> to vector<89x64xf32>
    %c0_28 = arith.constant 0 : index
    %c384 = arith.constant 384 : index
    %58 = vector.load %arg7[%c0_28, %c384] : memref<89x576xf32, #tpu.memory_space<vmem>>, vector<89x64xf32>
    tpu.vector_store %arg7[%c0_28, %c384], %57 {strides = array<i32>} : memref<89x576xf32, #tpu.memory_space<vmem>>, vector<89x64xf32>,
    %c0_29 = arith.constant 0 : index
    %c26 = arith.constant 26 : index
    %c0_30 = arith.constant 0 : index
    %59 = vector.load %arg1[%c0_29, %c26, %c0_30] : memref<1x116x64xf32, #tpu.memory_space<vmem>>, vector<1x89x64xf32>
    %60 = vector.shape_cast %59 : vector<1x89x64xf32> to vector<89x64xf32>
    %c0_31 = arith.constant 0 : index
    %c448 = arith.constant 448 : index
    %61 = vector.load %arg7[%c0_31, %c448] : memref<89x576xf32, #tpu.memory_space<vmem>>, vector<89x64xf32>
    tpu.vector_store %arg7[%c0_31, %c448], %60 {strides = array<i32>} : memref<89x576xf32, #tpu.memory_space<vmem>>, vector<89x64xf32>,
    %c0_32 = arith.constant 0 : index
    %c27 = arith.constant 27 : index
    %c0_33 = arith.constant 0 : index
    %62 = vector.load %arg1[%c0_32, %c27, %c0_33] : memref<1x116x64xf32, #tpu.memory_space<vmem>>, vector<1x89x64xf32>
    %63 = vector.shape_cast %62 : vector<1x89x64xf32> to vector<89x64xf32>
    %c0_34 = arith.constant 0 : index
    %c512 = arith.constant 512 : index
    %64 = vector.load %arg7[%c0_34, %c512] : memref<89x576xf32, #tpu.memory_space<vmem>>, vector<89x64xf32>
    tpu.vector_store %arg7[%c0_34, %c512], %63 {strides = array<i32>} : memref<89x576xf32, #tpu.memory_space<vmem>>, vector<89x64xf32>,
    %c0_35 = arith.constant 0 : index
    %c0_36 = arith.constant 0 : index
    %65 = vector.load %arg7[%c0_35, %c0_36] : memref<89x576xf32, #tpu.memory_space<vmem>>, vector<89x576xf32>
    %66 = arith.truncf %65 : vector<89x576xf32> to vector<89x576xbf16>
    %c0_37 = arith.constant 0 : index
    %c0_38 = arith.constant 0 : index
    %67 = vector.load %arg2[%c0_37, %c0_38] : memref<576x256xbf16, #tpu.memory_space<vmem>>, vector<576x256xbf16>
    %cst = arith.constant dense<0.000000e+00> : vector<89x256xf32>
    %68 = tpu.matmul %66, %67, %cst {dimension_numbers = #tpu.dot_dimension_numbers<[1], [0], [0], [1], [0, 0, 1, 1], [], []>} : vector<89x576xbf16>, vector<576x256xbf16>, vector<89x256xf32> -> vector<89x256xf32>
    %69 = vector.extract_strided_slice %68 {offsets = [0, 0], sizes = [89, 64], strides = [1, 1]} : vector<89x256xf32> to vector<89x64xf32>
    %70 = vector.extract_strided_slice %68 {offsets = [0, 64], sizes = [89, 64], strides = [1, 1]} : vector<89x256xf32> to vector<89x64xf32>
    %71 = arith.maximumf %69, %70 : vector<89x64xf32>
    %72 = vector.extract_strided_slice %68 {offsets = [0, 128], sizes = [89, 64], strides = [1, 1]} : vector<89x256xf32> to vector<89x64xf32>
    %73 = vector.extract_strided_slice %68 {offsets = [0, 192], sizes = [89, 64], strides = [1, 1]} : vector<89x256xf32> to vector<89x64xf32>
    %74 = arith.maximumf %72, %73 : vector<89x64xf32>
    %75 = arith.maximumf %71, %74 : vector<89x64xf32>
    %c0_39 = arith.constant 0 : index
    %c0_40 = arith.constant 0 : index
    %76 = vector.load %arg3[%c0_39, %c0_40] : memref<1x64xf32, #tpu.memory_space<vmem>>, vector<1x64xf32>
    %77 = vector.broadcast %76 : vector<1x64xf32> to vector<89x64xf32>
    %78 = arith.addf %75, %77 : vector<89x64xf32>
    %cst_41 = arith.constant 2.000000e+01 : f32
    %79 = vector.broadcast %cst_41 : f32 to vector<89x64xf32>
    %80 = arith.cmpf ogt, %78, %79 : vector<89x64xf32>
    %cst_42 = arith.constant 2.000000e+01 : f32
    %81 = vector.broadcast %cst_42 : f32 to vector<89x64xf32>
    %82 = arith.minimumf %78, %81 : vector<89x64xf32>
    %83 = math.exp %82 : vector<89x64xf32>
    %cst_43 = arith.constant 1.000000e+00 : f32
    %84 = vector.broadcast %cst_43 : f32 to vector<89x64xf32>
    %85 = arith.addf %84, %83 : vector<89x64xf32>
    %86 = math.log %85 : vector<89x64xf32>
    %87 = arith.select %80, %78, %86 : vector<89x64xi1>, vector<89x64xf32>
    %cst_44 = arith.constant 0.000000e+00 : f32
    %88 = vector.shape_cast %37 : vector<89x1xi1> to vector<89x1xi1>
    %89 = vector.broadcast %88 : vector<89x1xi1> to vector<89x64xi1>
    %90 = vector.broadcast %cst_44 : f32 to vector<89x64xf32>
    %91 = arith.select %89, %87, %90 : vector<89x64xi1>, vector<89x64xf32>
    %cst_45 = arith.constant 0.000000e+00 : f32
    %92 = vector.broadcast %cst_45 : f32 to vector<16x64xf32>
    %c0_46 = arith.constant 0 : index
    %c0_47 = arith.constant 0 : index
    %93 = vector.load %arg8[%c0_46, %c0_47] : memref<116x64xf32, #tpu.memory_space<vmem>>, vector<16x64xf32>
    tpu.vector_store %arg8[%c0_46, %c0_47], %92 {strides = array<i32>} : memref<116x64xf32, #tpu.memory_space<vmem>>, vector<16x64xf32>,
    %cst_48 = arith.constant 0.000000e+00 : f32
    %94 = vector.broadcast %cst_48 : f32 to vector<11x64xf32>
    %c105 = arith.constant 105 : index
    %c0_49 = arith.constant 0 : index
    %95 = vector.load %arg8[%c105, %c0_49] : memref<116x64xf32, #tpu.memory_space<vmem>>, vector<11x64xf32>
    tpu.vector_store %arg8[%c105, %c0_49], %94 {strides = array<i32>} : memref<116x64xf32, #tpu.memory_space<vmem>>, vector<11x64xf32>,
    %c16_50 = arith.constant 16 : index
    %c0_51 = arith.constant 0 : index
    %96 = vector.load %arg8[%c16_50, %c0_51] : memref<116x64xf32, #tpu.memory_space<vmem>>, vector<89x64xf32>
    tpu.vector_store %arg8[%c16_50, %c0_51], %91 {strides = array<i32>} : memref<116x64xf32, #tpu.memory_space<vmem>>, vector<89x64xf32>,
    %c5_52 = arith.constant 5 : index
    %c0_53 = arith.constant 0 : index
    %97 = vector.load %arg8[%c5_52, %c0_53] : memref<116x64xf32, #tpu.memory_space<vmem>>, vector<89x64xf32>
    %c0_54 = arith.constant 0 : index
    %c0_55 = arith.constant 0 : index
    %98 = vector.load %arg9[%c0_54, %c0_55] : memref<89x576xf32, #tpu.memory_space<vmem>>, vector<89x64xf32>
    tpu.vector_store %arg9[%c0_54, %c0_55], %97 {strides = array<i32>} : memref<89x576xf32, #tpu.memory_space<vmem>>, vector<89x64xf32>,
    %c6_56 = arith.constant 6 : index
    %c0_57 = arith.constant 0 : index
    %99 = vector.load %arg8[%c6_56, %c0_57] : memref<116x64xf32, #tpu.memory_space<vmem>>, vector<89x64xf32>
    %c0_58 = arith.constant 0 : index
    %c64_59 = arith.constant 64 : index
    %100 = vector.load %arg9[%c0_58, %c64_59] : memref<89x576xf32, #tpu.memory_space<vmem>>, vector<89x64xf32>
    tpu.vector_store %arg9[%c0_58, %c64_59], %99 {strides = array<i32>} : memref<89x576xf32, #tpu.memory_space<vmem>>, vector<89x64xf32>,
    %c7_60 = arith.constant 7 : index
    %c0_61 = arith.constant 0 : index
    %101 = vector.load %arg8[%c7_60, %c0_61] : memref<116x64xf32, #tpu.memory_space<vmem>>, vector<89x64xf32>
    %c0_62 = arith.constant 0 : index
    %c128_63 = arith.constant 128 : index
    %102 = vector.load %arg9[%c0_62, %c128_63] : memref<89x576xf32, #tpu.memory_space<vmem>>, vector<89x64xf32>
    tpu.vector_store %arg9[%c0_62, %c128_63], %101 {strides = array<i32>} : memref<89x576xf32, #tpu.memory_space<vmem>>, vector<89x64xf32>,
    %c15_64 = arith.constant 15 : index
    %c0_65 = arith.constant 0 : index
    %103 = vector.load %arg8[%c15_64, %c0_65] : memref<116x64xf32, #tpu.memory_space<vmem>>, vector<89x64xf32>
    %c0_66 = arith.constant 0 : index
    %c192_67 = arith.constant 192 : index
    %104 = vector.load %arg9[%c0_66, %c192_67] : memref<89x576xf32, #tpu.memory_space<vmem>>, vector<89x64xf32>
    tpu.vector_store %arg9[%c0_66, %c192_67], %103 {strides = array<i32>} : memref<89x576xf32, #tpu.memory_space<vmem>>, vector<89x64xf32>,
    %c16_68 = arith.constant 16 : index
    %c0_69 = arith.constant 0 : index
    %105 = vector.load %arg8[%c16_68, %c0_69] : memref<116x64xf32, #tpu.memory_space<vmem>>, vector<89x64xf32>
    %c0_70 = arith.constant 0 : index
    %c256_71 = arith.constant 256 : index
    %106 = vector.load %arg9[%c0_70, %c256_71] : memref<89x576xf32, #tpu.memory_space<vmem>>, vector<89x64xf32>
    tpu.vector_store %arg9[%c0_70, %c256_71], %105 {strides = array<i32>} : memref<89x576xf32, #tpu.memory_space<vmem>>, vector<89x64xf32>,
    %c17_72 = arith.constant 17 : index
    %c0_73 = arith.constant 0 : index
    %107 = vector.load %arg8[%c17_72, %c0_73] : memref<116x64xf32, #tpu.memory_space<vmem>>, vector<89x64xf32>
    %c0_74 = arith.constant 0 : index
    %c320_75 = arith.constant 320 : index
    %108 = vector.load %arg9[%c0_74, %c320_75] : memref<89x576xf32, #tpu.memory_space<vmem>>, vector<89x64xf32>
    tpu.vector_store %arg9[%c0_74, %c320_75], %107 {strides = array<i32>} : memref<89x576xf32, #tpu.memory_space<vmem>>, vector<89x64xf32>,
    %c25_76 = arith.constant 25 : index
    %c0_77 = arith.constant 0 : index
    %109 = vector.load %arg8[%c25_76, %c0_77] : memref<116x64xf32, #tpu.memory_space<vmem>>, vector<89x64xf32>
    %c0_78 = arith.constant 0 : index
    %c384_79 = arith.constant 384 : index
    %110 = vector.load %arg9[%c0_78, %c384_79] : memref<89x576xf32, #tpu.memory_space<vmem>>, vector<89x64xf32>
    tpu.vector_store %arg9[%c0_78, %c384_79], %109 {strides = array<i32>} : memref<89x576xf32, #tpu.memory_space<vmem>>, vector<89x64xf32>,
    %c26_80 = arith.constant 26 : index
    %c0_81 = arith.constant 0 : index
    %111 = vector.load %arg8[%c26_80, %c0_81] : memref<116x64xf32, #tpu.memory_space<vmem>>, vector<89x64xf32>
    %c0_82 = arith.constant 0 : index
    %c448_83 = arith.constant 448 : index
    %112 = vector.load %arg9[%c0_82, %c448_83] : memref<89x576xf32, #tpu.memory_space<vmem>>, vector<89x64xf32>
    tpu.vector_store %arg9[%c0_82, %c448_83], %111 {strides = array<i32>} : memref<89x576xf32, #tpu.memory_space<vmem>>, vector<89x64xf32>,
    %c27_84 = arith.constant 27 : index
    %c0_85 = arith.constant 0 : index
    %113 = vector.load %arg8[%c27_84, %c0_85] : memref<116x64xf32, #tpu.memory_space<vmem>>, vector<89x64xf32>
    %c0_86 = arith.constant 0 : index
    %c512_87 = arith.constant 512 : index
    %114 = vector.load %arg9[%c0_86, %c512_87] : memref<89x576xf32, #tpu.memory_space<vmem>>, vector<89x64xf32>
    tpu.vector_store %arg9[%c0_86, %c512_87], %113 {strides = array<i32>} : memref<89x576xf32, #tpu.memory_space<vmem>>, vector<89x64xf32>,
    %c0_88 = arith.constant 0 : index
    %c0_89 = arith.constant 0 : index
    %115 = vector.load %arg9[%c0_88, %c0_89] : memref<89x576xf32, #tpu.memory_space<vmem>>, vector<89x576xf32>
    %116 = arith.truncf %115 : vector<89x576xf32> to vector<89x576xbf16>
    %c0_90 = arith.constant 0 : index
    %c0_91 = arith.constant 0 : index
    %117 = vector.load %arg4[%c0_90, %c0_91] : memref<576x256xbf16, #tpu.memory_space<vmem>>, vector<576x256xbf16>
    %cst_92 = arith.constant dense<0.000000e+00> : vector<89x256xf32>
    %118 = tpu.matmul %116, %117, %cst_92 {dimension_numbers = #tpu.dot_dimension_numbers<[1], [0], [0], [1], [0, 0, 1, 1], [], []>} : vector<89x576xbf16>, vector<576x256xbf16>, vector<89x256xf32> -> vector<89x256xf32>
    %119 = vector.extract_strided_slice %118 {offsets = [0, 0], sizes = [89, 64], strides = [1, 1]} : vector<89x256xf32> to vector<89x64xf32>
    %120 = vector.extract_strided_slice %118 {offsets = [0, 64], sizes = [89, 64], strides = [1, 1]} : vector<89x256xf32> to vector<89x64xf32>
    %121 = arith.maximumf %119, %120 : vector<89x64xf32>
    %122 = vector.extract_strided_slice %118 {offsets = [0, 128], sizes = [89, 64], strides = [1, 1]} : vector<89x256xf32> to vector<89x64xf32>
    %123 = vector.extract_strided_slice %118 {offsets = [0, 192], sizes = [89, 64], strides = [1, 1]} : vector<89x256xf32> to vector<89x64xf32>
    %124 = arith.maximumf %122, %123 : vector<89x64xf32>
    %125 = arith.maximumf %121, %124 : vector<89x64xf32>
    %c0_93 = arith.constant 0 : index
    %c0_94 = arith.constant 0 : index
    %126 = vector.load %arg5[%c0_93, %c0_94] : memref<1x64xf32, #tpu.memory_space<vmem>>, vector<1x64xf32>
    %127 = vector.broadcast %126 : vector<1x64xf32> to vector<89x64xf32>
    %128 = arith.addf %125, %127 : vector<89x64xf32>
    %cst_95 = arith.constant 2.000000e+01 : f32
    %129 = vector.broadcast %cst_95 : f32 to vector<89x64xf32>
    %130 = arith.cmpf ogt, %128, %129 : vector<89x64xf32>
    %cst_96 = arith.constant 2.000000e+01 : f32
    %131 = vector.broadcast %cst_96 : f32 to vector<89x64xf32>
    %132 = arith.minimumf %128, %131 : vector<89x64xf32>
    %133 = math.exp %132 : vector<89x64xf32>
    %cst_97 = arith.constant 1.000000e+00 : f32
    %134 = vector.broadcast %cst_97 : f32 to vector<89x64xf32>
    %135 = arith.addf %134, %133 : vector<89x64xf32>
    %136 = math.log %135 : vector<89x64xf32>
    %137 = arith.select %130, %128, %136 : vector<89x64xi1>, vector<89x64xf32>
    %cst_98 = arith.constant 0.000000e+00 : f32
    %138 = vector.shape_cast %37 : vector<89x1xi1> to vector<89x1xi1>
    %139 = vector.broadcast %138 : vector<89x1xi1> to vector<89x64xi1>
    %140 = vector.broadcast %cst_98 : f32 to vector<89x64xf32>
    %141 = arith.select %139, %137, %140 : vector<89x64xi1>, vector<89x64xf32>
    %c0_99 = arith.constant 0 : index
    %c0_100 = arith.constant 0 : index
    %c0_101 = arith.constant 0 : index
    %142 = vector.load %arg6[%c0_99, %c0_100, %c0_101] : memref<1x89x64xf32, #tpu.memory_space<vmem>>, vector<1x89x64xf32>
    %143 = vector.shape_cast %142 : vector<1x89x64xf32> to vector<89x64xf32>
    %144 = vector.shape_cast %141 : vector<89x64xf32> to vector<1x89x64xf32>
    tpu.vector_store %arg6[%c0_99, %c0_100, %c0_101], %144 {strides = array<i32>} : memref<1x89x64xf32, #tpu.memory_space<vmem>>, vector<1x89x64xf32>,
    return
  }
  func.func @transform_0(%arg0: i32) -> (i32, i32, i32) {
    %c0_i32 = arith.constant 0 : i32
    %c0_i32_0 = arith.constant 0 : i32
    %c0_i32_1 = arith.constant 0 : i32
    return %arg0, %c0_i32, %c0_i32_0 : i32, i32, i32
  }
  func.func @transform_1(%arg0: i32) -> (i32, i32) {
    %c0_i32 = arith.constant 0 : i32
    %c0_i32_0 = arith.constant 0 : i32
    %c0_i32_1 = arith.constant 0 : i32
    return %c0_i32, %c0_i32_0 : i32, i32
  }
  func.func @transform_2(%arg0: i32) -> (i32, i32) {
    %c0_i32 = arith.constant 0 : i32
    %c0_i32_0 = arith.constant 0 : i32
    %c0_i32_1 = arith.constant 0 : i32
    return %c0_i32, %c0_i32_0 : i32, i32
  }
  func.func @transform_3(%arg0: i32) -> (i32, i32) {
    %c0_i32 = arith.constant 0 : i32
    %c0_i32_0 = arith.constant 0 : i32
    %c0_i32_1 = arith.constant 0 : i32
    return %c0_i32, %c0_i32_0 : i32, i32
  }
  func.func @transform_4(%arg0: i32) -> (i32, i32) {
    %c0_i32 = arith.constant 0 : i32
    %c0_i32_0 = arith.constant 0 : i32
    %c0_i32_1 = arith.constant 0 : i32
    return %c0_i32, %c0_i32_0 : i32, i32
  }
  func.func @transform_5(%arg0: i32) -> (i32, i32, i32) {
    %c0_i32 = arith.constant 0 : i32
    %c0_i32_0 = arith.constant 0 : i32
    %c0_i32_1 = arith.constant 0 : i32
    return %arg0, %c0_i32, %c0_i32_0 : i32, i32, i32
  }
}

module attributes {stable_mosaic.version = 11 : i64} {
  func.func @_fc_head_kernel(%arg0: i32, %arg1: memref<2x5696xf32, #tpu.memory_space<vmem>>, %arg2: memref<5696x128xf32, #tpu.memory_space<vmem>>, %arg3: memref<1x128xf32, #tpu.memory_space<vmem>>, %arg4: memref<128x128xf32, #tpu.memory_space<vmem>>, %arg5: memref<1x128xf32, #tpu.memory_space<vmem>>, %arg6: memref<2x128xf32, #tpu.memory_space<vmem>>) attributes {dimension_semantics = [#tpu.dimension_semantics<arbitrary>], iteration_bounds = array<i64: 1>, scalar_prefetch = 0 : i64, scratch_operands = 0 : i64, tpu.core_type = #tpu.core_type<tc>, window_params = [{pipeline_mode = #tpu.pipeline_mode<synchronous>, transform_indices = @transform_0, window_bounds = array<i64: 2, 5696>}, {pipeline_mode = #tpu.pipeline_mode<synchronous>, transform_indices = @transform_1, window_bounds = array<i64: 5696, 128>}, {pipeline_mode = #tpu.pipeline_mode<synchronous>, transform_indices = @transform_2, window_bounds = array<i64: 1, 128>}, {pipeline_mode = #tpu.pipeline_mode<synchronous>, transform_indices = @transform_3, window_bounds = array<i64: 128, 128>}, {pipeline_mode = #tpu.pipeline_mode<synchronous>, transform_indices = @transform_4, window_bounds = array<i64: 1, 128>}, {pipeline_mode = #tpu.pipeline_mode<synchronous>, transform_indices = @transform_5, window_bounds = array<i64: 2, 128>}]} {
    %c0 = arith.constant 0 : index
    %c0_0 = arith.constant 0 : index
    %0 = vector.load %arg1[%c0, %c0_0] : memref<2x5696xf32, #tpu.memory_space<vmem>>, vector<2x5696xf32>
    %c0_1 = arith.constant 0 : index
    %c0_2 = arith.constant 0 : index
    %1 = vector.load %arg2[%c0_1, %c0_2] : memref<5696x128xf32, #tpu.memory_space<vmem>>, vector<5696x128xf32>
    %cst = arith.constant dense<0.000000e+00> : vector<2x128xf32>
    %2 = tpu.matmul %0, %1, %cst {dimension_numbers = #tpu.dot_dimension_numbers<[1], [0], [0], [1], [0, 0, 1, 1], [], []>} : vector<2x5696xf32>, vector<5696x128xf32>, vector<2x128xf32> -> vector<2x128xf32>
    %c0_3 = arith.constant 0 : index
    %c0_4 = arith.constant 0 : index
    %3 = vector.load %arg3[%c0_3, %c0_4] : memref<1x128xf32, #tpu.memory_space<vmem>>, vector<1x128xf32>
    %4 = vector.broadcast %3 : vector<1x128xf32> to vector<2x128xf32>
    %5 = arith.addf %2, %4 : vector<2x128xf32>
    %cst_5 = arith.constant 2.000000e+01 : f32
    %6 = vector.broadcast %cst_5 : f32 to vector<2x128xf32>
    %7 = arith.cmpf ogt, %5, %6 : vector<2x128xf32>
    %cst_6 = arith.constant 2.000000e+01 : f32
    %8 = vector.broadcast %cst_6 : f32 to vector<2x128xf32>
    %9 = arith.minimumf %5, %8 : vector<2x128xf32>
    %10 = math.exp %9 : vector<2x128xf32>
    %cst_7 = arith.constant 1.000000e+00 : f32
    %11 = vector.broadcast %cst_7 : f32 to vector<2x128xf32>
    %12 = arith.addf %11, %10 : vector<2x128xf32>
    %13 = math.log %12 : vector<2x128xf32>
    %14 = arith.select %7, %5, %13 : vector<2x128xi1>, vector<2x128xf32>
    %c0_8 = arith.constant 0 : index
    %c0_9 = arith.constant 0 : index
    %15 = vector.load %arg4[%c0_8, %c0_9] : memref<128x128xf32, #tpu.memory_space<vmem>>, vector<128x128xf32>
    %cst_10 = arith.constant dense<0.000000e+00> : vector<2x128xf32>
    %16 = tpu.matmul %14, %15, %cst_10 {dimension_numbers = #tpu.dot_dimension_numbers<[1], [0], [0], [1], [0, 0, 1, 1], [], []>} : vector<2x128xf32>, vector<128x128xf32>, vector<2x128xf32> -> vector<2x128xf32>
    %c0_11 = arith.constant 0 : index
    %c0_12 = arith.constant 0 : index
    %17 = vector.load %arg5[%c0_11, %c0_12] : memref<1x128xf32, #tpu.memory_space<vmem>>, vector<1x128xf32>
    %18 = vector.broadcast %17 : vector<1x128xf32> to vector<2x128xf32>
    %19 = arith.addf %16, %18 : vector<2x128xf32>
    %20 = tpu.iota {dimensions = array<i32: 1>} : vector<2x128xi32>
    %c8_i32 = arith.constant 8 : i32
    %21 = vector.broadcast %c8_i32 : i32 to vector<2x128xi32>
    %22 = arith.cmpi sge, %20, %21 : vector<2x128xi32>
    %c16_i32 = arith.constant 16 : i32
    %23 = vector.broadcast %c16_i32 : i32 to vector<2x128xi32>
    %24 = arith.cmpi slt, %20, %23 : vector<2x128xi32>
    %25 = arith.andi %22, %24 : vector<2x128xi1>
    %26 = math.exp %19 : vector<2x128xf32>
    %27 = arith.select %25, %26, %19 : vector<2x128xi1>, vector<2x128xf32>
    %c0_13 = arith.constant 0 : index
    %c0_14 = arith.constant 0 : index
    %28 = vector.load %arg6[%c0_13, %c0_14] : memref<2x128xf32, #tpu.memory_space<vmem>>, vector<2x128xf32>
    tpu.vector_store %arg6[%c0_13, %c0_14], %27 {strides = array<i32>} : memref<2x128xf32, #tpu.memory_space<vmem>>, vector<2x128xf32>,
    return
  }
  func.func @transform_0(%arg0: i32) -> (i32, i32) {
    %c0_i32 = arith.constant 0 : i32
    %c0_i32_0 = arith.constant 0 : i32
    %c0_i32_1 = arith.constant 0 : i32
    return %c0_i32, %c0_i32_0 : i32, i32
  }
  func.func @transform_1(%arg0: i32) -> (i32, i32) {
    %c0_i32 = arith.constant 0 : i32
    %c0_i32_0 = arith.constant 0 : i32
    %c0_i32_1 = arith.constant 0 : i32
    return %c0_i32, %c0_i32_0 : i32, i32
  }
  func.func @transform_2(%arg0: i32) -> (i32, i32) {
    %c0_i32 = arith.constant 0 : i32
    %c0_i32_0 = arith.constant 0 : i32
    %c0_i32_1 = arith.constant 0 : i32
    return %c0_i32, %c0_i32_0 : i32, i32
  }
  func.func @transform_3(%arg0: i32) -> (i32, i32) {
    %c0_i32 = arith.constant 0 : i32
    %c0_i32_0 = arith.constant 0 : i32
    %c0_i32_1 = arith.constant 0 : i32
    return %c0_i32, %c0_i32_0 : i32, i32
  }
  func.func @transform_4(%arg0: i32) -> (i32, i32) {
    %c0_i32 = arith.constant 0 : i32
    %c0_i32_0 = arith.constant 0 : i32
    %c0_i32_1 = arith.constant 0 : i32
    return %c0_i32, %c0_i32_0 : i32, i32
  }
  func.func @transform_5(%arg0: i32) -> (i32, i32) {
    %c0_i32 = arith.constant 0 : i32
    %c0_i32_0 = arith.constant 0 : i32
    %c0_i32_1 = arith.constant 0 : i32
    return %c0_i32, %c0_i32_0 : i32, i32
  }
}

</mosaic_0001>

<bundles_post_ra>
// kernel: _encoder_forward_impl.3
= control target key start
LH: loop header
LB: loop body
LE: loop exit
PB: predicated region body
PF: predicated region fallthrough
CT: control target
= control target key end

     0   :  { %v4343_v43 = vmov 1983009808   ;;  %v767_v45 = vlaneseq  ;;  %vm4345_vm0 = vmmov 0   ;;  %vm1001_vm1 = vcmask 523264   ;;  %s6753_s1 = inlined_call_operand.vmem [shape: f32[5696,128], index: 1, kind: input, shape index: {}]   ;;  %s6754_s0 = inlined_call_operand.vmem [shape: f32[2,5696], index: 0, kind: input, shape index: {}]   ;;  %s6755_s2 = inlined_call_operand.vmem [shape: f32[1,128], index: 2, kind: input, shape index: {}]   ;;  %s6756_s3 = inlined_call_operand.vmem [shape: f32[128,128], index: 3, kind: input, shape index: {}]   ;;  %s6757_s4 = inlined_call_operand.vmem [shape: f32[1,128], index: 4, kind: input, shape index: {}]   ;;  %s6758_s5 = inlined_call_operand.vmem [shape: f32[2,128], index: 5, kind: output, shape index: {}]  }
   0x1   :  { %v48_v0 = vld [vmem:[%s6753_s1 + $0x80] sm:$0xff]  ;;  %v49_v1 = vld [vmem:[%s6753_s1 + $0x88] sm:$0xff]  ;;  %v50_v11 = vld [vmem:[%s6753_s1 + $0x90] sm:$0xff]  ;;  %v765_v44 = vunpack.c.l.s4 %v4343_v43 }
   0x2   :  { %v32_v2 = vld [vmem:[%s6753_s1] sm:$0xff]  ;;  %v3582_v3 = vpack.c.bf16 %v49_v1, %v48_v0  ;;  %v33_v4 = vld [vmem:[%s6753_s1 + $0x8] sm:$0xff]  ;;  %v51_v13 = vld [vmem:[%s6753_s1 + $0x98] sm:$0xff]  ;;  %v768_v60 = vshrl.u32 %v767_v45, 7 }
   0x3   :  { %v80_v5 = vld [vmem:[%s6753_s1 + $0x180] sm:$0xff]  ;;  %v81_v6 = vld [vmem:[%s6753_s1 + $0x188] sm:$0xff]  ;;  %v3584_v7 = vpack.c.bf16 %v33_v4, %v32_v2  ;;  %v34_v14 = vld [vmem:[%s6753_s1 + $0x10] sm:$0xff]  ;;  %v3586_v16 = vpack.c.bf16 %v51_v13, %v50_v11  ;;  %v766_v59 = vunpack.c.0.s8 %v765_v44 }
   0x4   :  { %v3614_v8 = vpack.c.bf16 %v81_v6, %v80_v5  ;;  %v64_v9 = vld [vmem:[%s6753_s1 + $0x100] sm:$0xff]  ;;  %v65_v10 = vld [vmem:[%s6753_s1 + $0x108] sm:$0xff]  ;;  %3583 = vmatprep.subr.bf16.mxu0 %v3582_v3  ;;  %v35_v15 = vld [vmem:[%s6753_s1 + $0x18] sm:$0xff] }
   0x5   :  { %v3616_v12 = vpack.c.bf16 %v65_v10, %v64_v9  ;;  %3585 = vmatpush3.bf16.msra.mxu0 %v3584_v7  ;;  %v3588_v17 = vpack.c.bf16 %v35_v15, %v34_v14  ;;  %v82_v18 = vld [vmem:[%s6753_s1 + $0x190] sm:$0xff]  ;;  %v83_v19 = vld [vmem:[%s6753_s1 + $0x198] sm:$0xff]  ;;  %v52_v23 = vld [vmem:[%s6753_s1 + $0xa0] sm:$0xff]  ;;  %v4522_v10 = vsub.s32 %v766_v59, %v768_v60 }
   0x6   :  { %3615 = vmatprep.subr.bf16.mxu1 %v3614_v8  ;;  %v66_v20 = vld [vmem:[%s6753_s1 + $0x110] sm:$0xff]  ;;  %v3618_v21 = vpack.c.bf16 %v83_v19, %v82_v18  ;;  %v67_v22 = vld [vmem:[%s6753_s1 + $0x118] sm:$0xff]  ;;  %v53_v24 = vld [vmem:[%s6753_s1 + $0xa8] sm:$0xff]  ;;  %3587 = vmatprep.subr.bf16.mxu0 %v3586_v16 }
   0x7   :  { %3617 = vmatpush3.bf16.msra.mxu1 %v3616_v12  ;;  %v3620_v25 = vpack.c.bf16 %v67_v22, %v66_v20  ;;  %v3590_v26 = vpack.c.bf16 %v53_v24, %v52_v23  ;;  %v36_v27 = vld [vmem:[%s6753_s1 + $0x20] sm:$0xff]  ;;  %v37_v28 = vld [vmem:[%s6753_s1 + $0x28] sm:$0xff]  ;;  %v54_v35 = vld [vmem:[%s6753_s1 + $0xb0] sm:$0xff] }
   0x8   :  { %v84_v29 = vld [vmem:[%s6753_s1 + $0x1a0] sm:$0xff]  ;;  %3619 = vmatprep.subr.bf16.mxu1 %v3618_v21  ;;  %v85_v30 = vld [vmem:[%s6753_s1 + $0x1a8] sm:$0xff]  ;;  %v3592_v33 = vpack.c.bf16 %v37_v28, %v36_v27  ;;  %v55_v36 = vld [vmem:[%s6753_s1 + $0xb8] sm:$0xff] }
   0x9   :  { %v68_v31 = vld [vmem:[%s6753_s1 + $0x120] sm:$0xff]  ;;  %v69_v32 = vld [vmem:[%s6753_s1 + $0x128] sm:$0xff]  ;;  %3589 = vmatpush3.bf16.msra.mxu0 %v3588_v17  ;;  %v3622_v34 = vpack.c.bf16 %v85_v30, %v84_v29  ;;  %v38_v37 = vld [vmem:[%s6753_s1 + $0x30] sm:$0xff]  ;;  %v3594_v39 = vpack.c.bf16 %v55_v36, %v54_v35 }
   0xa   :  { %3591 = vmatprep.subr.bf16.mxu0 %v3590_v26  ;;  %v3624_v38 = vpack.c.bf16 %v69_v32, %v68_v31  ;;  %v39_v40 = vld [vmem:[%s6753_s1 + $0x38] sm:$0xff]  ;;  %v86_v41 = vld [vmem:[%s6753_s1 + $0x1b0] sm:$0xff]  ;;  %v56_v49 = vld [vmem:[%s6753_s1 + $0xc0] sm:$0xff] }
   0xb   :  { %3621 = vmatpush3.bf16.msra.mxu1 %v3620_v25  ;;  %v87_v42 = vld [vmem:[%s6753_s1 + $0x1b8] sm:$0xff]  ;;  %v70_v47 = vld [vmem:[%s6753_s1 + $0x130] sm:$0xff]  ;;  %v57_v50 = vld [vmem:[%s6753_s1 + $0xc8] sm:$0xff]  ;;  %v3596_v51 = vpack.c.bf16 %v39_v40, %v38_v37 }
   0xc   :  { %3623 = vmatprep.subr.bf16.mxu1 %v3622_v34  ;;  %v3626_v46 = vpack.c.bf16 %v87_v42, %v86_v41  ;;  %v71_v48 = vld [vmem:[%s6753_s1 + $0x138] sm:$0xff]  ;;  %v88_v52 = vld [vmem:[%s6753_s1 + $0x1c0] sm:$0xff]  ;;  %v89_v53 = vld [vmem:[%s6753_s1 + $0x1c8] sm:$0xff]  ;;  %v3598_v55 = vpack.c.bf16 %v57_v50, %v56_v49 }
   0xd   :  { %3593 = vmatpush3.bf16.msra.mxu0 %v3592_v33  ;;  %v3628_v54 = vpack.c.bf16 %v71_v48, %v70_v47  ;;  %v40_v56 = vld [vmem:[%s6753_s1 + $0x40] sm:$0xff]  ;;  %v41_v57 = vld [vmem:[%s6753_s1 + $0x48] sm:$0xff]  ;;  %v3630_v61 = vpack.c.bf16 %v89_v53, %v88_v52  ;;  %v58_v63 = vld [vmem:[%s6753_s1 + $0xd0] sm:$0xff] }
   0xe   :  { %3595 = vmatprep.subr.bf16.mxu0 %v3594_v39  ;;  %v72_v58 = vld [vmem:[%s6753_s1 + $0x140] sm:$0xff]  ;;  %v73_v62 = vld [vmem:[%s6753_s1 + $0x148] sm:$0xff]  ;;  %v59_v0 = vld [vmem:[%s6753_s1 + $0xd8] sm:$0xff]  ;;  %v3600_v3 = vpack.c.bf16 %v41_v57, %v40_v56 }
   0xf   :  { %3625 = vmatpush3.bf16.msra.mxu1 %v3624_v38  ;;  %v90_v1 = vld [vmem:[%s6753_s1 + $0x1d0] sm:$0xff]  ;;  %v91_v2 = vld [vmem:[%s6753_s1 + $0x1d8] sm:$0xff]  ;;  %v3632_v5 = vpack.c.bf16 %v73_v62, %v72_v58  ;;  %v3602_v6 = vpack.c.bf16 %v59_v0, %v58_v63  ;;  %v60_v12 = vld [vmem:[%s6753_s1 + $0xe0] sm:$0xff] }
  0x10   :  { %3627 = vmatprep.subr.bf16.mxu1 %v3626_v46  ;;  %v42_v4 = vld [vmem:[%s6753_s1 + $0x50] sm:$0xff]  ;;  %v43_v7 = vld [vmem:[%s6753_s1 + $0x58] sm:$0xff]  ;;  %v3634_v11 = vpack.c.bf16 %v91_v2, %v90_v1  ;;  %v61_v13 = vld [vmem:[%s6753_s1 + $0xe8] sm:$0xff] }
  0x11   :  { %3597 = vmatpush3.bf16.msra.mxu0 %v3596_v51  ;;  %v74_v8 = vld [vmem:[%s6753_s1 + $0x150] sm:$0xff]  ;;  %v75_v9 = vld [vmem:[%s6753_s1 + $0x158] sm:$0xff]  ;;  %v92_v14 = vld [vmem:[%s6753_s1 + $0x1e0] sm:$0xff]  ;;  %v3604_v16 = vpack.c.bf16 %v43_v7, %v42_v4  ;;  %v3606_v19 = vpack.c.bf16 %v61_v13, %v60_v12 }
  0x12   :  { %3599 = vmatprep.subr.bf16.mxu0 %v3598_v55  ;;  %v93_v15 = vld [vmem:[%s6753_s1 + $0x1e8] sm:$0xff]  ;;  %v3636_v17 = vpack.c.bf16 %v75_v9, %v74_v8  ;;  %v20_v18 = vld [vmem:[%s6754_s0] sm:$0xff]  ;;  %v62_v27 = vld [vmem:[%s6753_s1 + $0xf0] sm:$0xff] }
  0x13   :  { %3629 = vmatpush3.bf16.msra.mxu1 %v3628_v54  ;;  %v44_v20 = vld [vmem:[%s6753_s1 + $0x60] sm:$0xff]  ;;  %v45_v21 = vld [vmem:[%s6753_s1 + $0x68] sm:$0xff]  ;;  %v770_v23 = vrot.slane %v20_v18, %v4522_v10  ;;  %v763_v24 = vcombine.high %v20_v18, %v20_v18  ;;  %v3638_v25 = vpack.c.bf16 %v93_v15, %v92_v14  ;;  %v63_v28 = vld [vmem:[%s6753_s1 + $0xf8] sm:$0xff] }
  0x14   :  { %3631 = vmatprep.subr.bf16.mxu1 %v3630_v61  ;;  %v76_v22 = vld [vmem:[%s6753_s1 + $0x160] sm:$0xff]  ;;  %v77_v26 = vld [vmem:[%s6753_s1 + $0x168] sm:$0xff]  ;;  %v94_v29 = vld [vmem:[%s6753_s1 + $0x1f0] sm:$0xff]  ;;  %v3608_v33 = vpack.c.bf16 %v45_v21, %v44_v20  ;;  %v3610_v35 = vpack.c.bf16 %v63_v28, %v62_v27 }
  0x15   :  { %3601 = vmatpush3.bf16.msra.mxu0 %v3600_v3  ;;  %v95_v30 = vld [vmem:[%s6753_s1 + $0x1f8] sm:$0xff]  ;;  %v778_v31 = vcombine.high %v770_v23, %v770_v23  ;;  %v777_v32 = vrot.slane %v763_v24, %v4522_v10  ;;  %v3640_v34 = vpack.c.bf16 %v77_v26, %v76_v22  ;;  %v46_v36 = vld [vmem:[%s6753_s1 + $0x70] sm:$0xff]  ;;  %v112_v42 = vld [vmem:[%s6753_s1 + $0x280] sm:$0xff] }
  0x16   :  { %3603 = vmatprep.subr.bf16.mxu0 %v3602_v6  ;;  %v47_v37 = vld [vmem:[%s6753_s1 + $0x78] sm:$0xff]  ;;  %v78_v38 = vld [vmem:[%s6753_s1 + $0x170] sm:$0xff]  ;;  %v3642_v40 = vpack.c.bf16 %v95_v30, %v94_v29  ;;  %v113_v43 = vld [vmem:[%s6753_s1 + $0x288] sm:$0xff] }
  0x17   :  { %3633 = vmatpush3.bf16.msra.mxu1 %v3632_v5  ;;  %v779_v39 = vcombine.high %v777_v32, %v777_v32  ;;  %1068 = vmatprep.mubr.f32.mxu0 %v778_v31  ;;  %v79_v41 = vld [vmem:[%s6753_s1 + $0x178] sm:$0xff]  ;;  %v144_v44 = vld [vmem:[%s6753_s1 + $0x380] sm:$0xff]  ;;  %v145_v46 = vld [vmem:[%s6753_s1 + $0x388] sm:$0xff]  ;;  %v3612_v47 = vpack.c.bf16 %v47_v37, %v46_v36  ;;  %v3646_v49 = vpack.c.bf16 %v113_v43, %v112_v42 }
  0x18   :  { %3635 = vmatprep.subr.bf16.mxu1 %v3634_v11  ;;  %v3644_v48 = vpack.c.bf16 %v79_v41, %v78_v38  ;;  %v96_v50 = vld [vmem:[%s6753_s1 + $0x200] sm:$0xff]  ;;  %v97_v51 = vld [vmem:[%s6753_s1 + $0x208] sm:$0xff]  ;;  %v3678_v53 = vpack.c.bf16 %v145_v46, %v144_v44  ;;  %v114_v55 = vld [vmem:[%s6753_s1 + $0x290] sm:$0xff] }
  0x19   :  { %3605 = vmatpush3.bf16.msra.mxu0 %v3604_v16  ;;  %1138 = vmatprep.mubr.f32.mxu1 %v779_v39  ;;  %v128_v52 = vld [vmem:[%s6753_s1 + $0x300] sm:$0xff]  ;;  %v129_v54 = vld [vmem:[%s6753_s1 + $0x308] sm:$0xff]  ;;  %v115_v56 = vld [vmem:[%s6753_s1 + $0x298] sm:$0xff]  ;;  %v3648_v59 = vpack.c.bf16 %v97_v51, %v96_v50 }
  0x1a   :  { %3607 = vmatprep.subr.bf16.mxu0 %v3606_v19  ;;  %v146_v57 = vld [vmem:[%s6753_s1 + $0x390] sm:$0xff]  ;;  %v147_v58 = vld [vmem:[%s6753_s1 + $0x398] sm:$0xff]  ;;  %v3680_v60 = vpack.c.bf16 %v129_v54, %v128_v52  ;;  %v3650_v61 = vpack.c.bf16 %v115_v56, %v114_v55  ;;  %v116_v3 = vld [vmem:[%s6753_s1 + $0x2a0] sm:$0xff] }
  0x1b   :  { %3637 = vmatpush3.bf16.msra.mxu1 %v3636_v17  ;;  %v98_v62 = vld [vmem:[%s6753_s1 + $0x210] sm:$0xff]  ;;  %v99_v63 = vld [vmem:[%s6753_s1 + $0x218] sm:$0xff]  ;;  %v3682_v1 = vpack.c.bf16 %v147_v58, %v146_v57  ;;  %v117_v4 = vld [vmem:[%s6753_s1 + $0x2a8] sm:$0xff] }
  0x1c   :  { %3639 = vmatprep.subr.bf16.mxu1 %v3638_v25  ;;  %v130_v0 = vld [vmem:[%s6753_s1 + $0x310] sm:$0xff]  ;;  %v131_v2 = vld [vmem:[%s6753_s1 + $0x318] sm:$0xff]  ;;  %v148_v5 = vld [vmem:[%s6753_s1 + $0x3a0] sm:$0xff]  ;;  %v3652_v7 = vpack.c.bf16 %v99_v63, %v98_v62  ;;  %v3654_v9 = vpack.c.bf16 %v117_v4, %v116_v3 }
  0x1d   :  { %3609 = vmatpush3.bf16.msra.mxu0 %v3608_v33  ;;  %v149_v6 = vld [vmem:[%s6753_s1 + $0x3a8] sm:$0xff]  ;;  %v3684_v8 = vpack.c.bf16 %v131_v2, %v130_v0  ;;  %v100_v11 = vld [vmem:[%s6753_s1 + $0x220] sm:$0xff]  ;;  %v118_v16 = vld [vmem:[%s6753_s1 + $0x2b0] sm:$0xff] }
  0x1e   :  { %3611 = vmatprep.subr.bf16.mxu0 %v3610_v35  ;;  %v101_v12 = vld [vmem:[%s6753_s1 + $0x228] sm:$0xff]  ;;  %v132_v13 = vld [vmem:[%s6753_s1 + $0x320] sm:$0xff]  ;;  %v3686_v14 = vpack.c.bf16 %v149_v6, %v148_v5  ;;  %v119_v17 = vld [vmem:[%s6753_s1 + $0x2b8] sm:$0xff] }
  0x1f   :  { %3641 = vmatpush3.bf16.msra.mxu1 %v3640_v34  ;;  %v133_v15 = vld [vmem:[%s6753_s1 + $0x328] sm:$0xff]  ;;  %v150_v18 = vld [vmem:[%s6753_s1 + $0x3b0] sm:$0xff]  ;;  %v151_v19 = vld [vmem:[%s6753_s1 + $0x3b8] sm:$0xff]  ;;  %v3656_v20 = vpack.c.bf16 %v101_v12, %v100_v11 }
  0x20   :  { %3643 = vmatprep.subr.bf16.mxu1 %v3642_v40  ;;  %v102_v21 = vld [vmem:[%s6753_s1 + $0x230] sm:$0xff]  ;;  %v3688_v22 = vpack.c.bf16 %v133_v15, %v132_v13  ;;  %v103_v24 = vld [vmem:[%s6753_s1 + $0x238] sm:$0xff]  ;;  %v3690_v27 = vpack.c.bf16 %v151_v19, %v150_v18  ;;  %v120_v28 = vld [vmem:[%s6753_s1 + $0x2c0] sm:$0xff] }
  0x21   :  { %3613 = vmatpush3.bf16.msra.mxu0 %v3612_v47  ;;  %v134_v25 = vld [vmem:[%s6753_s1 + $0x330] sm:$0xff]  ;;  %v135_v26 = vld [vmem:[%s6753_s1 + $0x338] sm:$0xff]  ;;  %v121_v29 = vld [vmem:[%s6753_s1 + $0x2c8] sm:$0xff]  ;;  %v3660_v35 = vpack.c.bf16 %v103_v24, %v102_v21 }
  0x22   :  { %3647 = vmatprep.subr.bf16.mxu0 %v3646_v49  ;;  %v21_v30 = vld [vmem:[%s6754_s0 + $0x8] sm:$0xff]  ;;  %v152_v31 = vld [vmem:[%s6753_s1 + $0x3c0] sm:$0xff]  ;;  %v3692_v36 = vpack.c.bf16 %v135_v26, %v134_v25  ;;  %v3662_v37 = vpack.c.bf16 %v121_v29, %v120_v28  ;;  %v122_v46 = vld [vmem:[%s6753_s1 + $0x2d0] sm:$0xff] }
  0x23   :  { %3645 = vmatpush3.bf16.msra.mxu1 %v3644_v48  ;;  %v4689_v33 = vrot.slane %v21_v30, %v4522_v10  ;;  %v780_v34 = vcombine.high %v21_v30, %v21_v30  ;;  %v104_v38 = vld [vmem:[%s6753_s1 + $0x240] sm:$0xff]  ;;  %v105_v39 = vld [vmem:[%s6753_s1 + $0x248] sm:$0xff]  ;;  %v123_v47 = vld [vmem:[%s6753_s1 + $0x2d8] sm:$0xff] }
  0x24   :  { %3679 = vmatprep.subr.bf16.mxu1 %v3678_v53  ;;  %1069 = vmatmul.mubr.f32.vlgmr.msra.gmra.mrb[0].mxu0 %v770_v23  ;;  %v3658_v23 = vpack.c.bf16 %v119_v17, %v118_v16  ;;  %v136_v40 = vld [vmem:[%s6753_s1 + $0x340] sm:$0xff]  ;;  %v137_v44 = vld [vmem:[%s6753_s1 + $0x348] sm:$0xff]  ;;  %v154_v48 = vld [vmem:[%s6753_s1 + $0x3d0] sm:$0xff]  ;;  %v3664_v51 = vpack.c.bf16 %v105_v39, %v104_v38  ;;  %v3666_v53 = vpack.c.bf16 %v123_v47, %v122_v46 }
  0x25   :  { %3649 = vmatpush3.bf16.msra.mxu0 %v3648_v59  ;;  %v795_v41 = vcombine.high %v4689_v33, %v4689_v33  ;;  %v4703_v42 = vrot.slane %v780_v34, %v4522_v10  ;;  %v155_v49 = vld [vmem:[%s6753_s1 + $0x3d8] sm:$0xff]  ;;  %v3696_v52 = vpack.c.bf16 %v137_v44, %v136_v40  ;;  %v106_v54 = vld [vmem:[%s6753_s1 + $0x250] sm:$0xff]  ;;  %v124_v59 = vld [vmem:[%s6753_s1 + $0x2e0] sm:$0xff] }
  0x26   :  { %1139 = vmatmul.mubr.f32.vlgmr.msra.gmra.mrb[0].mxu1 %v777_v32  ;;  %3651 = vmatprep.subr.bf16.mxu0 %v3650_v61  ;;  %v153_v32 = vld [vmem:[%s6753_s1 + $0x3c8] sm:$0xff]  ;;  %v107_v55 = vld [vmem:[%s6753_s1 + $0x258] sm:$0xff]  ;;  %v138_v56 = vld [vmem:[%s6753_s1 + $0x350] sm:$0xff]  ;;  %v3698_v57 = vpack.c.bf16 %v155_v49, %v154_v48 }
  0x27   :  { %3681 = vmatpush3.bf16.msra.mxu1 %v3680_v60  ;;  %v3694_v43 = vpack.c.bf16 %v153_v32, %v152_v31  ;;  %1208 = vmatprep.mubr.f32.mxu0 %v795_v41  ;;  %v796_v50 = vcombine.high %v4703_v42, %v4703_v42  ;;  %v139_v58 = vld [vmem:[%s6753_s1 + $0x358] sm:$0xff]  ;;  %v125_v60 = vld [vmem:[%s6753_s1 + $0x2e8] sm:$0xff]  ;;  %v156_v61 = vld [vmem:[%s6753_s1 + $0x3e0] sm:$0xff]  ;;  %v3668_v63 = vpack.c.bf16 %v107_v55, %v106_v54 }
  0x28   :  { %3683 = vmatprep.subr.bf16.mxu1 %v3682_v1  ;;  %v157_v62 = vld [vmem:[%s6753_s1 + $0x3e8] sm:$0xff]  ;;  %v3700_v0 = vpack.c.bf16 %v139_v58, %v138_v56  ;;  %v3670_v1 = vpack.c.bf16 %v125_v60, %v124_v59  ;;  %v108_v2 = vld [vmem:[%s6753_s1 + $0x260] sm:$0xff]  ;;  %v159_v11 = vld [vmem:[%s6753_s1 + $0x3f8] sm:$0xff] }
  0x29   :  { %3653 = vmatpush3.bf16.msra.mxu0 %v3652_v7  ;;  %1278 = vmatprep.mubr.f32.mxu1 %v796_v50  ;;  %v109_v3 = vld [vmem:[%s6753_s1 + $0x268] sm:$0xff]  ;;  %v140_v4 = vld [vmem:[%s6753_s1 + $0x360] sm:$0xff]  ;;  %v3702_v5 = vpack.c.bf16 %v157_v62, %v156_v61  ;;  %v126_v7 = vld [vmem:[%s6753_s1 + $0x2f0] sm:$0xff] }
  0x2a   :  { %3655 = vmatprep.subr.bf16.mxu0 %v3654_v9  ;;  %v141_v6 = vld [vmem:[%s6753_s1 + $0x368] sm:$0xff]  ;;  %v158_v9 = vld [vmem:[%s6753_s1 + $0x3f0] sm:$0xff]  ;;  %v3672_v12 = vpack.c.bf16 %v109_v3, %v108_v2  ;;  %v111_v16 = vld [vmem:[%s6753_s1 + $0x278] sm:$0xff] }
  0x2b   :  { %3685 = vmatpush3.bf16.msra.mxu1 %v3684_v8  ;;  %v127_v8 = vld [vmem:[%s6753_s1 + $0x2f8] sm:$0xff]  ;;  %v3704_v13 = vpack.c.bf16 %v141_v6, %v140_v4  ;;  %v110_v15 = vld [vmem:[%s6753_s1 + $0x270] sm:$0xff]  ;;  %v3706_v18 = vpack.c.bf16 %v159_v11, %v158_v9  ;;  %v177_v21 = vld [vmem:[%s6753_s1 + $0x488] sm:$0xff] }
  0x2c   :  { %3687 = vmatprep.subr.bf16.mxu1 %v3686_v14  ;;  %v3674_v14 = vpack.c.bf16 %v127_v8, %v126_v7  ;;  %v142_v17 = vld [vmem:[%s6753_s1 + $0x370] sm:$0xff]  ;;  %v143_v19 = vld [vmem:[%s6753_s1 + $0x378] sm:$0xff]  ;;  %v3676_v24 = vpack.c.bf16 %v111_v16, %v110_v15  ;;  %v160_v25 = vld [vmem:[%s6753_s1 + $0x400] sm:$0xff] }
  0x2d   :  { %3657 = vmatpush3.bf16.msra.mxu0 %v3656_v20  ;;  %v176_v20 = vld [vmem:[%s6753_s1 + $0x480] sm:$0xff]  ;;  %v3708_v26 = vpack.c.bf16 %v143_v19, %v142_v17  ;;  %v161_v28 = vld [vmem:[%s6753_s1 + $0x408] sm:$0xff]  ;;  %v178_v32 = vld [vmem:[%s6753_s1 + $0x490] sm:$0xff] }
  0x2e   :  { %3659 = vmatprep.subr.bf16.mxu0 %v3658_v23  ;;  %v209_v23 = vld [vmem:[%s6753_s1 + $0x588] sm:$0xff]  ;;  %v192_v29 = vld [vmem:[%s6753_s1 + $0x500] sm:$0xff]  ;;  %v179_v34 = vld [vmem:[%s6753_s1 + $0x498] sm:$0xff] }
  0x2f   :  { %3689 = vmatpush3.bf16.msra.mxu1 %v3688_v22  ;;  %v208_v22 = vld [vmem:[%s6753_s1 + $0x580] sm:$0xff]  ;;  %v193_v30 = vld [vmem:[%s6753_s1 + $0x508] sm:$0xff]  ;;  %v22_v39 = vld [vmem:[%s6754_s0 + $0x10] sm:$0xff]  ;;  %v3714_v40 = vpack.c.bf16 %v179_v34, %v178_v32 }
  0x30   :  { %3691 = vmatprep.subr.bf16.mxu1 %v3690_v27  ;;  %v3710_v27 = vpack.c.bf16 %v177_v21, %v176_v20  ;;  %v3742_v31 = vpack.c.bf16 %v209_v23, %v208_v22  ;;  %v3744_v38 = vpack.c.bf16 %v193_v30, %v192_v29  ;;  %v162_v41 = vld [vmem:[%s6753_s1 + $0x410] sm:$0xff]  ;;  %v4831_v46 = vrot.slane %v22_v39, %v4522_v10  ;;  %v195_v49 = vld [vmem:[%s6753_s1 + $0x518] sm:$0xff]  ;;  %v180_v50 = vld [vmem:[%s6753_s1 + $0x4a0] sm:$0xff] }
  0x31   :  { %3661 = vmatpush3.bf16.msra.mxu0 %v3660_v35  ;;  %v210_v35 = vld [vmem:[%s6753_s1 + $0x590] sm:$0xff]  ;;  %v797_v47 = vcombine.high %v22_v39, %v22_v39  ;;  %v164_v58 = vld [vmem:[%s6753_s1 + $0x420] sm:$0xff]  ;;  %v165_v59 = vld [vmem:[%s6753_s1 + $0x428] sm:$0xff] }
  0x32   :  { %3663 = vmatprep.subr.bf16.mxu0 %v3662_v37  ;;  %v3712_v37 = vpack.c.bf16 %v161_v28, %v160_v25  ;;  %v194_v44 = vld [vmem:[%s6753_s1 + $0x510] sm:$0xff]  ;;  %v812_v54 = vcombine.high %v4831_v46, %v4831_v46  ;;  %v196_v60 = vld [vmem:[%s6753_s1 + $0x520] sm:$0xff]  ;;  %v197_v62 = vld [vmem:[%s6753_s1 + $0x528] sm:$0xff]  ;;  %v3720_v3 = vpack.c.bf16 %v165_v59, %v164_v58 }
  0x33   :  { %3693 = vmatpush3.bf16.msra.mxu1 %v3692_v36  ;;  %v211_v36 = vld [vmem:[%s6753_s1 + $0x598] sm:$0xff]  ;;  %v4852_v55 = vrot.slane %v797_v47, %v4522_v10  ;;  %v3752_v4 = vpack.c.bf16 %v197_v62, %v196_v60  ;;  %v166_v6 = vld [vmem:[%s6753_s1 + $0x430] sm:$0xff]  ;;  %v217_v15 = vld [vmem:[%s6753_s1 + $0x5c8] sm:$0xff] }
  0x34   :  { %3695 = vmatprep.subr.bf16.mxu1 %v3694_v43  ;;  %v163_v43 = vld [vmem:[%s6753_s1 + $0x418] sm:$0xff]  ;;  %v3746_v48 = vpack.c.bf16 %v211_v36, %v210_v35  ;;  %v198_v8 = vld [vmem:[%s6753_s1 + $0x530] sm:$0xff]  ;;  %v168_v19 = vld [vmem:[%s6753_s1 + $0x440] sm:$0xff] }
  0x35   :  { %3665 = vmatpush3.bf16.msra.mxu0 %v3664_v51  ;;  %v181_v51 = vld [vmem:[%s6753_s1 + $0x4a8] sm:$0xff]  ;;  %v3716_v56 = vpack.c.bf16 %v163_v43, %v162_v41  ;;  %v215_v2 = vld [vmem:[%s6753_s1 + $0x5b8] sm:$0xff]  ;;  %v200_v21 = vld [vmem:[%s6753_s1 + $0x540] sm:$0xff] }
  0x36   :  { %3667 = vmatprep.subr.bf16.mxu0 %v3666_v53  ;;  %v213_v53 = vld [vmem:[%s6753_s1 + $0x5a8] sm:$0xff]  ;;  %v167_v7 = vld [vmem:[%s6753_s1 + $0x438] sm:$0xff]  ;;  %v202_v34 = vld [vmem:[%s6753_s1 + $0x550] sm:$0xff] }
  0x37   :  { %3697 = vmatpush3.bf16.msra.mxu1 %v3696_v52  ;;  %v212_v52 = vld [vmem:[%s6753_s1 + $0x5a0] sm:$0xff]  ;;  %v199_v11 = vld [vmem:[%s6753_s1 + $0x538] sm:$0xff]  ;;  %v3724_v16 = vpack.c.bf16 %v167_v7, %v166_v6  ;;  %v169_v20 = vld [vmem:[%s6753_s1 + $0x448] sm:$0xff] }
  0x38   :  { %3699 = vmatprep.subr.bf16.mxu1 %v3698_v57  ;;  %v3718_v57 = vpack.c.bf16 %v181_v51, %v180_v50  ;;  %v3750_v61 = vpack.c.bf16 %v213_v53, %v212_v52  ;;  %v3756_v17 = vpack.c.bf16 %v199_v11, %v198_v8  ;;  %v201_v23 = vld [vmem:[%s6753_s1 + $0x548] sm:$0xff]  ;;  %v187_v25 = vld [vmem:[%s6753_s1 + $0x4d8] sm:$0xff]  ;;  %v3728_v28 = vpack.c.bf16 %v169_v20, %v168_v19  ;;  %v220_v39 = vld [vmem:[%s6753_s1 + $0x5e0] sm:$0xff] }
  0x39   :  { %3669 = vmatpush3.bf16.msra.mxu0 %v3668_v63  ;;  %v182_v63 = vld [vmem:[%s6753_s1 + $0x4b0] sm:$0xff]  ;;  %v3760_v29 = vpack.c.bf16 %v201_v23, %v200_v21  ;;  %v171_v32 = vld [vmem:[%s6753_s1 + $0x458] sm:$0xff]  ;;  %v172_v47 = vld [vmem:[%s6753_s1 + $0x460] sm:$0xff] }
  0x3a   :  { %3671 = vmatprep.subr.bf16.mxu0 %v3670_v1  ;;  %v214_v1 = vld [vmem:[%s6753_s1 + $0x5b0] sm:$0xff]  ;;  %v203_v36 = vld [vmem:[%s6753_s1 + $0x558] sm:$0xff]  ;;  %v205_v51 = vld [vmem:[%s6753_s1 + $0x568] sm:$0xff] }
  0x3b   :  { %3701 = vmatpush3.bf16.msra.mxu1 %v3700_v0  ;;  %v183_v0 = vld [vmem:[%s6753_s1 + $0x4b8] sm:$0xff]  ;;  %v3754_v9 = vpack.c.bf16 %v215_v2, %v214_v1  ;;  %v3764_v43 = vpack.c.bf16 %v203_v36, %v202_v34  ;;  %v190_v52 = vld [vmem:[%s6753_s1 + $0x4f0] sm:$0xff]  ;;  %v241_v1 = vld [vmem:[%s6753_s1 + $0x688] sm:$0xff] }
  0x3c   :  { %3703 = vmatprep.subr.bf16.mxu1 %v3702_v5  ;;  %v3722_v5 = vpack.c.bf16 %v183_v0, %v182_v63  ;;  %v191_v53 = vld [vmem:[%s6753_s1 + $0x4f8] sm:$0xff]  ;;  %v174_v60 = vld [vmem:[%s6753_s1 + $0x470] sm:$0xff]  ;;  %v240_v0 = vld [vmem:[%s6753_s1 + $0x680] sm:$0xff] }
  0x3d   :  { %3673 = vmatpush3.bf16.msra.mxu0 %v3672_v12  ;;  %v184_v12 = vld [vmem:[%s6753_s1 + $0x4c0] sm:$0xff]  ;;  %v3738_v59 = vpack.c.bf16 %v191_v53, %v190_v52  ;;  %v207_v63 = vld [vmem:[%s6753_s1 + $0x578] sm:$0xff]  ;;  %v3774_v7 = vpack.c.bf16 %v241_v1, %v240_v0  ;;  %v226_v23 = vld [vmem:[%s6753_s1 + $0x610] sm:$0xff] }
  0x3e   :  { %3675 = vmatprep.subr.bf16.mxu0 %v3674_v14  ;;  %v216_v14 = vld [vmem:[%s6753_s1 + $0x5c0] sm:$0xff]  ;;  %v231_v52 = vld [vmem:[%s6753_s1 + $0x638] sm:$0xff]  ;;  %v262_v53 = vld [vmem:[%s6753_s1 + $0x730] sm:$0xff] }
  0x3f   :  { %3705 = vmatpush3.bf16.msra.mxu1 %v3704_v13  ;;  %v185_v13 = vld [vmem:[%s6753_s1 + $0x4c8] sm:$0xff]  ;;  %v3758_v22 = vpack.c.bf16 %v217_v15, %v216_v14  ;;  %v272_v2 = vld [vmem:[%s6753_s1 + $0x780] sm:$0xff]  ;;  %v242_v14 = vld [vmem:[%s6753_s1 + $0x690] sm:$0xff] }
  0x40   :  { %3707 = vmatprep.subr.bf16.mxu1 %v3706_v18  ;;  %v3726_v18 = vpack.c.bf16 %v185_v13, %v184_v12  ;;  %v224_v8 = vld [vmem:[%s6753_s1 + $0x600] sm:$0xff]  ;;  %v257_v13 = vld [vmem:[%s6753_s1 + $0x708] sm:$0xff]  ;;  %v243_v15 = vld [vmem:[%s6753_s1 + $0x698] sm:$0xff] }
  0x41   :  { %3677 = vmatpush3.bf16.msra.mxu0 %v3676_v24  ;;  %v186_v24 = vld [vmem:[%s6753_s1 + $0x4d0] sm:$0xff]  ;;  %v256_v11 = vld [vmem:[%s6753_s1 + $0x700] sm:$0xff] }
  0x42   :  { %3711 = vmatprep.subr.bf16.mxu0 %v3710_v27  ;;  %v219_v27 = vld [vmem:[%s6753_s1 + $0x5d8] sm:$0xff]  ;;  %v3730_v30 = vpack.c.bf16 %v187_v25, %v186_v24  ;;  %v3808_v21 = vpack.c.bf16 %v257_v13, %v256_v11  ;;  %v258_v25 = vld [vmem:[%s6753_s1 + $0x710] sm:$0xff]  ;;  %v264_v0 = vld [vmem:[%s6753_s1 + $0x740] sm:$0xff] }
  0x43   :  { %3709 = vmatpush3.bf16.msra.mxu1 %v3708_v26  ;;  %v218_v26 = vld [vmem:[%s6753_s1 + $0x5d0] sm:$0xff]  ;;  %v227_v24 = vld [vmem:[%s6753_s1 + $0x618] sm:$0xff] }
  0x44   :  { %3743 = vmatprep.subr.bf16.mxu1 %v3742_v31  ;;  %1209 = vmatmul.mubr.f32.vlgmr.msra.gmra.mrb[2].mxu0 %v4689_v33  ;;  %v3748_v33 = vpack.c.bf16 %v195_v49, %v194_v44  ;;  %v170_v31 = vld [vmem:[%s6753_s1 + $0x450] sm:$0xff]  ;;  %v3762_v35 = vpack.c.bf16 %v219_v27, %v218_v26  ;;  %v204_v49 = vld [vmem:[%s6753_s1 + $0x560] sm:$0xff]  ;;  %v259_v27 = vld [vmem:[%s6753_s1 + $0x718] sm:$0xff] }
  0x45   :  { %3713 = vmatpush3.bf16.msra.mxu0 %v3712_v37  ;;  %1348 = vmatprep.mubr.f32.mxu0 %v812_v54  ;;  %v188_v37 = vld [vmem:[%s6753_s1 + $0x4e0] sm:$0xff]  ;;  %v3732_v41 = vpack.c.bf16 %v171_v32, %v170_v31  ;;  %v222_v54 = vld [vmem:[%s6753_s1 + $0x5f0] sm:$0xff]  ;;  %v3768_v58 = vpack.c.bf16 %v205_v51, %v204_v49  ;;  %v277_v32 = vld [vmem:[%s6753_s1 + $0x7a8] sm:$0xff]  ;;  %v3812_v36 = vpack.c.bf16 %v259_v27, %v258_v25 }
  0x46   :  { %1279 = vmatmul.mubr.f32.vlgmr.msra.gmra.mrb[2].mxu1 %v4703_v42  ;;  %3715 = vmatprep.subr.bf16.mxu0 %v3714_v40  ;;  %v813_v42 = vcombine.high %v4852_v55, %v4852_v55  ;;  %v221_v40 = vld [vmem:[%s6753_s1 + $0x5e8] sm:$0xff]  ;;  %v276_v31 = vld [vmem:[%s6753_s1 + $0x7a0] sm:$0xff]  ;;  %v230_v51 = vld [vmem:[%s6753_s1 + $0x630] sm:$0xff] }
  0x47   :  { %3745 = vmatpush3.bf16.msra.mxu1 %v3744_v38  ;;  %v189_v38 = vld [vmem:[%s6753_s1 + $0x4e8] sm:$0xff]  ;;  %v3766_v50 = vpack.c.bf16 %v221_v40, %v220_v39  ;;  %v260_v39 = vld [vmem:[%s6753_s1 + $0x720] sm:$0xff]  ;;  %v3814_v40 = vpack.c.bf16 %v277_v32, %v276_v31  ;;  %v234_v11 = vld [vmem:[%s6753_s1 + $0x650] sm:$0xff] }
  0x48   :  { %3747 = vmatprep.subr.bf16.mxu1 %v3746_v48  ;;  %1418 = vmatprep.mubr.f32.mxu1 %v813_v42  ;;  %v3734_v44 = vpack.c.bf16 %v189_v38, %v188_v37  ;;  %v173_v48 = vld [vmem:[%s6753_s1 + $0x468] sm:$0xff]  ;;  %v175_v42 = vld [vmem:[%s6753_s1 + $0x478] sm:$0xff]  ;;  %v266_v13 = vld [vmem:[%s6753_s1 + $0x750] sm:$0xff] }
  0x49   :  { %3717 = vmatpush3.bf16.msra.mxu0 %v3716_v56  ;;  %v223_v56 = vld [vmem:[%s6753_s1 + $0x5f8] sm:$0xff]  ;;  %v229_v38 = vld [vmem:[%s6753_s1 + $0x628] sm:$0xff]  ;;  %v236_v25 = vld [vmem:[%s6753_s1 + $0x660] sm:$0xff] }
  0x4a   :  { %3719 = vmatprep.subr.bf16.mxu0 %v3718_v57  ;;  %v23_v57 = vld [vmem:[%s6754_s0 + $0x18] sm:$0xff]  ;;  %v3770_v62 = vpack.c.bf16 %v223_v56, %v222_v54  ;;  %v268_v27 = vld [vmem:[%s6753_s1 + $0x760] sm:$0xff]  ;;  %v286_v32 = vld [vmem:[%s6753_s1 + $0x7f0] sm:$0xff] }
  0x4b   :  { %3749 = vmatpush3.bf16.msra.mxu1 %v3748_v33  ;;  %v3736_v33 = vpack.c.bf16 %v173_v48, %v172_v47  ;;  %v279_v47 = vld [vmem:[%s6753_s1 + $0x7b8] sm:$0xff] }
  0x4c   :  { %3751 = vmatprep.subr.bf16.mxu1 %v3750_v61  ;;  %v206_v61 = vld [vmem:[%s6753_s1 + $0x570] sm:$0xff]  ;;  %v263_v56 = vld [vmem:[%s6753_s1 + $0x738] sm:$0xff] }
  0x4d   :  { %3721 = vmatpush3.bf16.msra.mxu0 %v3720_v3  ;;  %v273_v3 = vld [vmem:[%s6753_s1 + $0x788] sm:$0xff]  ;;  %v3772_v6 = vpack.c.bf16 %v207_v63, %v206_v61  ;;  %v255_v31 = vld [vmem:[%s6753_s1 + $0x6f8] sm:$0xff] }
  0x4e   :  { %3723 = vmatprep.subr.bf16.mxu0 %v3722_v5  ;;  %v3740_v5 = vpack.c.bf16 %v175_v42, %v174_v60  ;;  %v3806_v12 = vpack.c.bf16 %v273_v3, %v272_v2  ;;  %v3788_v60 = vpack.c.bf16 %v231_v52, %v230_v51  ;;  %v3820_v42 = vpack.c.bf16 %v263_v56, %v262_v53  ;;  %v233_v63 = vld [vmem:[%s6753_s1 + $0x648] sm:$0xff]  ;;  %v250_v3 = vld [vmem:[%s6753_s1 + $0x6d0] sm:$0xff]  ;;  %v288_v53 = vld [vmem:[%s6753_s1 + $0x800] sm:$0xff] }
  0x4f   :  { %3753 = vmatpush3.bf16.msra.mxu1 %v3752_v4  ;;  %v814_v4 = vcombine.high %v23_v57, %v23_v57  ;;  %v265_v2 = vld [vmem:[%s6753_s1 + $0x748] sm:$0xff]  ;;  %v320_v56 = vld [vmem:[%s6753_s1 + $0x900] sm:$0xff] }
  0x50   :  { %3755 = vmatprep.subr.bf16.mxu1 %v3754_v9  ;;  %v225_v9 = vld [vmem:[%s6753_s1 + $0x608] sm:$0xff] }
  0x51   :  { %3725 = vmatpush3.bf16.msra.mxu0 %v3724_v16  ;;  %v5023_v16 = vrot.slane %v23_v57, %v4522_v10  ;;  %v5032_v19 = vrot.slane %v814_v4, %v4522_v10  ;;  %v3776_v20 = vpack.c.bf16 %v225_v9, %v224_v8  ;;  %v249_v57 = vld [vmem:[%s6753_s1 + $0x6c8] sm:$0xff]  ;;  %v251_v4 = vld [vmem:[%s6753_s1 + $0x6d8] sm:$0xff]  ;;  %v3824_v8 = vpack.c.bf16 %v265_v2, %v264_v0  ;;  %v290_v2 = vld [vmem:[%s6753_s1 + $0x810] sm:$0xff] }
  0x52   :  { %3727 = vmatprep.subr.bf16.mxu0 %v3726_v18  ;;  %v275_v18 = vld [vmem:[%s6753_s1 + $0x798] sm:$0xff]  ;;  %v3794_v9 = vpack.c.bf16 %v251_v4, %v250_v3  ;;  %v322_v4 = vld [vmem:[%s6753_s1 + $0x910] sm:$0xff] }
  0x53   :  { %3757 = vmatpush3.bf16.msra.mxu1 %v3756_v17  ;;  %v274_v17 = vld [vmem:[%s6753_s1 + $0x790] sm:$0xff]  ;;  %v830_v34 = vcombine.high %v5032_v19, %v5032_v19  ;;  %v291_v3 = vld [vmem:[%s6753_s1 + $0x818] sm:$0xff] }
  0x54   :  { %3759 = vmatprep.subr.bf16.mxu1 %v3758_v22  ;;  %v3778_v22 = vpack.c.bf16 %v243_v15, %v242_v14  ;;  %v3810_v26 = vpack.c.bf16 %v275_v18, %v274_v17  ;;  %v267_v15 = vld [vmem:[%s6753_s1 + $0x758] sm:$0xff]  ;;  %v252_v17 = vld [vmem:[%s6753_s1 + $0x6e0] sm:$0xff]  ;;  %v253_v18 = vld [vmem:[%s6753_s1 + $0x6e8] sm:$0xff] }
  0x55   :  { %3729 = vmatpush3.bf16.msra.mxu0 %v3728_v28  ;;  %v244_v28 = vld [vmem:[%s6753_s1 + $0x6a0] sm:$0xff] }
  0x56   :  { %3731 = vmatprep.subr.bf16.mxu0 %v3730_v30  ;;  %v829_v30 = vcombine.high %v5023_v16, %v5023_v16 }
  0x57   :  { %3761 = vmatpush3.bf16.msra.mxu1 %v3760_v29  ;;  %v245_v29 = vld [vmem:[%s6753_s1 + $0x6a8] sm:$0xff] }
  0x58   :  { %3763 = vmatprep.subr.bf16.mxu1 %v3762_v35  ;;  %v3780_v35 = vpack.c.bf16 %v227_v24, %v226_v23  ;;  %v3782_v37 = vpack.c.bf16 %v245_v29, %v244_v28  ;;  %v3828_v23 = vpack.c.bf16 %v267_v15, %v266_v13  ;;  %v3798_v24 = vpack.c.bf16 %v253_v18, %v252_v17  ;;  %v269_v29 = vld [vmem:[%s6753_s1 + $0x768] sm:$0xff] }
  0x59   :  { %3733 = vmatpush3.bf16.msra.mxu0 %v3732_v41  ;;  %v246_v41 = vld [vmem:[%s6753_s1 + $0x6b0] sm:$0xff]  ;;  %v293_v18 = vld [vmem:[%s6753_s1 + $0x828] sm:$0xff] }
  0x5a   :  { %3735 = vmatprep.subr.bf16.mxu0 %v3734_v44  ;;  %v278_v44 = vld [vmem:[%s6753_s1 + $0x7b0] sm:$0xff] }
  0x5b   :  { %3765 = vmatpush3.bf16.msra.mxu1 %v3764_v43  ;;  %v247_v43 = vld [vmem:[%s6753_s1 + $0x6b8] sm:$0xff]  ;;  %v3818_v54 = vpack.c.bf16 %v279_v47, %v278_v44  ;;  %v305_v44 = vld [vmem:[%s6753_s1 + $0x888] sm:$0xff]  ;;  %v336_v47 = vld [vmem:[%s6753_s1 + $0x980] sm:$0xff] }
  0x5c   :  { %3767 = vmatprep.subr.bf16.mxu1 %v3766_v50  ;;  %v3786_v50 = vpack.c.bf16 %v247_v43, %v246_v41  ;;  %v271_v41 = vld [vmem:[%s6753_s1 + $0x778] sm:$0xff]  ;;  %v304_v43 = vld [vmem:[%s6753_s1 + $0x880] sm:$0xff] }
  0x5d   :  { %3737 = vmatpush3.bf16.msra.mxu0 %v3736_v33  ;;  %v248_v33 = vld [vmem:[%s6753_s1 + $0x6c0] sm:$0xff]  ;;  %v3838_v52 = vpack.c.bf16 %v305_v44, %v304_v43 }
  0x5e   :  { %3739 = vmatprep.subr.bf16.mxu0 %v3738_v59  ;;  %v281_v59 = vld [vmem:[%s6753_s1 + $0x7c8] sm:$0xff]  ;;  %v3790_v61 = vpack.c.bf16 %v249_v57, %v248_v33  ;;  %v328_v43 = vld [vmem:[%s6753_s1 + $0x940] sm:$0xff] }
  0x5f   :  { %3769 = vmatpush3.bf16.msra.mxu1 %v3768_v58  ;;  %v280_v58 = vld [vmem:[%s6753_s1 + $0x7c0] sm:$0xff]  ;;  %v321_v57 = vld [vmem:[%s6753_s1 + $0x908] sm:$0xff] }
  0x60   :  { %3771 = vmatprep.subr.bf16.mxu1 %v3770_v62  ;;  %v232_v62 = vld [vmem:[%s6753_s1 + $0x640] sm:$0xff]  ;;  %v3822_v1 = vpack.c.bf16 %v281_v59, %v280_v58  ;;  %v306_v58 = vld [vmem:[%s6753_s1 + $0x890] sm:$0xff]  ;;  %v307_v59 = vld [vmem:[%s6753_s1 + $0x898] sm:$0xff]  ;;  %v3872_v0 = vpack.c.bf16 %v321_v57, %v320_v56 }
  0x61   :  { %3741 = vmatpush3.bf16.msra.mxu0 %v3740_v5  ;;  %v282_v5 = vld [vmem:[%s6753_s1 + $0x7d0] sm:$0xff] }
  0x62   :  { %3775 = vmatprep.subr.bf16.mxu0 %v3774_v7  ;;  %v3792_v7 = vpack.c.bf16 %v233_v63, %v232_v62  ;;  %v298_v56 = vld [vmem:[%s6753_s1 + $0x850] sm:$0xff] }
  0x63   :  { %3773 = vmatpush3.bf16.msra.mxu1 %v3772_v6  ;;  %v283_v6 = vld [vmem:[%s6753_s1 + $0x7d8] sm:$0xff]  ;;  %v330_v57 = vld [vmem:[%s6753_s1 + $0x950] sm:$0xff] }
  0x64   :  { %3807 = vmatprep.subr.bf16.mxu1 %v3806_v12  ;;  %1349 = vmatmul.mubr.f32.vlgmr.msra.gmra.mrb[4].mxu0 %v4831_v46  ;;  %v228_v46 = vld [vmem:[%s6753_s1 + $0x620] sm:$0xff]  ;;  %v235_v12 = vld [vmem:[%s6753_s1 + $0x658] sm:$0xff]  ;;  %v3826_v14 = vpack.c.bf16 %v283_v6, %v282_v5 }
  0x65   :  { %3777 = vmatpush3.bf16.msra.mxu0 %v3776_v20  ;;  %1488 = vmatprep.mubr.f32.mxu0 %v829_v30  ;;  %v3784_v48 = vpack.c.bf16 %v229_v38, %v228_v46  ;;  %v284_v20 = vld [vmem:[%s6753_s1 + $0x7e0] sm:$0xff]  ;;  %v254_v30 = vld [vmem:[%s6753_s1 + $0x6f0] sm:$0xff]  ;;  %v323_v6 = vld [vmem:[%s6753_s1 + $0x918] sm:$0xff] }
  0x66   :  { %1419 = vmatmul.mubr.f32.vlgmr.msra.gmra.mrb[4].mxu1 %v4852_v55  ;;  %3779 = vmatprep.subr.bf16.mxu0 %v3778_v22  ;;  %v261_v55 = vld [vmem:[%s6753_s1 + $0x728] sm:$0xff]  ;;  %v3796_v22 = vpack.c.bf16 %v235_v12, %v234_v11  ;;  %v3802_v46 = vpack.c.bf16 %v255_v31, %v254_v30  ;;  %v238_v38 = vld [vmem:[%s6753_s1 + $0x670] sm:$0xff]  ;;  %v340_v11 = vld [vmem:[%s6753_s1 + $0x9a0] sm:$0xff]  ;;  %v3876_v15 = vpack.c.bf16 %v323_v6, %v322_v4 }
  0x67   :  { %3809 = vmatpush3.bf16.msra.mxu1 %v3808_v21  ;;  %1558 = vmatprep.mubr.f32.mxu1 %v830_v34  ;;  %v3816_v49 = vpack.c.bf16 %v261_v55, %v260_v39  ;;  %v285_v21 = vld [vmem:[%s6753_s1 + $0x7e8] sm:$0xff]  ;;  %v287_v34 = vld [vmem:[%s6753_s1 + $0x7f8] sm:$0xff]  ;;  %v326_v31 = vld [vmem:[%s6753_s1 + $0x930] sm:$0xff] }
  0x68   :  { %3811 = vmatprep.subr.bf16.mxu1 %v3810_v26  ;;  %v237_v26 = vld [vmem:[%s6753_s1 + $0x668] sm:$0xff]  ;;  %v3830_v28 = vpack.c.bf16 %v285_v21, %v284_v20  ;;  %v239_v39 = vld [vmem:[%s6753_s1 + $0x678] sm:$0xff]  ;;  %v3834_v55 = vpack.c.bf16 %v287_v34, %v286_v32  ;;  %v324_v20 = vld [vmem:[%s6753_s1 + $0x920] sm:$0xff] }
  0x69   :  { %3781 = vmatpush3.bf16.msra.mxu0 %v3780_v35  ;;  %v3800_v35 = vpack.c.bf16 %v237_v26, %v236_v25  ;;  %v341_v12 = vld [vmem:[%s6753_s1 + $0x9a8] sm:$0xff]  ;;  %v343_v25 = vld [vmem:[%s6753_s1 + $0x9b8] sm:$0xff]  ;;  %v300_v4 = vld [vmem:[%s6753_s1 + $0x860] sm:$0xff] }
  0x6a   :  { %3783 = vmatprep.subr.bf16.mxu0 %v3782_v37  ;;  %v3832_v37 = vpack.c.bf16 %v269_v29, %v268_v27  ;;  %v3878_v21 = vpack.c.bf16 %v341_v12, %v340_v11  ;;  %v294_v29 = vld [vmem:[%s6753_s1 + $0x830] sm:$0xff]  ;;  %v295_v30 = vld [vmem:[%s6753_s1 + $0x838] sm:$0xff]  ;;  %v332_v6 = vld [vmem:[%s6753_s1 + $0x960] sm:$0xff] }
  0x6b   :  { %3813 = vmatpush3.bf16.msra.mxu1 %v3812_v36  ;;  %v24_v36 = vld [vmem:[%s6754_s0 + $0x20] sm:$0xff]  ;;  %v327_v34 = vld [vmem:[%s6753_s1 + $0x938] sm:$0xff]  ;;  %v350_v12 = vld [vmem:[%s6753_s1 + $0x9f0] sm:$0xff] }
  0x6c   :  { %3815 = vmatprep.subr.bf16.mxu1 %v3814_v40  ;;  %v270_v40 = vld [vmem:[%s6753_s1 + $0x770] sm:$0xff]  ;;  %v319_v11 = vld [vmem:[%s6753_s1 + $0x8f8] sm:$0xff] }
  0x6d   :  { %3785 = vmatpush3.bf16.msra.mxu0 %v3784_v48  ;;  %v337_v48 = vld [vmem:[%s6753_s1 + $0x988] sm:$0xff]  ;;  %v3836_v51 = vpack.c.bf16 %v271_v41, %v270_v40 }
  0x6e   :  { %3787 = vmatprep.subr.bf16.mxu0 %v3786_v50  ;;  %v3804_v50 = vpack.c.bf16 %v239_v39, %v238_v38  ;;  %v3870_v33 = vpack.c.bf16 %v337_v48, %v336_v47  ;;  %v3852_v38 = vpack.c.bf16 %v295_v30, %v294_v29  ;;  %v3884_v39 = vpack.c.bf16 %v327_v34, %v326_v31  ;;  %v297_v41 = vld [vmem:[%s6753_s1 + $0x848] sm:$0xff]  ;;  %v314_v48 = vld [vmem:[%s6753_s1 + $0x8d0] sm:$0xff]  ;;  %v352_v31 = vld [vmem:[%s6753_s1 + $0xa00] sm:$0xff] }
  0x6f   :  { %3817 = vmatpush3.bf16.msra.mxu1 %v3816_v49  ;;  %v831_v49 = vcombine.high %v24_v36, %v24_v36  ;;  %v329_v47 = vld [vmem:[%s6753_s1 + $0x948] sm:$0xff]  ;;  %v384_v34 = vld [vmem:[%s6753_s1 + $0xb00] sm:$0xff] }
  0x70   :  { %3819 = vmatprep.subr.bf16.mxu1 %v3818_v54  ;;  %v289_v54 = vld [vmem:[%s6753_s1 + $0x808] sm:$0xff] }
  0x71   :  { %3789 = vmatpush3.bf16.msra.mxu0 %v3788_v60  ;;  %v5230_v60 = vrot.slane %v24_v36, %v4522_v10  ;;  %v5239_v62 = vrot.slane %v831_v49, %v4522_v10  ;;  %v3840_v63 = vpack.c.bf16 %v289_v54, %v288_v53  ;;  %v313_v36 = vld [vmem:[%s6753_s1 + $0x8c8] sm:$0xff]  ;;  %v315_v49 = vld [vmem:[%s6753_s1 + $0x8d8] sm:$0xff]  ;;  %v3888_v53 = vpack.c.bf16 %v329_v47, %v328_v43  ;;  %v354_v47 = vld [vmem:[%s6753_s1 + $0xa10] sm:$0xff] }
  0x72   :  { %3791 = vmatprep.subr.bf16.mxu0 %v3790_v61  ;;  %v339_v61 = vld [vmem:[%s6753_s1 + $0x998] sm:$0xff]  ;;  %v3858_v54 = vpack.c.bf16 %v315_v49, %v314_v48  ;;  %v386_v49 = vld [vmem:[%s6753_s1 + $0xb10] sm:$0xff] }
  0x73   :  { %3821 = vmatpush3.bf16.msra.mxu1 %v3820_v42  ;;  %v338_v42 = vld [vmem:[%s6753_s1 + $0x990] sm:$0xff]  ;;  %v847_v13 = vcombine.high %v5239_v62, %v5239_v62  ;;  %v355_v48 = vld [vmem:[%s6753_s1 + $0xa18] sm:$0xff] }
  0x74   :  { %3823 = vmatprep.subr.bf16.mxu1 %v3822_v1  ;;  %v3842_v1 = vpack.c.bf16 %v307_v59, %v306_v58  ;;  %v3874_v5 = vpack.c.bf16 %v339_v61, %v338_v42  ;;  %v331_v59 = vld [vmem:[%s6753_s1 + $0x958] sm:$0xff]  ;;  %v316_v42 = vld [vmem:[%s6753_s1 + $0x8e0] sm:$0xff]  ;;  %v317_v61 = vld [vmem:[%s6753_s1 + $0x8e8] sm:$0xff] }
  0x75   :  { %3793 = vmatpush3.bf16.msra.mxu0 %v3792_v7  ;;  %v308_v7 = vld [vmem:[%s6753_s1 + $0x8a0] sm:$0xff] }
  0x76   :  { %3795 = vmatprep.subr.bf16.mxu0 %v3794_v9  ;;  %v846_v9 = vcombine.high %v5230_v60, %v5230_v60 }
  0x77   :  { %3825 = vmatpush3.bf16.msra.mxu1 %v3824_v8  ;;  %v309_v8 = vld [vmem:[%s6753_s1 + $0x8a8] sm:$0xff] }
  0x78   :  { %3827 = vmatprep.subr.bf16.mxu1 %v3826_v14  ;;  %v3844_v14 = vpack.c.bf16 %v291_v3, %v290_v2  ;;  %v3846_v17 = vpack.c.bf16 %v309_v8, %v308_v7  ;;  %v3892_v2 = vpack.c.bf16 %v331_v59, %v330_v57  ;;  %v3862_v3 = vpack.c.bf16 %v317_v61, %v316_v42  ;;  %v333_v8 = vld [vmem:[%s6753_s1 + $0x968] sm:$0xff] }
  0x79   :  { %3797 = vmatpush3.bf16.msra.mxu0 %v3796_v22  ;;  %v310_v22 = vld [vmem:[%s6753_s1 + $0x8b0] sm:$0xff]  ;;  %v357_v61 = vld [vmem:[%s6753_s1 + $0xa28] sm:$0xff] }
  0x7a   :  { %3799 = vmatprep.subr.bf16.mxu0 %v3798_v24  ;;  %v342_v24 = vld [vmem:[%s6753_s1 + $0x9b0] sm:$0xff] }
  0x7b   :  { %3829 = vmatpush3.bf16.msra.mxu1 %v3828_v23  ;;  %v311_v23 = vld [vmem:[%s6753_s1 + $0x8b8] sm:$0xff]  ;;  %v3882_v32 = vpack.c.bf16 %v343_v25, %v342_v24  ;;  %v369_v24 = vld [vmem:[%s6753_s1 + $0xa88] sm:$0xff]  ;;  %v400_v25 = vld [vmem:[%s6753_s1 + $0xb80] sm:$0xff] }
  0x7c   :  { %3831 = vmatprep.subr.bf16.mxu1 %v3830_v28  ;;  %v3850_v28 = vpack.c.bf16 %v311_v23, %v310_v22  ;;  %v335_v22 = vld [vmem:[%s6753_s1 + $0x978] sm:$0xff]  ;;  %v368_v23 = vld [vmem:[%s6753_s1 + $0xa80] sm:$0xff] }
  0x7d   :  { %3801 = vmatpush3.bf16.msra.mxu0 %v3800_v35  ;;  %v312_v35 = vld [vmem:[%s6753_s1 + $0x8c0] sm:$0xff]  ;;  %v3902_v30 = vpack.c.bf16 %v369_v24, %v368_v23 }
  0x7e   :  { %3803 = vmatprep.subr.bf16.mxu0 %v3802_v46  ;;  %v345_v46 = vld [vmem:[%s6753_s1 + $0x9c8] sm:$0xff]  ;;  %v3854_v40 = vpack.c.bf16 %v313_v36, %v312_v35  ;;  %v392_v23 = vld [vmem:[%s6753_s1 + $0xb40] sm:$0xff] }
  0x7f   :  { %3833 = vmatpush3.bf16.msra.mxu1 %v3832_v37  ;;  %v344_v37 = vld [vmem:[%s6753_s1 + $0x9c0] sm:$0xff]  ;;  %v385_v36 = vld [vmem:[%s6753_s1 + $0xb08] sm:$0xff] }
  0x80   :  { %3835 = vmatprep.subr.bf16.mxu1 %v3834_v55  ;;  %v296_v55 = vld [vmem:[%s6753_s1 + $0x840] sm:$0xff]  ;;  %v3886_v44 = vpack.c.bf16 %v345_v46, %v344_v37  ;;  %v370_v37 = vld [vmem:[%s6753_s1 + $0xa90] sm:$0xff]  ;;  %v371_v46 = vld [vmem:[%s6753_s1 + $0xa98] sm:$0xff]  ;;  %v3936_v43 = vpack.c.bf16 %v385_v36, %v384_v34 }
  0x81   :  { %3805 = vmatpush3.bf16.msra.mxu0 %v3804_v50  ;;  %v346_v50 = vld [vmem:[%s6753_s1 + $0x9d0] sm:$0xff] }
  0x82   :  { %3839 = vmatprep.subr.bf16.mxu0 %v3838_v52  ;;  %v3856_v52 = vpack.c.bf16 %v297_v41, %v296_v55  ;;  %v362_v34 = vld [vmem:[%s6753_s1 + $0xa50] sm:$0xff] }
  0x83   :  { %3837 = vmatpush3.bf16.msra.mxu1 %v3836_v51  ;;  %v347_v51 = vld [vmem:[%s6753_s1 + $0x9d8] sm:$0xff]  ;;  %v394_v36 = vld [vmem:[%s6753_s1 + $0xb50] sm:$0xff] }
  0x84   :  { %3871 = vmatprep.subr.bf16.mxu1 %v3870_v33  ;;  %1489 = vmatmul.mubr.f32.vlgmr.msra.gmra.mrb[6].mxu0 %v5023_v16  ;;  %v292_v16 = vld [vmem:[%s6753_s1 + $0x820] sm:$0xff]  ;;  %v299_v33 = vld [vmem:[%s6753_s1 + $0x858] sm:$0xff]  ;;  %v3890_v58 = vpack.c.bf16 %v347_v51, %v346_v50 }
  0x85   :  { %3841 = vmatpush3.bf16.msra.mxu0 %v3840_v63  ;;  %1628 = vmatprep.mubr.f32.mxu0 %v846_v9  ;;  %v3848_v26 = vpack.c.bf16 %v293_v18, %v292_v16  ;;  %v348_v63 = vld [vmem:[%s6753_s1 + $0x9e0] sm:$0xff]  ;;  %v318_v9 = vld [vmem:[%s6753_s1 + $0x8f0] sm:$0xff]  ;;  %v387_v51 = vld [vmem:[%s6753_s1 + $0xb18] sm:$0xff] }
  0x86   :  { %1559 = vmatmul.mubr.f32.vlgmr.msra.gmra.mrb[6].mxu1 %v5032_v19  ;;  %3843 = vmatprep.subr.bf16.mxu0 %v3842_v1  ;;  %v325_v19 = vld [vmem:[%s6753_s1 + $0x928] sm:$0xff]  ;;  %v3860_v1 = vpack.c.bf16 %v299_v33, %v298_v56  ;;  %v3866_v16 = vpack.c.bf16 %v319_v11, %v318_v9  ;;  %v302_v18 = vld [vmem:[%s6753_s1 + $0x870] sm:$0xff]  ;;  %v404_v56 = vld [vmem:[%s6753_s1 + $0xba0] sm:$0xff]  ;;  %v3940_v59 = vpack.c.bf16 %v387_v51, %v386_v49 }
  0x87   :  { %3873 = vmatpush3.bf16.msra.mxu1 %v3872_v0  ;;  %1698 = vmatprep.mubr.f32.mxu1 %v847_v13  ;;  %v3880_v27 = vpack.c.bf16 %v325_v19, %v324_v20  ;;  %v349_v0 = vld [vmem:[%s6753_s1 + $0x9e8] sm:$0xff]  ;;  %v351_v13 = vld [vmem:[%s6753_s1 + $0x9f8] sm:$0xff]  ;;  %v390_v11 = vld [vmem:[%s6753_s1 + $0xb30] sm:$0xff] }
  0x88   :  { %3875 = vmatprep.subr.bf16.mxu1 %v3874_v5  ;;  %v301_v5 = vld [vmem:[%s6753_s1 + $0x868] sm:$0xff]  ;;  %v3894_v7 = vpack.c.bf16 %v349_v0, %v348_v63  ;;  %v303_v20 = vld [vmem:[%s6753_s1 + $0x878] sm:$0xff]  ;;  %v3898_v19 = vpack.c.bf16 %v351_v13, %v350_v12  ;;  %v388_v63 = vld [vmem:[%s6753_s1 + $0xb20] sm:$0xff] }
  0x89   :  { %3845 = vmatpush3.bf16.msra.mxu0 %v3844_v14  ;;  %v3864_v14 = vpack.c.bf16 %v301_v5, %v300_v4  ;;  %v405_v33 = vld [vmem:[%s6753_s1 + $0xba8] sm:$0xff]  ;;  %v407_v4 = vld [vmem:[%s6753_s1 + $0xbb8] sm:$0xff]  ;;  %v364_v49 = vld [vmem:[%s6753_s1 + $0xa60] sm:$0xff] }
  0x8a   :  { %3847 = vmatprep.subr.bf16.mxu0 %v3846_v17  ;;  %v3896_v17 = vpack.c.bf16 %v333_v8, %v332_v6  ;;  %v3942_v0 = vpack.c.bf16 %v405_v33, %v404_v56  ;;  %v358_v8 = vld [vmem:[%s6753_s1 + $0xa30] sm:$0xff]  ;;  %v359_v9 = vld [vmem:[%s6753_s1 + $0xa38] sm:$0xff]  ;;  %v396_v51 = vld [vmem:[%s6753_s1 + $0xb60] sm:$0xff] }
  0x8b   :  { %3877 = vmatpush3.bf16.msra.mxu1 %v3876_v15  ;;  %v25_v15 = vld [vmem:[%s6754_s0 + $0x28] sm:$0xff]  ;;  %v391_v13 = vld [vmem:[%s6753_s1 + $0xb38] sm:$0xff]  ;;  %v414_v33 = vld [vmem:[%s6753_s1 + $0xbf0] sm:$0xff] }
  0x8c   :  { %3879 = vmatprep.subr.bf16.mxu1 %v3878_v21  ;;  %v334_v21 = vld [vmem:[%s6753_s1 + $0x970] sm:$0xff]  ;;  %v383_v56 = vld [vmem:[%s6753_s1 + $0xaf8] sm:$0xff] }
  0x8d   :  { %3849 = vmatpush3.bf16.msra.mxu0 %v3848_v26  ;;  %v401_v26 = vld [vmem:[%s6753_s1 + $0xb88] sm:$0xff]  ;;  %v3900_v29 = vpack.c.bf16 %v335_v22, %v334_v21 }
  0x8e   :  { %3851 = vmatprep.subr.bf16.mxu0 %v3850_v28  ;;  %v3868_v28 = vpack.c.bf16 %v303_v20, %v302_v18  ;;  %v3934_v35 = vpack.c.bf16 %v401_v26, %v400_v25  ;;  %v3916_v18 = vpack.c.bf16 %v359_v9, %v358_v8  ;;  %v3948_v20 = vpack.c.bf16 %v391_v13, %v390_v11  ;;  %v361_v22 = vld [vmem:[%s6753_s1 + $0xa48] sm:$0xff]  ;;  %v378_v26 = vld [vmem:[%s6753_s1 + $0xad0] sm:$0xff]  ;;  %v416_v11 = vld [vmem:[%s6753_s1 + $0xc00] sm:$0xff] }
  0x8f   :  { %3881 = vmatpush3.bf16.msra.mxu1 %v3880_v27  ;;  %v848_v27 = vcombine.high %v25_v15, %v25_v15  ;;  %v393_v25 = vld [vmem:[%s6753_s1 + $0xb48] sm:$0xff]  ;;  %v448_v13 = vld [vmem:[%s6753_s1 + $0xd00] sm:$0xff] }
  0x90   :  { %3883 = vmatprep.subr.bf16.mxu1 %v3882_v32  ;;  %v353_v32 = vld [vmem:[%s6753_s1 + $0xa08] sm:$0xff] }
  0x91   :  { %3853 = vmatpush3.bf16.msra.mxu0 %v3852_v38  ;;  %v5437_v38 = vrot.slane %v25_v15, %v4522_v10  ;;  %v5446_v55 = vrot.slane %v848_v27, %v4522_v10  ;;  %v3904_v41 = vpack.c.bf16 %v353_v32, %v352_v31  ;;  %v377_v15 = vld [vmem:[%s6753_s1 + $0xac8] sm:$0xff]  ;;  %v379_v27 = vld [vmem:[%s6753_s1 + $0xad8] sm:$0xff]  ;;  %v3952_v31 = vpack.c.bf16 %v393_v25, %v392_v23  ;;  %v418_v25 = vld [vmem:[%s6753_s1 + $0xc10] sm:$0xff] }
  0x92   :  { %3855 = vmatprep.subr.bf16.mxu0 %v3854_v40  ;;  %v403_v40 = vld [vmem:[%s6753_s1 + $0xb98] sm:$0xff]  ;;  %v3922_v32 = vpack.c.bf16 %v379_v27, %v378_v26  ;;  %v450_v27 = vld [vmem:[%s6753_s1 + $0xd10] sm:$0xff] }
  0x93   :  { %3885 = vmatpush3.bf16.msra.mxu1 %v3884_v39  ;;  %v402_v39 = vld [vmem:[%s6753_s1 + $0xb90] sm:$0xff]  ;;  %v864_v57 = vcombine.high %v5446_v55, %v5446_v55  ;;  %v419_v26 = vld [vmem:[%s6753_s1 + $0xc18] sm:$0xff] }
  0x94   :  { %3887 = vmatprep.subr.bf16.mxu1 %v3886_v44  ;;  %v3906_v44 = vpack.c.bf16 %v371_v46, %v370_v37  ;;  %v3938_v50 = vpack.c.bf16 %v403_v40, %v402_v39  ;;  %v395_v46 = vld [vmem:[%s6753_s1 + $0xb58] sm:$0xff]  ;;  %v380_v39 = vld [vmem:[%s6753_s1 + $0xae0] sm:$0xff]  ;;  %v381_v40 = vld [vmem:[%s6753_s1 + $0xae8] sm:$0xff] }
  0x95   :  { %3857 = vmatpush3.bf16.msra.mxu0 %v3856_v52  ;;  %v372_v52 = vld [vmem:[%s6753_s1 + $0xaa0] sm:$0xff] }
  0x96   :  { %3859 = vmatprep.subr.bf16.mxu0 %v3858_v54  ;;  %v863_v54 = vcombine.high %v5437_v38, %v5437_v38 }
  0x97   :  { %3889 = vmatpush3.bf16.msra.mxu1 %v3888_v53  ;;  %v373_v53 = vld [vmem:[%s6753_s1 + $0xaa8] sm:$0xff] }
  0x98   :  { %3891 = vmatprep.subr.bf16.mxu1 %v3890_v58  ;;  %v3908_v58 = vpack.c.bf16 %v355_v48, %v354_v47  ;;  %v3910_v42 = vpack.c.bf16 %v373_v53, %v372_v52  ;;  %v3956_v47 = vpack.c.bf16 %v395_v46, %v394_v36  ;;  %v3926_v48 = vpack.c.bf16 %v381_v40, %v380_v39  ;;  %v397_v53 = vld [vmem:[%s6753_s1 + $0xb68] sm:$0xff] }
  0x99   :  { %3861 = vmatpush3.bf16.msra.mxu0 %v3860_v1  ;;  %v374_v1 = vld [vmem:[%s6753_s1 + $0xab0] sm:$0xff]  ;;  %v421_v40 = vld [vmem:[%s6753_s1 + $0xc28] sm:$0xff] }
  0x9a   :  { %3863 = vmatprep.subr.bf16.mxu0 %v3862_v3  ;;  %v406_v3 = vld [vmem:[%s6753_s1 + $0xbb0] sm:$0xff] }
  0x9b   :  { %3893 = vmatpush3.bf16.msra.mxu1 %v3892_v2  ;;  %v375_v2 = vld [vmem:[%s6753_s1 + $0xab8] sm:$0xff]  ;;  %v3946_v12 = vpack.c.bf16 %v407_v4, %v406_v3  ;;  %v433_v3 = vld [vmem:[%s6753_s1 + $0xc88] sm:$0xff]  ;;  %v464_v4 = vld [vmem:[%s6753_s1 + $0xd80] sm:$0xff] }
  0x9c   :  { %3895 = vmatprep.subr.bf16.mxu1 %v3894_v7  ;;  %v3914_v7 = vpack.c.bf16 %v375_v2, %v374_v1  ;;  %v399_v1 = vld [vmem:[%s6753_s1 + $0xb78] sm:$0xff]  ;;  %v432_v2 = vld [vmem:[%s6753_s1 + $0xc80] sm:$0xff] }
  0x9d   :  { %3865 = vmatpush3.bf16.msra.mxu0 %v3864_v14  ;;  %v376_v14 = vld [vmem:[%s6753_s1 + $0xac0] sm:$0xff]  ;;  %v3966_v9 = vpack.c.bf16 %v433_v3, %v432_v2 }
  0x9e   :  { %3867 = vmatprep.subr.bf16.mxu0 %v3866_v16  ;;  %v409_v16 = vld [vmem:[%s6753_s1 + $0xbc8] sm:$0xff]  ;;  %v3918_v21 = vpack.c.bf16 %v377_v15, %v376_v14  ;;  %v456_v2 = vld [vmem:[%s6753_s1 + $0xd40] sm:$0xff] }
  0x9f   :  { %3897 = vmatpush3.bf16.msra.mxu1 %v3896_v17  ;;  %v408_v17 = vld [vmem:[%s6753_s1 + $0xbc0] sm:$0xff]  ;;  %v449_v15 = vld [vmem:[%s6753_s1 + $0xd08] sm:$0xff] }
  0xa0   :  { %3899 = vmatprep.subr.bf16.mxu1 %v3898_v19  ;;  %v360_v19 = vld [vmem:[%s6753_s1 + $0xa40] sm:$0xff]  ;;  %v3950_v24 = vpack.c.bf16 %v409_v16, %v408_v17  ;;  %v434_v17 = vld [vmem:[%s6753_s1 + $0xc90] sm:$0xff]  ;;  %v435_v16 = vld [vmem:[%s6753_s1 + $0xc98] sm:$0xff]  ;;  %v4000_v23 = vpack.c.bf16 %v449_v15, %v448_v13 }
  0xa1   :  { %3869 = vmatpush3.bf16.msra.mxu0 %v3868_v28  ;;  %v410_v28 = vld [vmem:[%s6753_s1 + $0xbd0] sm:$0xff] }
  0xa2   :  { %3903 = vmatprep.subr.bf16.mxu0 %v3902_v30  ;;  %v3920_v30 = vpack.c.bf16 %v361_v22, %v360_v19  ;;  %v426_v13 = vld [vmem:[%s6753_s1 + $0xc50] sm:$0xff] }
  0xa3   :  { %3901 = vmatpush3.bf16.msra.mxu1 %v3900_v29  ;;  %v411_v29 = vld [vmem:[%s6753_s1 + $0xbd8] sm:$0xff]  ;;  %v458_v15 = vld [vmem:[%s6753_s1 + $0xd50] sm:$0xff] }
  0xa4   :  { %3935 = vmatprep.subr.bf16.mxu1 %v3934_v35  ;;  %1629 = vmatmul.mubr.f32.vlgmr.msra.gmra.mrb[8].mxu0 %v5230_v60  ;;  %v356_v60 = vld [vmem:[%s6753_s1 + $0xa20] sm:$0xff]  ;;  %v363_v35 = vld [vmem:[%s6753_s1 + $0xa58] sm:$0xff]  ;;  %v3954_v37 = vpack.c.bf16 %v411_v29, %v410_v28 }
  0xa5   :  { %3905 = vmatpush3.bf16.msra.mxu0 %v3904_v41  ;;  %1768 = vmatprep.mubr.f32.mxu0 %v863_v54  ;;  %v3912_v5 = vpack.c.bf16 %v357_v61, %v356_v60  ;;  %v412_v41 = vld [vmem:[%s6753_s1 + $0xbe0] sm:$0xff]  ;;  %v382_v54 = vld [vmem:[%s6753_s1 + $0xaf0] sm:$0xff]  ;;  %v451_v29 = vld [vmem:[%s6753_s1 + $0xd18] sm:$0xff] }
  0xa6   :  { %1699 = vmatmul.mubr.f32.vlgmr.msra.gmra.mrb[8].mxu1 %v5239_v62  ;;  %3907 = vmatprep.subr.bf16.mxu0 %v3906_v44  ;;  %v389_v62 = vld [vmem:[%s6753_s1 + $0xb28] sm:$0xff]  ;;  %v3924_v44 = vpack.c.bf16 %v363_v35, %v362_v34  ;;  %v3930_v60 = vpack.c.bf16 %v383_v56, %v382_v54  ;;  %v366_v61 = vld [vmem:[%s6753_s1 + $0xa70] sm:$0xff]  ;;  %v468_v34 = vld [vmem:[%s6753_s1 + $0xda0] sm:$0xff]  ;;  %v4004_v46 = vpack.c.bf16 %v451_v29, %v450_v27 }
  0xa7   :  { %3937 = vmatpush3.bf16.msra.mxu1 %v3936_v43  ;;  %1838 = vmatprep.mubr.f32.mxu1 %v864_v57  ;;  %v3944_v6 = vpack.c.bf16 %v389_v62, %v388_v63  ;;  %v413_v43 = vld [vmem:[%s6753_s1 + $0xbe8] sm:$0xff]  ;;  %v415_v57 = vld [vmem:[%s6753_s1 + $0xbf8] sm:$0xff]  ;;  %v454_v56 = vld [vmem:[%s6753_s1 + $0xd30] sm:$0xff] }
  0xa8   :  { %3939 = vmatprep.subr.bf16.mxu1 %v3938_v50  ;;  %v365_v50 = vld [vmem:[%s6753_s1 + $0xa68] sm:$0xff]  ;;  %v3958_v52 = vpack.c.bf16 %v413_v43, %v412_v41  ;;  %v367_v63 = vld [vmem:[%s6753_s1 + $0xa78] sm:$0xff]  ;;  %v3962_v62 = vpack.c.bf16 %v415_v57, %v414_v33  ;;  %v452_v41 = vld [vmem:[%s6753_s1 + $0xd20] sm:$0xff] }
  0xa9   :  { %3909 = vmatpush3.bf16.msra.mxu0 %v3908_v58  ;;  %v3928_v58 = vpack.c.bf16 %v365_v50, %v364_v49  ;;  %v469_v35 = vld [vmem:[%s6753_s1 + $0xda8] sm:$0xff]  ;;  %v471_v49 = vld [vmem:[%s6753_s1 + $0xdb8] sm:$0xff]  ;;  %v428_v27 = vld [vmem:[%s6753_s1 + $0xc60] sm:$0xff] }
  0xaa   :  { %3911 = vmatprep.subr.bf16.mxu0 %v3910_v42  ;;  %v3960_v42 = vpack.c.bf16 %v397_v53, %v396_v51  ;;  %v4006_v43 = vpack.c.bf16 %v469_v35, %v468_v34  ;;  %v422_v53 = vld [vmem:[%s6753_s1 + $0xc30] sm:$0xff]  ;;  %v423_v54 = vld [vmem:[%s6753_s1 + $0xc38] sm:$0xff]  ;;  %v460_v29 = vld [vmem:[%s6753_s1 + $0xd60] sm:$0xff] }
  0xab   :  { %3941 = vmatpush3.bf16.msra.mxu1 %v3940_v59  ;;  %v26_v59 = vld [vmem:[%s6754_s0 + $0x30] sm:$0xff]  ;;  %v455_v57 = vld [vmem:[%s6753_s1 + $0xd38] sm:$0xff] }
  0xac   :  { %3943 = vmatprep.subr.bf16.mxu1 %v3942_v0  ;;  %v398_v0 = vld [vmem:[%s6753_s1 + $0xb70] sm:$0xff]  ;;  %v447_v34 = vld [vmem:[%s6753_s1 + $0xcf8] sm:$0xff] }
  0xad   :  { %3913 = vmatpush3.bf16.msra.mxu0 %v3912_v5  ;;  %v465_v5 = vld [vmem:[%s6753_s1 + $0xd88] sm:$0xff]  ;;  %v3964_v8 = vpack.c.bf16 %v399_v1, %v398_v0  ;;  %v478_v35 = vld [vmem:[%s6753_s1 + $0xdf0] sm:$0xff] }
  0xae   :  { %3915 = vmatprep.subr.bf16.mxu0 %v3914_v7  ;;  %v3932_v7 = vpack.c.bf16 %v367_v63, %v366_v61  ;;  %v3998_v14 = vpack.c.bf16 %v465_v5, %v464_v4  ;;  %v3980_v61 = vpack.c.bf16 %v423_v54, %v422_v53  ;;  %v4012_v63 = vpack.c.bf16 %v455_v57, %v454_v56  ;;  %v425_v1 = vld [vmem:[%s6753_s1 + $0xc48] sm:$0xff]  ;;  %v442_v5 = vld [vmem:[%s6753_s1 + $0xcd0] sm:$0xff]  ;;  %v480_v56 = vld [vmem:[%s6753_s1 + $0xe00] sm:$0xff] }
  0xaf   :  { %3945 = vmatpush3.bf16.msra.mxu1 %v3944_v6  ;;  %v865_v6 = vcombine.high %v26_v59, %v26_v59  ;;  %v457_v4 = vld [vmem:[%s6753_s1 + $0xd48] sm:$0xff]  ;;  %v512_v57 = vld [vmem:[%s6753_s1 + $0xf00] sm:$0xff] }
  0xb0   :  { %3947 = vmatprep.subr.bf16.mxu1 %v3946_v12  ;;  %v417_v12 = vld [vmem:[%s6753_s1 + $0xc08] sm:$0xff] }
  0xb1   :  { %3917 = vmatpush3.bf16.msra.mxu0 %v3916_v18  ;;  %v5644_v18 = vrot.slane %v26_v59, %v4522_v10  ;;  %v5653_v19 = vrot.slane %v865_v6, %v4522_v10  ;;  %v3968_v22 = vpack.c.bf16 %v417_v12, %v416_v11  ;;  %v441_v59 = vld [vmem:[%s6753_s1 + $0xcc8] sm:$0xff]  ;;  %v443_v6 = vld [vmem:[%s6753_s1 + $0xcd8] sm:$0xff]  ;;  %v4016_v11 = vpack.c.bf16 %v457_v4, %v456_v2  ;;  %v482_v4 = vld [vmem:[%s6753_s1 + $0xe10] sm:$0xff] }
  0xb2   :  { %3919 = vmatprep.subr.bf16.mxu0 %v3918_v21  ;;  %v467_v21 = vld [vmem:[%s6753_s1 + $0xd98] sm:$0xff]  ;;  %v3986_v12 = vpack.c.bf16 %v443_v6, %v442_v5  ;;  %v514_v6 = vld [vmem:[%s6753_s1 + $0xf10] sm:$0xff] }
  0xb3   :  { %3949 = vmatpush3.bf16.msra.mxu1 %v3948_v20  ;;  %v466_v20 = vld [vmem:[%s6753_s1 + $0xd90] sm:$0xff]  ;;  %v881_v36 = vcombine.high %v5653_v19, %v5653_v19  ;;  %v483_v5 = vld [vmem:[%s6753_s1 + $0xe18] sm:$0xff] }
  0xb4   :  { %3951 = vmatprep.subr.bf16.mxu1 %v3950_v24  ;;  %v3970_v24 = vpack.c.bf16 %v435_v16, %v434_v17  ;;  %v4002_v28 = vpack.c.bf16 %v467_v21, %v466_v20  ;;  %v459_v16 = vld [vmem:[%s6753_s1 + $0xd58] sm:$0xff]  ;;  %v444_v20 = vld [vmem:[%s6753_s1 + $0xce0] sm:$0xff]  ;;  %v445_v21 = vld [vmem:[%s6753_s1 + $0xce8] sm:$0xff] }
  0xb5   :  { %3921 = vmatpush3.bf16.msra.mxu0 %v3920_v30  ;;  %v436_v30 = vld [vmem:[%s6753_s1 + $0xca0] sm:$0xff] }
  0xb6   :  { %3923 = vmatprep.subr.bf16.mxu0 %v3922_v32  ;;  %v880_v32 = vcombine.high %v5644_v18, %v5644_v18 }
  0xb7   :  { %3953 = vmatpush3.bf16.msra.mxu1 %v3952_v31  ;;  %v437_v31 = vld [vmem:[%s6753_s1 + $0xca8] sm:$0xff] }
  0xb8   :  { %3955 = vmatprep.subr.bf16.mxu1 %v3954_v37  ;;  %v3972_v37 = vpack.c.bf16 %v419_v26, %v418_v25  ;;  %v3974_v39 = vpack.c.bf16 %v437_v31, %v436_v30  ;;  %v4020_v25 = vpack.c.bf16 %v459_v16, %v458_v15  ;;  %v3990_v26 = vpack.c.bf16 %v445_v21, %v444_v20  ;;  %v461_v31 = vld [vmem:[%s6753_s1 + $0xd68] sm:$0xff] }
  0xb9   :  { %3925 = vmatpush3.bf16.msra.mxu0 %v3924_v44  ;;  %v438_v44 = vld [vmem:[%s6753_s1 + $0xcb0] sm:$0xff]  ;;  %v485_v21 = vld [vmem:[%s6753_s1 + $0xe28] sm:$0xff] }
  0xba   :  { %3927 = vmatprep.subr.bf16.mxu0 %v3926_v48  ;;  %v470_v48 = vld [vmem:[%s6753_s1 + $0xdb0] sm:$0xff] }
  0xbb   :  { %3957 = vmatpush3.bf16.msra.mxu1 %v3956_v47  ;;  %v439_v47 = vld [vmem:[%s6753_s1 + $0xcb8] sm:$0xff]  ;;  %v4010_v33 = vpack.c.bf16 %v471_v49, %v470_v48  ;;  %v497_v48 = vld [vmem:[%s6753_s1 + $0xe88] sm:$0xff]  ;;  %v528_v49 = vld [vmem:[%s6753_s1 + $0xf80] sm:$0xff] }
  0xbc   :  { %3959 = vmatprep.subr.bf16.mxu1 %v3958_v52  ;;  %v3978_v52 = vpack.c.bf16 %v439_v47, %v438_v44  ;;  %v463_v44 = vld [vmem:[%s6753_s1 + $0xd78] sm:$0xff]  ;;  %v496_v47 = vld [vmem:[%s6753_s1 + $0xe80] sm:$0xff] }
  0xbd   :  { %3929 = vmatpush3.bf16.msra.mxu0 %v3928_v58  ;;  %v440_v58 = vld [vmem:[%s6753_s1 + $0xcc0] sm:$0xff]  ;;  %v4030_v54 = vpack.c.bf16 %v497_v48, %v496_v47 }
  0xbe   :  { %3931 = vmatprep.subr.bf16.mxu0 %v3930_v60  ;;  %v473_v60 = vld [vmem:[%s6753_s1 + $0xdc8] sm:$0xff]  ;;  %v3982_v0 = vpack.c.bf16 %v441_v59, %v440_v58  ;;  %v520_v47 = vld [vmem:[%s6753_s1 + $0xf40] sm:$0xff] }
  0xbf   :  { %3961 = vmatpush3.bf16.msra.mxu1 %v3960_v42  ;;  %v472_v42 = vld [vmem:[%s6753_s1 + $0xdc0] sm:$0xff]  ;;  %v513_v59 = vld [vmem:[%s6753_s1 + $0xf08] sm:$0xff] }
  0xc0   :  { %3963 = vmatprep.subr.bf16.mxu1 %v3962_v62  ;;  %v424_v62 = vld [vmem:[%s6753_s1 + $0xc40] sm:$0xff]  ;;  %v4014_v3 = vpack.c.bf16 %v473_v60, %v472_v42  ;;  %v498_v42 = vld [vmem:[%s6753_s1 + $0xe90] sm:$0xff]  ;;  %v499_v60 = vld [vmem:[%s6753_s1 + $0xe98] sm:$0xff]  ;;  %v4064_v2 = vpack.c.bf16 %v513_v59, %v512_v57 }
  0xc1   :  { %3933 = vmatpush3.bf16.msra.mxu0 %v3932_v7  ;;  %v474_v7 = vld [vmem:[%s6753_s1 + $0xdd0] sm:$0xff] }
  0xc2   :  { %3967 = vmatprep.subr.bf16.mxu0 %v3966_v9  ;;  %v3984_v9 = vpack.c.bf16 %v425_v1, %v424_v62  ;;  %v490_v57 = vld [vmem:[%s6753_s1 + $0xe50] sm:$0xff] }
  0xc3   :  { %3965 = vmatpush3.bf16.msra.mxu1 %v3964_v8  ;;  %v475_v8 = vld [vmem:[%s6753_s1 + $0xdd8] sm:$0xff]  ;;  %v522_v59 = vld [vmem:[%s6753_s1 + $0xf50] sm:$0xff] }
  0xc4   :  { %3999 = vmatprep.subr.bf16.mxu1 %v3998_v14  ;;  %1769 = vmatmul.mubr.f32.vlgmr.msra.gmra.mrb[10].mxu0 %v5437_v38  ;;  %v420_v38 = vld [vmem:[%s6753_s1 + $0xc20] sm:$0xff]  ;;  %v427_v14 = vld [vmem:[%s6753_s1 + $0xc58] sm:$0xff]  ;;  %v4018_v17 = vpack.c.bf16 %v475_v8, %v474_v7 }
  0xc5   :  { %3969 = vmatpush3.bf16.msra.mxu0 %v3968_v22  ;;  %1908 = vmatprep.mubr.f32.mxu0 %v880_v32  ;;  %v3976_v50 = vpack.c.bf16 %v421_v40, %v420_v38  ;;  %v476_v22 = vld [vmem:[%s6753_s1 + $0xde0] sm:$0xff]  ;;  %v446_v32 = vld [vmem:[%s6753_s1 + $0xcf0] sm:$0xff]  ;;  %v515_v8 = vld [vmem:[%s6753_s1 + $0xf18] sm:$0xff] }
  0xc6   :  { %1839 = vmatmul.mubr.f32.vlgmr.msra.gmra.mrb[10].mxu1 %v5446_v55  ;;  %3971 = vmatprep.subr.bf16.mxu0 %v3970_v24  ;;  %v453_v55 = vld [vmem:[%s6753_s1 + $0xd28] sm:$0xff]  ;;  %v3988_v24 = vpack.c.bf16 %v427_v14, %v426_v13  ;;  %v3994_v38 = vpack.c.bf16 %v447_v34, %v446_v32  ;;  %v430_v40 = vld [vmem:[%s6753_s1 + $0xc70] sm:$0xff]  ;;  %v532_v13 = vld [vmem:[%s6753_s1 + $0xfa0] sm:$0xff]  ;;  %v4068_v16 = vpack.c.bf16 %v515_v8, %v514_v6 }
  0xc7   :  { %4001 = vmatpush3.bf16.msra.mxu1 %v4000_v23  ;;  %1978 = vmatprep.mubr.f32.mxu1 %v881_v36  ;;  %v4008_v51 = vpack.c.bf16 %v453_v55, %v452_v41  ;;  %v477_v23 = vld [vmem:[%s6753_s1 + $0xde8] sm:$0xff]  ;;  %v479_v36 = vld [vmem:[%s6753_s1 + $0xdf8] sm:$0xff]  ;;  %v518_v34 = vld [vmem:[%s6753_s1 + $0xf30] sm:$0xff] }
  0xc8   :  { %4003 = vmatprep.subr.bf16.mxu1 %v4002_v28  ;;  %v429_v28 = vld [vmem:[%s6753_s1 + $0xc68] sm:$0xff]  ;;  %v4022_v30 = vpack.c.bf16 %v477_v23, %v476_v22  ;;  %v431_v41 = vld [vmem:[%s6753_s1 + $0xc78] sm:$0xff]  ;;  %v4026_v55 = vpack.c.bf16 %v479_v36, %v478_v35  ;;  %v516_v22 = vld [vmem:[%s6753_s1 + $0xf20] sm:$0xff] }
  0xc9   :  { %3973 = vmatpush3.bf16.msra.mxu0 %v3972_v37  ;;  %v3992_v37 = vpack.c.bf16 %v429_v28, %v428_v27  ;;  %v533_v14 = vld [vmem:[%s6753_s1 + $0xfa8] sm:$0xff]  ;;  %v535_v27 = vld [vmem:[%s6753_s1 + $0xfb8] sm:$0xff]  ;;  %v492_v6 = vld [vmem:[%s6753_s1 + $0xe60] sm:$0xff] }
  0xca   :  { %3975 = vmatprep.subr.bf16.mxu0 %v3974_v39  ;;  %v4024_v39 = vpack.c.bf16 %v461_v31, %v460_v29  ;;  %v4070_v23 = vpack.c.bf16 %v533_v14, %v532_v13  ;;  %v486_v31 = vld [vmem:[%s6753_s1 + $0xe30] sm:$0xff]  ;;  %v487_v32 = vld [vmem:[%s6753_s1 + $0xe38] sm:$0xff]  ;;  %v524_v8 = vld [vmem:[%s6753_s1 + $0xf60] sm:$0xff] }
  0xcb   :  { %4005 = vmatpush3.bf16.msra.mxu1 %v4004_v46  ;;  %v27_v46 = vld [vmem:[%s6754_s0 + $0x38] sm:$0xff]  ;;  %v510_v13 = vld [vmem:[%s6753_s1 + $0xef0] sm:$0xff] }
  0xcc   :  { %4007 = vmatprep.subr.bf16.mxu1 %v4006_v43  ;;  %v462_v43 = vld [vmem:[%s6753_s1 + $0xd70] sm:$0xff]  ;;  %v519_v36 = vld [vmem:[%s6753_s1 + $0xf38] sm:$0xff] }
  0xcd   :  { %3977 = vmatpush3.bf16.msra.mxu0 %v3976_v50  ;;  %v529_v50 = vld [vmem:[%s6753_s1 + $0xf88] sm:$0xff]  ;;  %v4028_v53 = vpack.c.bf16 %v463_v44, %v462_v43  ;;  %v511_v14 = vld [vmem:[%s6753_s1 + $0xef8] sm:$0xff] }
  0xce   :  { %3979 = vmatprep.subr.bf16.mxu0 %v3978_v52  ;;  %v3996_v52 = vpack.c.bf16 %v431_v41, %v430_v40  ;;  %v4062_v58 = vpack.c.bf16 %v529_v50, %v528_v49  ;;  %v4044_v40 = vpack.c.bf16 %v487_v32, %v486_v31  ;;  %v4076_v41 = vpack.c.bf16 %v519_v36, %v518_v34  ;;  %v489_v44 = vld [vmem:[%s6753_s1 + $0xe48] sm:$0xff]  ;;  %v506_v50 = vld [vmem:[%s6753_s1 + $0xed0] sm:$0xff]  ;;  %v527_v32 = vld [vmem:[%s6753_s1 + $0xf78] sm:$0xff] }
  0xcf   :  { %4009 = vmatpush3.bf16.msra.mxu1 %v4008_v51  ;;  %v882_v51 = vcombine.high %v27_v46, %v27_v46  ;;  %v521_v49 = vld [vmem:[%s6753_s1 + $0xf48] sm:$0xff]  ;;  %v560_v34 = vld [vmem:[%s6753_s1 + $0x1080] sm:$0xff] }
  0xd0   :  { %4011 = vmatprep.subr.bf16.mxu1 %v4010_v33  ;;  %v481_v33 = vld [vmem:[%s6753_s1 + $0xe08] sm:$0xff]  ;;  %v592_v36 = vld [vmem:[%s6753_s1 + $0x1180] sm:$0xff] }
  0xd1   :  { %3981 = vmatpush3.bf16.msra.mxu0 %v3980_v61  ;;  %v5851_v61 = vrot.slane %v27_v46, %v4522_v10  ;;  %v5860_v62 = vrot.slane %v882_v51, %v4522_v10  ;;  %v4032_v1 = vpack.c.bf16 %v481_v33, %v480_v56  ;;  %v505_v46 = vld [vmem:[%s6753_s1 + $0xec8] sm:$0xff]  ;;  %v507_v51 = vld [vmem:[%s6753_s1 + $0xed8] sm:$0xff]  ;;  %v4080_v56 = vpack.c.bf16 %v521_v49, %v520_v47  ;;  %v562_v49 = vld [vmem:[%s6753_s1 + $0x1090] sm:$0xff] }
  0xd2   :  { %3983 = vmatprep.subr.bf16.mxu0 %v3982_v0  ;;  %v531_v0 = vld [vmem:[%s6753_s1 + $0xf98] sm:$0xff]  ;;  %v4050_v33 = vpack.c.bf16 %v507_v51, %v506_v50 }
  0xd3   :  { %4013 = vmatpush3.bf16.msra.mxu1 %v4012_v63  ;;  %v530_v63 = vld [vmem:[%s6753_s1 + $0xf90] sm:$0xff]  ;;  %v898_v15 = vcombine.high %v5860_v62, %v5860_v62  ;;  %v563_v50 = vld [vmem:[%s6753_s1 + $0x1098] sm:$0xff] }
  0xd4   :  { %4015 = vmatprep.subr.bf16.mxu1 %v4014_v3  ;;  %v4034_v3 = vpack.c.bf16 %v499_v60, %v498_v42  ;;  %v4066_v7 = vpack.c.bf16 %v531_v0, %v530_v63  ;;  %v523_v60 = vld [vmem:[%s6753_s1 + $0xf58] sm:$0xff]  ;;  %v508_v63 = vld [vmem:[%s6753_s1 + $0xee0] sm:$0xff]  ;;  %v509_v0 = vld [vmem:[%s6753_s1 + $0xee8] sm:$0xff] }
  0xd5   :  { %3985 = vmatpush3.bf16.msra.mxu0 %v3984_v9  ;;  %v500_v9 = vld [vmem:[%s6753_s1 + $0xea0] sm:$0xff] }
  0xd6   :  { %3987 = vmatprep.subr.bf16.mxu0 %v3986_v12  ;;  %v897_v12 = vcombine.high %v5851_v61, %v5851_v61 }
  0xd7   :  { %4017 = vmatpush3.bf16.msra.mxu1 %v4016_v11  ;;  %v501_v11 = vld [vmem:[%s6753_s1 + $0xea8] sm:$0xff] }
  0xd8   :  { %4019 = vmatprep.subr.bf16.mxu1 %v4018_v17  ;;  %v4036_v17 = vpack.c.bf16 %v483_v5, %v482_v4  ;;  %v4038_v20 = vpack.c.bf16 %v501_v11, %v500_v9  ;;  %v4084_v4 = vpack.c.bf16 %v523_v60, %v522_v59  ;;  %v4054_v5 = vpack.c.bf16 %v509_v0, %v508_v63  ;;  %v547_v59 = vld [vmem:[%s6753_s1 + $0x1018] sm:$0xff]  ;;  %v564_v0 = vld [vmem:[%s6753_s1 + $0x10a0] sm:$0xff] }
  0xd9   :  { %3989 = vmatpush3.bf16.msra.mxu0 %v3988_v24  ;;  %v502_v24 = vld [vmem:[%s6753_s1 + $0xeb0] sm:$0xff]  ;;  %v579_v63 = vld [vmem:[%s6753_s1 + $0x1118] sm:$0xff] }
  0xda   :  { %3991 = vmatprep.subr.bf16.mxu0 %v3990_v26  ;;  %v534_v26 = vld [vmem:[%s6753_s1 + $0xfb0] sm:$0xff] }
  0xdb   :  { %4021 = vmatpush3.bf16.msra.mxu1 %v4020_v25  ;;  %v503_v25 = vld [vmem:[%s6753_s1 + $0xeb8] sm:$0xff]  ;;  %v4074_v35 = vpack.c.bf16 %v535_v27, %v534_v26  ;;  %v4058_v26 = vpack.c.bf16 %v511_v14, %v510_v13  ;;  %v494_v27 = vld [vmem:[%s6753_s1 + $0xe70] sm:$0xff] }
  0xdc   :  { %4023 = vmatprep.subr.bf16.mxu1 %v4022_v30  ;;  %v4042_v30 = vpack.c.bf16 %v503_v25, %v502_v24  ;;  %v566_v13 = vld [vmem:[%s6753_s1 + $0x10b0] sm:$0xff]  ;;  %v567_v14 = vld [vmem:[%s6753_s1 + $0x10b8] sm:$0xff] }
  0xdd   :  { %3993 = vmatpush3.bf16.msra.mxu0 %v3992_v37  ;;  %v504_v37 = vld [vmem:[%s6753_s1 + $0xec0] sm:$0xff] }
  0xde   :  { %3995 = vmatprep.subr.bf16.mxu0 %v3994_v38  ;;  %v537_v38 = vld [vmem:[%s6753_s1 + $0xfc8] sm:$0xff]  ;;  %v4046_v43 = vpack.c.bf16 %v505_v46, %v504_v37 }
  0xdf   :  { %4025 = vmatpush3.bf16.msra.mxu1 %v4024_v39  ;;  %v536_v39 = vld [vmem:[%s6753_s1 + $0xfc0] sm:$0xff]  ;;  %v593_v37 = vld [vmem:[%s6753_s1 + $0x1188] sm:$0xff] }
  0xe0   :  { %4027 = vmatprep.subr.bf16.mxu1 %v4026_v55  ;;  %v488_v55 = vld [vmem:[%s6753_s1 + $0xe40] sm:$0xff]  ;;  %v4078_v48 = vpack.c.bf16 %v537_v38, %v536_v39  ;;  %v4126_v47 = vpack.c.bf16 %v593_v37, %v592_v36  ;;  %v585_v37 = vld [vmem:[%s6753_s1 + $0x1148] sm:$0xff] }
  0xe1   :  { %3997 = vmatpush3.bf16.msra.mxu0 %v3996_v52  ;;  %v538_v52 = vld [vmem:[%s6753_s1 + $0xfd0] sm:$0xff] }
  0xe2   :  { %4031 = vmatprep.subr.bf16.mxu0 %v4030_v54  ;;  %v4048_v54 = vpack.c.bf16 %v489_v44, %v488_v55  ;;  %v545_v55 = vld [vmem:[%s6753_s1 + $0x1008] sm:$0xff]  ;;  %v576_v44 = vld [vmem:[%s6753_s1 + $0x1100] sm:$0xff] }
  0xe3   :  { %4029 = vmatpush3.bf16.msra.mxu1 %v4028_v53  ;;  %v539_v53 = vld [vmem:[%s6753_s1 + $0xfd8] sm:$0xff] }
  0xe4   :  { %4063 = vmatprep.subr.bf16.mxu1 %v4062_v58  ;;  %1909 = vmatmul.mubr.f32.vlgmr.msra.gmra.mrb[12].mxu0 %v5644_v18  ;;  %v484_v18 = vld [vmem:[%s6753_s1 + $0xe20] sm:$0xff]  ;;  %v491_v58 = vld [vmem:[%s6753_s1 + $0xe58] sm:$0xff]  ;;  %v4082_v42 = vpack.c.bf16 %v539_v53, %v538_v52  ;;  %v594_v52 = vld [vmem:[%s6753_s1 + $0x1190] sm:$0xff] }
  0xe5   :  { %4033 = vmatpush3.bf16.msra.mxu0 %v4032_v1  ;;  %2048 = vmatprep.mubr.f32.mxu0 %v897_v12  ;;  %v4040_v28 = vpack.c.bf16 %v485_v21, %v484_v18  ;;  %v540_v1 = vld [vmem:[%s6753_s1 + $0xfe0] sm:$0xff]  ;;  %v525_v12 = vld [vmem:[%s6753_s1 + $0xf68] sm:$0xff]  ;;  %v543_v18 = vld [vmem:[%s6753_s1 + $0xff8] sm:$0xff] }
  0xe6   :  { %1979 = vmatmul.mubr.f32.vlgmr.msra.gmra.mrb[12].mxu1 %v5653_v19  ;;  %4035 = vmatprep.subr.bf16.mxu0 %v4034_v3  ;;  %v517_v19 = vld [vmem:[%s6753_s1 + $0xf28] sm:$0xff]  ;;  %v4052_v3 = vpack.c.bf16 %v491_v58, %v490_v57  ;;  %v4088_v25 = vpack.c.bf16 %v525_v12, %v524_v8  ;;  %v595_v53 = vld [vmem:[%s6753_s1 + $0x1198] sm:$0xff]  ;;  %v4098_v57 = vpack.c.bf16 %v563_v50, %v562_v49  ;;  %v546_v58 = vld [vmem:[%s6753_s1 + $0x1010] sm:$0xff] }
  0xe7   :  { %4065 = vmatpush3.bf16.msra.mxu1 %v4064_v2  ;;  %2118 = vmatprep.mubr.f32.mxu1 %v898_v15  ;;  %v4072_v29 = vpack.c.bf16 %v517_v19, %v516_v22  ;;  %v541_v2 = vld [vmem:[%s6753_s1 + $0xfe8] sm:$0xff]  ;;  %v2728_v15 = vld [vmem:[%s6755_s2] ss:$0 sm:$0xff]  ;;  %v4130_v60 = vpack.c.bf16 %v595_v53, %v594_v52  ;;  %v586_v49 = vld [vmem:[%s6753_s1 + $0x1150] sm:$0xff] }
  0xe8   :  { %4067 = vmatprep.subr.bf16.mxu1 %v4066_v7  ;;  %v493_v7 = vld [vmem:[%s6753_s1 + $0xe68] sm:$0xff]  ;;  %v4086_v11 = vpack.c.bf16 %v541_v2, %v540_v1  ;;  %v28_v19 = vld [vmem:[%s6754_s0 + $0x40] sm:$0xff]  ;;  %v587_v52 = vld [vmem:[%s6753_s1 + $0x1158] sm:$0xff] }
  0xe9   :  { %4037 = vmatpush3.bf16.msra.mxu0 %v4036_v17  ;;  %v899_v46 = vcombine.high %v28_v19, %v28_v19  ;;  %v6063_v51 = vrot.slane %v28_v19, %v4522_v10  ;;  %v565_v1 = vld [vmem:[%s6753_s1 + $0x10a8] sm:$0xff]  ;;  %v572_v53 = vld [vmem:[%s6753_s1 + $0x10e0] sm:$0xff] }
  0xea   :  { %4039 = vmatprep.subr.bf16.mxu0 %v4038_v20  ;;  %v542_v20 = vld [vmem:[%s6753_s1 + $0xff0] sm:$0xff]  ;;  %v4102_v8 = vpack.c.bf16 %v565_v1, %v564_v0  ;;  %v588_v0 = vld [vmem:[%s6753_s1 + $0x1160] sm:$0xff] }
  0xeb   :  { %4069 = vmatpush3.bf16.msra.mxu1 %v4068_v16  ;;  %v4090_v31 = vpack.c.bf16 %v543_v18, %v542_v20  ;;  %v914_v2 = vcombine.high %v6063_v51, %v6063_v51  ;;  %v4106_v18 = vpack.c.bf16 %v567_v14, %v566_v13 }
  0xec   :  { %4071 = vmatprep.subr.bf16.mxu1 %v4070_v23  ;;  %v4056_v23 = vpack.c.bf16 %v493_v7, %v492_v6  ;;  %v4100_v6 = vpack.c.bf16 %v547_v59, %v546_v58  ;;  %v4148_v59 = vpack.c.bf16 %v587_v52, %v586_v49  ;;  %v642_v49 = vld [vmem:[%s6753_s1 + $0x1310] sm:$0xff]  ;;  %v643_v52 = vld [vmem:[%s6753_s1 + $0x1318] sm:$0xff] }
  0xed   :  { %4041 = vmatpush3.bf16.msra.mxu0 %v4040_v28  ;;  %v495_v28 = vld [vmem:[%s6753_s1 + $0xe78] sm:$0xff] }
  0xee   :  { %4043 = vmatprep.subr.bf16.mxu0 %v4042_v30  ;;  %v4060_v38 = vpack.c.bf16 %v495_v28, %v494_v27  ;;  %v600_v27 = vld [vmem:[%s6753_s1 + $0x11c0] sm:$0xff]  ;;  %v601_v28 = vld [vmem:[%s6753_s1 + $0x11c8] sm:$0xff] }
  0xef   :  { %4073 = vmatpush3.bf16.msra.mxu1 %v4072_v29  ;;  %v526_v29 = vld [vmem:[%s6753_s1 + $0xf70] sm:$0xff]  ;;  %v4142_v36 = vpack.c.bf16 %v601_v28, %v600_v27 }
  0xf0   :  { %4075 = vmatprep.subr.bf16.mxu1 %v4074_v35  ;;  %v561_v35 = vld [vmem:[%s6753_s1 + $0x1088] sm:$0xff] }
  0xf1   :  { %4045 = vmatpush3.bf16.msra.mxu0 %v4044_v40  ;;  %v4092_v40 = vpack.c.bf16 %v527_v32, %v526_v29  ;;  %v552_v32 = vld [vmem:[%s6753_s1 + $0x1040] sm:$0xff] }
  0xf2   :  { %4047 = vmatprep.subr.bf16.mxu0 %v4046_v43  ;;  %v544_v43 = vld [vmem:[%s6753_s1 + $0x1000] sm:$0xff] }
  0xf3   :  { %4077 = vmatpush3.bf16.msra.mxu1 %v4076_v41  ;;  %v4094_v41 = vpack.c.bf16 %v561_v35, %v560_v34  ;;  %v553_v34 = vld [vmem:[%s6753_s1 + $0x1048] sm:$0xff]  ;;  %v584_v35 = vld [vmem:[%s6753_s1 + $0x1140] sm:$0xff] }
  0xf4   :  { %4079 = vmatprep.subr.bf16.mxu1 %v4078_v48  ;;  %v577_v48 = vld [vmem:[%s6753_s1 + $0x1108] sm:$0xff] }
  0xf5   :  { %4049 = vmatpush3.bf16.msra.mxu0 %v4048_v54  ;;  %v6072_v54 = vrot.slane %v899_v46, %v4522_v10  ;;  %v570_v46 = vld [vmem:[%s6753_s1 + $0x10d0] sm:$0xff] }
  0xf6   :  { %4051 = vmatprep.subr.bf16.mxu0 %v4050_v33  ;;  %v4128_v33 = vpack.c.bf16 %v577_v48, %v576_v44  ;;  %v555_v48 = vld [vmem:[%s6753_s1 + $0x1058] sm:$0xff] }
  0xf7   :  { %4081 = vmatpush3.bf16.msra.mxu1 %v4080_v56  ;;  %v2764_v9 = vpop.f32.mrb[0].mxu0  ;;  %v4096_v56 = vpack.c.bf16 %v545_v55, %v544_v43  ;;  %v4112_v43 = vpack.c.bf16 %v553_v34, %v552_v32  ;;  %v4144_v55 = vpack.c.bf16 %v585_v37, %v584_v35  ;;  %v640_v32 = vld [vmem:[%s6753_s1 + $0x1300] sm:$0xff]  ;;  %v641_v35 = vld [vmem:[%s6753_s1 + $0x1308] sm:$0xff]  ;;  %v627_v37 = vld [vmem:[%s6753_s1 + $0x1298] sm:$0xff] }
  0xf8   :  { %4083 = vmatprep.subr.bf16.mxu1 %v4082_v42  ;;  %v2765_v17 = vpop.f32.mrb[1].mxu0  ;;  %v578_v42 = vld [vmem:[%s6753_s1 + $0x1110] sm:$0xff] }
  0xf9   :  { %v2799_v16 = vpop.f32.mrb[0].mxu1  ;;  %v2766_v21 = vadd.f32 %v2765_v17, %v2764_v9  ;;  %4053 = vmatpush3.bf16.msra.mxu0 %v4052_v3  ;;  %v596_v3 = vld [vmem:[%s6753_s1 + $0x11a0] sm:$0xff]  ;;  %v4132_v7 = vpack.c.bf16 %v579_v63, %v578_v42  ;;  %v549_v9 = vld [vmem:[%s6753_s1 + $0x1028] sm:$0xff]  ;;  %v599_v17 = vld [vmem:[%s6753_s1 + $0x11b8] sm:$0xff] }
  0xfa   :  { %v2800_v22 = vpop.f32.mrb[1].mxu1  ;;  %4055 = vmatprep.subr.bf16.mxu0 %v4054_v5  ;;  %v915_v5 = vcombine.high %v6072_v54, %v6072_v54  ;;  %v557_v63 = vld [vmem:[%s6753_s1 + $0x1068] sm:$0xff] }
  0xfb   :  { %v2801_v24 = vadd.f32 %v2800_v22, %v2799_v16  ;;  %4085 = vmatpush3.bf16.msra.mxu1 %v4084_v4  ;;  %v1071_v30 = vadd.f32 %v2766_v21, %v2728_v15  ;;  %v597_v4 = vld [vmem:[%s6753_s1 + $0x11a8] sm:$0xff]  ;;  %v598_v15 = vld [vmem:[%s6753_s1 + $0x11b0] sm:$0xff]  ;;  %v551_v22 = vld [vmem:[%s6753_s1 + $0x1038] sm:$0xff] }
  0xfc   :  { %4087 = vmatprep.subr.bf16.mxu1 %v4086_v11  ;;  %v580_v11 = vld [vmem:[%s6753_s1 + $0x1120] sm:$0xff]  ;;  %v4134_v12 = vpack.c.bf16 %v597_v4, %v596_v3  ;;  %v550_v21 = vld [vmem:[%s6753_s1 + $0x1030] sm:$0xff]  ;;  %v4138_v19 = vpack.c.bf16 %v599_v17, %v598_v15  ;;  %v589_v3 = vld [vmem:[%s6753_s1 + $0x1168] sm:$0xff] }
  0xfd   :  { %v6042_v39 = vadd.f32 %v2801_v24, %v1071_v30  ;;  %4057 = vmatpush3.bf16.msra.mxu0 %v4056_v23  ;;  %v582_v23 = vld [vmem:[%s6753_s1 + $0x1130] sm:$0xff]  ;;  %v583_v24 = vld [vmem:[%s6753_s1 + $0x1138] sm:$0xff]  ;;  %v4108_v29 = vpack.c.bf16 %v551_v22, %v550_v21  ;;  %v4152_v14 = vpack.c.bf16 %v589_v3, %v588_v0  ;;  %v613_v0 = vld [vmem:[%s6753_s1 + $0x1228] sm:$0xff] }
  0xfe   :  { %4059 = vmatprep.subr.bf16.mxu0 %v4058_v26  ;;  %v569_v26 = vld [vmem:[%s6753_s1 + $0x10c8] sm:$0xff]  ;;  %v4140_v30 = vpack.c.bf16 %v583_v24, %v582_v23  ;;  %v574_v4 = vld [vmem:[%s6753_s1 + $0x10f0] sm:$0xff]  ;;  %v591_v22 = vld [vmem:[%s6753_s1 + $0x1178] sm:$0xff] }
  0xff   :  { %4089 = vmatpush3.bf16.msra.mxu1 %v4088_v25  ;;  %v568_v25 = vld [vmem:[%s6753_s1 + $0x10c0] sm:$0xff]  ;;  %v558_v17 = vld [vmem:[%s6753_s1 + $0x1070] sm:$0xff] }
 0x100   :  { %4091 = vmatprep.subr.bf16.mxu1 %v4090_v31  ;;  %v4110_v31 = vpack.c.bf16 %v569_v26, %v568_v25  ;;  %v624_v23 = vld [vmem:[%s6753_s1 + $0x1280] sm:$0xff]  ;;  %v630_v3 = vld [vmem:[%s6753_s1 + $0x12b0] sm:$0xff] }
 0x101   :  { %4061 = vmatpush3.bf16.msra.mxu0 %v4060_v38  ;;  %v571_v38 = vld [vmem:[%s6753_s1 + $0x10d8] sm:$0xff]  ;;  %v656_v24 = vld [vmem:[%s6753_s1 + $0x1380] sm:$0xff] }
 0x102   :  { %4095 = vmatprep.subr.bf16.mxu0 %v4094_v41  ;;  %v603_v41 = vld [vmem:[%s6753_s1 + $0x11d8] sm:$0xff]  ;;  %v4114_v44 = vpack.c.bf16 %v571_v38, %v570_v46  ;;  %v658_v38 = vld [vmem:[%s6753_s1 + $0x1390] sm:$0xff] }
 0x103   :  { %4093 = vmatpush3.bf16.msra.mxu1 %v4092_v40  ;;  %v602_v40 = vld [vmem:[%s6753_s1 + $0x11d0] sm:$0xff] }
 0x104   :  { %4127 = vmatprep.subr.bf16.mxu1 %v4126_v47  ;;  %2049 = vmatmul.mubr.f32.vlgmr.msra.gmra.mrb[14].mxu0 %v5851_v61  ;;  %v548_v61 = vld [vmem:[%s6753_s1 + $0x1020] sm:$0xff]  ;;  %v554_v47 = vld [vmem:[%s6753_s1 + $0x1050] sm:$0xff]  ;;  %v4146_v50 = vpack.c.bf16 %v603_v41, %v602_v40  ;;  %v659_v40 = vld [vmem:[%s6753_s1 + $0x1398] sm:$0xff] }
 0x105   :  { %4097 = vmatpush3.bf16.msra.mxu0 %v4096_v56  ;;  %2188 = vmatprep.mubr.f32.mxu0 %v914_v2  ;;  %v4104_v16 = vpack.c.bf16 %v549_v9, %v548_v61  ;;  %v573_v56 = vld [vmem:[%s6753_s1 + $0x10e8] sm:$0xff]  ;;  %v4116_v58 = vpack.c.bf16 %v555_v48, %v554_v47  ;;  %v607_v61 = vld [vmem:[%s6753_s1 + $0x11f8] sm:$0xff]  ;;  %v610_v47 = vld [vmem:[%s6753_s1 + $0x1210] sm:$0xff] }
 0x106   :  { %2119 = vmatmul.mubr.f32.vlgmr.msra.gmra.mrb[14].mxu1 %v5860_v62  ;;  %4099 = vmatprep.subr.bf16.mxu0 %v4098_v57  ;;  %v581_v62 = vld [vmem:[%s6753_s1 + $0x1128] sm:$0xff]  ;;  %v4118_v42 = vpack.c.bf16 %v573_v56, %v572_v53  ;;  %v611_v48 = vld [vmem:[%s6753_s1 + $0x1218] sm:$0xff]  ;;  %v628_v53 = vld [vmem:[%s6753_s1 + $0x12a0] sm:$0xff] }
 0x107   :  { %4129 = vmatpush3.bf16.msra.mxu1 %v4128_v33  ;;  %2258 = vmatprep.mubr.f32.mxu1 %v915_v5  ;;  %v4136_v20 = vpack.c.bf16 %v581_v62, %v580_v11  ;;  %v604_v33 = vld [vmem:[%s6753_s1 + $0x11e0] sm:$0xff]  ;;  %v605_v57 = vld [vmem:[%s6753_s1 + $0x11e8] sm:$0xff]  ;;  %v575_v5 = vld [vmem:[%s6753_s1 + $0x10f8] sm:$0xff] }
 0x108   :  { %4131 = vmatprep.subr.bf16.mxu1 %v4130_v60  ;;  %v556_v60 = vld [vmem:[%s6753_s1 + $0x1060] sm:$0xff]  ;;  %v4150_v2 = vpack.c.bf16 %v605_v57, %v604_v33  ;;  %v29_v62 = vld [vmem:[%s6754_s0 + $0x48] sm:$0xff]  ;;  %v4122_v15 = vpack.c.bf16 %v575_v5, %v574_v4  ;;  %v631_v4 = vld [vmem:[%s6753_s1 + $0x12b8] sm:$0xff] }
 0x109   :  { %4101 = vmatpush3.bf16.msra.mxu0 %v4100_v6  ;;  %v916_v25 = vcombine.high %v29_v62, %v29_v62  ;;  %v6273_v46 = vrot.slane %v29_v62, %v4522_v10  ;;  %v629_v56 = vld [vmem:[%s6753_s1 + $0x12a8] sm:$0xff]  ;;  %v660_v57 = vld [vmem:[%s6753_s1 + $0x13a0] sm:$0xff]  ;;  %v662_v5 = vld [vmem:[%s6753_s1 + $0x13b0] sm:$0xff] }
 0x10a   :  { %4103 = vmatprep.subr.bf16.mxu0 %v4102_v8  ;;  %v606_v8 = vld [vmem:[%s6753_s1 + $0x11f0] sm:$0xff] }
 0x10b   :  { %4133 = vmatpush3.bf16.msra.mxu1 %v4132_v7  ;;  %v4154_v21 = vpack.c.bf16 %v607_v61, %v606_v8  ;;  %v6282_v41 = vrot.slane %v916_v25, %v4522_v10  ;;  %v931_v33 = vcombine.high %v6273_v46, %v6273_v46  ;;  %v4170_v61 = vpack.c.bf16 %v631_v4, %v630_v3  ;;  %v634_v25 = vld [vmem:[%s6753_s1 + $0x12d0] sm:$0xff] }
 0x10c   :  { %4135 = vmatprep.subr.bf16.mxu1 %v4134_v12  ;;  %v4120_v12 = vpack.c.bf16 %v557_v63, %v556_v60  ;;  %v4196_v60 = vpack.c.bf16 %v643_v52, %v642_v49  ;;  %v4166_v63 = vpack.c.bf16 %v629_v56, %v628_v53  ;;  %v621_v52 = vld [vmem:[%s6753_s1 + $0x1268] sm:$0xff]  ;;  %v652_v53 = vld [vmem:[%s6753_s1 + $0x1360] sm:$0xff] }
 0x10d   :  { %4105 = vmatpush3.bf16.msra.mxu0 %v4104_v16  ;;  %v559_v16 = vld [vmem:[%s6753_s1 + $0x1078] sm:$0xff] }
 0x10e   :  { %4107 = vmatprep.subr.bf16.mxu0 %v4106_v18  ;;  %v4124_v27 = vpack.c.bf16 %v559_v16, %v558_v17  ;;  %v664_v17 = vld [vmem:[%s6753_s1 + $0x13c0] sm:$0xff]  ;;  %v665_v16 = vld [vmem:[%s6753_s1 + $0x13c8] sm:$0xff] }
 0x10f   :  { %4137 = vmatpush3.bf16.msra.mxu1 %v4136_v20  ;;  %v590_v20 = vld [vmem:[%s6753_s1 + $0x1170] sm:$0xff] }
 0x110   :  { %4139 = vmatprep.subr.bf16.mxu1 %v4138_v19  ;;  %v625_v19 = vld [vmem:[%s6753_s1 + $0x1288] sm:$0xff]  ;;  %v4156_v28 = vpack.c.bf16 %v591_v22, %v590_v20  ;;  %v616_v22 = vld [vmem:[%s6753_s1 + $0x1240] sm:$0xff] }
 0x111   :  { %4109 = vmatpush3.bf16.msra.mxu0 %v4108_v29  ;;  %v4158_v29 = vpack.c.bf16 %v625_v19, %v624_v23  ;;  %v617_v23 = vld [vmem:[%s6753_s1 + $0x1248] sm:$0xff]  ;;  %v648_v19 = vld [vmem:[%s6753_s1 + $0x1340] sm:$0xff] }
 0x112   :  { %4111 = vmatprep.subr.bf16.mxu0 %v4110_v31  ;;  %v609_v31 = vld [vmem:[%s6753_s1 + $0x1208] sm:$0xff] }
 0x113   :  { %4141 = vmatpush3.bf16.msra.mxu1 %v4140_v30  ;;  %v608_v30 = vld [vmem:[%s6753_s1 + $0x1200] sm:$0xff] }
 0x114   :  { %4143 = vmatprep.subr.bf16.mxu1 %v4142_v36  ;;  %v626_v36 = vld [vmem:[%s6753_s1 + $0x1290] sm:$0xff] }
 0x115   :  { %4113 = vmatpush3.bf16.msra.mxu0 %v4112_v43  ;;  %v4160_v43 = vpack.c.bf16 %v609_v31, %v608_v30  ;;  %v4176_v30 = vpack.c.bf16 %v617_v23, %v616_v22  ;;  %v704_v22 = vld [vmem:[%s6753_s1 + $0x1500] sm:$0xff] }
 0x116   :  { %4115 = vmatprep.subr.bf16.mxu0 %v4114_v44  ;;  %v4162_v44 = vpack.c.bf16 %v627_v37, %v626_v36  ;;  %v650_v36 = vld [vmem:[%s6753_s1 + $0x1350] sm:$0xff] }
 0x117   :  { %4145 = vmatpush3.bf16.msra.mxu1 %v4144_v55  ;;  %v2834_v1 = vpop.f32.mrb[2].mxu0  ;;  %v4192_v55 = vpack.c.bf16 %v641_v35, %v640_v32  ;;  %v619_v35 = vld [vmem:[%s6753_s1 + $0x1258] sm:$0xff] }
 0x118   :  { %4147 = vmatprep.subr.bf16.mxu1 %v4146_v50  ;;  %v2835_v6 = vpop.f32.mrb[3].mxu0  ;;  %v4194_v50 = vpack.c.bf16 %v659_v40, %v658_v38  ;;  %v651_v38 = vld [vmem:[%s6753_s1 + $0x1358] sm:$0xff]  ;;  %v636_v40 = vld [vmem:[%s6753_s1 + $0x12e0] sm:$0xff] }
 0x119   :  { %v2869_v7 = vpop.f32.mrb[2].mxu1  ;;  %v2836_v9 = vadd.f32 %v2835_v6, %v2834_v1  ;;  %4117 = vmatpush3.bf16.msra.mxu0 %v4116_v58  ;;  %v661_v58 = vld [vmem:[%s6753_s1 + $0x13a8] sm:$0xff]  ;;  %v644_v1 = vld [vmem:[%s6753_s1 + $0x1320] sm:$0xff]  ;;  %v663_v6 = vld [vmem:[%s6753_s1 + $0x13b8] sm:$0xff] }
 0x11a   :  { %v2870_v11 = vpop.f32.mrb[3].mxu1  ;;  %4119 = vmatprep.subr.bf16.mxu0 %v4118_v42  ;;  %v4164_v42 = vpack.c.bf16 %v611_v48, %v610_v47  ;;  %v4202_v62 = vpack.c.bf16 %v663_v6, %v662_v5  ;;  %v4212_v48 = vpack.c.bf16 %v651_v38, %v650_v36  ;;  %v622_v6 = vld [vmem:[%s6753_s1 + $0x1270] sm:$0xff]  ;;  %v692_v38 = vld [vmem:[%s6753_s1 + $0x14a0] sm:$0xff] }
 0x11b   :  { %v2871_v13 = vadd.f32 %v2870_v11, %v2869_v7  ;;  %4149 = vmatpush3.bf16.msra.mxu1 %v4148_v59  ;;  %v1211_v18 = vadd.f32 %v2836_v9, %v6042_v39  ;;  %v657_v39 = vld [vmem:[%s6753_s1 + $0x1388] sm:$0xff]  ;;  %v932_v59 = vcombine.high %v6282_v41, %v6282_v41  ;;  %v614_v9 = vld [vmem:[%s6753_s1 + $0x1230] sm:$0xff]  ;;  %v615_v11 = vld [vmem:[%s6753_s1 + $0x1238] sm:$0xff] }
 0x11c   :  { %4151 = vmatprep.subr.bf16.mxu1 %v4150_v2  ;;  %v4190_v34 = vpack.c.bf16 %v657_v39, %v656_v24  ;;  %v4198_v2 = vpack.c.bf16 %v661_v58, %v660_v57  ;;  %v4172_v20 = vpack.c.bf16 %v615_v11, %v614_v9  ;;  %v4206_v24 = vpack.c.bf16 %v665_v16, %v664_v17  ;;  %v649_v39 = vld [vmem:[%s6753_s1 + $0x1348] sm:$0xff]  ;;  %v638_v58 = vld [vmem:[%s6753_s1 + $0x12f0] sm:$0xff]  ;;  %v655_v11 = vld [vmem:[%s6753_s1 + $0x1378] sm:$0xff] }
 0x11d   :  { %v6252_v26 = vadd.f32 %v2871_v13, %v1211_v18  ;;  %4121 = vmatpush3.bf16.msra.mxu0 %v4120_v12  ;;  %v646_v12 = vld [vmem:[%s6753_s1 + $0x1330] sm:$0xff]  ;;  %v647_v13 = vld [vmem:[%s6753_s1 + $0x1338] sm:$0xff]  ;;  %v4208_v31 = vpack.c.bf16 %v649_v39, %v648_v19  ;;  %v653_v57 = vld [vmem:[%s6753_s1 + $0x1368] sm:$0xff] }
 0x11e   :  { %4123 = vmatprep.subr.bf16.mxu0 %v4122_v15  ;;  %v633_v15 = vld [vmem:[%s6753_s1 + $0x12c8] sm:$0xff]  ;;  %v4204_v18 = vpack.c.bf16 %v647_v13, %v646_v12  ;;  %v4216_v4 = vpack.c.bf16 %v653_v57, %v652_v53  ;;  %v688_v12 = vld [vmem:[%s6753_s1 + $0x1480] sm:$0xff]  ;;  %v691_v39 = vld [vmem:[%s6753_s1 + $0x1498] sm:$0xff] }
 0x11f   :  { %4153 = vmatpush3.bf16.msra.mxu1 %v4152_v14  ;;  %v632_v14 = vld [vmem:[%s6753_s1 + $0x12c0] sm:$0xff]  ;;  %v705_v19 = vld [vmem:[%s6753_s1 + $0x1508] sm:$0xff]  ;;  %v706_v36 = vld [vmem:[%s6753_s1 + $0x1510] sm:$0xff] }
 0x120   :  { %4155 = vmatprep.subr.bf16.mxu1 %v4154_v21  ;;  %v4174_v21 = vpack.c.bf16 %v633_v15, %v632_v14  ;;  %v720_v13 = vld [vmem:[%s6753_s1 + $0x1580] sm:$0xff]  ;;  %v695_v57 = vld [vmem:[%s6753_s1 + $0x14b8] sm:$0xff] }
 0x121   :  { %4125 = vmatpush3.bf16.msra.mxu0 %v4124_v27  ;;  %v635_v27 = vld [vmem:[%s6753_s1 + $0x12d8] sm:$0xff]  ;;  %v708_v53 = vld [vmem:[%s6753_s1 + $0x1520] sm:$0xff] }
 0x122   :  { %4159 = vmatprep.subr.bf16.mxu0 %v4158_v29  ;;  %v667_v29 = vld [vmem:[%s6753_s1 + $0x13d8] sm:$0xff]  ;;  %v4178_v32 = vpack.c.bf16 %v635_v27, %v634_v25  ;;  %v722_v27 = vld [vmem:[%s6753_s1 + $0x1590] sm:$0xff] }
 0x123   :  { %4157 = vmatpush3.bf16.msra.mxu1 %v4156_v28  ;;  %v666_v28 = vld [vmem:[%s6753_s1 + $0x13d0] sm:$0xff] }
 0x124   :  { %4191 = vmatprep.subr.bf16.mxu1 %v4190_v34  ;;  %2189 = vmatmul.mubr.f32.vlgmr.msra.gmra.mrb[16].mxu0 %v6063_v51  ;;  %v612_v51 = vld [vmem:[%s6753_s1 + $0x1220] sm:$0xff]  ;;  %v618_v34 = vld [vmem:[%s6753_s1 + $0x1250] sm:$0xff]  ;;  %v4210_v37 = vpack.c.bf16 %v667_v29, %v666_v28  ;;  %v723_v28 = vld [vmem:[%s6753_s1 + $0x1598] sm:$0xff] }
 0x125   :  { %4161 = vmatpush3.bf16.msra.mxu0 %v4160_v43  ;;  %2328 = vmatprep.mubr.f32.mxu0 %v931_v33  ;;  %v4168_v7 = vpack.c.bf16 %v613_v0, %v612_v51  ;;  %v637_v43 = vld [vmem:[%s6753_s1 + $0x12e8] sm:$0xff]  ;;  %v4180_v47 = vpack.c.bf16 %v619_v35, %v618_v34  ;;  %v671_v51 = vld [vmem:[%s6753_s1 + $0x13f8] sm:$0xff]  ;;  %v674_v34 = vld [vmem:[%s6753_s1 + $0x1410] sm:$0xff] }
 0x126   :  { %2259 = vmatmul.mubr.f32.vlgmr.msra.gmra.mrb[16].mxu1 %v6072_v54  ;;  %4163 = vmatprep.subr.bf16.mxu0 %v4162_v44  ;;  %v645_v54 = vld [vmem:[%s6753_s1 + $0x1328] sm:$0xff]  ;;  %v4182_v49 = vpack.c.bf16 %v637_v43, %v636_v40  ;;  %v675_v35 = vld [vmem:[%s6753_s1 + $0x1418] sm:$0xff] }
 0x127   :  { %4193 = vmatpush3.bf16.msra.mxu1 %v4192_v55  ;;  %2398 = vmatprep.mubr.f32.mxu1 %v932_v59  ;;  %v4200_v8 = vpack.c.bf16 %v645_v54, %v644_v1  ;;  %v668_v55 = vld [vmem:[%s6753_s1 + $0x13e0] sm:$0xff]  ;;  %v669_v44 = vld [vmem:[%s6753_s1 + $0x13e8] sm:$0xff]  ;;  %v639_v59 = vld [vmem:[%s6753_s1 + $0x12f8] sm:$0xff] }
 0x128   :  { %4195 = vmatprep.subr.bf16.mxu1 %v4194_v50  ;;  %v620_v50 = vld [vmem:[%s6753_s1 + $0x1260] sm:$0xff]  ;;  %v4214_v33 = vpack.c.bf16 %v669_v44, %v668_v55  ;;  %v30_v54 = vld [vmem:[%s6754_s0 + $0x50] sm:$0xff]  ;;  %v4186_v5 = vpack.c.bf16 %v639_v59, %v638_v58  ;;  %v693_v40 = vld [vmem:[%s6753_s1 + $0x14a8] sm:$0xff] }
 0x129   :  { %4165 = vmatpush3.bf16.msra.mxu0 %v4164_v42  ;;  %v933_v14 = vcombine.high %v30_v54, %v30_v54  ;;  %v6483_v25 = vrot.slane %v30_v54, %v4522_v10  ;;  %v724_v55 = vld [vmem:[%s6753_s1 + $0x15a0] sm:$0xff]  ;;  %v725_v44 = vld [vmem:[%s6753_s1 + $0x15a8] sm:$0xff]  ;;  %v726_v58 = vld [vmem:[%s6753_s1 + $0x15b0] sm:$0xff] }
 0x12a   :  { %4167 = vmatprep.subr.bf16.mxu0 %v4166_v63  ;;  %v670_v63 = vld [vmem:[%s6753_s1 + $0x13f0] sm:$0xff]  ;;  %v727_v59 = vld [vmem:[%s6753_s1 + $0x15b8] sm:$0xff] }
 0x12b   :  { %4197 = vmatpush3.bf16.msra.mxu1 %v4196_v60  ;;  %v4218_v9 = vpack.c.bf16 %v671_v51, %v670_v63  ;;  %v6492_v29 = vrot.slane %v933_v14, %v4522_v10  ;;  %v4258_v10 = vpack.c.bf16 %v723_v28, %v722_v27  ;;  %v948_v43 = vcombine.high %v6483_v25, %v6483_v25  ;;  %v678_v51 = vld [vmem:[%s6753_s1 + $0x1430] sm:$0xff]  ;;  %v711_v54 = vld [vmem:[%s6753_s1 + $0x1538] sm:$0xff]  ;;  %v700_v27 = vld [vmem:[%s6753_s1 + $0x14e0] sm:$0xff] }
 0x12c   :  { %4199 = vmatprep.subr.bf16.mxu1 %v4198_v2  ;;  %v4184_v2 = vpack.c.bf16 %v621_v52, %v620_v50  ;;  %v4230_v50 = vpack.c.bf16 %v693_v40, %v692_v38  ;;  %v677_v52 = vld [vmem:[%s6753_s1 + $0x1428] sm:$0xff]  ;;  %v699_v14 = vld [vmem:[%s6753_s1 + $0x14d8] sm:$0xff] }
 0x12d   :  { %4169 = vmatpush3.bf16.msra.mxu0 %v4168_v7  ;;  %v623_v7 = vld [vmem:[%s6753_s1 + $0x1278] sm:$0xff]  ;;  %v701_v28 = vld [vmem:[%s6753_s1 + $0x14e8] sm:$0xff] }
 0x12e   :  { %4171 = vmatprep.subr.bf16.mxu0 %v4170_v61  ;;  %v4188_v17 = vpack.c.bf16 %v623_v7, %v622_v6  ;;  %v729_v6 = vld [vmem:[%s6753_s1 + $0x15c8] sm:$0xff] }
 0x12f   :  { %4201 = vmatpush3.bf16.msra.mxu1 %v4200_v8  ;;  %v654_v8 = vld [vmem:[%s6753_s1 + $0x1370] sm:$0xff] }
 0x130   :  { %4203 = vmatprep.subr.bf16.mxu1 %v4202_v62  ;;  %v689_v62 = vld [vmem:[%s6753_s1 + $0x1488] sm:$0xff]  ;;  %v4220_v16 = vpack.c.bf16 %v655_v11, %v654_v8 }
 0x131   :  { %4173 = vmatpush3.bf16.msra.mxu0 %v4172_v20  ;;  %v4222_v20 = vpack.c.bf16 %v689_v62, %v688_v12  ;;  %v681_v11 = vld [vmem:[%s6753_s1 + $0x1448] sm:$0xff]  ;;  %v712_v12 = vld [vmem:[%s6753_s1 + $0x1540] sm:$0xff] }
 0x132   :  { %4175 = vmatprep.subr.bf16.mxu0 %v4174_v21  ;;  %v673_v21 = vld [vmem:[%s6753_s1 + $0x1408] sm:$0xff] }
 0x133   :  { %4205 = vmatpush3.bf16.msra.mxu1 %v4204_v18  ;;  %v672_v18 = vld [vmem:[%s6753_s1 + $0x1400] sm:$0xff] }
 0x134   :  { %4207 = vmatprep.subr.bf16.mxu1 %v4206_v24  ;;  %v690_v24 = vld [vmem:[%s6753_s1 + $0x1490] sm:$0xff] }
 0x135   :  { %4177 = vmatpush3.bf16.msra.mxu0 %v4176_v30  ;;  %v4224_v30 = vpack.c.bf16 %v673_v21, %v672_v18 }
 0x136   :  { %4179 = vmatprep.subr.bf16.mxu0 %v4178_v32  ;;  %v4226_v32 = vpack.c.bf16 %v691_v39, %v690_v24  ;;  %v715_v39 = vld [vmem:[%s6753_s1 + $0x1558] sm:$0xff] }
 0x137   :  { %4209 = vmatpush3.bf16.msra.mxu1 %v4208_v31  ;;  %v2904_v56 = vpop.f32.mrb[4].mxu0  ;;  %v4256_v31 = vpack.c.bf16 %v705_v19, %v704_v22  ;;  %v682_v22 = vld [vmem:[%s6753_s1 + $0x1450] sm:$0xff] }
 0x138   :  { %4211 = vmatprep.subr.bf16.mxu1 %v4210_v37  ;;  %v2905_v42 = vpop.f32.mrb[5].mxu0  ;;  %v707_v37 = vld [vmem:[%s6753_s1 + $0x1518] sm:$0xff]  ;;  %v714_v19 = vld [vmem:[%s6753_s1 + $0x1550] sm:$0xff] }
 0x139   :  { %v2939_v60 = vpop.f32.mrb[4].mxu1  ;;  %v2906_v0 = vadd.f32 %v2905_v42, %v2904_v56  ;;  %4181 = vmatpush3.bf16.msra.mxu0 %v4180_v47  ;;  %v949_v47 = vcombine.high %v6492_v29, %v6492_v29  ;;  %v4262_v56 = vpack.c.bf16 %v725_v44, %v724_v55  ;;  %v702_v55 = vld [vmem:[%s6753_s1 + $0x14f0] sm:$0xff]  ;;  %v703_v44 = vld [vmem:[%s6753_s1 + $0x14f8] sm:$0xff] }
 0x13a   :  { %v2940_v1 = vpop.f32.mrb[5].mxu1  ;;  %4183 = vmatprep.subr.bf16.mxu0 %v4182_v49  ;;  %v4260_v49 = vpack.c.bf16 %v707_v37, %v706_v36  ;;  %v684_v36 = vld [vmem:[%s6753_s1 + $0x1460] sm:$0xff] }
 0x13b   :  { %v2941_v3 = vadd.f32 %v2940_v1, %v2939_v60  ;;  %4213 = vmatpush3.bf16.msra.mxu1 %v4212_v48  ;;  %v1351_v61 = vadd.f32 %v2906_v0, %v6252_v26  ;;  %v721_v26 = vld [vmem:[%s6753_s1 + $0x1588] sm:$0xff]  ;;  %v4228_v48 = vpack.c.bf16 %v675_v35, %v674_v34  ;;  %v679_v0 = vld [vmem:[%s6753_s1 + $0x1438] sm:$0xff]  ;;  %v710_v1 = vld [vmem:[%s6753_s1 + $0x1530] sm:$0xff]  ;;  %v4276_v34 = vpack.c.bf16 %v715_v39, %v714_v19 }
 0x13c   :  { %4215 = vmatprep.subr.bf16.mxu1 %v4214_v33  ;;  %v4254_v23 = vpack.c.bf16 %v721_v26, %v720_v13  ;;  %v694_v33 = vld [vmem:[%s6753_s1 + $0x14b0] sm:$0xff]  ;;  %v4236_v7 = vpack.c.bf16 %v679_v0, %v678_v51  ;;  %v4268_v8 = vpack.c.bf16 %v711_v54, %v710_v1  ;;  %v713_v13 = vld [vmem:[%s6753_s1 + $0x1548] sm:$0xff]  ;;  %v4246_v35 = vpack.c.bf16 %v701_v28, %v700_v27  ;;  %v716_v37 = vld [vmem:[%s6753_s1 + $0x1560] sm:$0xff] }
 0x13d   :  { %v6462_v15 = vadd.f32 %v2941_v3, %v1351_v61  ;;  %4185 = vmatpush3.bf16.msra.mxu0 %v4184_v2  ;;  %v4234_v63 = vpack.c.bf16 %v695_v57, %v694_v33  ;;  %v4266_v2 = vpack.c.bf16 %v727_v59, %v726_v58  ;;  %v696_v3 = vld [vmem:[%s6753_s1 + $0x14c0] sm:$0xff]  ;;  %v698_v26 = vld [vmem:[%s6753_s1 + $0x14d0] sm:$0xff]  ;;  %v4272_v18 = vpack.c.bf16 %v713_v13, %v712_v12  ;;  %v687_v58 = vld [vmem:[%s6753_s1 + $0x1478] sm:$0xff] }
 0x13e   :  { %4187 = vmatprep.subr.bf16.mxu0 %v4186_v5  ;;  %v728_v5 = vld [vmem:[%s6753_s1 + $0x15c0] sm:$0xff]  ;;  %v4242_v21 = vpack.c.bf16 %v699_v14, %v698_v26  ;;  %v4250_v33 = vpack.c.bf16 %v703_v44, %v702_v55  ;;  %v686_v57 = vld [vmem:[%s6753_s1 + $0x1470] sm:$0xff]  ;;  %v2729_v12 = vld.sshfl [vmem:[%s6754_s0 + $0x58] sm:$0x3 pattern:$0x76325410] }
 0x13f   :  { %4217 = vmatpush3.bf16.msra.mxu1 %v4216_v4  ;;  %v697_v4 = vld [vmem:[%s6753_s1 + $0x14c8] sm:$0xff]  ;;  %v4270_v62 = vpack.c.bf16 %v729_v6, %v728_v5  ;;  %v4252_v0 = vpack.c.bf16 %v687_v58, %v686_v57  ;;  %v739_v5 = vld [vmem:[%s6753_s1 + $0x1618] sm:$0xff]  ;;  %v2624_v55 = vld [vmem:[%s6756_s3 + $0x10] sm:$0xff] }
 0x140   :  { %4219 = vmatprep.subr.bf16.mxu1 %v4218_v9  ;;  %v4238_v61 = vpack.c.bf16 %v697_v4, %v696_v3  ;;  %v680_v9 = vld [vmem:[%s6753_s1 + $0x1440] sm:$0xff]  ;;  %v4344_v3 = vmov 0.0|0.0   ;;  %v738_v4 = vld [vmem:[%s6753_s1 + $0x1610] sm:$0xff]  ;;  %v2625_v44 = vld [vmem:[%s6756_s3 + $0x18] sm:$0xff] }
 0x141   :  { %4189 = vmatpush3.bf16.msra.mxu0 %v4188_v17  ;;  %v730_v17 = vld [vmem:[%s6753_s1 + $0x15d0] sm:$0xff]  ;;  %v4290_v6 = vpack.c.bf16 %v739_v5, %v738_v4 }
 0x142   :  { %4223 = vmatprep.subr.bf16.mxu0 %v4222_v20  ;;  %v4240_v20 = vpack.c.bf16 %v681_v11, %v680_v9  ;;  %v743_v9 = vld [vmem:[%s6753_s1 + $0x1638] sm:$0xff] }
 0x143   :  { %4221 = vmatpush3.bf16.msra.mxu1 %v4220_v16  ;;  %v731_v16 = vld [vmem:[%s6753_s1 + $0x15d8] sm:$0xff] }
 0x144   :  { %4255 = vmatprep.subr.bf16.mxu1 %v4254_v23  ;;  %2329 = vmatmul.mubr.f32.vlgmr.msra.gmra.mrb[18].mxu0 %v6273_v46  ;;  %v676_v46 = vld [vmem:[%s6753_s1 + $0x1420] sm:$0xff]  ;;  %v683_v23 = vld [vmem:[%s6753_s1 + $0x1458] sm:$0xff]  ;;  %v4274_v24 = vpack.c.bf16 %v731_v16, %v730_v17 }
 0x145   :  { %4225 = vmatpush3.bf16.msra.mxu0 %v4224_v30  ;;  %2468 = vmatprep.mubr.f32.mxu0 %v948_v43  ;;  %v4232_v42 = vpack.c.bf16 %v677_v52, %v676_v46  ;;  %v732_v30 = vld [vmem:[%s6753_s1 + $0x15e0] sm:$0xff]  ;;  %v717_v43 = vld [vmem:[%s6753_s1 + $0x1568] sm:$0xff] }
 0x146   :  { %2399 = vmatmul.mubr.f32.vlgmr.msra.gmra.mrb[18].mxu1 %v6282_v41  ;;  %4227 = vmatprep.subr.bf16.mxu0 %v4226_v32  ;;  %v709_v41 = vld [vmem:[%s6753_s1 + $0x1528] sm:$0xff]  ;;  %v4244_v32 = vpack.c.bf16 %v683_v23, %v682_v22 }
 0x147   :  { %4257 = vmatpush3.bf16.msra.mxu1 %v4256_v31  ;;  %2538 = vmatprep.mubr.f32.mxu1 %v949_v47  ;;  %v4264_v60 = vpack.c.bf16 %v709_v41, %v708_v53  ;;  %v733_v31 = vld [vmem:[%s6753_s1 + $0x15e8] sm:$0xff]  ;;  %v4280_v41 = vpack.c.bf16 %v717_v43, %v716_v37 }
 0x148   :  { %4259 = vmatprep.subr.bf16.mxu1 %v4258_v10  ;;  %v685_v10 = vld [vmem:[%s6753_s1 + $0x1468] sm:$0xff]  ;;  %v4278_v40 = vpack.c.bf16 %v733_v31, %v732_v30 }
 0x149   :  { %4229 = vmatpush3.bf16.msra.mxu0 %v4228_v48  ;;  %v4248_v53 = vpack.c.bf16 %v685_v10, %v684_v36 }
 0x14a   :  { %4231 = vmatprep.subr.bf16.mxu0 %v4230_v50  ;;  %v735_v50 = vld [vmem:[%s6753_s1 + $0x15f8] sm:$0xff] }
 0x14b   :  { %4261 = vmatpush3.bf16.msra.mxu1 %v4260_v49  ;;  %v734_v49 = vld [vmem:[%s6753_s1 + $0x15f0] sm:$0xff] }
 0x14c   :  { %4263 = vmatprep.subr.bf16.mxu1 %v4262_v56 }
 0x14d   :  { %4233 = vmatpush3.bf16.msra.mxu0 %v4232_v42  ;;  %v4282_v42 = vpack.c.bf16 %v735_v50, %v734_v49  ;;  %v2627_v49 = vld [vmem:[%s6756_s3 + $0x28] sm:$0xff] }
 0x14e   :  { %4235 = vmatprep.subr.bf16.mxu0 %v4234_v63  ;;  %v719_v63 = vld [vmem:[%s6753_s1 + $0x1578] sm:$0xff] }
 0x14f   :  { %4265 = vmatpush3.bf16.msra.mxu1 %v4264_v60  ;;  %v718_v60 = vld [vmem:[%s6753_s1 + $0x1570] sm:$0xff] }
 0x150   :  { %4267 = vmatprep.subr.bf16.mxu1 %v4266_v2  ;;  %v4284_v1 = vpack.c.bf16 %v719_v63, %v718_v60  ;;  %v737_v2 = vld [vmem:[%s6753_s1 + $0x1608] sm:$0xff] }
 0x151   :  { %4237 = vmatpush3.bf16.msra.mxu0 %v4236_v7  ;;  %v740_v7 = vld [vmem:[%s6753_s1 + $0x1620] sm:$0xff] }
 0x152   :  { %4239 = vmatprep.subr.bf16.mxu0 %v4238_v61  ;;  %v4346_v61 = vmov 0.0  }
 0x153   :  { %4269 = vmatpush3.bf16.msra.mxu1 %v4268_v8  ;;  %v741_v8 = vld [vmem:[%s6753_s1 + $0x1628] sm:$0xff] }
 0x154   :  { %4271 = vmatprep.subr.bf16.mxu1 %v4270_v62 }
 0x155   :  { %4241 = vmatpush3.bf16.msra.mxu0 %v4240_v20 }
 0x156   :  { %4243 = vmatprep.subr.bf16.mxu0 %v4242_v21 }
 0x157   :  { %4273 = vmatpush3.bf16.msra.mxu1 %v4272_v18  ;;  %v2974_v38 = vpop.f32.mrb[6].mxu0 }
 0x158   :  { %4275 = vmatprep.subr.bf16.mxu1 %v4274_v24  ;;  %v2975_v47 = vpop.f32.mrb[7].mxu0 }
 0x159   :  { %v3009_v48 = vpop.f32.mrb[6].mxu1  ;;  %v2976_v46 = vadd.f32 %v2975_v47, %v2974_v38  ;;  %4245 = vmatpush3.bf16.msra.mxu0 %v4244_v32  ;;  %v2622_v38 = vld [vmem:[%s6756_s3] sm:$0xff]  ;;  %v4302_v47 = vpack.c.bf16 %v2625_v44, %v2624_v55 }
 0x15a   :  { %v3010_v52 = vpop.f32.mrb[7].mxu1  ;;  %4247 = vmatprep.subr.bf16.mxu0 %v4246_v35  ;;  %v2731_v55 = vld [vmem:[%s6757_s4] ss:$0 sm:$0xff] }
 0x15b   :  { %v3011_v56 = vadd.f32 %v3010_v52, %v3009_v48  ;;  %4277 = vmatpush3.bf16.msra.mxu1 %v4276_v34  ;;  %v1491_v59 = vadd.f32 %v2976_v46, %v6462_v15  ;;  %v736_v15 = vld [vmem:[%s6753_s1 + $0x1600] sm:$0xff]  ;;  %v2628_v46 = vld [vmem:[%s6756_s3 + $0x30] sm:$0xff]  ;;  %v2629_v52 = vld [vmem:[%s6756_s3 + $0x38] sm:$0xff] }
 0x15c   :  { %4279 = vmatprep.subr.bf16.mxu1 %v4278_v40  ;;  %v4287_v54 = vpack.c.bf16 %v737_v2, %v736_v15  ;;  %v2623_v40 = vld [vmem:[%s6756_s3 + $0x8] sm:$0xff]  ;;  %v2626_v48 = vld [vmem:[%s6756_s3 + $0x20] sm:$0xff] }
 0x15d   :  { %v1561_v51 = vadd.f32 %v3011_v56, %v1491_v59  ;;  %4249 = vmatpush3.bf16.msra.mxu0 %v4248_v53  ;;  %v4299_v43 = vpack.c.bf16 %v2623_v40, %v2622_v38  ;;  %v4305_v50 = vpack.c.bf16 %v2627_v49, %v2626_v48  ;;  %v4308_v53 = vpack.c.bf16 %v2629_v52, %v2628_v46  ;;  %v2634_v15 = vld [vmem:[%s6756_s3 + $0x60] sm:$0xff] }
 0x15e   :  { %4251 = vmatprep.subr.bf16.mxu0 %v4250_v33  ;;  %v2631_v33 = vld [vmem:[%s6756_s3 + $0x48] sm:$0xff] }
 0x15f   :  { %4281 = vmatpush3.bf16.msra.mxu1 %v4280_v41  ;;  %v2630_v41 = vld [vmem:[%s6756_s3 + $0x40] sm:$0xff] }
 0x160   :  { %4283 = vmatprep.subr.bf16.mxu1 %v4282_v42  ;;  %v4311_v59 = vpack.c.bf16 %v2631_v33, %v2630_v41 }
 0x161   :  { %4253 = vmatpush3.bf16.msra.mxu0 %v4252_v0  ;;  %v2632_v0 = vld [vmem:[%s6756_s3 + $0x50] sm:$0xff] }
 0x162   :  { %4286 = vmatprep.subr.bf16.mxu0 %v4344_v3 }
 0x163   :  { %4285 = vmatpush3.bf16.msra.mxu1 %v4284_v1  ;;  %v2633_v1 = vld [vmem:[%s6756_s3 + $0x58] sm:$0xff] }
 0x164   :  { %4298 = vmatprep.subr.bf16.mxu1 %v4344_v3  ;;  %2469 = vmatmul.mubr.f32.vlgmr.msra.gmra.mrb[20].mxu0 %v6483_v25  ;;  %v4293_v25 = vpack.c.bf16 %v741_v8, %v740_v7  ;;  %v4314_v2 = vpack.c.bf16 %v2633_v1, %v2632_v0  ;;  %v2637_v7 = vld [vmem:[%s6756_s3 + $0x78] sm:$0xff] }
 0x165   :  { %4288 = vmatpush3.bf16.msra.mxu0 %v4287_v54  ;;  %3544 = vmatprep.mubr.msk.f32.mxu0 %vm4345_vm0, %v4346_v61  ;;  %v2635_v54 = vld [vmem:[%s6756_s3 + $0x68] sm:$0xff] }
 0x166   :  { %2539 = vmatmul.mubr.f32.vlgmr.msra.gmra.mrb[20].mxu1 %v6492_v29  ;;  %4289 = vmatprep.subr.bf16.mxu0 %v4344_v3  ;;  %v742_v29 = vld [vmem:[%s6753_s1 + $0x1630] sm:$0xff]  ;;  %v4317_v5 = vpack.c.bf16 %v2635_v54, %v2634_v15 }
 0x167   :  { %3579 = vmatprep.mubr.msk.f32.mxu1 %vm4345_vm0, %v4346_v61  ;;  %v4296_v11 = vpack.c.bf16 %v743_v9, %v742_v29  ;;  %4300 = vmatpush3.bf16.msra.mxu1 %v4299_v43 }
 0x168   :  { %4301 = vmatprep.subr.bf16.mxu1 %v4344_v3 }
 0x169   :  { %4291 = vmatpush3.bf16.msra.mxu0 %v4290_v6  ;;  %v2636_v6 = vld [vmem:[%s6756_s3 + $0x70] sm:$0xff] }
 0x16a   :  { %4292 = vmatprep.subr.bf16.mxu0 %v4344_v3  ;;  %v4320_v8 = vpack.c.bf16 %v2637_v7, %v2636_v6 }
 0x16b   :  { %4303 = vmatpush3.bf16.msra.mxu1 %v4302_v47 }
 0x16c   :  { %4304 = vmatprep.subr.bf16.mxu1 %v4344_v3 }
 0x16d   :  { %4294 = vmatpush3.bf16.msra.mxu0 %v4293_v25 }
 0x16e   :  { %4295 = vmatprep.subr.bf16.mxu0 %v4344_v3 }
 0x16f   :  { %4306 = vmatpush3.bf16.msra.mxu1 %v4305_v50  ;;  %v2716_v50 = vand.u32 127, %v767_v45 }
 0x170   :  { %4307 = vmatprep.subr.bf16.mxu1 %v4344_v3 }
 0x171   :  { %4297 = vmatpush3.bf16.msra.mxu0 %v4296_v11  ;;  %vm2717_vm3 = vcmp.ge.s32.totalorder %v2716_v50, 8  ;;  %vm2718_vm4 = vcmp.lt.s32.totalorder %v2716_v50, 16 }
 0x172   :  { %vm2719_vm5 = vmand %vm2717_vm3, %vm2718_vm4 }
 0x173   :  { %4309 = vmatpush3.bf16.msra.mxu1 %v4308_v53 }
 0x174   :  { %3545 = vmatmul.mubr.msk.f32.vlgmr.msra.gmra.mrb[22].mxu0 %vm1001_vm1, %v2729_v12  ;;  %4310 = vmatprep.subr.bf16.mxu1 %v4344_v3 }
 0x177   :  { %v3044_v62 = vpop.f32.mrb[8].mxu0  ;;  %4312 = vmatpush3.bf16.msra.mxu1 %v4311_v59 }
 0x178   :  { %v3045_v13 = vpop.f32.mrb[9].mxu0  ;;  %4313 = vmatprep.subr.bf16.mxu1 %v4344_v3 }
 0x179   :  { %v3079_v26 = vpop.f32.mrb[8].mxu1  ;;  %v3046_v14 = vadd.f32 %v3045_v13, %v3044_v62 }
 0x17a   :  { %v3080_v17 = vpop.f32.mrb[9].mxu1 }
 0x17b   :  { %v3081_v16 = vadd.f32 %v3080_v17, %v3079_v26  ;;  %v1631_v20 = vadd.f32 %v3046_v14, %v1561_v51  ;;  %4315 = vmatpush3.bf16.msra.mxu1 %v4314_v2 }
 0x17c   :  { %4316 = vmatprep.subr.bf16.mxu1 %v4344_v3 }
 0x17d   :  { %v1701_v18 = vadd.f32 %v3081_v16, %v1631_v20 }
 0x17f   :  { %4318 = vmatpush3.bf16.msra.mxu1 %v4317_v5 }
 0x180   :  { %4319 = vmatprep.subr.bf16.mxu1 %v4344_v3 }
 0x183   :  { %4321 = vmatpush3.bf16.msra.mxu1 %v4320_v8 }
 0x197   :  { %v3114_v21 = vpop.f32.mrb[10].mxu0 }
 0x198   :  { %v3115_v22 = vpop.f32.mrb[11].mxu0 }
 0x199   :  { %v3149_v23 = vpop.f32.mrb[10].mxu1  ;;  %v3116_v19 = vadd.f32 %v3115_v22, %v3114_v21 }
 0x19a   :  { %v3150_v24 = vpop.f32.mrb[11].mxu1 }
 0x19b   :  { %v3151_v39 = vadd.f32 %v3150_v24, %v3149_v23  ;;  %v1771_v27 = vadd.f32 %v3116_v19, %v1701_v18 }
 0x19d   :  { %v1841_v28 = vadd.f32 %v3151_v39, %v1771_v27 }
 0x1b7   :  { %v3184_v30 = vpop.f32.mrb[12].mxu0 }
 0x1b8   :  { %v3185_v31 = vpop.f32.mrb[13].mxu0 }
 0x1b9   :  { %v3219_v32 = vpop.f32.mrb[12].mxu1  ;;  %v3186_v34 = vadd.f32 %v3185_v31, %v3184_v30 }
 0x1ba   :  { %v3220_v35 = vpop.f32.mrb[13].mxu1 }
 0x1bb   :  { %v3221_v36 = vadd.f32 %v3220_v35, %v3219_v32  ;;  %v1911_v10 = vadd.f32 %v3186_v34, %v1841_v28 }
 0x1bd   :  { %v1981_v37 = vadd.f32 %v3221_v36, %v1911_v10 }
 0x1d7   :  { %v3254_v56 = vpop.f32.mrb[14].mxu0 }
 0x1d8   :  { %v3255_v57 = vpop.f32.mrb[15].mxu0 }
 0x1d9   :  { %v3289_v58 = vpop.f32.mrb[14].mxu1  ;;  %v3256_v42 = vadd.f32 %v3255_v57, %v3254_v56 }
 0x1da   :  { %v3290_v60 = vpop.f32.mrb[15].mxu1 }
 0x1db   :  { %v3291_v63 = vadd.f32 %v3290_v60, %v3289_v58  ;;  %v2051_v51 = vadd.f32 %v3256_v42, %v1981_v37 }
 0x1dd   :  { %v2121_v4 = vadd.f32 %v3291_v63, %v2051_v51 }
 0x1f7   :  { %v3324_v61 = vpop.f32.mrb[16].mxu0 }
 0x1f8   :  { %v3325_v25 = vpop.f32.mrb[17].mxu0 }
 0x1f9   :  { %v3359_v29 = vpop.f32.mrb[16].mxu1  ;;  %v3326_v9 = vadd.f32 %v3325_v25, %v3324_v61 }
 0x1fa   :  { %v3360_v11 = vpop.f32.mrb[17].mxu1 }
 0x1fb   :  { %v3361_v12 = vadd.f32 %v3360_v11, %v3359_v29  ;;  %v2191_v62 = vadd.f32 %v3326_v9, %v2121_v4 }
 0x1fd   :  { %v2261_v13 = vadd.f32 %v3361_v12, %v2191_v62 }
 0x217   :  { %v3394_v26 = vpop.f32.mrb[18].mxu0 }
 0x218   :  { %v3395_v14 = vpop.f32.mrb[19].mxu0 }
 0x219   :  { %v3429_v17 = vpop.f32.mrb[18].mxu1  ;;  %v3396_v16 = vadd.f32 %v3395_v14, %v3394_v26 }
 0x21a   :  { %v3430_v20 = vpop.f32.mrb[19].mxu1 }
 0x21b   :  { %v3431_v18 = vadd.f32 %v3430_v20, %v3429_v17  ;;  %v2331_v21 = vadd.f32 %v3396_v16, %v2261_v13 }
 0x21d   :  { %v2401_v22 = vadd.f32 %v3431_v18, %v2331_v21 }
 0x237   :  { %v3464_v23 = vpop.f32.mrb[20].mxu0 }
 0x238   :  { %v3465_v19 = vpop.f32.mrb[21].mxu0 }
 0x239   :  { %v3499_v3 = vpop.f32.mrb[20].mxu1  ;;  %v3466_v24 = vadd.f32 %v3465_v19, %v3464_v23 }
 0x23a   :  { %v3500_v39 = vpop.f32.mrb[21].mxu1 }
 0x23b   :  { %v3501_v27 = vadd.f32 %v3500_v39, %v3499_v3  ;;  %v2471_v28 = vadd.f32 %v3466_v24, %v2401_v22 }
 0x23d   :  { %v2541_v30 = vadd.f32 %v3501_v27, %v2471_v28 }
 0x247   :  { %v2610_v31 = vpop.f32.mrb[22].mxu0 }
 0x248   :  { %v2611_v32 = vadd.f32 %v2610_v31, %v2541_v30  ;;  %v3546_v34 = vpop.f32.mrb[23].mxu0 }
 0x24a   :  { %v2615_v35 = vmin.f32 %v2611_v32, 20.0  ;;  %vm2614_vm2 = vcmp.gt.f32.partialorder %v2611_v32, 20.0 }
 0x24c   :  { %v2616_v36 = vmul.f32 1.442695, %v2615_v35 }
 0x24e   :  { %4337 = vpow2.f32 %v2616_v36 }
 0x258   :  { %v4338_v10 = vpop.eup %4337 }
 0x259   :  { %v2618_v37 = vadd.f32 1.0, %v4338_v10 }
 0x25b   :  { %4339 = vlog2.f32 %v2618_v37 }
 0x265   :  { %v4340_v38 = vpop.eup %4339 }
 0x266   :  { %v2620_v40 = vmul.f32 0.6931472, %v4340_v38 }
 0x268   :  { %v2621_v43 = vsel %vm2614_vm2, %v2611_v32, %v2620_v40 }
 0x269   :  { %3580 = vmatmul.mubr.f32.vlgmr.msra.gmra.mrb[22].mxu1 %v2621_v43 }
 0x33c   :  { %v2711_v44 = vpop.f32.mrb[22].mxu1 }
 0x33d   :  { %v2712_v47 = vadd.f32 %v2731_v55, %v2711_v44  ;;  %v3581_v48 = vpop.f32.mrb[23].mxu1 }
 0x33f   :  { %v2720_v49 = vmul.f32 1.442695, %v2712_v47 }
 0x341   :  { %4341 = vpow2.f32 %v2720_v49 }
 0x34b   :  { %v4342_v46 = vpop.eup %4341 }
 0x34c   :  { %v2722_v52 = vsel %vm2719_vm5, %v4342_v46, %v2712_v47 }
 0x34d   :  { %2723 = vst [vmem:[%s6758_s5] sm:$0x3] %v2722_v52 }

// kernel: _encoder_forward_impl.2
= control target key start
LH: loop header
LB: loop body
LE: loop exit
PB: predicated region body
PF: predicated region fallthrough
CT: control target
= control target key end

     0   :  { %s4428_s18 = smov 0   ;;  %s6586_s0 = inlined_call_operand.vmem [shape: f32[2,116,64], index: 0, kind: input, shape index: {}]   ;;  %s6587_s1 = inlined_call_operand.vmem [shape: bf16[576,256], index: 1, kind: input, shape index: {}]   ;;  %s6588_s2 = inlined_call_operand.vmem [shape: f32[1,64], index: 2, kind: input, shape index: {}]   ;;  %s6589_s3 = inlined_call_operand.vmem [shape: bf16[576,256], index: 3, kind: input, shape index: {}]   ;;  %s6590_s4 = inlined_call_operand.vmem [shape: f32[1,64], index: 4, kind: input, shape index: {}]   ;;  %s6591_s5 = inlined_call_operand.vmem [shape: f32[2,89,64], index: 5, kind: output, shape index: {}]  }
   0x1 LB: > { %s3743_s19 = sadd.s32 4294967295, %s4393_s18   ;;  %p3747_p0 = scmp.ge.s32.totalorder %s4393_s18, 1  ;;  %s4393_s18 = sphi %s4428_s18, %s15_s18  }
   0x2   : > { %p187_p1 = scmp.lt.s32.totalorder %s4393_s18, 3 }
   0x4   : > { %p188_p2 = pnand %p3747_p0, %p187_p1 }
   0x6   : > { %191 = sbr.rel (%p188_p2) target bundleno = 1298 (0x512), region = 40 }
   0xd   : > { %p215_p3 = scmp.lt.s32.totalorder %s3743_s19, 1  ;;  %v4079_v0 = vld [vmem:[%s6587_s1 + $0x4] ss:$8 sps:$4 sm:$0xff]   ;;  %v4081_v1 = vld [vmem:[%s6587_s1] ss:$8 sps:$4 sm:$0xff]   ;;  %vm6610_vm0 = vcmask 523264  }
   0xe   : > { %1611 = vmatprep.subr.bf16.mxu0 %v4079_v0  ;;  %v4082_v2 = vld [vmem:[%s6587_s1 + $0x14] ss:$8 sps:$4 sm:$0xff]   ;;  %v4084_v3 = vld [vmem:[%s6587_s1 + $0x10] ss:$8 sps:$4 sm:$0xff]   ;;  %v4085_v4 = vld [vmem:[%s6587_s1 + $0x24] ss:$8 sps:$4 sm:$0xff]  }
   0xf   : > { %s6788_s19 = smov (!%p215_p3, %s3743_s19), 1  ;;  %1612 = vmatpush1.bf16.msra.mxu0 %v4081_v1  ;;  %v4087_v5 = vld [vmem:[%s6587_s1 + $0x20] ss:$8 sps:$4 sm:$0xff]   ;;  %s4395_s11 = smov 64   ;;  %v4088_v12 = vld [vmem:[%s6587_s1 + $0x34] ss:$8 sps:$4 sm:$0xff]  }
  0x10   : > { %s4018_s28 = smul.u32 120, %s6788_s19  ;;  %1613 = vmatprep.subr.bf16.mxu0 %v4082_v2  ;;  %v4090_v17 = vld [vmem:[%s6587_s1 + $0x30] ss:$8 sps:$4 sm:$0xff]   ;;  %v4091_v20 = vld [vmem:[%s6587_s1 + $0x44] ss:$8 sps:$4 sm:$0xff]   ;;  %vm6608_vm1 = vcmask 516096  }
  0x11   : > { %v4093_v21 = vld [vmem:[%s6587_s1 + $0x40] ss:$8 sps:$4 sm:$0xff]   ;;  %v4094_v29 = vld [vmem:[%s6587_s1 + $0x54] ss:$8 sps:$4 sm:$0xff]   ;;  %v4096_v30 = vld [vmem:[%s6587_s1 + $0x50] ss:$8 sps:$4 sm:$0xff]  }
  0x12   : > { %s4457_s8 = scalar_lea.vmem %s6586_s0, %s4018_s28  ;;  %v4097_v31 = vld [vmem:[%s6587_s1 + $0x64] ss:$8 sps:$4 sm:$0xff]   ;;  %v4099_v32 = vld [vmem:[%s6587_s1 + $0x60] ss:$8 sps:$4 sm:$0xff]   ;;  %v4100_v37 = vld [vmem:[%s6587_s1 + $0x74] ss:$8 sps:$4 sm:$0xff]  }
  0x13   : > { %v783_v6 = vld [vmem:[%s4457_s8 + $0xf] sm:$0xff]  ;;  %v685_v7 = vld [vmem:[%s4457_s8 + $0x6] sm:$0xff]  ;;  %v784_v8 = vld [vmem:[%s4457_s8 + $0x17] sm:$0xff]  ;;  %1614 = vmatpush1.bf16.msra.mxu0 %v4084_v3  ;;  %vm6607_vm2 = vcmask 1048064   ;;  %vm6606_vm3 = vcmask 1040896  }
  0x14   : > { %807 = vrot.lane.b32.xlu0 %v783_v6, %s4395_s11  ;;  %709 = vrot.lane.b32.xlu1 %v685_v7, %s4395_s11  ;;  %v785_v9 = vld [vmem:[%s4457_s8 + $0x1f] sm:$0xff]  ;;  %772 = vst.msk [vmem:[#allocation2 + $0x30] sm:$0xff] %vm6610_vm0, %v783_v6  ;;  %773 = vst.msk [vmem:[#allocation2 + $0x58] sm:$0xff] %vm6610_vm0, %v784_v8  ;;  %v686_v10 = vld [vmem:[%s4457_s8 + $0xe] sm:$0xff] }
  0x15   : > { %v786_v11 = vld [vmem:[%s4457_s8 + $0x27] sm:$0xff]  ;;  %1615 = vmatprep.subr.bf16.mxu0 %v4085_v4  ;;  %774 = vst.msk [vmem:[#allocation2 + $0x80] sm:$0xff] %vm6610_vm0, %v785_v9  ;;  %v787_v13 = vld [vmem:[%s4457_s8 + $0x2f] sm:$0xff]  ;;  %v788_v14 = vld [vmem:[%s4457_s8 + $0x37] sm:$0xff] }
  0x16   : > { %775 = vst.msk [vmem:[#allocation2 + $0xa8] sm:$0xff] %vm6610_vm0, %v786_v11  ;;  %v4480_v15 = vld [vmem:[%s4457_s8 + $0x3f] sm:$0xff]  ;;  %v4483_v16 = vld [vmem:[%s4457_s8 + $0x47] sm:$0xff]  ;;  %776 = vst.msk [vmem:[#allocation2 + $0xd0] sm:$0xff] %vm6610_vm0, %v787_v13 }
  0x17   : > { %1616 = vmatpush1.bf16.msra.mxu0 %v4087_v5  ;;  %777 = vst.msk [vmem:[#allocation2 + $0xf8] sm:$0xff] %vm6610_vm0, %v788_v14  ;;  %778 = vst.msk [vmem:[#allocation2 + $0x120] sm:$0xff] %vm6610_vm0, %v4480_v15  ;;  %v4497_v18 = vld [vmem:[%s4457_s8 + $0x4f] sm:$0xff]  ;;  %v4500_v19 = vld [vmem:[%s4457_s8 + $0x57] sm:$0xff] }
  0x18   : > { %809 = vrot.lane.b32.xlu0 %v784_v8, %s4395_s11  ;;  %711 = vrot.lane.b32.xlu1 %v686_v10, %s4395_s11  ;;  %779 = vst.msk [vmem:[#allocation2 + $0x148] sm:$0xff] %vm6610_vm0, %v4483_v16  ;;  %780 = vst.msk [vmem:[#allocation2 + $0x170] sm:$0xff] %vm6610_vm0, %v4497_v18  ;;  %v687_v22 = vld [vmem:[%s4457_s8 + $0x16] sm:$0xff]  ;;  %v688_v23 = vld [vmem:[%s4457_s8 + $0x1e] sm:$0xff] }
  0x19   : > { %1617 = vmatprep.subr.bf16.mxu0 %v4088_v12  ;;  %781 = vst.msk [vmem:[#allocation2 + $0x198] sm:$0xff] %vm6610_vm0, %v4500_v19  ;;  %v4517_v24 = vld [vmem:[%s4457_s8 + $0x19] sm:$0xff]  ;;  %v4520_v25 = vld [vmem:[%s4457_s8 + $0x21] sm:$0xff]  ;;  %v4523_v26 = vld [vmem:[%s4457_s8 + $0x29] sm:$0xff] }
  0x1a   : > { %963 = vst.msk [vmem:[#allocation2 + $0x18] sm:$0xff] %vm6610_vm0, %v4517_v24  ;;  %v4528_v27 = vld [vmem:[%s4457_s8 + $0x31] sm:$0xff]  ;;  %v4531_v28 = vld [vmem:[%s4457_s8 + $0x39] sm:$0xff]  ;;  %964 = vst.msk [vmem:[#allocation2 + $0x40] sm:$0xff] %vm6610_vm0, %v4520_v25 }
  0x1b   : > { %1618 = vmatpush1.bf16.msra.mxu0 %v4090_v17  ;;  %965 = vst.msk [vmem:[#allocation2 + $0x68] sm:$0xff] %vm6610_vm0, %v4523_v26  ;;  %966 = vst.msk [vmem:[#allocation2 + $0x90] sm:$0xff] %vm6610_vm0, %v4528_v27  ;;  %v4556_v33 = vld [vmem:[%s4457_s8 + $0x41] sm:$0xff]  ;;  %v4559_v34 = vld [vmem:[%s4457_s8 + $0x49] sm:$0xff] }
  0x1c   : > { %811 = vrot.lane.b32.xlu0 %v785_v9, %s4395_s11  ;;  %813 = vrot.lane.b32.xlu1 %v786_v11, %s4395_s11  ;;  %967 = vst.msk [vmem:[#allocation2 + $0xb8] sm:$0xff] %vm6610_vm0, %v4531_v28  ;;  %968 = vst.msk [vmem:[#allocation2 + $0xe0] sm:$0xff] %vm6610_vm0, %v4556_v33  ;;  %v689_v35 = vld [vmem:[%s4457_s8 + $0x26] sm:$0xff]  ;;  %v690_v36 = vld [vmem:[%s4457_s8 + $0x2e] sm:$0xff] }
  0x1d   : > { %1619 = vmatprep.subr.bf16.mxu0 %v4091_v20  ;;  %969 = vst.msk [vmem:[#allocation2 + $0x108] sm:$0xff] %vm6610_vm0, %v4559_v34  ;;  %v4102_v38 = vld [vmem:[%s6587_s1 + $0x70] ss:$8 sps:$4 sm:$0xff]   ;;  %v4103_v41 = vld [vmem:[%s6587_s1 + $0x84] ss:$8 sps:$4 sm:$0xff]  }
  0x1e   : > { %v4576_v39 = vld [vmem:[%s4457_s8 + $0x51] sm:$0xff]  ;;  %v4581_v40 = vld [vmem:[%s4457_s8 + $0x59] sm:$0xff]  ;;  %v4600_v45 = vld [vmem:[%s4457_s8 + $0x61] sm:$0xff] }
  0x1f   : > { %1620 = vmatpush1.bf16.msra.mxu0 %v4093_v21  ;;  %970 = vst.msk [vmem:[#allocation2 + $0x130] sm:$0xff] %vm6610_vm0, %v4576_v39  ;;  %971 = vst.msk [vmem:[#allocation2 + $0x158] sm:$0xff] %vm6610_vm0, %v4581_v40  ;;  %v691_v42 = vld [vmem:[%s4457_s8 + $0x36] sm:$0xff]  ;;  %v4105_v43 = vld [vmem:[%s6587_s1 + $0x80] ss:$8 sps:$4 sm:$0xff]  }
  0x20   : > { %713 = vrot.lane.b32.xlu0 %v687_v22, %s4395_s11  ;;  %715 = vrot.lane.b32.xlu1 %v688_v23, %s4395_s11  ;;  %v692_v44 = vld [vmem:[%s4457_s8 + $0x3e] sm:$0xff]  ;;  %972 = vst.msk [vmem:[#allocation2 + $0x180] sm:$0xff] %vm6610_vm0, %v4600_v45  ;;  %v4108_v47 = vld [vmem:[%s6587_s1 + $0x90] ss:$8 sps:$4 sm:$0xff]  }
  0x21   : > { %1621 = vmatprep.subr.bf16.mxu0 %v4094_v29  ;;  %v4106_v46 = vld [vmem:[%s6587_s1 + $0x94] ss:$8 sps:$4 sm:$0xff]   ;;  %v759_v48 = vld [vmem:[%s4457_s8 + $0x7] sm:$0xff]  ;;  %v4114_v57 = vld [vmem:[%s6587_s1 + $0xb0] ss:$8 sps:$4 sm:$0xff]  }
  0x22   : > { %771 = vst.msk [vmem:[#allocation2 + $0x8] sm:$0xff] %vm6610_vm0, %v759_v48  ;;  %v659_v49 = vld [vmem:[%s4457_s8 + $0x5] sm:$0xff]  ;;  %v660_v51 = vld [vmem:[%s4457_s8 + $0xd] sm:$0xff]  ;;  %v695_v61 = vld [vmem:[%s4457_s8 + $0x56] sm:$0xff] }
  0x23   : > { %1622 = vmatpush1.bf16.msra.mxu0 %v4096_v30  ;;  %v4109_v50 = vld [vmem:[%s6587_s1 + $0xa4] ss:$8 sps:$4 sm:$0xff]   ;;  %672 = vst.msk [vmem:[#allocation2] sm:$0xff] %vm6610_vm0, %v659_v49  ;;  %v4111_v53 = vld [vmem:[%s6587_s1 + $0xa0] ss:$8 sps:$4 sm:$0xff]   ;;  %673 = vst.msk [vmem:[#allocation2 + $0x28] sm:$0xff] %vm6610_vm0, %v660_v51 }
  0x24   : > { %815 = vrot.lane.b32.xlu0 %v787_v13, %s4395_s11  ;;  %817 = vrot.lane.b32.xlu1 %v788_v14, %s4395_s11  ;;  %v693_v52 = vld [vmem:[%s4457_s8 + $0x46] sm:$0xff]  ;;  %v694_v54 = vld [vmem:[%s4457_s8 + $0x4e] sm:$0xff] }
  0x25   : > { %1623 = vmatprep.subr.bf16.mxu0 %v4097_v31  ;;  %v4112_v55 = vld [vmem:[%s6587_s1 + $0xb4] ss:$8 sps:$4 sm:$0xff]   ;;  %v794_v58 = vld [vmem:[%s4457_s8 + $0x67] sm:$0x1]  ;;  %v4117_v60 = vld [vmem:[%s6587_s1 + $0xc0] ss:$8 sps:$4 sm:$0xff]  }
  0x26   : > { %v793_v56 = vld [vmem:[%s4457_s8 + $0x5f] sm:$0xff]  ;;  %v661_v62 = vld [vmem:[%s4457_s8 + $0x15] sm:$0xff]  ;;  %v696_v0 = vld [vmem:[%s4457_s8 + $0x5e] sm:$0x1] }
  0x27   : > { %1624 = vmatpush1.bf16.msra.mxu0 %v4099_v32  ;;  %v4115_v59 = vld [vmem:[%s6587_s1 + $0xc4] ss:$8 sps:$4 sm:$0xff]   ;;  %674 = vst.msk [vmem:[#allocation2 + $0x50] sm:$0xff] %vm6610_vm0, %v661_v62  ;;  %v4118_v1 = vld [vmem:[%s6587_s1 + $0xd4] ss:$8 sps:$4 sm:$0xff]  }
  0x28   : > { %717 = vrot.lane.b32.xlu0 %v689_v35, %s4395_s11  ;;  %719 = vrot.lane.b32.xlu1 %v690_v36, %s4395_s11  ;;  %v662_v63 = vld [vmem:[%s4457_s8 + $0x1d] sm:$0xff]  ;;  %v4120_v2 = vld [vmem:[%s6587_s1 + $0xd0] ss:$8 sps:$4 sm:$0xff]  }
  0x29   : > { %1625 = vmatprep.subr.bf16.mxu0 %v4100_v37  ;;  %675 = vst.msk [vmem:[#allocation2 + $0x78] sm:$0xff] %vm6610_vm0, %v662_v63  ;;  %v663_v3 = vld [vmem:[%s4457_s8 + $0x25] sm:$0xff]  ;;  %v664_v4 = vld [vmem:[%s4457_s8 + $0x2d] sm:$0xff]  ;;  %v975_v5 = vld [vmem:[%s4457_s8 + $0x1a] sm:$0xff] }
  0x2a   : > { %676 = vst.msk [vmem:[#allocation2 + $0xa0] sm:$0xff] %vm6610_vm0, %v663_v3  ;;  %v976_v6 = vld [vmem:[%s4457_s8 + $0x22] sm:$0xff]  ;;  %677 = vst.msk [vmem:[#allocation2 + $0xc8] sm:$0xff] %vm6610_vm0, %v664_v4  ;;  %v665_v8 = vld [vmem:[%s4457_s8 + $0x35] sm:$0xff] }
  0x2b   : > { %1626 = vmatpush1.bf16.msra.mxu0 %v4102_v38  ;;  %v4121_v7 = vld [vmem:[%s6587_s1 + $0xe4] ss:$8 sps:$4 sm:$0xff]   ;;  %v4123_v10 = vld [vmem:[%s6587_s1 + $0xe0] ss:$8 sps:$4 sm:$0xff]   ;;  %678 = vst.msk [vmem:[#allocation2 + $0xf0] sm:$0xff] %vm6610_vm0, %v665_v8  ;;  %v879_v11 = vld [vmem:[%s4457_s8 + $0x11] sm:$0xff] }
  0x2c   : > { %819 = vrot.lane.b32.xlu0 %v4480_v15, %s4395_s11  ;;  %821 = vrot.lane.b32.xlu1 %v4483_v16, %s4395_s11  ;;  %v666_v9 = vld [vmem:[%s4457_s8 + $0x3d] sm:$0xff]  ;;  %v667_v13 = vld [vmem:[%s4457_s8 + $0x45] sm:$0xff] }
  0x2d   : > { %1627 = vmatprep.subr.bf16.mxu0 %v4103_v41  ;;  %679 = vst.msk [vmem:[#allocation2 + $0x118] sm:$0xff] %vm6610_vm0, %v666_v9  ;;  %v4124_v12 = vld [vmem:[%s6587_s1 + $0xf4] ss:$8 sps:$4 sm:$0xff]   ;;  %v977_v15 = vld [vmem:[%s4457_s8 + $0x2a] sm:$0xff]  ;;  %680 = vst.msk [vmem:[#allocation2 + $0x140] sm:$0xff] %vm6610_vm0, %v667_v13 }
  0x2e   : > { %v668_v14 = vld [vmem:[%s4457_s8 + $0x4d] sm:$0xff]  ;;  %v770_v17 = vld [vmem:[%s4457_s8 + $0x5f] sm:$0x1]  ;;  %v669_v20 = vld [vmem:[%s4457_s8 + $0x55] sm:$0xff] }
  0x2f   : > { %1628 = vmatpush1.bf16.msra.mxu0 %v4105_v43  ;;  %v4126_v16 = vld [vmem:[%s6587_s1 + $0xf0] ss:$8 sps:$4 sm:$0xff]   ;;  %681 = vst.msk [vmem:[#allocation2 + $0x168] sm:$0xff] %vm6610_vm0, %v668_v14  ;;  %v670_v21 = vld [vmem:[%s4457_s8 + $0x5d] sm:$0x1]  ;;  %682 = vst.msk [vmem:[#allocation2 + $0x190] sm:$0xff] %vm6610_vm0, %v669_v20 }
  0x30   : > { %721 = vrot.lane.b32.xlu0 %v691_v42, %s4395_s11  ;;  %723 = vrot.lane.b32.xlu1 %v692_v44, %s4395_s11  ;;  %782 = vst.msk [vmem:[#allocation2 + $0x1c0] sm:$0x1] %vm6608_vm1, %v770_v17  ;;  %684 = vst.msk [vmem:[#allocation2 + $0x1b8] sm:$0x1] %vm6608_vm1, %v670_v21  ;;  %v855_v22 = vld [vmem:[%s4457_s8 + $0x10] sm:$0xff]  ;;  %v856_v23 = vld [vmem:[%s4457_s8 + $0x18] sm:$0xff] }
  0x31   : > { %1629 = vmatprep.subr.bf16.mxu0 %v4106_v46  ;;  %867 = vst.msk [vmem:[#allocation2 + $0x10] sm:$0xff] %vm6610_vm0, %v855_v22  ;;  %868 = vst.msk [vmem:[#allocation2 + $0x38] sm:$0xff] %vm6610_vm0, %v856_v23  ;;  %v980_v29 = vld [vmem:[%s4457_s8 + $0x42] sm:$0xff]  ;;  %v981_v32 = vld [vmem:[%s4457_s8 + $0x4a] sm:$0xff] }
  0x32   : > { %v857_v30 = vld [vmem:[%s4457_s8 + $0x20] sm:$0xff]  ;;  %v858_v31 = vld [vmem:[%s4457_s8 + $0x28] sm:$0xff]  ;;  %v859_v35 = vld [vmem:[%s4457_s8 + $0x30] sm:$0xff] }
  0x33   : > { %1630 = vmatpush1.bf16.msra.mxu0 %v4108_v47  ;;  %869 = vst.msk [vmem:[#allocation2 + $0x60] sm:$0xff] %vm6610_vm0, %v857_v30  ;;  %870 = vst.msk [vmem:[#allocation2 + $0x88] sm:$0xff] %vm6610_vm0, %v858_v31  ;;  %v983_v36 = vld [vmem:[%s4457_s8 + $0x5a] sm:$0xff]  ;;  %v984_v37 = vld [vmem:[%s4457_s8 + $0x62] sm:$0xff] }
  0x34   : > { %823 = vrot.lane.b32.xlu0 %v4497_v18, %s4395_s11  ;;  %825 = vrot.lane.b32.xlu1 %v4500_v19, %s4395_s11  ;;  %v978_v18 = vld [vmem:[%s4457_s8 + $0x32] sm:$0xff]  ;;  %v4129_v19 = vld [vmem:[%s6587_s1 + $0x104] ss:$8 sps:$4 sm:$0xff]   ;;  %871 = vst.msk [vmem:[#allocation2 + $0xb0] sm:$0xff] %vm6610_vm0, %v859_v35 }
  0x35   : > { %1631 = vmatprep.subr.bf16.mxu0 %v4109_v50  ;;  %v861_v38 = vld [vmem:[%s4457_s8 + $0x40] sm:$0xff]  ;;  %v986_v41 = vld [vmem:[%s4457_s8 + $0x72] sm:$0x1]  ;;  %v961_v43 = vld [vmem:[%s4457_s8 + $0x69] sm:$0xff] }
  0x36   : > { %873 = vst.msk [vmem:[#allocation2 + $0x100] sm:$0xff] %vm6610_vm0, %v861_v38  ;;  %v863_v42 = vld [vmem:[%s4457_s8 + $0x50] sm:$0xff]  ;;  %973 = vst.msk [vmem:[#allocation2 + $0x1a8] sm:$0xff] %vm6610_vm0, %v961_v43  ;;  %v865_v44 = vld [vmem:[%s4457_s8 + $0x60] sm:$0xff] }
  0x37   : > { %1632 = vmatpush1.bf16.msra.mxu0 %v4111_v53  ;;  %875 = vst.msk [vmem:[#allocation2 + $0x150] sm:$0xff] %vm6610_vm0, %v863_v42  ;;  %v866_v46 = vld [vmem:[%s4457_s8 + $0x68] sm:$0x1]  ;;  %877 = vst.msk [vmem:[#allocation2 + $0x1a0] sm:$0xff] %vm6610_vm0, %v865_v44  ;;  %v1049_v48 = vld [vmem:[%s4457_s8 + $0x2b] sm:$0xff] }
  0x38   : > { %725 = vrot.lane.b32.xlu0 %v693_v52, %s4395_s11  ;;  %727 = vrot.lane.b32.xlu1 %v694_v54, %s4395_s11  ;;  %878 = vst.msk [vmem:[#allocation2 + $0x1c8] sm:$0x1] %vm6608_vm1, %v866_v46  ;;  %v1048_v47 = vld [vmem:[%s4457_s8 + $0x23] sm:$0xff]  ;;  %v1050_v49 = vld [vmem:[%s4457_s8 + $0x33] sm:$0xff] }
  0x39   : > { %1633 = vmatprep.subr.bf16.mxu0 %v4112_v55  ;;  %1060 = vst.msk [vmem:[#allocation2 + $0x48] sm:$0xff] %vm6610_vm0, %v1048_v47  ;;  %1061 = vst.msk [vmem:[#allocation2 + $0x70] sm:$0xff] %vm6610_vm0, %v1049_v48  ;;  %v1051_v53 = vld [vmem:[%s4457_s8 + $0x3b] sm:$0xff]  ;;  %v1052_v54 = vld [vmem:[%s4457_s8 + $0x43] sm:$0xff] }
  0x3a   : > { %1062 = vst.msk [vmem:[#allocation2 + $0x98] sm:$0xff] %vm6610_vm0, %v1050_v49  ;;  %1063 = vst.msk [vmem:[#allocation2 + $0xc0] sm:$0xff] %vm6610_vm0, %v1051_v53  ;;  %v4132_v3 = vld [vmem:[%s6587_s1 + $0x114] ss:$8 sps:$4 sm:$0xff]   ;;  %v4130_v9 = vld [vmem:[%s6587_s1 + $0x110] ss:$8 sps:$4 sm:$0xff]  }
  0x3b   : > { %1634 = vmatpush1.bf16.msra.mxu0 %v4114_v57  ;;  %1064 = vst.msk [vmem:[#allocation2 + $0xe8] sm:$0xff] %vm6610_vm0, %v1052_v54  ;;  %v1054_v4 = vld [vmem:[%s4457_s8 + $0x53] sm:$0xff]  ;;  %v4141_v31 = vld [vmem:[%s6587_s1 + $0x144] ss:$8 sps:$4 sm:$0xff]   ;;  %v4145_v49 = vld [vmem:[%s6587_s1 + $0x160] ss:$8 sps:$4 sm:$0xff]  }
  0x3c   : > { %827 = vrot.lane.b32.xlu0 %v793_v56, %s4395_s11  ;;  %829 = vrot.lane.b32.xlu1 %v794_v58, %s4395_s11  ;;  %1066 = vst.msk [vmem:[#allocation2 + $0x138] sm:$0xff] %vm6610_vm0, %v1054_v4  ;;  %v4138_v20 = vld [vmem:[%s6587_s1 + $0x134] ss:$8 sps:$4 sm:$0xff]   ;;  %v1057_v38 = vld [vmem:[%s4457_s8 + $0x6b] sm:$0xff] }
  0x3d   : > { %1635 = vmatprep.subr.bf16.mxu0 %v4115_v59  ;;  %1069 = vst.msk [vmem:[#allocation2 + $0x1b0] sm:$0xff] %vm6610_vm0, %v1057_v38  ;;  %v4142_v43 = vld [vmem:[%s6587_s1 + $0x150] ss:$8 sps:$4 sm:$0xff]   ;;  %v4147_v44 = vld [vmem:[%s6587_s1 + $0x164] ss:$8 sps:$4 sm:$0xff]  }
  0x3f   : > { %1636 = vmatpush1.bf16.msra.mxu0 %v4117_v60 }
  0x40   : > { %729 = vrot.lane.b32.xlu0 %v695_v61, %s4395_s11  ;;  %731 = vrot.lane.b32.xlu1 %v696_v0, %s4395_s11  ;;  %v4127_v0 = vld [vmem:[%s6587_s1 + $0x100] ss:$8 sps:$4 sm:$0xff]  }
  0x41   : > { %1637 = vmatprep.subr.bf16.mxu0 %v4118_v1 }
  0x43   : > { %1638 = vmatpush1.bf16.msra.mxu0 %v4120_v2  ;;  %v1053_v2 = vld [vmem:[%s4457_s8 + $0x4b] sm:$0xff] }
  0x44   : > { %999 = vrot.lane.b32.xlu0 %v975_v5, %s4395_s11  ;;  %1001 = vrot.lane.b32.xlu1 %v976_v6, %s4395_s11  ;;  %1065 = vst.msk [vmem:[#allocation2 + $0x110] sm:$0xff] %vm6610_vm0, %v1053_v2 }
  0x45   : > { %1639 = vmatprep.subr.bf16.mxu0 %v4121_v7 }
  0x47   : > { %1640 = vmatpush1.bf16.msra.mxu0 %v4123_v10 }
  0x48   : > { %903 = vrot.lane.b32.xlu0 %v879_v11, %s4395_s11  ;;  %905 = vrot.lane.b32.xlu1 %v4517_v24, %s4395_s11  ;;  %v979_v24 = vld [vmem:[%s4457_s8 + $0x3a] sm:$0xff]  ;;  %v4135_v11 = vld [vmem:[%s6587_s1 + $0x124] ss:$8 sps:$4 sm:$0xff]  }
  0x49   : > { %1641 = vmatprep.subr.bf16.mxu0 %v4124_v12 }
  0x4b   : > { %1642 = vmatpush1.bf16.msra.mxu0 %v4126_v16  ;;  %v4133_v16 = vld [vmem:[%s6587_s1 + $0x120] ss:$8 sps:$4 sm:$0xff]  }
  0x4c   : > { %1003 = vrot.lane.b32.xlu0 %v977_v15, %s4395_s11  ;;  %1005 = vrot.lane.b32.xlu1 %v978_v18, %s4395_s11  ;;  %v1055_v18 = vld [vmem:[%s4457_s8 + $0x5b] sm:$0xff] }
  0x4d   : > { %1704 = vmatprep.subr.bf16.mxu0 %v4129_v19  ;;  %v1056_v19 = vld [vmem:[%s4457_s8 + $0x63] sm:$0xff]  ;;  %1067 = vst.msk [vmem:[#allocation2 + $0x160] sm:$0xff] %vm6610_vm0, %v1055_v18 }
  0x4e   : > { %1068 = vst.msk [vmem:[#allocation2 + $0x188] sm:$0xff] %vm6610_vm0, %v1056_v19  ;;  %v4160_v19 = vld [vmem:[%s6587_s1 + $0x1b0] ss:$8 sps:$4 sm:$0xff]  }
  0x50   : > { %907 = vrot.lane.b32.xlu0 %v4520_v25, %s4395_s11  ;;  %909 = vrot.lane.b32.xlu1 %v4523_v26, %s4395_s11  ;;  %v982_v25 = vld [vmem:[%s4457_s8 + $0x52] sm:$0xff] }
  0x51   : > { %v860_v26 = vld [vmem:[%s4457_s8 + $0x38] sm:$0xff] }
  0x52   : > { %872 = vst.msk [vmem:[#allocation2 + $0xd8] sm:$0xff] %vm6610_vm0, %v860_v26 }
  0x54   : > { %1007 = vrot.lane.b32.xlu0 %v979_v24, %s4395_s11  ;;  %1009 = vrot.lane.b32.xlu1 %v980_v29, %s4395_s11  ;;  %v4136_v29 = vld [vmem:[%s6587_s1 + $0x130] ss:$8 sps:$4 sm:$0xff]  }
  0x58   : > { %911 = vrot.lane.b32.xlu0 %v4528_v27, %s4395_s11  ;;  %913 = vrot.lane.b32.xlu1 %v4531_v28, %s4395_s11  ;;  %v862_v27 = vld [vmem:[%s4457_s8 + $0x48] sm:$0xff] }
  0x59   : > { %874 = vst.msk [vmem:[#allocation2 + $0x128] sm:$0xff] %vm6610_vm0, %v862_v27  ;;  %v985_v28 = vld [vmem:[%s4457_s8 + $0x6a] sm:$0xff]  ;;  %v4144_v27 = vld [vmem:[%s6587_s1 + $0x154] ss:$8 sps:$4 sm:$0xff]  }
  0x5c   : > { %1011 = vrot.lane.b32.xlu0 %v981_v32, %s4395_s11  ;;  %1013 = vrot.lane.b32.xlu1 %v982_v25, %s4395_s11 }
  0x60   : > { %915 = vrot.lane.b32.xlu0 %v4556_v33, %s4395_s11  ;;  %917 = vrot.lane.b32.xlu1 %v4559_v34, %s4395_s11  ;;  %v864_v33 = vld [vmem:[%s4457_s8 + $0x58] sm:$0xff]  ;;  %v890_v34 = vld [vmem:[%s4457_s8 + $0x69] sm:$0x1] }
  0x61   : > { %876 = vst.msk [vmem:[#allocation2 + $0x178] sm:$0xff] %vm6610_vm0, %v864_v33 }
  0x64   : > { %1015 = vrot.lane.b32.xlu0 %v983_v36, %s4395_s11  ;;  %1017 = vrot.lane.b32.xlu1 %v984_v37, %s4395_s11  ;;  %v4139_v36 = vld [vmem:[%s6587_s1 + $0x140] ss:$8 sps:$4 sm:$0xff]  }
  0x68   : > { %919 = vrot.lane.b32.xlu0 %v4576_v39, %s4395_s11  ;;  %921 = vrot.lane.b32.xlu1 %v4581_v40, %s4395_s11  ;;  %v962_v39 = vld [vmem:[%s4457_s8 + $0x71] sm:$0x1]  ;;  %v1047_v40 = vld [vmem:[%s4457_s8 + $0x1b] sm:$0xff] }
  0x69   : > { %974 = vst.msk [vmem:[#allocation2 + $0x1d0] sm:$0x1] %vm6608_vm1, %v962_v39 }
  0x6a   : > { %1059 = vst.msk [vmem:[#allocation2 + $0x20] sm:$0xff] %vm6610_vm0, %v1047_v40 }
  0x6c   : > { %1019 = vrot.lane.b32.xlu0 %v985_v28, %s4395_s11  ;;  %1021 = vrot.lane.b32.xlu1 %v986_v41, %s4395_s11  ;;  %v1058_v28 = vld [vmem:[%s4457_s8 + $0x73] sm:$0x1] }
  0x6d   : > { %1070 = vst.msk [vmem:[#allocation2 + $0x1d8] sm:$0x1] %vm6608_vm1, %v1058_v28  ;;  %v4172_v28 = vld [vmem:[%s6587_s1 + $0x1f0] ss:$8 sps:$4 sm:$0xff]  }
  0x70   : > { %923 = vrot.lane.b32.xlu0 %v4600_v45, %s4395_s11  ;;  %925 = vrot.lane.b32.xlu1 %v890_v34, %s4395_s11 }
  0x86   : > { %v808_v45 = vpop.permute.xlu0 %807  ;;  %v710_v50 = vpop.permute.xlu1 %709 }
  0x87   : > { %843 = vst.msk [vmem:[#allocation2 + $0x8] sm:$0xff] %vm6607_vm2, %v808_v45  ;;  %746 = vst.msk [vmem:[#allocation2] sm:$0xff] %vm6607_vm2, %v710_v50  ;;  %v4150_v50 = vld [vmem:[%s6587_s1 + $0x174] ss:$8 sps:$4 sm:$0xff]  }
  0x8a   : > { %v810_v51 = vpop.permute.xlu0 %809  ;;  %v712_v52 = vpop.permute.xlu1 %711 }
  0x8b   : > { %844 = vst.msk [vmem:[#allocation2 + $0x30] sm:$0xff] %vm6607_vm2, %v810_v51  ;;  %747 = vst.msk [vmem:[#allocation2 + $0x28] sm:$0xff] %vm6607_vm2, %v712_v52 }
  0x8e   : > { %v812_v55 = vpop.permute.xlu0 %811  ;;  %v814_v56 = vpop.permute.xlu1 %813  ;;  %v1072_v57 = vld [vmem:[#allocation2 + $0x8] sm:$0xff]  ;;  %v1071_v59 = vld [vmem:[#allocation2] sm:$0xff] }
  0x8f   : > { %845 = vst.msk [vmem:[#allocation2 + $0x58] sm:$0xff] %vm6607_vm2, %v812_v55  ;;  %846 = vst.msk [vmem:[#allocation2 + $0x80] sm:$0xff] %vm6607_vm2, %v814_v56  ;;  %v4148_v55 = vld [vmem:[%s6587_s1 + $0x170] ss:$8 sps:$4 sm:$0xff]  }
  0x92   : > { %v1077_v58 = vld [vmem:[#allocation2 + $0x30] sm:$0xff]  ;;  %v1076_v60 = vld [vmem:[#allocation2 + $0x28] sm:$0xff]  ;;  %v714_v61 = vpop.permute.xlu0 %713  ;;  %v716_v62 = vpop.permute.xlu1 %715 }
  0x93   : > { %v1132_v63 = vpack.c.bf16 %v1077_v58, %v1072_v57  ;;  %v1131_v1 = vpack.c.bf16 %v1076_v60, %v1071_v59  ;;  %748 = vst.msk [vmem:[#allocation2 + $0x50] sm:$0xff] %vm6607_vm2, %v714_v61  ;;  %749 = vst.msk [vmem:[#allocation2 + $0x78] sm:$0xff] %vm6607_vm2, %v716_v62  ;;  %v4153_v57 = vld [vmem:[%s6587_s1 + $0x184] ss:$8 sps:$4 sm:$0xff]   ;;  %v4151_v62 = vld [vmem:[%s6587_s1 + $0x180] ss:$8 sps:$4 sm:$0xff]  }
  0x95   : > { %1643 = vmatprep.mubr.bf16.mxu0 %v1132_v63 }
  0x96   : > { %1644 = vmatmul.mubr.bf16.vlgmr.msra.gmra.mrb[0].mxu0 %v1131_v1  ;;  %v816_v5 = vpop.permute.xlu0 %815  ;;  %v818_v6 = vpop.permute.xlu1 %817  ;;  %v1082_v7 = vld [vmem:[#allocation2 + $0x58] sm:$0xff]  ;;  %v1087_v8 = vld [vmem:[#allocation2 + $0x80] sm:$0xff] }
  0x97   : > { %1705 = vmatpush1.bf16.msra.mxu0 %v4127_v0  ;;  %847 = vst.msk [vmem:[#allocation2 + $0xa8] sm:$0xff] %vm6607_vm2, %v816_v5  ;;  %848 = vst.msk [vmem:[#allocation2 + $0xd0] sm:$0xff] %vm6607_vm2, %v818_v6  ;;  %v1137_v10 = vpack.c.bf16 %v1087_v8, %v1082_v7  ;;  %v4156_v0 = vld [vmem:[%s6587_s1 + $0x194] ss:$8 sps:$4 sm:$0xff]   ;;  %v4154_v5 = vld [vmem:[%s6587_s1 + $0x190] ss:$8 sps:$4 sm:$0xff]  }
  0x98   : > { %1706 = vmatprep.subr.bf16.mxu0 %v4132_v3  ;;  %v4159_v7 = vld [vmem:[%s6587_s1 + $0x1a4] ss:$8 sps:$4 sm:$0xff]  }
  0x99   : > { %1653 = vmatprep.mubr.bf16.mxu0 %v1137_v10 }
  0x9a   : > { %v718_v12 = vpop.permute.xlu0 %717  ;;  %v720_v13 = vpop.permute.xlu1 %719  ;;  %v1081_v14 = vld [vmem:[#allocation2 + $0x50] sm:$0xff]  ;;  %v1086_v15 = vld [vmem:[#allocation2 + $0x78] sm:$0xff] }
  0x9b   : > { %1707 = vmatpush1.bf16.msra.mxu0 %v4130_v9  ;;  %750 = vst.msk [vmem:[#allocation2 + $0xa0] sm:$0xff] %vm6607_vm2, %v718_v12  ;;  %751 = vst.msk [vmem:[#allocation2 + $0xc8] sm:$0xff] %vm6607_vm2, %v720_v13  ;;  %v1136_v17 = vpack.c.bf16 %v1086_v15, %v1081_v14  ;;  %v4157_v12 = vld [vmem:[%s6587_s1 + $0x1a0] ss:$8 sps:$4 sm:$0xff]   ;;  %v4162_v14 = vld [vmem:[%s6587_s1 + $0x1b4] ss:$8 sps:$4 sm:$0xff]  }
  0x9c   : > { %1708 = vmatprep.subr.bf16.mxu0 %v4135_v11 }
  0x9e   : > { %1654 = vmatmul.mubr.bf16.gmra.mrb[4].mxu0 %v1136_v17  ;;  %v820_v21 = vpop.permute.xlu0 %819  ;;  %v822_v22 = vpop.permute.xlu1 %821  ;;  %v1092_v23 = vld [vmem:[#allocation2 + $0xa8] sm:$0xff]  ;;  %v1097_v24 = vld [vmem:[#allocation2 + $0xd0] sm:$0xff] }
  0x9f   : > { %1709 = vmatpush1.bf16.msra.mxu0 %v4133_v16  ;;  %849 = vst.msk [vmem:[#allocation2 + $0xf8] sm:$0xff] %vm6607_vm2, %v820_v21  ;;  %850 = vst.msk [vmem:[#allocation2 + $0x120] sm:$0xff] %vm6607_vm2, %v822_v22  ;;  %v1142_v30 = vpack.c.bf16 %v1097_v24, %v1092_v23  ;;  %v4165_v21 = vld [vmem:[%s6587_s1 + $0x1c4] ss:$8 sps:$4 sm:$0xff]   ;;  %v4163_v24 = vld [vmem:[%s6587_s1 + $0x1c0] ss:$8 sps:$4 sm:$0xff]  }
  0xa0   : > { %1710 = vmatprep.subr.bf16.mxu0 %v4138_v20 }
  0xa1   : > { %1663 = vmatprep.mubr.bf16.mxu0 %v1142_v30 }
  0xa2   : > { %v722_v32 = vpop.permute.xlu0 %721  ;;  %v724_v25 = vpop.permute.xlu1 %723  ;;  %v1091_v35 = vld [vmem:[#allocation2 + $0xa0] sm:$0xff]  ;;  %v1096_v26 = vld [vmem:[#allocation2 + $0xc8] sm:$0xff] }
  0xa3   : > { %1711 = vmatpush1.bf16.msra.mxu0 %v4136_v29  ;;  %752 = vst.msk [vmem:[#allocation2 + $0xf0] sm:$0xff] %vm6607_vm2, %v722_v32  ;;  %753 = vst.msk [vmem:[#allocation2 + $0x118] sm:$0xff] %vm6607_vm2, %v724_v25  ;;  %v1141_v37 = vpack.c.bf16 %v1096_v26, %v1091_v35  ;;  %v4168_v29 = vld [vmem:[%s6587_s1 + $0x1d4] ss:$8 sps:$4 sm:$0xff]   ;;  %v4166_v32 = vld [vmem:[%s6587_s1 + $0x1d0] ss:$8 sps:$4 sm:$0xff]  }
  0xa4   : > { %1712 = vmatprep.subr.bf16.mxu0 %v4141_v31  ;;  %v4171_v25 = vld [vmem:[%s6587_s1 + $0x1e4] ss:$8 sps:$4 sm:$0xff]  }
  0xa6   : > { %1664 = vmatmul.mubr.bf16.gmra.mrb[8].mxu0 %v1141_v37  ;;  %v824_v41 = vpop.permute.xlu0 %823  ;;  %v826_v42 = vpop.permute.xlu1 %825  ;;  %v1102_v33 = vld [vmem:[#allocation2 + $0xf8] sm:$0xff]  ;;  %v1107_v34 = vld [vmem:[#allocation2 + $0x120] sm:$0xff] }
  0xa7   : > { %1713 = vmatpush1.bf16.msra.mxu0 %v4139_v36  ;;  %851 = vst.msk [vmem:[#allocation2 + $0x148] sm:$0xff] %vm6607_vm2, %v824_v41  ;;  %852 = vst.msk [vmem:[#allocation2 + $0x170] sm:$0xff] %vm6607_vm2, %v826_v42  ;;  %v1147_v39 = vpack.c.bf16 %v1107_v34, %v1102_v33  ;;  %v4169_v36 = vld [vmem:[%s6587_s1 + $0x1e0] ss:$8 sps:$4 sm:$0xff]   ;;  %v4174_v37 = vld [vmem:[%s6587_s1 + $0x1f4] ss:$8 sps:$4 sm:$0xff]  }
  0xa8   : > { %1714 = vmatprep.subr.bf16.mxu0 %v4144_v27  ;;  %v4177_v33 = vld [vmem:[%s6587_s1 + $0x204] ss:$8 sps:$4 sm:$0xff]  }
  0xa9   : > { %1673 = vmatprep.mubr.bf16.mxu0 %v1147_v39 }
  0xaa   : > { %v726_v46 = vpop.permute.xlu0 %725  ;;  %v728_v40 = vpop.permute.xlu1 %727  ;;  %v1101_v47 = vld [vmem:[#allocation2 + $0xf0] sm:$0xff]  ;;  %v1106_v48 = vld [vmem:[#allocation2 + $0x118] sm:$0xff] }
  0xab   : > { %1715 = vmatpush1.bf16.msra.mxu0 %v4142_v43  ;;  %754 = vst.msk [vmem:[#allocation2 + $0x140] sm:$0xff] %vm6607_vm2, %v726_v46  ;;  %755 = vst.msk [vmem:[#allocation2 + $0x168] sm:$0xff] %vm6607_vm2, %v728_v40  ;;  %v1146_v45 = vpack.c.bf16 %v1106_v48, %v1101_v47  ;;  %v4175_v40 = vld [vmem:[%s6587_s1 + $0x200] ss:$8 sps:$4 sm:$0xff]   ;;  %v4180_v48 = vld [vmem:[%s6587_s1 + $0x214] ss:$8 sps:$4 sm:$0xff]  }
  0xac   : > { %1716 = vmatprep.subr.bf16.mxu0 %v4147_v44 }
  0xae   : > { %1674 = vmatmul.mubr.bf16.gmra.mrb[12].mxu0 %v1146_v45  ;;  %v828_v51 = vpop.permute.xlu0 %827  ;;  %v830_v52 = vpop.permute.xlu1 %829  ;;  %v1112_v53 = vld [vmem:[#allocation2 + $0x148] sm:$0xff]  ;;  %v1117_v54 = vld [vmem:[#allocation2 + $0x170] sm:$0xff] }
  0xaf   : > { %1717 = vmatpush1.bf16.msra.mxu0 %v4145_v49  ;;  %853 = vst.msk [vmem:[#allocation2 + $0x198] sm:$0xff] %vm6607_vm2, %v828_v51  ;;  %v1152_v56 = vpack.c.bf16 %v1117_v54, %v1112_v53 }
  0xb0   : > { %854 = vst.msk [vmem:[#allocation2 + $0x1c0] sm:$0x1] %vm6606_vm3, %v830_v52  ;;  %1718 = vmatprep.subr.bf16.mxu0 %v4150_v50  ;;  %v4178_v52 = vld [vmem:[%s6587_s1 + $0x210] ss:$8 sps:$4 sm:$0xff]  }
  0xb1   : > { %1683 = vmatprep.mubr.bf16.mxu0 %v1152_v56 }
  0xb2   : > { %v730_v58 = vpop.permute.xlu0 %729  ;;  %v732_v59 = vpop.permute.xlu1 %731  ;;  %v1111_v60 = vld [vmem:[#allocation2 + $0x140] sm:$0xff]  ;;  %v1116_v61 = vld [vmem:[#allocation2 + $0x168] sm:$0xff] }
  0xb3   : > { %1719 = vmatpush1.bf16.msra.mxu0 %v4148_v55  ;;  %756 = vst.msk [vmem:[#allocation2 + $0x190] sm:$0xff] %vm6607_vm2, %v730_v58  ;;  %v1151_v63 = vpack.c.bf16 %v1116_v61, %v1111_v60  ;;  %v4183_v55 = vld [vmem:[%s6587_s1 + $0x224] ss:$8 sps:$4 sm:$0xff]   ;;  %v4181_v60 = vld [vmem:[%s6587_s1 + $0x220] ss:$8 sps:$4 sm:$0xff]  }
  0xb4   : > { %758 = vst.msk [vmem:[#allocation2 + $0x1b8] sm:$0x1] %vm6606_vm3, %v732_v59  ;;  %1720 = vmatprep.subr.bf16.mxu0 %v4153_v57  ;;  %v4186_v61 = vld [vmem:[%s6587_s1 + $0x234] ss:$8 sps:$4 sm:$0xff]  }
  0xb6   : > { %1684 = vmatmul.mubr.bf16.gmra.mrb[16].mxu0 %v1151_v63  ;;  %v1000_v1 = vpop.permute.xlu0 %999  ;;  %v1002_v2 = vpop.permute.xlu1 %1001  ;;  %v1122_v3 = vld [vmem:[#allocation2 + $0x198] sm:$0xff] }
  0xb7   : > { %v1127_v4 = vld [vmem:[#allocation2 + $0x1c0] sm:$0x1]  ;;  %1721 = vmatpush1.bf16.msra.mxu0 %v4151_v62  ;;  %1035 = vst.msk [vmem:[#allocation2 + $0x18] sm:$0xff] %vm6607_vm2, %v1000_v1  ;;  %1036 = vst.msk [vmem:[#allocation2 + $0x40] sm:$0xff] %vm6607_vm2, %v1002_v2  ;;  %v4184_v2 = vld [vmem:[%s6587_s1 + $0x230] ss:$8 sps:$4 sm:$0xff]  }
  0xb8   : > { %v1157_v6 = vpack.c.bf16 %v1127_v4, %v1122_v3  ;;  %1722 = vmatprep.subr.bf16.mxu0 %v4156_v0 }
  0xba   : > { %1693 = vmatprep.mubr.bf16.mxu0 %v1157_v6  ;;  %v904_v8 = vpop.permute.xlu0 %903  ;;  %v906_v9 = vpop.permute.xlu1 %905  ;;  %v1121_v10 = vld [vmem:[#allocation2 + $0x190] sm:$0xff] }
  0xbb   : > { %v1126_v11 = vld [vmem:[#allocation2 + $0x1b8] sm:$0x1]  ;;  %1723 = vmatpush1.bf16.msra.mxu0 %v4154_v5  ;;  %939 = vst.msk [vmem:[#allocation2 + $0x10] sm:$0xff] %vm6607_vm2, %v904_v8  ;;  %940 = vst.msk [vmem:[#allocation2 + $0x38] sm:$0xff] %vm6607_vm2, %v906_v9 }
  0xbc   : > { %v1156_v13 = vpack.c.bf16 %v1126_v11, %v1121_v10  ;;  %1724 = vmatprep.subr.bf16.mxu0 %v4159_v7 }
  0xbe   : > { %1694 = vmatmul.mubr.bf16.gmra.mrb[20].mxu0 %v1156_v13  ;;  %v1004_v15 = vpop.permute.xlu0 %1003  ;;  %v1006_v16 = vpop.permute.xlu1 %1005  ;;  %v1074_v17 = vld [vmem:[#allocation2 + $0x18] sm:$0xff]  ;;  %v1079_v18 = vld [vmem:[#allocation2 + $0x40] sm:$0xff] }
  0xbf   : > { %1725 = vmatpush1.bf16.msra.mxu0 %v4157_v12  ;;  %1037 = vst.msk [vmem:[#allocation2 + $0x68] sm:$0xff] %vm6607_vm2, %v1004_v15  ;;  %1038 = vst.msk [vmem:[#allocation2 + $0x90] sm:$0xff] %vm6607_vm2, %v1006_v16  ;;  %v1134_v20 = vpack.c.bf16 %v1079_v18, %v1074_v17 }
  0xc0   : > { %1726 = vmatprep.subr.bf16.mxu0 %v4162_v14 }
  0xc1   : > { %1736 = vmatprep.mubr.bf16.mxu0 %v1134_v20 }
  0xc2   : > { %v908_v22 = vpop.permute.xlu0 %907  ;;  %v910_v23 = vpop.permute.xlu1 %909  ;;  %v1073_v41 = vld [vmem:[#allocation2 + $0x10] sm:$0xff]  ;;  %v1078_v42 = vld [vmem:[#allocation2 + $0x38] sm:$0xff] }
  0xc3   : > { %1727 = vmatpush1.bf16.msra.mxu0 %v4160_v19  ;;  %941 = vst.msk [vmem:[#allocation2 + $0x60] sm:$0xff] %vm6607_vm2, %v908_v22  ;;  %942 = vst.msk [vmem:[#allocation2 + $0x88] sm:$0xff] %vm6607_vm2, %v910_v23  ;;  %v1133_v39 = vpack.c.bf16 %v1078_v42, %v1073_v41  ;;  %v1115_v41 = vld [vmem:[#allocation2 + $0x160] sm:$0xff]  ;;  %v1120_v42 = vld [vmem:[#allocation2 + $0x188] sm:$0xff] }
  0xc4   : > { %1728 = vmatprep.subr.bf16.mxu0 %v4165_v21 }
  0xc6   : > { %v1008_v30 = vpop.permute.xlu0 %1007  ;;  %v1010_v31 = vpop.permute.xlu1 %1009  ;;  %v1084_v34 = vld [vmem:[#allocation2 + $0x68] sm:$0xff]  ;;  %v1089_v43 = vld [vmem:[#allocation2 + $0x90] sm:$0xff] }
  0xc7   : > { %1729 = vmatpush1.bf16.msra.mxu0 %v4163_v24  ;;  %1039 = vst.msk [vmem:[#allocation2 + $0xb8] sm:$0xff] %vm6607_vm2, %v1008_v30  ;;  %1040 = vst.msk [vmem:[#allocation2 + $0xe0] sm:$0xff] %vm6607_vm2, %v1010_v31  ;;  %v1139_v47 = vpack.c.bf16 %v1089_v43, %v1084_v34  ;;  %v6592_v24 = vmov 0   ;;  %v1080_v30 = vld [vmem:[#allocation2 + $0x48] sm:$0xff]  ;;  %v1125_v34 = vld [vmem:[#allocation2 + $0x1b0] sm:$0xff] }
  0xc8   : > { %1730 = vmatprep.subr.bf16.mxu0 %v4168_v29  ;;  %v1075_v29 = vld [vmem:[#allocation2 + $0x20] sm:$0xff]  ;;  %v1130_v43 = vld [vmem:[#allocation2 + $0x1d8] sm:$0x1] }
  0xc9   : > { %v1135_v31 = vpack.c.bf16 %v1080_v30, %v1075_v29 }
  0xca   : > { %v912_v35 = vpop.permute.xlu0 %911  ;;  %v914_v26 = vpop.permute.xlu1 %913  ;;  %v1083_v50 = vld [vmem:[#allocation2 + $0x60] sm:$0xff]  ;;  %v1088_v51 = vld [vmem:[#allocation2 + $0x88] sm:$0xff] }
  0xcb   : > { %1731 = vmatpush1.bf16.msra.mxu0 %v4166_v32  ;;  %943 = vst.msk [vmem:[#allocation2 + $0xb0] sm:$0xff] %vm6607_vm2, %v912_v35  ;;  %944 = vst.msk [vmem:[#allocation2 + $0xd8] sm:$0xff] %vm6607_vm2, %v914_v26  ;;  %v1138_v56 = vpack.c.bf16 %v1088_v51, %v1083_v50  ;;  %v1085_v32 = vld [vmem:[#allocation2 + $0x70] sm:$0xff]  ;;  %v1095_v26 = vld [vmem:[#allocation2 + $0xc0] sm:$0xff] }
  0xcc   : > { %1732 = vmatprep.subr.bf16.mxu0 %v4171_v25  ;;  %v1090_v25 = vld [vmem:[#allocation2 + $0x98] sm:$0xff] }
  0xcd   : > { %v1140_v35 = vpack.c.bf16 %v1090_v25, %v1085_v32 }
  0xce   : > { %v1012_v38 = vpop.permute.xlu0 %1011  ;;  %v1014_v27 = vpop.permute.xlu1 %1013  ;;  %v1094_v53 = vld [vmem:[#allocation2 + $0xb8] sm:$0xff]  ;;  %v1099_v54 = vld [vmem:[#allocation2 + $0xe0] sm:$0xff] }
  0xcf   : > { %1733 = vmatpush1.bf16.msra.mxu0 %v4169_v36  ;;  %1041 = vst.msk [vmem:[#allocation2 + $0x108] sm:$0xff] %vm6607_vm2, %v1012_v38  ;;  %1042 = vst.msk [vmem:[#allocation2 + $0x130] sm:$0xff] %vm6607_vm2, %v1014_v27  ;;  %v1144_v59 = vpack.c.bf16 %v1099_v54, %v1094_v53  ;;  %v1100_v36 = vld [vmem:[#allocation2 + $0xe8] sm:$0xff]  ;;  %v1105_v38 = vld [vmem:[#allocation2 + $0x110] sm:$0xff] }
  0xd0   : > { %1734 = vmatprep.subr.bf16.mxu0 %v4174_v37  ;;  %v1145_v37 = vpack.c.bf16 %v1100_v36, %v1095_v26  ;;  %v1110_v27 = vld [vmem:[#allocation2 + $0x138] sm:$0xff] }
  0xd2   : > { %v916_v44 = vpop.permute.xlu0 %915  ;;  %v918_v46 = vpop.permute.xlu1 %917  ;;  %v1093_v0 = vld [vmem:[#allocation2 + $0xb0] sm:$0xff]  ;;  %v1098_v1 = vld [vmem:[#allocation2 + $0xd8] sm:$0xff] }
  0xd3   : > { %1735 = vmatpush1.bf16.msra.mxu0 %v4172_v28  ;;  %945 = vst.msk [vmem:[#allocation2 + $0x100] sm:$0xff] %vm6607_vm2, %v916_v44  ;;  %946 = vst.msk [vmem:[#allocation2 + $0x128] sm:$0xff] %vm6607_vm2, %v918_v46  ;;  %v1143_v5 = vpack.c.bf16 %v1098_v1, %v1093_v0  ;;  %v1150_v28 = vpack.c.bf16 %v1110_v27, %v1105_v38 }
  0xd4   : > { %1797 = vmatprep.subr.bf16.mxu0 %v4177_v33  ;;  %v1155_v33 = vpack.c.bf16 %v1120_v42, %v1115_v41 }
  0xd6   : > { %1737 = vmatmul.mubr.bf16.vlgmr.msra.gmra.mrb[0].mxu0 %v1133_v39  ;;  %v1016_v49 = vpop.permute.xlu0 %1015  ;;  %v1018_v45 = vpop.permute.xlu1 %1017  ;;  %v1104_v3 = vld [vmem:[#allocation2 + $0x108] sm:$0xff]  ;;  %v1109_v4 = vld [vmem:[#allocation2 + $0x130] sm:$0xff]  ;;  %v1160_v39 = vpack.c.bf16 %v1130_v43, %v1125_v34 }
  0xd7   : > { %1798 = vmatpush1.bf16.msra.mxu0 %v4175_v40  ;;  %1746 = vmatprep.mubr.bf16.mxu0 %v1139_v47  ;;  %1043 = vst.msk [vmem:[#allocation2 + $0x158] sm:$0xff] %vm6607_vm2, %v1016_v49  ;;  %1044 = vst.msk [vmem:[#allocation2 + $0x180] sm:$0xff] %vm6607_vm2, %v1018_v45  ;;  %v1149_v8 = vpack.c.bf16 %v1109_v4, %v1104_v3 }
  0xd8   : > { %1799 = vmatprep.subr.bf16.mxu0 %v4180_v48 }
  0xda   : > { %v920_v57 = vpop.permute.xlu0 %919  ;;  %v922_v58 = vpop.permute.xlu1 %921  ;;  %v1103_v9 = vld [vmem:[#allocation2 + $0x100] sm:$0xff]  ;;  %v1108_v10 = vld [vmem:[#allocation2 + $0x128] sm:$0xff] }
  0xdb   : > { %1800 = vmatpush1.bf16.msra.mxu0 %v4178_v52  ;;  %947 = vst.msk [vmem:[#allocation2 + $0x150] sm:$0xff] %vm6607_vm2, %v920_v57  ;;  %948 = vst.msk [vmem:[#allocation2 + $0x178] sm:$0xff] %vm6607_vm2, %v922_v58  ;;  %v1148_v13 = vpack.c.bf16 %v1108_v10, %v1103_v9  ;;  %v6594_v10 = vmov 0.0  }
  0xdc   : > { %1801 = vmatprep.subr.bf16.mxu0 %v4183_v55  ;;  %2174 = vst.msk [vmem:[#allocation3 + $0x8] sm:$0xff] %vm6610_vm0, %v6594_v10  ;;  %2173 = vst.msk [vmem:[#allocation3] sm:$0xff] %vm6610_vm0, %v6594_v10 }
  0xdd   : > { %2175 = vst.msk [vmem:[#allocation3 + $0x69] sm:$0xff] %vm6610_vm0, %v6594_v10 }
  0xde   : > { %1747 = vmatmul.mubr.bf16.gmra.mrb[4].mxu0 %v1138_v56  ;;  %v1020_v62 = vpop.permute.xlu0 %1019  ;;  %v1022_v63 = vpop.permute.xlu1 %1021  ;;  %v1114_v11 = vld [vmem:[#allocation2 + $0x158] sm:$0xff]  ;;  %v1119_v12 = vld [vmem:[#allocation2 + $0x180] sm:$0xff] }
  0xdf   : > { %1756 = vmatprep.mubr.bf16.mxu0 %v1144_v59  ;;  %1045 = vst.msk [vmem:[#allocation2 + $0x1a8] sm:$0xff] %vm6607_vm2, %v1020_v62  ;;  %1802 = vmatpush1.bf16.msra.mxu0 %v4181_v60  ;;  %v1154_v14 = vpack.c.bf16 %v1119_v12, %v1114_v11  ;;  %v226_v59 = vlaneseq }
  0xe0   : > { %1046 = vst.msk [vmem:[#allocation2 + $0x1d0] sm:$0x1] %vm6606_vm3, %v1022_v63  ;;  %1803 = vmatprep.subr.bf16.mxu0 %v4186_v61 }
  0xe1   : > { %v5048_v0 = vshrl.u32 %v226_v59, 7 }
  0xe2   : > { %v924_v6 = vpop.permute.xlu0 %923  ;;  %v926_v7 = vpop.permute.xlu1 %925  ;;  %v1113_v15 = vld [vmem:[#allocation2 + $0x150] sm:$0xff]  ;;  %v1118_v16 = vld [vmem:[#allocation2 + $0x178] sm:$0xff] }
  0xe3   : > { %949 = vst.msk [vmem:[#allocation2 + $0x1a0] sm:$0xff] %vm6607_vm2, %v924_v6  ;;  %1804 = vmatpush1.bf16.msra.mxu0 %v4184_v2  ;;  %v1153_v19 = vpack.c.bf16 %v1118_v16, %v1113_v15  ;;  %v228_v1 = vadd.s32 8, %v5048_v0  ;;  %v229_v11 = vadd.s32 16, %v5048_v0  ;;  %v231_v29 = vadd.s32 32, %v5048_v0 }
  0xe4   : > { %950 = vst.msk [vmem:[#allocation2 + $0x1c8] sm:$0x1] %vm6606_vm3, %v926_v7  ;;  %v232_v38 = vadd.s32 40, %v5048_v0  ;;  %v233_v59 = vadd.s32 48, %v5048_v0 }
  0xe5   : > { %v5097_v32 = vmul.u32.u64.low 2748779070, %v231_v29  ;;  %v5098_v25 = vmul.u32.u64.high 2748779070, %v231_v29, %v5097_v32 }
  0xe6   : > { %1757 = vmatmul.mubr.bf16.gmra.mrb[8].mxu0 %v1143_v5  ;;  %v1124_v17 = vld [vmem:[#allocation2 + $0x1a8] sm:$0xff]  ;;  %v5062_v4 = vmul.u32.u64.low 2748779070, %v5048_v0  ;;  %v5063_v5 = vmul.u32.u64.high 2748779070, %v5048_v0, %v5062_v4 }
  0xe7   : > { %1766 = vmatprep.mubr.bf16.mxu0 %v1149_v8  ;;  %v1129_v18 = vld [vmem:[#allocation2 + $0x1d0] sm:$0x1]  ;;  %v5071_v8 = vmul.u32.u64.low 2748779070, %v228_v1  ;;  %v5072_v9 = vmul.u32.u64.high 2748779070, %v228_v1, %v5071_v8  ;;  %v289_v43 = vshrl.u32 %v5098_v25, 6 }
  0xe8   : > { %v1159_v20 = vpack.c.bf16 %v1129_v18, %v1124_v17  ;;  %v245_v12 = vshrl.u32 %v5063_v5, 6  ;;  %v230_v17 = vadd.s32 24, %v5048_v0 }
  0xe9   : > { %v290_v8 = vmul.u32 100, %v289_v43 }
  0xea   : > { %v1123_v21 = vld [vmem:[#allocation2 + $0x1a0] sm:$0xff]  ;;  %v246_v16 = vmul.u32 100, %v245_v12 }
  0xeb   : > { %v1128_v22 = vld [vmem:[#allocation2 + $0x1c8] sm:$0x1] }
  0xec   : > { %v1158_v23 = vpack.c.bf16 %v1128_v22, %v1123_v21 }
  0xee   : > { %1767 = vmatmul.mubr.bf16.gmra.mrb[12].mxu0 %v1148_v13  ;;  %v256_v13 = vshrl.u32 %v5072_v9, 6 }
  0xef   : > { %1776 = vmatprep.mubr.bf16.mxu0 %v1154_v14  ;;  %v5087_v14 = vmul.u32.u64.low 2748779070, %v229_v11  ;;  %v5088_v15 = vmul.u32.u64.high 2748779070, %v229_v11, %v5087_v14 }
  0xf0   : > { %v257_v18 = vmul.u32 100, %v256_v13 }
  0xf2   : > { %v258_v22 = vsub.s32 %v228_v1, %v257_v18 }
  0xf4   : > { %vm372_vm6 = vcmp.ne.s32.totalorder %v258_v22, 0  ;;  %vm384_vm7 = vcmp.lt.s32.totalorder %v258_v22, 0 }
  0xf5   : > { %vm396_vm9 = vmand %vm384_vm7, %vm372_vm6 }
  0xf6   : > { %1777 = vmatmul.mubr.bf16.gmra.mrb[16].mxu0 %v1153_v19  ;;  %v247_v19 = vsub.s32 %v5048_v0, %v246_v16 }
  0xf7   : > { %1786 = vmatprep.mubr.bf16.mxu0 %v1159_v20  ;;  %v5092_v20 = vmul.u32.u64.low 2748779070, %v230_v17  ;;  %v5093_v21 = vmul.u32.u64.high 2748779070, %v230_v17, %v5092_v20 }
  0xf8   : > { %vm371_vm4 = vcmp.ne.s32.totalorder %v247_v19, 0  ;;  %vm383_vm5 = vcmp.lt.s32.totalorder %v247_v19, 0  ;;  %v407_v30 = vadd.s32 100, %v247_v19  ;;  %v291_v20 = vsub.s32 %v231_v29, %v290_v8 }
  0xf9   : > { %vm395_vm8 = vmand %vm383_vm5, %vm371_vm4  ;;  %v278_v26 = vshrl.u32 %v5093_v21, 6 }
  0xfa   : > { %v5101_v36 = vsel %vm395_vm8, %v407_v30, %v247_v19  ;;  %vm375_vm4 = vcmp.ne.s32.totalorder %v291_v20, 0  ;;  %vm387_vm5 = vcmp.lt.s32.totalorder %v291_v20, 0 }
  0xfb   : > { %v279_v41 = vmul.u32 100, %v278_v26  ;;  %vm399_vm6 = vmand %vm387_vm5, %vm375_vm4 }
  0xfd   : > { %v280_v4 = vsub.s32 %v230_v17, %v279_v41 }
  0xfe   : > { %1787 = vmatmul.mubr.bf16.gmra.mrb[20].mxu0 %v1158_v23  ;;  %v267_v23 = vshrl.u32 %v5088_v15, 6  ;;  %v234_v15 = vadd.s32 56, %v5048_v0 }
  0xff   : > { %1829 = vmatprep.mubr.bf16.mxu0 %v6592_v24  ;;  %vm374_vm13 = vcmp.ne.s32.totalorder %v280_v4, 0  ;;  %vm386_vm14 = vcmp.lt.s32.totalorder %v280_v4, 0  ;;  %v410_v21 = vadd.s32 100, %v280_v4 }
 0x100   : > { %vm398_vm15 = vmand %vm386_vm14, %vm374_vm13 }
 0x101   : > { %v5133_v32 = vsel %vm398_vm15, %v410_v21, %v280_v4 }
 0x106   : > { %3834 = vmatmul.mubr.msk.bf16.vlgmr.msra.gmra.mrb[0].mxu0 %vm6610_vm0, %v1135_v31  ;;  %v268_v31 = vmul.u32 100, %v267_v23 }
 0x107   : > { %1839 = vmatprep.mubr.bf16.mxu0 %v6592_v24 }
 0x10e   : > { %3835 = vmatmul.mubr.msk.bf16.gmra.mrb[4].mxu0 %vm6610_vm0, %v1140_v35  ;;  %v408_v35 = vadd.s32 100, %v258_v22 }
 0x10f   : > { %1849 = vmatprep.mubr.bf16.mxu0 %v6592_v24 }
 0x110   : > { %v5104_v27 = vsel %vm396_vm9, %v408_v35, %v258_v22  ;;  %v5129_v22 = vmul.u32.u64.low 2748779070, %v234_v15  ;;  %v5130_v23 = vmul.u32.u64.high 2748779070, %v234_v15, %v5129_v22  ;;  %v411_v35 = vadd.s32 100, %v291_v20 }
 0x111   : > { %v443_v34 = vsub.s32 0, %v5104_v27  ;;  %vm442_vm14 = vcmp.lt.s32.totalorder %v5104_v27, 0 }
 0x112   : > { %v322_v43 = vshrl.u32 %v5130_v23, 6 }
 0x113   : > { %v3751_v5 = vmin.u32 %v443_v34, %v5104_v27  ;;  %v5142_v34 = vsel %vm399_vm6, %v411_v35, %v291_v20 }
 0x114   : > { %6617 = vst [vmem:[#allocation10_spill] sm:$0xff] %v5142_v34 }
 0x115   : > { %v5125_v18 = vmul.u32.u64.low 3435973837, %v3751_v5  ;;  %v5126_v19 = vmul.u32.u64.high 3435973837, %v3751_v5, %v5125_v18 }
 0x116   : > { %3836 = vmatmul.mubr.msk.bf16.gmra.mrb[8].mxu0 %vm6610_vm0, %v1145_v37  ;;  %v269_v37 = vsub.s32 %v229_v11, %v268_v31  ;;  %v5117_v11 = vmul.u32.u64.low 2748779070, %v233_v59  ;;  %v5118_v12 = vmul.u32.u64.high 2748779070, %v233_v59, %v5117_v11 }
 0x117   : > { %1859 = vmatprep.mubr.bf16.mxu0 %v6592_v24  ;;  %v448_v29 = vshrl.u32 %v5126_v19, 3  ;;  %v476_v11 = vsub.s32 0, %v5142_v34 }
 0x118   : > { %vm373_vm10 = vcmp.ne.s32.totalorder %v269_v37, 0  ;;  %vm385_vm11 = vcmp.lt.s32.totalorder %v269_v37, 0  ;;  %v311_v25 = vshrl.u32 %v5118_v12, 6 }
 0x119   : > { %vm397_vm12 = vmand %vm385_vm11, %vm373_vm10  ;;  %v449_v8 = vmul.u32 10, %v448_v29 }
 0x11b   : > { %v450_v20 = vsub.s32 %v3751_v5, %v449_v8 }
 0x11d   : > { %v451_v5 = vsub.s32 0, %v450_v20 }
 0x11e   : > { %3837 = vmatmul.mubr.msk.bf16.gmra.mrb[12].mxu0 %vm6610_vm0, %v1150_v28  ;;  %v432_v28 = vsub.s32 0, %v5101_v36 }
 0x11f   : > { %1869 = vmatprep.mubr.bf16.mxu0 %v6592_v24  ;;  %v5188_v8 = vsel %vm442_vm14, %v451_v5, %v450_v20 }
 0x120   : > { %v3750_v1 = vmin.u32 %v432_v28, %v5101_v36 }
 0x122   : > { %v5120_v13 = vmul.u32.u64.low 3435973837, %v3750_v1  ;;  %v5121_v14 = vmul.u32.u64.high 3435973837, %v3750_v1, %v5120_v13 }
 0x124   : > { %v437_v26 = vshrl.u32 %v5121_v14, 3  ;;  %v323_v14 = vmul.u32 100, %v322_v43 }
 0x126   : > { %3838 = vmatmul.mubr.msk.bf16.gmra.mrb[16].mxu0 %vm6610_vm0, %v1155_v33  ;;  %v5107_v42 = vmul.u32.u64.low 2748779070, %v232_v38  ;;  %v5108_v33 = vmul.u32.u64.high 2748779070, %v232_v38, %v5107_v42  ;;  %v438_v4 = vmul.u32 10, %v437_v26 }
 0x127   : > { %1879 = vmatprep.mubr.bf16.mxu0 %v6592_v24  ;;  %v465_v42 = vsub.s32 0, %v5133_v32 }
 0x128   : > { %v300_v16 = vshrl.u32 %v5108_v33, 6  ;;  %v312_v33 = vmul.u32 100, %v311_v25  ;;  %v439_v19 = vsub.s32 %v3750_v1, %v438_v4  ;;  %v324_v25 = vsub.s32 %v234_v15, %v323_v14 }
 0x12a   : > { %v301_v30 = vmul.u32 100, %v300_v16  ;;  %v313_v13 = vsub.s32 %v233_v59, %v312_v33  ;;  %v440_v35 = vsub.s32 0, %v439_v19  ;;  %vm378_vm15 = vcmp.ne.s32.totalorder %v324_v25, 0  ;;  %v4187_v33 = vld [vmem:[%s6589_s3 + $0x4] ss:$8 sps:$4 sm:$0xff]  }
 0x12b   : > { %vm390_vm4 = vcmp.lt.s32.totalorder %v324_v25, 0  ;;  %v414_v14 = vadd.s32 100, %v324_v25  ;;  %3138 = vmatprep.subr.bf16.mxu1 %v4187_v33 }
 0x12c   : > { %vm377_vm10 = vcmp.ne.s32.totalorder %v313_v13, 0  ;;  %vm389_vm11 = vcmp.lt.s32.totalorder %v313_v13, 0  ;;  %v413_v1 = vadd.s32 100, %v313_v13  ;;  %vm402_vm5 = vmand %vm390_vm4, %vm378_vm15 }
 0x12d   : > { %vm401_vm13 = vmand %vm389_vm11, %vm377_vm10 }
 0x12e   : > { %3839 = vmatmul.mubr.msk.bf16.gmra.mrb[20].mxu0 %vm6610_vm0, %v1160_v39  ;;  %v409_v39 = vadd.s32 100, %v269_v37  ;;  %v5186_v4 = vsel %vm401_vm13, %v413_v1, %v313_v13  ;;  %v5213_v1 = vsel %vm402_vm5, %v414_v14, %v324_v25  ;;  %v5234_v14 = vadd.s32 88, %v5048_v0 }
 0x12f   : > { %v498_v13 = vsub.s32 0, %v5186_v4 }
 0x130   : > { %v5115_v9 = vsel %vm397_vm12, %v409_v39, %v269_v37  ;;  %v302_v37 = vsub.s32 %v232_v38, %v301_v30  ;;  %v5146_v39 = vadd.s32 64, %v5048_v0  ;;  %v5149_v38 = vmin.u32 %v465_v42, %v5133_v32 }
 0x131   : > { %v454_v17 = vsub.s32 0, %v5115_v9  ;;  %v5165_v30 = vmin.u32 %v476_v11, %v5142_v34  ;;  %vm431_vm12 = vcmp.lt.s32.totalorder %v5101_v36, 0  ;;  %vm453_vm10 = vcmp.lt.s32.totalorder %v5115_v9, 0 }
 0x132   : > { %vm376_vm7 = vcmp.ne.s32.totalorder %v302_v37, 0  ;;  %vm388_vm8 = vcmp.lt.s32.totalorder %v302_v37, 0  ;;  %v412_v12 = vadd.s32 100, %v302_v37  ;;  %v5184_v43 = vsel %vm431_vm12, %v440_v35, %v439_v19 }
 0x133   : > { %v3752_v31 = vmin.u32 %v454_v17, %v5115_v9  ;;  %vm400_vm9 = vmand %vm388_vm8, %vm376_vm7  ;;  %v5153_v16 = vmul.u32.u64.low 2748779070, %v5146_v39  ;;  %v5154_v18 = vmul.u32.u64.high 2748779070, %v5146_v39, %v5153_v16  ;;  %v5157_v17 = vadd.s32 72, %v5048_v0 }
 0x134   : > { %v5161_v22 = vmul.u32.u64.low 3435973837, %v5149_v38  ;;  %v5162_v23 = vmul.u32.u64.high 3435973837, %v5149_v38, %v5161_v22  ;;  %v5167_v59 = vsel %vm400_vm9, %v412_v12, %v302_v37  ;;  %v4189_v16 = vld [vmem:[%s6589_s3] ss:$8 sps:$4 sm:$0xff]   ;;  %v5199_v19 = vadd.s32 80, %v5048_v0 }
 0x135   : > { %v5138_v28 = vmul.u32.u64.low 3435973837, %v3752_v31  ;;  %v5139_v41 = vmul.u32.u64.high 3435973837, %v3752_v31, %v5138_v28  ;;  %v5170_v26 = vmul.u32.u64.low 2748779070, %v5157_v17  ;;  %v5171_v29 = vmul.u32.u64.high 2748779070, %v5157_v17, %v5170_v26  ;;  %3139 = vmatpush1.bf16.msra.mxu1 %v4189_v16  ;;  %v4219_v16 = vld [vmem:[%s6589_s3 + $0xa0] ss:$8 sps:$4 sm:$0xff]  }
 0x136   : > { %v5177_v37 = vmul.u32.u64.low 3435973837, %v5165_v30  ;;  %v5178_v42 = vmul.u32.u64.high 3435973837, %v5165_v30, %v5177_v37  ;;  %v333_v15 = vshrl.u32 %v5154_v18, 6  ;;  %v470_v18 = vshrl.u32 %v5162_v23, 3  ;;  %v4192_v26 = vld [vmem:[%s6589_s3 + $0x10] ss:$8 sps:$4 sm:$0xff]  }
 0x137   : > { %v459_v21 = vshrl.u32 %v5139_v41, 3  ;;  %v487_v41 = vsub.s32 0, %v5167_v59  ;;  %vm563_vm6 = vcmp.ne.s32.totalorder %v5184_v43, 0  ;;  %vm575_vm7 = vcmp.lt.s32.totalorder %v5184_v43, 0 }
 0x138   : > { %v334_v20 = vmul.u32 100, %v333_v15  ;;  %vm564_vm8 = vcmp.ne.s32.totalorder %v5188_v8, 0  ;;  %v471_v5 = vmul.u32 10, %v470_v18  ;;  %vm576_vm9 = vcmp.lt.s32.totalorder %v5188_v8, 0  ;;  %v4193_v15 = vld [vmem:[%s6589_s3 + $0x24] ss:$8 sps:$4 sm:$0xff]   ;;  %vm5240_vm11 = vmand %vm575_vm7, %vm563_vm6 }
 0x139   : > { %v460_v28 = vmul.u32 10, %v459_v21  ;;  %v5191_v12 = vmin.u32 %v487_v41, %v5167_v59  ;;  %v344_v21 = vshrl.u32 %v5171_v29, 6  ;;  %v5226_v29 = vmin.u32 %v498_v13, %v5186_v4  ;;  %vm5252_vm12 = vmand %vm576_vm9, %vm564_vm8 }
 0x13a   : > { %v5220_v41 = vmul.u32.u64.low 2748779070, %v5199_v19  ;;  %v5221_v37 = vmul.u32.u64.high 2748779070, %v5199_v19, %v5220_v41  ;;  %v335_v25 = vsub.s32 %v5146_v39, %v334_v20  ;;  %v5245_v39 = vadd.s32 10, %v5184_v43 }
 0x13b   : > { %v461_v11 = vsub.s32 %v3752_v31, %v460_v28  ;;  %v4190_v31 = vld [vmem:[%s6589_s3 + $0x14] ss:$8 sps:$4 sm:$0xff]   ;;  %v5210_v23 = vmul.u32.u64.low 3435973837, %v5191_v12  ;;  %v5211_v35 = vmul.u32.u64.high 3435973837, %v5191_v12, %v5210_v23  ;;  %v481_v28 = vshrl.u32 %v5178_v42, 3 }
 0x13c   : > { %3140 = vmatprep.subr.bf16.mxu1 %v4190_v31  ;;  %v509_v42 = vsub.s32 0, %v5213_v1  ;;  %v345_v33 = vmul.u32 100, %v344_v21  ;;  %v5248_v18 = vadd.s32 10, %v5188_v8  ;;  %v472_v20 = vsub.s32 %v5149_v38, %v471_v5  ;;  %v4195_v21 = vld [vmem:[%s6589_s3 + $0x20] ss:$8 sps:$4 sm:$0xff]  }
 0x13d   : > { %v462_v22 = vsub.s32 0, %v461_v11  ;;  %3141 = vmatpush1.bf16.msra.mxu1 %v4192_v26  ;;  %v482_v31 = vmul.u32 10, %v481_v28  ;;  %v5263_v23 = vmul.u32.u64.low 3435973837, %v5226_v29  ;;  %v5264_v26 = vmul.u32.u64.high 3435973837, %v5226_v29, %v5263_v23  ;;  %v4196_v41 = vld [vmem:[%s6589_s3 + $0x34] ss:$8 sps:$4 sm:$0xff]  }
 0x13e   : > { %3142 = vmatprep.subr.bf16.mxu1 %v4193_v15  ;;  %vm379_vm13 = vcmp.ne.s32.totalorder %v335_v25, 0  ;;  %vm391_vm14 = vcmp.lt.s32.totalorder %v335_v25, 0  ;;  %v5273_v38 = vsub.s32 %v5157_v17, %v345_v33  ;;  %v473_v17 = vsub.s32 0, %v472_v20  ;;  %v4198_v23 = vld [vmem:[%s6589_s3 + $0x30] ss:$8 sps:$4 sm:$0xff]  }
 0x13f   : > { %v5256_v13 = vsel %vm453_vm10, %v462_v22, %v461_v11  ;;  %v5270_v11 = vmin.u32 %v509_v42, %v5213_v1  ;;  %v5276_v22 = vmul.u32.u64.low 2748779070, %v5234_v14  ;;  %v5277_v5 = vmul.u32.u64.high 2748779070, %v5234_v14, %v5276_v22  ;;  %vm5291_vm15 = vmand %vm391_vm14, %vm379_vm13 }
 0x140   : > { %v415_v42 = vadd.s32 100, %v335_v25  ;;  %v483_v33 = vsub.s32 %v5165_v30, %v482_v31  ;;  %v492_v10 = vshrl.u32 %v5211_v35, 3  ;;  %v355_v22 = vshrl.u32 %v5221_v37, 6  ;;  %v4199_v35 = vld [vmem:[%s6589_s3 + $0x44] ss:$8 sps:$4 sm:$0xff]  }
 0x141   : > { %3143 = vmatpush1.bf16.msra.mxu1 %v4195_v21  ;;  %vm565_vm4 = vcmp.ne.s32.totalorder %v5256_v13, 0  ;;  %vm577_vm5 = vcmp.lt.s32.totalorder %v5256_v13, 0  ;;  %v5302_v30 = vadd.s32 10, %v5256_v13  ;;  %vm464_vm6 = vcmp.lt.s32.totalorder %v5133_v32, 0  ;;  %v4201_v21 = vld [vmem:[%s6589_s3 + $0x40] ss:$8 sps:$4 sm:$0xff]  }
 0x142   : > { %3144 = vmatprep.subr.bf16.mxu1 %v4196_v41  ;;  %v5309_v37 = vmul.u32.u64.low 3435973837, %v5270_v11  ;;  %v5310_v41 = vmul.u32.u64.high 3435973837, %v5270_v11, %v5309_v37  ;;  %vm380_vm7 = vcmp.ne.s32.totalorder %v5273_v38, 0  ;;  %vm2176_vm8 = vcmask 518144   ;;  %vm5330_vm10 = vmand %vm577_vm5, %vm565_vm4 }
 0x143   : > { %vm392_vm9 = vcmp.lt.s32.totalorder %v5273_v38, 0  ;;  %v6624_v37 = vmov 0.0   ;;  %vm475_vm13 = vcmp.lt.s32.totalorder %v5142_v34, 0  ;;  %vm640_vm1 = vcmp.lt.s32.totalorder %v5167_v59, 89 }
 0x144   : > { %2177 = vst.msk [vmem:[#allocation3 + $0x71] sm:$0x7] %vm2176_vm8, %v6624_v37  ;;  %vm5354_vm14 = vmand %vm392_vm9, %vm380_vm7  ;;  %vm486_vm8 = vcmp.lt.s32.totalorder %v5167_v59, 0 }
 0x145   : > { %3145 = vmatpush1.bf16.msra.mxu1 %v4198_v23 }
 0x146   : > { %3146 = vmatprep.subr.bf16.mxu1 %v4199_v35 }
 0x149   : > { %3147 = vmatpush1.bf16.msra.mxu1 %v4201_v21  ;;  %v4204_v21 = vld [vmem:[%s6589_s3 + $0x50] ss:$8 sps:$4 sm:$0xff]  }
 0x1d9   : > { %v4972_v44 = vpop.f32.mrb[0].mxu0 }
 0x1da   : > { %1902 = vrot.lane.b32.xlu0 %v4972_v44, %s4395_s11  ;;  %v4976_v46 = vpop.f32.mrb[1].mxu0 }
 0x1db   : > { %v4978_v40 = vpop.f32.mrb[2].mxu0 }
 0x1dc   : > { %1904 = vrot.lane.b32.xlu1 %v4978_v40, %s4395_s11  ;;  %v4982_v47 = vpop.f32.mrb[3].mxu0 }
 0x1de   : > { %1962 = vrot.lane.b32.xlu0 %v4976_v46, %s4395_s11 }
 0x1e0   : > { %1964 = vrot.lane.b32.xlu1 %v4982_v47, %s4395_s11 }
 0x1e1   : > { %v4988_v48 = vpop.f32.mrb[4].mxu0 }
 0x1e2   : > { %1906 = vrot.lane.b32.xlu0 %v4988_v48, %s4395_s11  ;;  %v4992_v49 = vpop.f32.mrb[5].mxu0 }
 0x1e3   : > { %v4994_v45 = vpop.f32.mrb[6].mxu0 }
 0x1e4   : > { %1908 = vrot.lane.b32.xlu1 %v4994_v45, %s4395_s11  ;;  %v4998_v50 = vpop.f32.mrb[7].mxu0 }
 0x1e6   : > { %1966 = vrot.lane.b32.xlu0 %v4992_v49, %s4395_s11 }
 0x1e8   : > { %1968 = vrot.lane.b32.xlu1 %v4998_v50, %s4395_s11 }
 0x1e9   : > { %v5004_v51 = vpop.f32.mrb[8].mxu0 }
 0x1ea   : > { %1910 = vrot.lane.b32.xlu0 %v5004_v51, %s4395_s11  ;;  %v5008_v52 = vpop.f32.mrb[9].mxu0 }
 0x1eb   : > { %v5010_v53 = vpop.f32.mrb[10].mxu0 }
 0x1ec   : > { %1912 = vrot.lane.b32.xlu1 %v5010_v53, %s4395_s11  ;;  %v5014_v54 = vpop.f32.mrb[11].mxu0 }
 0x1ee   : > { %1970 = vrot.lane.b32.xlu0 %v5008_v52, %s4395_s11 }
 0x1f0   : > { %1972 = vrot.lane.b32.xlu1 %v5014_v54, %s4395_s11 }
 0x1f1   : > { %v5020_v55 = vpop.f32.mrb[12].mxu0 }
 0x1f2   : > { %1914 = vrot.lane.b32.xlu0 %v5020_v55, %s4395_s11  ;;  %v5024_v56 = vpop.f32.mrb[13].mxu0 }
 0x1f3   : > { %v5026_v57 = vpop.f32.mrb[14].mxu0 }
 0x1f4   : > { %1916 = vrot.lane.b32.xlu1 %v5026_v57, %s4395_s11  ;;  %v5030_v58 = vpop.f32.mrb[15].mxu0 }
 0x1f6   : > { %1974 = vrot.lane.b32.xlu0 %v5024_v56, %s4395_s11 }
 0x1f8   : > { %1976 = vrot.lane.b32.xlu1 %v5030_v58, %s4395_s11 }
 0x1f9   : > { %v5036_v60 = vpop.f32.mrb[16].mxu0 }
 0x1fa   : > { %1918 = vrot.lane.b32.xlu0 %v5036_v60, %s4395_s11  ;;  %v5040_v61 = vpop.f32.mrb[17].mxu0 }
 0x1fb   : > { %v5042_v62 = vpop.f32.mrb[18].mxu0 }
 0x1fc   : > { %1920 = vrot.lane.b32.xlu1 %v5042_v62, %s4395_s11  ;;  %v5046_v63 = vpop.f32.mrb[19].mxu0 }
 0x1fd   : > { %6612 = vst [vmem:[#allocation5_spill] sm:$0xff] %v5046_v63 }
 0x1fe   : > { %1978 = vrot.lane.b32.xlu0 %v5040_v61, %s4395_s11 }
 0x200   : > { %1980 = vrot.lane.b32.xlu1 %v5046_v63, %s4395_s11  ;;  %v4202_v63 = vld [vmem:[%s6589_s3 + $0x54] ss:$8 sps:$4 sm:$0xff]  }
 0x201   : > { %v5055_v2 = vpop.f32.mrb[20].mxu0  ;;  %3148 = vmatprep.subr.bf16.mxu1 %v4202_v63 }
 0x202   : > { %6613 = vst [vmem:[#allocation6_spill] sm:$0xff] %v5055_v2  ;;  %1922 = vrot.lane.b32.xlu0 %v5055_v2, %s4395_s11  ;;  %v5059_v3 = vpop.f32.mrb[21].mxu0  ;;  %v416_v2 = vadd.s32 100, %v5273_v38  ;;  %3149 = vmatpush1.bf16.msra.mxu1 %v4204_v21 }
 0x203   : > { %6614 = vst [vmem:[#allocation7_spill] sm:$0xff] %v5059_v3  ;;  %v5065_v6 = vpop.f32.mrb[22].mxu0 }
 0x204   : > { %6615 = vst [vmem:[#allocation8_spill] sm:$0xff] %v5065_v6  ;;  %1982 = vrot.lane.b32.xlu1 %v5059_v3, %s4395_s11  ;;  %v5069_v7 = vpop.f32.mrb[23].mxu0  ;;  %v5322_v3 = vsel %vm5291_vm15, %v415_v42, %v335_v25  ;;  %v484_v25 = vsub.s32 0, %v483_v33  ;;  %v356_v42 = vmul.u32 100, %v355_v22 }
 0x205   : > { %6616 = vst [vmem:[#allocation9_spill] sm:$0xff] %v5069_v7 }
 0x206   : > { %1924 = vrot.lane.b32.xlu0 %v5065_v6, %s4395_s11  ;;  %v5317_v6 = vld [vmem:[%s6588_s2] ss:$0 sm:$0xff]  ;;  %v5384_v63 = vsel %vm475_vm13, %v484_v25, %v483_v33 }
 0x207   : > { %vm567_vm13 = vcmp.ne.s32.totalorder %v5384_v63, 0 }
 0x208   : > { %1984 = vrot.lane.b32.xlu1 %v5069_v7, %s4395_s11 }
 0x24c   : > { %v1903_v15 = vpop.permute.xlu0 %1902 }
 0x24d   : > { %v1938_v28 = vmax.f32 %v4972_v44, %v1903_v15  ;;  %v493_v15 = vmul.u32 10, %v492_v10  ;;  %v503_v10 = vshrl.u32 %v5264_v26, 3 }
 0x24e   : > { %v1905_v24 = vpop.permute.xlu1 %1904 }
 0x24f   : > { %v1939_v35 = vmax.f32 %v4978_v40, %v1905_v24  ;;  %v366_v40 = vshrl.u32 %v5277_v5, 6  ;;  %v5372_v5 = vsub.s32 %v5191_v12, %v493_v15  ;;  %v5389_v12 = vsel %vm5354_vm14, %v416_v2, %v5273_v38 }
 0x250   : > { %v1963_v31 = vpop.permute.xlu0 %1962  ;;  %6629 = vst [vmem:[#allocation11_spill] sm:$0xff] %v5389_v12  ;;  %vm579_vm14 = vcmp.lt.s32.totalorder %v5384_v63, 0 }
 0x251   : > { %v1998_v7 = vmax.f32 %v4976_v46, %v1963_v31  ;;  %v5336_v46 = vsel %vm464_vm6, %v473_v17, %v472_v20  ;;  %v520_v17 = vsub.s32 0, %v5322_v3  ;;  %v367_v26 = vmul.u32 100, %v366_v40 }
 0x252   : > { %v1965_v23 = vpop.permute.xlu1 %1964  ;;  %vm566_vm15 = vcmp.ne.s32.totalorder %v5336_v46, 0  ;;  %vm578_vm4 = vcmp.lt.s32.totalorder %v5336_v46, 0  ;;  %v5369_v22 = vadd.s32 10, %v5336_v46 }
 0x253   : > { %v2010_v31 = vmax.f32 %v1938_v28, %v1998_v7  ;;  %v1999_v37 = vmax.f32 %v4982_v47, %v1965_v23  ;;  %v357_v23 = vsub.s32 %v5199_v19, %v356_v42  ;;  %v4205_v19 = vld [vmem:[%s6589_s3 + $0x64] ss:$8 sps:$4 sm:$0xff]   ;;  %v504_v42 = vmul.u32 10, %v503_v10  ;;  %vm5410_vm7 = vmand %vm578_vm4, %vm566_vm15 }
 0x254   : > { %v1907_v20 = vpop.permute.xlu0 %1906  ;;  %3150 = vmatprep.subr.bf16.mxu1 %v4205_v19  ;;  %v531_v10 = vsub.s32 0, %v5389_v12  ;;  %v5423_v19 = vsub.s32 %v5234_v14, %v367_v26  ;;  %v495_v26 = vsub.s32 0, %v5372_v5  ;;  %vm497_vm15 = vcmp.lt.s32.totalorder %v5186_v4, 0 }
 0x255   : > { %v5360_v47 = vadd.f32 %v5317_v6, %v2010_v31  ;;  %v2011_v7 = vmax.f32 %v1939_v35, %v1999_v37  ;;  %v514_v37 = vshrl.u32 %v5310_v41, 3  ;;  %v1940_v24 = vmax.f32 %v4988_v48, %v1907_v20  ;;  %v4207_v41 = vld [vmem:[%s6589_s3 + $0x60] ss:$8 sps:$4 sm:$0xff]  }
 0x256   : > { %v1909_v28 = vpop.permute.xlu1 %1908  ;;  %vm381_vm5 = vcmp.ne.s32.totalorder %v357_v23, 0  ;;  %vm393_vm6 = vcmp.lt.s32.totalorder %v357_v23, 0  ;;  %3151 = vmatpush1.bf16.msra.mxu1 %v4207_v41  ;;  %vm382_vm4 = vcmp.ne.s32.totalorder %v5423_v19, 0 }
 0x257   : > { %v2053_v35 = vmin.f32 %v5360_v47, 20.0  ;;  %v5380_v31 = vadd.f32 %v5317_v6, %v2011_v7  ;;  %v5396_v7 = vmin.u32 %v520_v17, %v5322_v3  ;;  %v1941_v38 = vmax.f32 %v4994_v45, %v1909_v28  ;;  %v4208_v45 = vld [vmem:[%s6589_s3 + $0x74] ss:$8 sps:$4 sm:$0xff]   ;;  %vm5431_vm9 = vmand %vm393_vm6, %vm381_vm5 }
 0x258   : > { %v1967_v15 = vpop.permute.xlu0 %1966  ;;  %3152 = vmatprep.subr.bf16.mxu1 %v4208_v45  ;;  %vm394_vm5 = vcmp.lt.s32.totalorder %v5423_v19, 0 }
 0x259   : > { %v2065_v33 = vmul.f32 1.442695, %v2053_v35  ;;  %v2054_v25 = vmin.f32 %v5380_v31, 20.0  ;;  %v2000_v2 = vmax.f32 %v4992_v49, %v1967_v15  ;;  %v417_v35 = vadd.s32 100, %v357_v23  ;;  %vm5486_vm6 = vmand %vm394_vm5, %vm382_vm4 }
 0x25a   : > { %v1969_v34 = vpop.permute.xlu1 %1968  ;;  %v5419_v28 = vmul.u32.u64.low 3435973837, %v5396_v7  ;;  %v5420_v21 = vmul.u32.u64.high 3435973837, %v5396_v7, %v5419_v28  ;;  %vm635_vm4 = vcmp.lt.s32.totalorder %v5101_v36, 89  ;;  %vm5558_vm5 = vmand %vm579_vm14, %vm567_vm13 }
 0x25b   : > { %4291 = vpow2.f32 %v2065_v33  ;;  %v2067_v17 = vmul.f32 1.442695, %v2054_v25  ;;  %v2012_v40 = vmax.f32 %v1940_v24, %v2000_v2  ;;  %v2001_v49 = vmax.f32 %v4998_v50, %v1969_v34  ;;  %v4210_v2 = vld [vmem:[%s6589_s3 + $0x70] ss:$8 sps:$4 sm:$0xff]  }
 0x25c   : > { %v1911_v20 = vpop.permute.xlu0 %1910  ;;  %v505_v25 = vsub.s32 %v5226_v29, %v504_v42  ;;  %v515_v24 = vmul.u32 10, %v514_v37  ;;  %v5455_v42 = vmin.u32 %v531_v10, %v5389_v12  ;;  %v5459_v37 = vsel %vm5431_vm9, %v417_v35, %v357_v23  ;;  %3153 = vmatpush1.bf16.msra.mxu1 %v4210_v2  ;;  %v4214_v23 = vld [vmem:[%s6589_s3 + $0x94] ss:$8 sps:$4 sm:$0xff]  }
 0x25d   : > { %4293 = vpow2.f32 %v2067_v17  ;;  %v5426_v15 = vadd.f32 %v5317_v6, %v2012_v40  ;;  %v2013_v33 = vmax.f32 %v1941_v38, %v2001_v49  ;;  %v4211_v38 = vld [vmem:[%s6589_s3 + $0x84] ss:$8 sps:$4 sm:$0xff]   ;;  %v4213_v40 = vld [vmem:[%s6589_s3 + $0x80] ss:$8 sps:$4 sm:$0xff]   ;;  %v1942_v28 = vmax.f32 %v5004_v51, %v1911_v20 }
 0x25e   : > { %v1913_v14 = vpop.permute.xlu1 %1912  ;;  %3154 = vmatprep.subr.bf16.mxu1 %v4211_v38  ;;  %v506_v50 = vsub.s32 0, %v505_v25  ;;  %v516_v2 = vsub.s32 %v5270_v11, %v515_v24  ;;  %v418_v34 = vadd.s32 100, %v5423_v19  ;;  %v2286_v20 = vld [vmem:[#allocation3 + $0x7] sm:$0xff]  ;;  %v525_v38 = vshrl.u32 %v5420_v21, 3 }
 0x25f   : > { %v2055_v41 = vmin.f32 %v5426_v15, 20.0  ;;  %v5449_v17 = vadd.f32 %v5317_v6, %v2013_v33  ;;  %v1943_v35 = vmax.f32 %v5010_v53, %v1913_v14  ;;  %v542_v53 = vsub.s32 0, %v5459_v37  ;;  %2298 = vst.msk [vmem:[#allocation4 + $0x8] sm:$0xff] %vm6610_vm0, %v2286_v20 }
 0x260   : > { %v1971_v29 = vpop.permute.xlu0 %1970  ;;  %3155 = vmatpush1.bf16.msra.mxu1 %v4213_v40  ;;  %v5495_v14 = vadd.s32 10, %v5384_v63  ;;  %v4217_v40 = vld [vmem:[%s6589_s3 + $0xa4] ss:$8 sps:$4 sm:$0xff]   ;;  %vm508_vm9 = vcmp.lt.s32.totalorder %v5213_v1, 0 }
 0x261   : > { %6634 = vst [vmem:[#allocation12_spill] sm:$0xff] %v5449_v17  ;;  %v2069_v49 = vmul.f32 1.442695, %v2055_v41  ;;  %v2056_v45 = vmin.f32 %v5449_v17, 20.0  ;;  %v2002_v10 = vmax.f32 %v5008_v52, %v1971_v29  ;;  %3156 = vmatprep.subr.bf16.mxu1 %v4214_v23  ;;  %v5515_v23 = vsel %vm497_vm15, %v506_v50, %v505_v25 }
 0x262   : > { %v1973_v33 = vpop.permute.xlu1 %1972  ;;  %v5478_v29 = vmul.u32.u64.low 3435973837, %v5455_v42  ;;  %v5479_v17 = vmul.u32.u64.high 3435973837, %v5455_v42, %v5478_v29  ;;  %v526_v50 = vmul.u32 10, %v525_v38  ;;  %v4220_v38 = vld [vmem:[%s6589_s3 + $0xb4] ss:$8 sps:$4 sm:$0xff]   ;;  %vm636_vm15 = vcmp.lt.s32.totalorder %v5104_v27, 89 }
 0x263   : > { %4295 = vpow2.f32 %v2069_v49  ;;  %v2071_v41 = vmul.f32 1.442695, %v2056_v45  ;;  %v2014_v12 = vmax.f32 %v1942_v28, %v2002_v10  ;;  %v2003_v51 = vmax.f32 %v5014_v54, %v1973_v33  ;;  %v4216_v54 = vld [vmem:[%s6589_s3 + $0x90] ss:$8 sps:$4 sm:$0xff]  }
 0x264   : > { %v1915_v52 = vpop.permute.xlu0 %1914  ;;  %v5506_v28 = vsel %vm486_vm8, %v495_v26, %v5372_v5  ;;  %v517_v33 = vsub.s32 0, %v516_v2  ;;  %v6637_v5 = vsel %vm5240_vm11, %v5245_v39, %v5184_v43  ;;  %v5533_v29 = vmin.u32 %v542_v53, %v5459_v37  ;;  %3157 = vmatpush1.bf16.msra.mxu1 %v4216_v54  ;;  %v4225_v26 = vld [vmem:[%s6589_s3 + $0xd4] ss:$8 sps:$4 sm:$0xff]  }
 0x265   : > { %v4292_v21 = vpop.eup %4291  ;;  %4297 = vpow2.f32 %v2071_v41  ;;  %v5498_v24 = vadd.f32 %v5317_v6, %v2014_v12  ;;  %v2015_v49 = vmax.f32 %v1943_v35, %v2003_v51  ;;  %v5520_v51 = vsel %vm5486_vm6, %v418_v34, %v5423_v19  ;;  %3158 = vmatprep.subr.bf16.mxu1 %v4217_v40 }
 0x266   : > { %v2089_v45 = vadd.f32 1.0, %v4292_v21  ;;  %v1917_v10 = vpop.permute.xlu1 %1916  ;;  %vm5527_vm8 = vcmp.ne.s32.totalorder %v6637_v5, 9  ;;  %v1944_v39 = vmax.f32 %v5020_v55, %v1915_v52  ;;  %v6640_v53 = vsel %vm5252_vm12, %v5248_v18, %v5188_v8  ;;  %v2717_v55 = vld [vmem:[%s6589_s3 + $0xe8] sm:$0xff] }
 0x267   : > { %v4294_v41 = vpop.eup %4293  ;;  %v2057_v12 = vmin.f32 %v5498_v24, 20.0  ;;  %v5511_v35 = vadd.f32 %v5317_v6, %v2015_v49  ;;  %vm5549_vm11 = vcmp.ne.s32.totalorder %v6640_v53, 9  ;;  %v5565_v8 = vsel %vm508_vm9, %v517_v33, %v516_v2  ;;  %v4222_v2 = vld [vmem:[%s6589_s3 + $0xb0] ss:$8 sps:$4 sm:$0xff]   ;;  %vm5649_vm3 = vmand %vm5527_vm8, %vm635_vm4 }
 0x268   : > { %4299 = vlog2.f32 %v2089_v45  ;;  %v2090_v20 = vadd.f32 1.0, %v4294_v41  ;;  %v1975_v25 = vpop.permute.xlu0 %1974  ;;  %v553_v0 = vsub.s32 0, %v5520_v51  ;;  %v5570_v40 = vsub.s32 %v5396_v7, %v526_v50  ;;  %3159 = vmatpush1.bf16.msra.mxu1 %v4219_v16  ;;  %v4223_v41 = vld [vmem:[%s6589_s3 + $0xc4] ss:$8 sps:$4 sm:$0xff]   ;;  %vm5665_vm8 = vmand %vm5549_vm11, %vm636_vm15 }
 0x269   : > { %v2073_v19 = vmul.f32 1.442695, %v2057_v12  ;;  %v2058_v43 = vmin.f32 %v5511_v35, 20.0  ;;  %v2004_v34 = vmax.f32 %v5024_v56, %v1975_v25  ;;  %v1945_v56 = vmax.f32 %v5026_v57, %v1917_v10  ;;  %3160 = vmatprep.subr.bf16.mxu1 %v4220_v38  ;;  %v2713_v38 = vld [vmem:[%s6589_s3 + $0xc8] sm:$0xff] }
 0x26a   : > { %4301 = vlog2.f32 %v2090_v20  ;;  %v1977_v18 = vpop.permute.xlu1 %1976  ;;  %v536_v45 = vshrl.u32 %v5479_v17, 3  ;;  %v5574_v57 = vmul.u32.u64.low 3435973837, %v5533_v29  ;;  %v5575_v10 = vmul.u32.u64.high 3435973837, %v5533_v29, %v5574_v57 }
 0x26b   : > { %4303 = vpow2.f32 %v2073_v19  ;;  %v2075_v52 = vmul.f32 1.442695, %v2058_v43  ;;  %v2016_v54 = vmax.f32 %v1944_v39, %v2004_v34  ;;  %v2005_v21 = vmax.f32 %v5030_v58, %v1977_v18  ;;  %v2712_v34 = vld [vmem:[%s6589_s3 + $0xc0] sm:$0xff] }
 0x26c   : > { %v1919_v49 = vpop.permute.xlu0 %1918  ;;  %v615_v58 = vsel %vm5558_vm5, %v5495_v14, %v5384_v63  ;;  %vm568_vm12 = vcmp.ne.s32.totalorder %v5506_v28, 0  ;;  %vm580_vm13 = vcmp.lt.s32.totalorder %v5506_v28, 0  ;;  %v5593_v5 = vadd.s32 10, %v5506_v28  ;;  %3161 = vmatpush1.bf16.msra.mxu1 %v4222_v2  ;;  %v4227_v63 = vld [vmem:[%s6589_s3 + $0xe4] ss:$8 sps:$4 sm:$0xff]  }
 0x26d   : > { %v4296_v33 = vpop.eup %4295  ;;  %4305 = vpow2.f32 %v2075_v52  ;;  %v5585_v7 = vadd.f32 %v5317_v6, %v2016_v54  ;;  %v2017_v17 = vmax.f32 %v1945_v56, %v2005_v21  ;;  %v5596_v25 = vmin.u32 %v553_v0, %v5520_v51  ;;  %3162 = vmatprep.subr.bf16.mxu1 %v4223_v41  ;;  %vm5721_vm5 = vmand %vm580_vm13, %vm568_vm12 }
 0x26e   : > { %v2091_v12 = vadd.f32 1.0, %v4296_v33  ;;  %v1921_v20 = vpop.permute.xlu1 %1920  ;;  %v5599_v16 = vadd.s32 10, %v5515_v23  ;;  %v5603_v43 = vadd.s32 10, %v5565_v8  ;;  %v6645_v53 = vsel %vm5330_vm10, %v5302_v30, %v5256_v13 }
 0x26f   : > { %v4298_v50 = vpop.eup %4297  ;;  %v2059_v19 = vmin.f32 %v5585_v7, 20.0  ;;  %v5606_v39 = vadd.f32 %v5317_v6, %v2017_v17  ;;  %vm5619_vm14 = vcmp.ne.s32.totalorder %v6645_v53, 9  ;;  %vm637_vm6 = vcmp.lt.s32.totalorder %v5115_v9, 89 }
 0x270   : > { %4307 = vlog2.f32 %v2091_v12  ;;  %v2092_v18 = vadd.f32 1.0, %v4298_v50  ;;  %v528_v0 = vsub.s32 0, %v5570_v40  ;;  %v1979_v52 = vpop.permute.xlu0 %1978  ;;  %v5625_v54 = vmul.u32 10, %v536_v45  ;;  %v6653_v50 = vld [vmem:[#allocation5_spill] sm:$0xff]  ;;  %vm5734_vm12 = vmand %vm5619_vm14, %vm637_vm6 }
 0x271   : > { %v2077_v21 = vmul.f32 1.442695, %v2059_v19  ;;  %v2060_v44 = vmin.f32 %v5606_v39, 20.0  ;;  %v1946_v57 = vmax.f32 %v5036_v60, %v1919_v49  ;;  %v2006_v13 = vmax.f32 %v5040_v61, %v1979_v52 }
 0x272   : > { %v4300_v30 = vpop.eup %4299  ;;  %v6648_v33 = vsel %vm5410_vm7, %v5369_v22, %v5336_v46  ;;  %vm638_vm9 = vcmp.lt.s32.totalorder %v5133_v32, 89  ;;  %4309 = vlog2.f32 %v2092_v18  ;;  %v1981_v45 = vpop.permute.xlu1 %1980  ;;  %v3865_v61 = vcombine.low %v2712_v34, %v2713_v38 }
 0x273   : > { %vm5635_vm10 = vcmp.ne.s32.totalorder %v6648_v33, 9  ;;  %v5641_v2 = vmul.u32.u64.low 3435973837, %v5596_v25  ;;  %v5642_v60 = vmul.u32.u64.high 3435973837, %v5596_v25, %v5641_v2  ;;  %v2102_v22 = vmul.f32 0.6931472, %v4300_v30  ;;  %v6656_v33 = vld [vmem:[#allocation6_spill] sm:$0xff] }
 0x274   : > { %4311 = vpow2.f32 %v2077_v21  ;;  %v2079_v48 = vmul.f32 1.442695, %v2060_v44  ;;  %v2018_v49 = vmax.f32 %v1946_v57, %v2006_v13  ;;  %v4302_v41 = vpop.eup %4301  ;;  %vm2041_vm7 = vcmp.gt.f32.partialorder %v5360_v47, 20.0  ;;  %v1923_v34 = vpop.permute.xlu0 %1922  ;;  %3163 = vmatpush1.bf16.msra.mxu1 %v3865_v61  ;;  %v2714_v21 = vld [vmem:[%s6589_s3 + $0xd0] sm:$0xff]  ;;  %v2715_v44 = vld [vmem:[%s6589_s3 + $0xd8] sm:$0xff]  ;;  %v6657_v2 = vld [vmem:[#allocation7_spill] sm:$0xff] }
 0x275   : > { %v1947_v12 = vmax.f32 %v5042_v62, %v1921_v20  ;;  %v2007_v19 = vmax.f32 %v6653_v50, %v1981_v45  ;;  %v547_v36 = vshrl.u32 %v5575_v10, 3  ;;  %v4304_v38 = vpop.eup %4303  ;;  %v2125_v53 = vsel %vm2041_vm7, %v5360_v47, %v2102_v22  ;;  %v2190_v20 = vld [vmem:[#allocation3 + $0x5] sm:$0xff]  ;;  %3164 = vmatprep.subr.bf16.mxu1 %v4225_v26  ;;  %vm5767_vm13 = vmand %vm5635_vm10, %vm638_vm9 }
 0x276   : > { %v2104_v62 = vmul.f32 0.6931472, %v4302_v41  ;;  %vm569_vm4 = vcmp.ne.s32.totalorder %v5515_v23, 0  ;;  %vm581_vm2 = vcmp.lt.s32.totalorder %v5515_v23, 0  ;;  %4313 = vpow2.f32 %v2079_v48  ;;  %v1983_v52 = vpop.permute.xlu1 %1982  ;;  %2202 = vst.msk [vmem:[#allocation4] sm:$0xff] %vm6610_vm0, %v2190_v20 }
 0x277   : > { %v5672_v10 = vadd.f32 %v5317_v6, %v2018_v49  ;;  %v2161_v47 = vsel %vm5649_vm3, %v2125_v53, 0.0  ;;  %vm2042_vm7 = vcmp.gt.f32.partialorder %v5380_v31, 20.0  ;;  %v2093_v27 = vadd.f32 1.0, %v4304_v38  ;;  %v4306_v57 = vpop.eup %4305  ;;  %vm5787_vm6 = vmand %vm581_vm2, %vm569_vm4 }
 0x278   : > { %vm570_vm11 = vcmp.ne.s32.totalorder %v5565_v8, 0  ;;  %v2019_v11 = vmax.f32 %v1947_v12, %v2007_v19  ;;  %2178 = vst.msk [vmem:[#allocation3 + $0x10] sm:$0xff] %vm6610_vm0, %v2161_v47  ;;  %v2126_v13 = vsel %vm2042_vm7, %v5380_v31, %v2104_v62  ;;  %v1948_v45 = vmax.f32 %v6656_v33, %v1923_v34  ;;  %v6660_v31 = vld [vmem:[#allocation10_spill] sm:$0xff]  ;;  %v1925_v34 = vpop.permute.xlu0 %1924  ;;  %v2719_v33 = vld [vmem:[%s6589_s3 + $0xf8] sm:$0xff] }
 0x279   : > { %v2061_v30 = vmin.f32 %v5672_v10, 20.0  ;;  %v2008_v61 = vmax.f32 %v6657_v2, %v1983_v52  ;;  %v2162_v22 = vsel %vm5665_vm8, %v2126_v13, 0.0  ;;  %vm5699_vm15 = vcmp.ne.s32.totalorder %v615_v58, 9  ;;  %v2716_v12 = vld [vmem:[%s6589_s3 + $0xe0] sm:$0xff] }
 0x27a   : > { %4315 = vlog2.f32 %v2093_v27  ;;  %v2094_v49 = vadd.f32 1.0, %v4306_v57  ;;  %v5705_v41 = vadd.f32 %v5317_v6, %v2019_v11  ;;  %2179 = vst.msk [vmem:[#allocation3 + $0x18] sm:$0xff] %vm6610_vm0, %v2162_v22  ;;  %v5725_v50 = vmul.u32 10, %v547_v36  ;;  %v4308_v38 = vpop.eup %4307  ;;  %v1985_v62 = vpop.permute.xlu1 %1984  ;;  %v6665_v11 = vld [vmem:[#allocation9_spill] sm:$0xff]  ;;  %v6666_v57 = vld [vmem:[#allocation8_spill] sm:$0xff] }
 0x27b   : > { %v2081_v58 = vmul.f32 1.442695, %v2061_v30  ;;  %v2020_v19 = vmax.f32 %v1948_v45, %v2008_v61  ;;  %v3867_v26 = vcombine.low %v2714_v21, %v2715_v44  ;;  %vm2043_vm7 = vcmp.gt.f32.partialorder %v5426_v15, 20.0  ;;  %v2718_v30 = vld [vmem:[%s6589_s3 + $0xf0] sm:$0xff] }
 0x27c   : > { %4317 = vlog2.f32 %v2094_v49  ;;  %v2062_v53 = vmin.f32 %v5705_v41, 20.0  ;;  %v3869_v20 = vcombine.low %v2716_v12, %v2717_v55  ;;  %v2106_v47 = vmul.f32 0.6931472, %v4308_v38  ;;  %v4310_v21 = vpop.eup %4309  ;;  %v6669_v45 = vld [vmem:[#allocation12_spill] sm:$0xff] }
 0x27d   : > { %4319 = vpow2.f32 %v2081_v58  ;;  %v5739_v27 = vadd.f32 %v5317_v6, %v2020_v19  ;;  %v2009_v52 = vmax.f32 %v6665_v11, %v1985_v62  ;;  %3165 = vmatpush1.bf16.msra.mxu1 %v3867_v26  ;;  %v616_v9 = vsel %vm5721_vm5, %v5593_v5, %v5506_v28  ;;  %v4229_v28 = vld [vmem:[%s6589_s3 + $0xf4] ss:$8 sps:$4 sm:$0xff]   ;;  %v2214_v62 = vld [vmem:[#allocation3 + $0x6] sm:$0xff] }
 0x27e   : > { %v5748_v56 = vsub.s32 %v5455_v42, %v5625_v54  ;;  %v2083_v44 = vmul.f32 1.442695, %v2062_v53  ;;  %v1949_v13 = vmax.f32 %v6666_v57, %v1925_v34  ;;  %3166 = vmatprep.subr.bf16.mxu1 %v4227_v63  ;;  %v4312_v5 = vpop.eup %4311  ;;  %v2127_v42 = vsel %vm2043_vm7, %v5426_v15, %v2106_v47 }
 0x27f   : > { %vm2044_vm14 = vcmp.gt.f32.partialorder %v6669_v45, 20.0  ;;  %v2108_v2 = vmul.f32 0.6931472, %v4310_v21  ;;  %v2063_v61 = vmin.f32 %v5739_v27, 20.0  ;;  %v2163_v22 = vsel %vm5734_vm12, %v2127_v42, 0.0  ;;  %v2310_v15 = vld [vmem:[#allocation3 + $0xf] sm:$0xff] }
 0x280   : > { %v2095_v49 = vadd.f32 1.0, %v4312_v5  ;;  %4321 = vpow2.f32 %v2083_v44  ;;  %v2021_v12 = vmax.f32 %v1949_v13, %v2009_v52  ;;  %v2191_v55 = vld [vmem:[#allocation3 + $0xd] sm:$0xff]  ;;  %v4314_v32 = vpop.eup %4313  ;;  %2180 = vst.msk [vmem:[#allocation3 + $0x20] sm:$0xff] %vm6610_vm0, %v2163_v22  ;;  %v558_v14 = vshrl.u32 %v5642_v60, 3  ;;  %2334 = vrot.lane.b32.xlu0 %v2310_v15, %s4395_s11  ;;  %2299 = vst.msk [vmem:[#allocation4 + $0x30] sm:$0xff] %vm6610_vm0, %v2310_v15 }
 0x281   : > { %v2128_v17 = vsel %vm2044_vm14, %v6669_v45, %v2108_v2  ;;  %v2085_v63 = vmul.f32 1.442695, %v2063_v61  ;;  %2203 = vst.msk [vmem:[#allocation4 + $0x28] sm:$0xff] %vm6610_vm0, %v2191_v55  ;;  %3167 = vmatpush1.bf16.msra.mxu1 %v3869_v20  ;;  %v3871_v58 = vcombine.low %v2718_v30, %v2719_v33  ;;  %v2382_v19 = vld [vmem:[#allocation3 + $0x10] sm:$0xff]  ;;  %v2096_v60 = vadd.f32 1.0, %v4314_v32  ;;  %v2383_v44 = vld [vmem:[#allocation3 + $0x18] sm:$0xff] }
 0x282   : > { %v2164_v34 = vsel %vm5767_vm13, %v2128_v17, 0.0  ;;  %4323 = vlog2.f32 %v2095_v49  ;;  %v5792_v38 = vadd.f32 %v5317_v6, %v2021_v12  ;;  %v2311_v53 = vld [vmem:[#allocation3 + $0x17] sm:$0xff]  ;;  %3168 = vmatprep.subr.bf16.mxu1 %v4229_v28  ;;  %2394 = vst.msk [vmem:[#allocation4 + $0x10] sm:$0xff] %vm6610_vm0, %v2382_v19  ;;  %vm5796_vm10 = vcmp.ne.s32.totalorder %v616_v9, 9  ;;  %v4233_v52 = vld [vmem:[%s6589_s3 + $0x104] ss:$8 sps:$4 sm:$0xff]  }
 0x283   : > { %2181 = vst.msk [vmem:[#allocation3 + $0x28] sm:$0xff] %vm6610_vm0, %v2164_v34  ;;  %vm641_vm2 = vcmp.lt.s32.totalorder %v5186_v4, 89  ;;  %vm6674_vm9 = vcmp.lt.s32.totalorder %v5565_v8, 0  ;;  %v5811_v47 = vsub.s32 %v5533_v29, %v5725_v50  ;;  %4325 = vpow2.f32 %v2085_v63  ;;  %2336 = vrot.lane.b32.xlu1 %v2311_v53, %s4395_s11  ;;  %2300 = vst.msk [vmem:[#allocation4 + $0x58] sm:$0xff] %vm6610_vm0, %v2311_v53  ;;  %v2192_v11 = vld [vmem:[#allocation3 + $0x15] sm:$0xff]  ;;  %v6678_v29 = vld [vmem:[#allocation11_spill] sm:$0xff] }
 0x284   : > { %vm5805_vm4 = vmand %vm6674_vm9, %vm570_vm11  ;;  %v4316_v21 = vpop.eup %4315  ;;  %4327 = vlog2.f32 %v2096_v60  ;;  %vm6677_vm11 = vcmp.lt.s32.totalorder %v5322_v3, 0  ;;  %vm530_vm7 = vcmp.lt.s32.totalorder %v6678_v29, 0  ;;  %v2064_v50 = vmin.f32 %v5792_v38, 20.0  ;;  %2204 = vst.msk [vmem:[#allocation4 + $0x50] sm:$0xff] %vm6610_vm0, %v2192_v11  ;;  %2238 = vrot.lane.b32.xlu0 %v2214_v62, %s4395_s11  ;;  %v2216_v60 = vld [vmem:[#allocation3 + $0x16] sm:$0xff] }
 0x285   : > { %v5823_v9 = vsel %vm6677_vm11, %v528_v0, %v5570_v40  ;;  %vm6679_vm5 = vcmp.lt.s32.totalorder %v6660_v31, 89  ;;  %v2110_v13 = vmul.f32 0.6931472, %v4316_v21  ;;  %v617_v40 = vsel %vm5787_vm6, %v5599_v16, %v5515_v23  ;;  %3169 = vmatpush1.bf16.msra.mxu1 %v3871_v58  ;;  %2395 = vst.msk [vmem:[#allocation4 + $0x38] sm:$0xff] %vm6610_vm0, %v2383_v44  ;;  %v2215_v23 = vld [vmem:[#allocation3 + $0xe] sm:$0xff]  ;;  %vm5854_vm6 = vmand %vm5796_vm10, %vm640_vm1 }
 0x286   : > { %vm5832_vm14 = vmand %vm5699_vm15, %vm6679_vm5  ;;  %v539_v0 = vsub.s32 0, %v5748_v56  ;;  %v559_v30 = vmul.u32 10, %v558_v14  ;;  %v4318_v31 = vpop.eup %4317  ;;  %vm2045_vm15 = vcmp.gt.f32.partialorder %v5498_v24, 20.0  ;;  %v618_v48 = vsel %vm5805_vm4, %v5603_v43, %v5565_v8  ;;  %3231 = vmatprep.subr.bf16.mxu1 %v4233_v52 }
 0x287   : > { %vm541_vm9 = vcmp.lt.s32.totalorder %v5459_v37, 0  ;;  %v2087_v33 = vmul.f32 1.442695, %v2064_v50  ;;  %v4320_v16 = vpop.eup %4319  ;;  %v2129_v28 = vsel %vm2045_vm15, %v5498_v24, %v2110_v13  ;;  %v2112_v42 = vmul.f32 0.6931472, %v4318_v31  ;;  %2240 = vrot.lane.b32.xlu1 %v2215_v23, %s4395_s11  ;;  %v2574_v43 = vld [vmem:[#allocation3 + $0x1b] sm:$0xff] }
 0x288   : > { %vm571_vm11 = vcmp.ne.s32.totalorder %v5823_v9, 0  ;;  %v550_v8 = vsub.s32 0, %v5811_v47  ;;  %v2165_v45 = vsel %vm5832_vm14, %v2129_v28, 0.0  ;;  %vm2046_vm4 = vcmp.gt.f32.partialorder %v5511_v35, 20.0  ;;  %v2312_v24 = vld [vmem:[#allocation3 + $0x1f] sm:$0xff]  ;;  %2586 = vst.msk [vmem:[#allocation4 + $0x20] sm:$0xff] %vm6610_vm0, %v2574_v43 }
 0x289   : > { %v2097_v59 = vadd.f32 1.0, %v4320_v16  ;;  %4329 = vpow2.f32 %v2087_v33  ;;  %2182 = vst.msk [vmem:[#allocation3 + $0x30] sm:$0xff] %vm6610_vm0, %v2165_v45  ;;  %v2130_v2 = vsel %vm2046_vm4, %v5511_v35, %v2112_v42  ;;  %vm583_vm1 = vcmp.lt.s32.totalorder %v5823_v9, 0  ;;  %2338 = vrot.lane.b32.xlu0 %v2312_v24, %s4395_s11  ;;  %v5877_v49 = vld [vmem:[#allocation3 + $0x19] sm:$0xff]  ;;  %2301 = vst.msk [vmem:[#allocation4 + $0x80] sm:$0xff] %vm6610_vm0, %v2312_v24 }
 0x28a   : > { %v5871_v61 = vsel %vm530_vm7, %v539_v0, %v5748_v56  ;;  %v5874_v22 = vsub.s32 %v5596_v25, %v559_v30  ;;  %v2193_v12 = vld [vmem:[#allocation3 + $0x1d] sm:$0xff]  ;;  %v4322_v15 = vpop.eup %4321  ;;  %v2166_v35 = vsel %vm5854_vm6, %v2130_v2, 0.0  ;;  %vm5882_vm10 = vcmp.ne.s32.totalorder %v617_v40, 9  ;;  %v2313_v25 = vld [vmem:[#allocation3 + $0x27] sm:$0xff]  ;;  %2490 = vst.msk [vmem:[#allocation4 + $0x18] sm:$0xff] %vm6610_vm0, %v5877_v49  ;;  %vm5910_vm15 = vmand %vm583_vm1, %vm571_vm11 }
 0x28b   : > { %v2575_v55 = vld [vmem:[#allocation3 + $0x23] sm:$0xff]  ;;  %4331 = vlog2.f32 %v2097_v59  ;;  %2205 = vst.msk [vmem:[#allocation4 + $0x78] sm:$0xff] %vm6610_vm0, %v2193_v12  ;;  %2183 = vst.msk [vmem:[#allocation3 + $0x38] sm:$0xff] %vm6610_vm0, %v2166_v35  ;;  %vm5892_vm5 = vcmp.ne.s32.totalorder %v618_v48, 9  ;;  %v607_v17 = vadd.s32 10, %v5823_v9  ;;  %v2098_v63 = vadd.f32 1.0, %v4322_v15  ;;  %2340 = vrot.lane.b32.xlu1 %v2313_v25, %s4395_s11 }
 0x28c   : > { %2587 = vst.msk [vmem:[#allocation4 + $0x48] sm:$0xff] %vm6610_vm0, %v2575_v55  ;;  %v5900_v14 = vsel %vm541_vm9, %v550_v8, %v5811_v47  ;;  %v5903_v58 = vld [vmem:[#allocation3 + $0x21] sm:$0xff]  ;;  %2302 = vst.msk [vmem:[#allocation4 + $0xa8] sm:$0xff] %vm6610_vm0, %v2313_v25  ;;  %v4324_v34 = vpop.eup %4323  ;;  %vm572_vm4 = vcmp.ne.s32.totalorder %v5871_v61, 0  ;;  %v608_v6 = vadd.s32 10, %v5871_v61  ;;  %v561_v47 = vsub.s32 0, %v5874_v22 }
 0x28d   : > { %v2194_v19 = vld [vmem:[#allocation3 + $0x25] sm:$0xff]  ;;  %2491 = vst.msk [vmem:[#allocation4 + $0x40] sm:$0xff] %vm6610_vm0, %v5903_v58  ;;  %v4326_v53 = vpop.eup %4325  ;;  %vm5924_vm11 = vmand %vm5882_vm10, %vm641_vm2  ;;  %v2114_v20 = vmul.f32 0.6931472, %v4324_v34  ;;  %4333 = vlog2.f32 %v2098_v63  ;;  %2242 = vrot.lane.b32.xlu0 %v2216_v60, %s4395_s11  ;;  %vm2047_vm1 = vcmp.gt.f32.partialorder %v5585_v7, 20.0  ;;  %vm6692_vm7 = vcmp.lt.s32.totalorder %v5213_v1, 89 }
 0x28e   : > { %2206 = vst.msk [vmem:[#allocation4 + $0xa0] sm:$0xff] %vm6610_vm0, %v2194_v19  ;;  %v2384_v11 = vld [vmem:[#allocation3 + $0x20] sm:$0xff]  ;;  %v2385_v52 = vld [vmem:[#allocation3 + $0x28] sm:$0xff]  ;;  %v4328_v21 = vpop.eup %4327  ;;  %vm5936_vm2 = vmand %vm5892_vm5, %vm6692_vm7  ;;  %v6693_v4 = vmov 0  ;;  %vm573_vm10 = vcmp.ne.s32.totalorder %v5900_v14, 0  ;;  %vm585_vm9 = vcmp.lt.s32.totalorder %v5900_v14, 0  ;;  %v619_v1 = vsel %vm5910_vm15, %v607_v17, %v5823_v9 }
 0x28f   : > { %v6694_v4 = vsel %vm5936_vm2, 4294967295, %v6693_v4  ;;  %v2099_v50 = vadd.f32 1.0, %v4326_v53  ;;  %v2217_v44 = vld [vmem:[#allocation3 + $0x1e] sm:$0xff]  ;;  %2396 = vst.msk [vmem:[#allocation4 + $0x60] sm:$0xff] %vm6610_vm0, %v2384_v11  ;;  %2397 = vst.msk [vmem:[#allocation4 + $0x88] sm:$0xff] %vm6610_vm0, %v2385_v52  ;;  %v2131_v13 = vsel %vm2047_vm1, %v5585_v7, %v2114_v20  ;;  %vm6695_vm7 = vcmp.lt.s32.totalorder %v5871_v61, 0 }
 0x290   : > { %v2116_v40 = vmul.f32 0.6931472, %v4328_v21  ;;  %vm5952_vm5 = vmand %vm6695_vm7, %vm572_vm4  ;;  %2244 = vrot.lane.b32.xlu1 %v2217_v44, %s4395_s11  ;;  %v2167_v30 = vsel %vm5924_vm11, %v2131_v13, 0.0  ;;  %vm2048_vm1 = vcmp.gt.f32.partialorder %v5606_v39, 20.0  ;;  %v609_v7 = vadd.s32 10, %v5900_v14  ;;  %v2314_v31 = vld [vmem:[#allocation3 + $0x2f] sm:$0xff] }
 0x291   : > { %4335 = vlog2.f32 %v2099_v50  ;;  %2184 = vst.msk [vmem:[#allocation3 + $0x40] sm:$0xff] %vm6610_vm0, %v2167_v30  ;;  %vm5967_vm15 = vmand %vm585_vm9, %vm573_vm10  ;;  %vm6700_vm4 = vcmp.lt.s32.totalorder %v5520_v51, 0  ;;  %2342 = vrot.lane.b32.xlu0 %v2314_v31, %s4395_s11  ;;  %v5977_v23 = vld [vmem:[#allocation3 + $0x29] sm:$0xff]  ;;  %vm5982_vm9 = vcmp.ne.s32.totalorder %v619_v1, 9  ;;  %vm643_vm10 = vcmp.lt.s32.totalorder %v5322_v3, 89 }
 0x292   : > { %v2132_v9 = vsel %vm2048_vm1, %v5606_v39, %v2116_v40  ;;  %v5974_v33 = vsel %vm6700_vm4, %v561_v47, %v5874_v22  ;;  %2303 = vst.msk [vmem:[#allocation4 + $0xd0] sm:$0xff] %vm6610_vm0, %v2314_v31  ;;  %v2195_v39 = vld [vmem:[#allocation3 + $0x2d] sm:$0xff]  ;;  %v620_v8 = vsel %vm5952_vm5, %v608_v6, %v5871_v61  ;;  %v2315_v43 = vld [vmem:[#allocation3 + $0x37] sm:$0xff]  ;;  %2492 = vst.msk [vmem:[#allocation4 + $0x68] sm:$0xff] %vm6610_vm0, %v5977_v23 }
 0x293   : > { %v4330_v16 = vpop.eup %4329  ;;  %v2168_v28 = vsel %vm5936_vm2, %v2132_v9, 0.0  ;;  %2207 = vst.msk [vmem:[#allocation4 + $0xc8] sm:$0xff] %vm6610_vm0, %v2195_v39  ;;  %v5995_v59 = vld [vmem:[#allocation3 + $0x31] sm:$0xff]  ;;  %2304 = vst.msk [vmem:[#allocation4 + $0xf8] sm:$0xff] %vm6610_vm0, %v2315_v43  ;;  %v621_v61 = vsel %vm5967_vm15, %v609_v7, %v5900_v14  ;;  %vm574_vm7 = vcmp.ne.s32.totalorder %v5974_v33, 0  ;;  %vm586_vm5 = vcmp.lt.s32.totalorder %v5974_v33, 0 }
 0x294   : > { %2185 = vst.msk [vmem:[#allocation3 + $0x48] sm:$0xff] %vm6610_vm0, %v2168_v28  ;;  %v2100_v45 = vadd.f32 1.0, %v4330_v16  ;;  %2344 = vrot.lane.b32.xlu1 %v2315_v43, %s4395_s11  ;;  %v2196_v24 = vld [vmem:[#allocation3 + $0x35] sm:$0xff]  ;;  %v2218_v22 = vld [vmem:[#allocation3 + $0x26] sm:$0xff]  ;;  %2493 = vst.msk [vmem:[#allocation4 + $0x90] sm:$0xff] %vm6610_vm0, %v5995_v59  ;;  %vm6014_vm15 = vcmp.ne.s32.totalorder %v620_v8, 9 }
 0x295   : > { %v4332_v2 = vpop.eup %4331  ;;  %2208 = vst.msk [vmem:[#allocation4 + $0xf0] sm:$0xff] %vm6610_vm0, %v2196_v24  ;;  %v2386_v12 = vld [vmem:[#allocation3 + $0x30] sm:$0xff]  ;;  %v2387_v15 = vld [vmem:[#allocation3 + $0x38] sm:$0xff]  ;;  %vm6010_vm1 = vmand %vm5982_vm9, %vm643_vm10  ;;  %2246 = vrot.lane.b32.xlu0 %v2218_v22, %s4395_s11  ;;  %vm2049_vm9 = vcmp.gt.f32.partialorder %v5672_v10, 20.0  ;;  %v610_v25 = vadd.s32 10, %v5974_v33  ;;  %vm6026_vm10 = vcmp.ne.s32.totalorder %v621_v61, 9 }
 0x296   : > { %v2118_v35 = vmul.f32 0.6931472, %v4332_v2  ;;  %4337 = vlog2.f32 %v2100_v45  ;;  %2398 = vst.msk [vmem:[#allocation4 + $0xb0] sm:$0xff] %vm6610_vm0, %v2386_v12  ;;  %2399 = vst.msk [vmem:[#allocation4 + $0xd8] sm:$0xff] %vm6610_vm0, %v2387_v15  ;;  %v2576_v3 = vld [vmem:[#allocation3 + $0x2b] sm:$0xff]  ;;  %v2577_v17 = vld [vmem:[#allocation3 + $0x33] sm:$0xff] }
 0x297   : > { %v2219_v56 = vld [vmem:[#allocation3 + $0x2e] sm:$0xff]  ;;  %2588 = vst.msk [vmem:[#allocation4 + $0x70] sm:$0xff] %vm6610_vm0, %v2576_v3  ;;  %v4334_v63 = vpop.eup %4333  ;;  %vm6035_vm2 = vmand %vm586_vm5, %vm574_vm7  ;;  %vm2050_vm7 = vcmp.gt.f32.partialorder %v5705_v41, 20.0  ;;  %vm6714_vm5 = vcmp.lt.s32.totalorder %v5459_v37, 89  ;;  %v2220_v40 = vld [vmem:[#allocation3 + $0x36] sm:$0xff] }
 0x298   : > { %v2133_v14 = vsel %vm2049_vm9, %v5672_v10, %v2118_v35  ;;  %2248 = vrot.lane.b32.xlu1 %v2219_v56, %s4395_s11  ;;  %2589 = vst.msk [vmem:[#allocation4 + $0x98] sm:$0xff] %vm6610_vm0, %v2577_v17  ;;  %vm6711_vm9 = vcmp.lt.s32.totalorder %v6678_v29, 89  ;;  %v2120_v60 = vmul.f32 0.6931472, %v4334_v63  ;;  %v2316_v53 = vld [vmem:[#allocation3 + $0x3f] sm:$0xff]  ;;  %v622_v52 = vsel %vm6035_vm2, %v610_v25, %v5974_v33 }
 0x299   : > { %v2169_v10 = vsel %vm6010_vm1, %v2133_v14, 0.0  ;;  %vm6047_vm4 = vmand %vm6014_vm15, %vm6711_vm9  ;;  %2346 = vrot.lane.b32.xlu0 %v2316_v53, %s4395_s11  ;;  %v6054_v20 = vld [vmem:[#allocation3 + $0x39] sm:$0xff]  ;;  %2305 = vst.msk [vmem:[#allocation4 + $0x120] sm:$0xff] %vm6610_vm0, %v2316_v53  ;;  %vm2051_vm2 = vcmp.gt.f32.partialorder %v5739_v27, 20.0  ;;  %vm646_vm9 = vcmp.lt.s32.totalorder %v5520_v51, 89  ;;  %v6717_v51 = vmov 0 }
 0x29a   : > { %2186 = vst.msk [vmem:[#allocation3 + $0x50] sm:$0xff] %vm6610_vm0, %v2169_v10  ;;  %v2197_v6 = vld [vmem:[#allocation3 + $0x3d] sm:$0xff]  ;;  %v2134_v47 = vsel %vm2050_vm7, %v5705_v41, %v2120_v60  ;;  %vm6062_vm15 = vmand %vm6026_vm10, %vm6714_vm5  ;;  %vm634_vm10 = vcmp.ne.s32.totalorder %v622_v52, 9  ;;  %vm2052_vm5 = vcmp.gt.f32.partialorder %v5792_v38, 20.0 }
 0x29b   : > { %v4336_v29 = vpop.eup %4335  ;;  %v2317_v21 = vld [vmem:[#allocation3 + $0x47] sm:$0xff]  ;;  %2209 = vst.msk [vmem:[#allocation4 + $0x118] sm:$0xff] %vm6610_vm0, %v2197_v6  ;;  %2494 = vst.msk [vmem:[#allocation4 + $0xb8] sm:$0xff] %vm6610_vm0, %v6054_v20  ;;  %v2170_v41 = vsel %vm6047_vm4, %v2134_v47, 0.0  ;;  %v2578_v30 = vld [vmem:[#allocation3 + $0x3b] sm:$0xff] }
 0x29c   : > { %v2122_v37 = vmul.f32 0.6931472, %v4336_v29  ;;  %2348 = vrot.lane.b32.xlu1 %v2317_v21, %s4395_s11  ;;  %v6075_v50 = vld [vmem:[#allocation3 + $0x41] sm:$0xff]  ;;  %2306 = vst.msk [vmem:[#allocation4 + $0x148] sm:$0xff] %vm6610_vm0, %v2317_v21  ;;  %2187 = vst.msk [vmem:[#allocation3 + $0x58] sm:$0xff] %vm6610_vm0, %v2170_v41  ;;  %v2406_v6 = vld [vmem:[#allocation3 + $0x11] sm:$0xff] }
 0x29d   : > { %v2198_v44 = vld [vmem:[#allocation3 + $0x45] sm:$0xff]  ;;  %2495 = vst.msk [vmem:[#allocation4 + $0xe0] sm:$0xff] %vm6610_vm0, %v6075_v50  ;;  %2250 = vrot.lane.b32.xlu0 %v2220_v40, %s4395_s11  ;;  %2590 = vst.msk [vmem:[#allocation4 + $0xc0] sm:$0xff] %vm6610_vm0, %v2578_v30  ;;  %v2502_v60 = vld [vmem:[#allocation3 + $0x1a] sm:$0xff] }
 0x29e   : > { %v2388_v13 = vld [vmem:[#allocation3 + $0x40] sm:$0xff]  ;;  %2210 = vst.msk [vmem:[#allocation4 + $0x140] sm:$0xff] %vm6610_vm0, %v2198_v44  ;;  %v2389_v1 = vld [vmem:[#allocation3 + $0x48] sm:$0xff]  ;;  %v2135_v0 = vsel %vm2051_vm2, %v5739_v27, %v2122_v37  ;;  %vm6094_vm7 = vmand %vm634_vm10, %vm646_vm9  ;;  %vm6719_vm2 = vcmask 516096  }
 0x29f   : > { %2400 = vst.msk [vmem:[#allocation4 + $0x100] sm:$0xff] %vm6610_vm0, %v2388_v13  ;;  %2401 = vst.msk [vmem:[#allocation4 + $0x128] sm:$0xff] %vm6610_vm0, %v2389_v1  ;;  %v2579_v7 = vld [vmem:[#allocation3 + $0x43] sm:$0xff]  ;;  %v2171_v31 = vsel %vm6062_vm15, %v2135_v0, 0.0  ;;  %v6718_v51 = vsel %vm6094_vm7, 4294967295, %v6717_v51  ;;  %v2505_v47 = vld [vmem:[#allocation3 + $0x32] sm:$0xff] }
 0x2a0   : > { %v2221_v9 = vld [vmem:[#allocation3 + $0x3e] sm:$0xff]  ;;  %2591 = vst.msk [vmem:[#allocation4 + $0xe8] sm:$0xff] %vm6610_vm0, %v2579_v7  ;;  %v4338_v48 = vpop.eup %4337  ;;  %2188 = vst.msk [vmem:[#allocation3 + $0x60] sm:$0xff] %vm6610_vm0, %v2171_v31  ;;  %v2504_v29 = vld [vmem:[#allocation3 + $0x2a] sm:$0xff] }
 0x2a1   : > { %2252 = vrot.lane.b32.xlu1 %v2221_v9, %s4395_s11  ;;  %v2124_v27 = vmul.f32 0.6931472, %v4338_v48  ;;  %v2318_v33 = vld [vmem:[#allocation3 + $0x4f] sm:$0xff]  ;;  %vm6720_vm10 = vmmov %vm6719_vm2  ;;  %v2503_v53 = vld [vmem:[#allocation3 + $0x22] sm:$0xff] }
 0x2a2   : > { %2350 = vrot.lane.b32.xlu0 %v2318_v33, %s4395_s11  ;;  %v6100_v39 = vld [vmem:[#allocation3 + $0x49] sm:$0xff]  ;;  %2307 = vst.msk [vmem:[#allocation4 + $0x170] sm:$0xff] %vm6610_vm0, %v2318_v33  ;;  %vm6721_vm9 = vmmov %vm6719_vm2  ;;  %v2506_v52 = vld [vmem:[#allocation3 + $0x3a] sm:$0xff] }
 0x2a3   : > { %v2199_v16 = vld [vmem:[#allocation3 + $0x4d] sm:$0xff]  ;;  %v2136_v28 = vsel %vm2052_vm5, %v5792_v38, %v2124_v27  ;;  %2496 = vst.msk [vmem:[#allocation4 + $0x108] sm:$0xff] %vm6610_vm0, %v6100_v39  ;;  %v2319_v45 = vld [vmem:[#allocation3 + $0x57] sm:$0xff]  ;;  %v2297_v2 = vld [vmem:[#allocation3 + $0x5f] sm:$0x1] }
 0x2a4   : > { %2211 = vst.msk [vmem:[#allocation4 + $0x168] sm:$0xff] %vm6610_vm0, %v2199_v16  ;;  %v2390_v42 = vld [vmem:[#allocation3 + $0x50] sm:$0xff]  ;;  %v2172_v43 = vsel %vm6094_vm7, %v2136_v28, 0.0  ;;  %v2222_v38 = vld [vmem:[#allocation3 + $0x46] sm:$0xff]  ;;  %2308 = vst.msk [vmem:[#allocation4 + $0x198] sm:$0xff] %vm6610_vm0, %v2319_v45 }
 0x2a5   : > { %v2580_v8 = vld [vmem:[#allocation3 + $0x4b] sm:$0xff]  ;;  %2402 = vst.msk [vmem:[#allocation4 + $0x150] sm:$0xff] %vm6610_vm0, %v2390_v42  ;;  %2352 = vrot.lane.b32.xlu1 %v2319_v45, %s4395_s11  ;;  %v2200_v61 = vld [vmem:[#allocation3 + $0x55] sm:$0xff]  ;;  %v2201_v22 = vld [vmem:[#allocation3 + $0x5d] sm:$0x1] }
 0x2a6   : > { %2592 = vst.msk [vmem:[#allocation4 + $0x110] sm:$0xff] %vm6610_vm0, %v2580_v8  ;;  %v6113_v24 = vld [vmem:[#allocation3 + $0x51] sm:$0xff]  ;;  %2254 = vrot.lane.b32.xlu0 %v2222_v38, %s4395_s11  ;;  %2212 = vst.msk [vmem:[#allocation4 + $0x190] sm:$0xff] %vm6610_vm0, %v2200_v61  ;;  %v2225_v10 = vld [vmem:[#allocation3 + $0x5e] sm:$0x1] }
 0x2a7   : > { %2189 = vst.msk [vmem:[#allocation3 + $0x68] sm:$0x1] %vm6719_vm2, %v2172_v43  ;;  %v2223_v12 = vld [vmem:[#allocation3 + $0x4e] sm:$0xff]  ;;  %v2415_v15 = vld [vmem:[#allocation3 + $0x59] sm:$0xff]  ;;  %v2321_v17 = vld [vmem:[#allocation3 + $0x67] sm:$0x1] }
 0x2a8   : > { %2309 = vst.msk [vmem:[#allocation4 + $0x1c0] sm:$0x1] %vm6720_vm10, %v2297_v2  ;;  %v2391_v35 = vld [vmem:[#allocation3 + $0x58] sm:$0xff]  ;;  %v2392_v3 = vld [vmem:[#allocation3 + $0x60] sm:$0xff]  ;;  %vm6722_vm5 = vmmov %vm6719_vm2  ;;  %vm6723_vm10 = vcmask 1048064  }
 0x2a9   : > { %2497 = vst.msk [vmem:[#allocation4 + $0x130] sm:$0xff] %vm6610_vm0, %v6113_v24  ;;  %2256 = vrot.lane.b32.xlu1 %v2223_v12, %s4395_s11  ;;  %v2320_v32 = vld [vmem:[#allocation3 + $0x5f] sm:$0xff]  ;;  %2498 = vst.msk [vmem:[#allocation4 + $0x158] sm:$0xff] %vm6610_vm0, %v2415_v15  ;;  %v2581_v25 = vld [vmem:[#allocation3 + $0x53] sm:$0xff] }
 0x2aa   : > { %2213 = vst.msk [vmem:[#allocation4 + $0x1b8] sm:$0x1] %vm6721_vm9, %v2201_v22  ;;  %2354 = vrot.lane.b32.xlu0 %v2320_v32, %s4395_s11  ;;  %v2582_v56 = vld [vmem:[#allocation3 + $0x5b] sm:$0xff]  ;;  %v2509_v41 = vld [vmem:[#allocation3 + $0x52] sm:$0xff]  ;;  %v2512_v37 = vld [vmem:[#allocation3 + $0x6a] sm:$0xff] }
 0x2ab   : > { %2403 = vst.msk [vmem:[#allocation4 + $0x178] sm:$0xff] %vm6610_vm0, %v2391_v35  ;;  %2404 = vst.msk [vmem:[#allocation4 + $0x1a0] sm:$0xff] %vm6610_vm0, %v2392_v3  ;;  %v2224_v19 = vld [vmem:[#allocation3 + $0x56] sm:$0xff]  ;;  %v2507_v21 = vld [vmem:[#allocation3 + $0x42] sm:$0xff] }
 0x2ac   : > { %2593 = vst.msk [vmem:[#allocation4 + $0x138] sm:$0xff] %vm6610_vm0, %v2581_v25  ;;  %2594 = vst.msk [vmem:[#allocation4 + $0x160] sm:$0xff] %vm6610_vm0, %v2582_v56  ;;  %v2417_v44 = vld [vmem:[#allocation3 + $0x69] sm:$0x1]  ;;  %v4236_v8 = vld [vmem:[%s6589_s3 + $0x114] ss:$8 sps:$4 sm:$0xff]  }
 0x2ad   : > { %2356 = vrot.lane.b32.xlu1 %v2321_v17, %s4395_s11  ;;  %vm6724_vm9 = vmmov %vm6723_vm10  ;;  %v4231_v16 = vld [vmem:[%s6589_s3 + $0x100] ss:$8 sps:$4 sm:$0xff]   ;;  %v4234_v38 = vld [vmem:[%s6589_s3 + $0x110] ss:$8 sps:$4 sm:$0xff]  }
 0x2ae   : > { %v2416_v63 = vld [vmem:[#allocation3 + $0x61] sm:$0xff]  ;;  %2258 = vrot.lane.b32.xlu0 %v2224_v19, %s4395_s11  ;;  %v4242_v56 = vld [vmem:[%s6589_s3 + $0x134] ss:$8 sps:$4 sm:$0xff]  }
 0x2af   : > { %v2393_v14 = vld [vmem:[#allocation3 + $0x68] sm:$0x1]  ;;  %2499 = vst.msk [vmem:[#allocation4 + $0x180] sm:$0xff] %vm6610_vm0, %v2416_v63  ;;  %v4239_v22 = vld [vmem:[%s6589_s3 + $0x124] ss:$8 sps:$4 sm:$0xff]  }
 0x2b0   : > { %2405 = vst.msk [vmem:[#allocation4 + $0x1c8] sm:$0x1] %vm6722_vm5, %v2393_v14  ;;  %v2583_v34 = vld [vmem:[#allocation3 + $0x63] sm:$0xff]  ;;  %vm6725_vm5 = vmmov %vm6724_vm9  ;;  %v4240_v14 = vld [vmem:[%s6589_s3 + $0x130] ss:$8 sps:$4 sm:$0xff]  }
 0x2b1   : > { %2595 = vst.msk [vmem:[#allocation4 + $0x188] sm:$0xff] %vm6610_vm0, %v2583_v34  ;;  %2260 = vrot.lane.b32.xlu1 %v2225_v10, %s4395_s11  ;;  %v4237_v35 = vld [vmem:[%s6589_s3 + $0x120] ss:$8 sps:$4 sm:$0xff]  }
 0x2b2   : > { %2526 = vrot.lane.b32.xlu0 %v2502_v60, %s4395_s11  ;;  %v4245_v60 = vld [vmem:[%s6589_s3 + $0x144] ss:$8 sps:$4 sm:$0xff]  }
 0x2b5   : > { %2528 = vrot.lane.b32.xlu1 %v2503_v53, %s4395_s11 }
 0x2b6   : > { %2430 = vrot.lane.b32.xlu0 %v2406_v6, %s4395_s11 }
 0x2b9   : > { %2432 = vrot.lane.b32.xlu1 %v5877_v49, %s4395_s11  ;;  %v2508_v49 = vld [vmem:[#allocation3 + $0x4a] sm:$0xff] }
 0x2ba   : > { %2530 = vrot.lane.b32.xlu0 %v2504_v29, %s4395_s11  ;;  %v4243_v29 = vld [vmem:[%s6589_s3 + $0x140] ss:$8 sps:$4 sm:$0xff]  }
 0x2bd   : > { %2532 = vrot.lane.b32.xlu1 %v2505_v47, %s4395_s11 }
 0x2be   : > { %2434 = vrot.lane.b32.xlu0 %v5903_v58, %s4395_s11  ;;  %v2488_v58 = vld [vmem:[#allocation3 + $0x69] sm:$0xff] }
 0x2bf   : > { %2500 = vst.msk [vmem:[#allocation4 + $0x1a8] sm:$0xff] %vm6610_vm0, %v2488_v58  ;;  %v4246_v58 = vld [vmem:[%s6589_s3 + $0x150] ss:$8 sps:$4 sm:$0xff]  }
 0x2c1   : > { %2436 = vrot.lane.b32.xlu1 %v5977_v23, %s4395_s11  ;;  %v2489_v23 = vld [vmem:[#allocation3 + $0x71] sm:$0x1] }
 0x2c2   : > { %2534 = vrot.lane.b32.xlu0 %v2506_v52, %s4395_s11  ;;  %2501 = vst.msk [vmem:[#allocation4 + $0x1d0] sm:$0x1] %vm6719_vm2, %v2489_v23  ;;  %vm6726_vm2 = vmmov %vm6725_vm5 }
 0x2c3   : > { %vm6727_vm0 = vmmov %vm6726_vm2 }
 0x2c4   : > { %vm6728_vm7 = vmmov %vm6727_vm0 }
 0x2c5   : > { %2536 = vrot.lane.b32.xlu1 %v2507_v21, %s4395_s11 }
 0x2c6   : > { %2438 = vrot.lane.b32.xlu0 %v5995_v59, %s4395_s11  ;;  %v2510_v59 = vld [vmem:[#allocation3 + $0x5a] sm:$0xff] }
 0x2c9   : > { %2440 = vrot.lane.b32.xlu1 %v6054_v20, %s4395_s11  ;;  %v2511_v20 = vld [vmem:[#allocation3 + $0x62] sm:$0xff] }
 0x2ca   : > { %2538 = vrot.lane.b32.xlu0 %v2508_v49, %s4395_s11  ;;  %v4248_v49 = vld [vmem:[%s6589_s3 + $0x154] ss:$8 sps:$4 sm:$0xff]  }
 0x2cd   : > { %2540 = vrot.lane.b32.xlu1 %v2509_v41, %s4395_s11 }
 0x2ce   : > { %2442 = vrot.lane.b32.xlu0 %v6075_v50, %s4395_s11  ;;  %v2513_v50 = vld [vmem:[#allocation3 + $0x72] sm:$0x1] }
 0x2d1   : > { %2444 = vrot.lane.b32.xlu1 %v6100_v39, %s4395_s11 }
 0x2d2   : > { %2542 = vrot.lane.b32.xlu0 %v2510_v59, %s4395_s11 }
 0x2d5   : > { %2544 = vrot.lane.b32.xlu1 %v2511_v20, %s4395_s11 }
 0x2d6   : > { %2446 = vrot.lane.b32.xlu0 %v6113_v24, %s4395_s11 }
 0x2d9   : > { %2448 = vrot.lane.b32.xlu1 %v2415_v15, %s4395_s11 }
 0x2da   : > { %2546 = vrot.lane.b32.xlu0 %v2512_v37, %s4395_s11 }
 0x2dd   : > { %2548 = vrot.lane.b32.xlu1 %v2513_v50, %s4395_s11  ;;  %v4251_v50 = vld [vmem:[%s6589_s3 + $0x164] ss:$8 sps:$4 sm:$0xff]  }
 0x2de   : > { %2450 = vrot.lane.b32.xlu0 %v2416_v63, %s4395_s11 }
 0x2e1   : > { %2452 = vrot.lane.b32.xlu1 %v2417_v44, %s4395_s11  ;;  %v2584_v44 = vld [vmem:[#allocation3 + $0x6b] sm:$0xff] }
 0x2f2   : > { %v2335_v13 = vpop.permute.xlu0 %2334 }
 0x2f3   : > { %2370 = vst.msk [vmem:[#allocation4 + $0x8] sm:$0xff] %vm6723_vm10, %v2335_v13  ;;  %vm6729_vm10 = vmmov %vm6727_vm0  ;;  %v2585_v13 = vld [vmem:[#allocation3 + $0x73] sm:$0x1] }
 0x2f5   : > { %v2337_v40 = vpop.permute.xlu1 %2336 }
 0x2f6   : > { %2371 = vst.msk [vmem:[#allocation4 + $0x30] sm:$0xff] %vm6724_vm9, %v2337_v40  ;;  %v2239_v1 = vpop.permute.xlu0 %2238  ;;  %vm6730_vm9 = vmmov %vm6727_vm0 }
 0x2f7   : > { %2274 = vst.msk [vmem:[#allocation4] sm:$0xff] %vm6725_vm5, %v2239_v1  ;;  %vm6732_vm5 = vmmov %vm6727_vm0  ;;  %v4249_v1 = vld [vmem:[%s6589_s3 + $0x160] ss:$8 sps:$4 sm:$0xff]  }
 0x2f9   : > { %v2241_v0 = vpop.permute.xlu1 %2240 }
 0x2fa   : > { %2275 = vst.msk [vmem:[#allocation4 + $0x28] sm:$0xff] %vm6726_vm2, %v2241_v0  ;;  %v2599_v31 = vld [vmem:[#allocation4 + $0x8] sm:$0xff]  ;;  %vm6733_vm2 = vmmov %vm6727_vm0 }
 0x2fb   : > { %v2339_v30 = vpop.permute.xlu0 %2338 }
 0x2fc   : > { %2372 = vst.msk [vmem:[#allocation4 + $0x58] sm:$0xff] %vm6727_vm0, %v2339_v30 }
 0x2fd   : > { %v2341_v7 = vpop.permute.xlu1 %2340  ;;  %v2604_v9 = vld [vmem:[#allocation4 + $0x30] sm:$0xff] }
 0x2fe   : > { %2373 = vst.msk [vmem:[#allocation4 + $0x80] sm:$0xff] %vm6728_vm7, %v2341_v7  ;;  %v2659_v48 = vpack.c.bf16 %v2604_v9, %v2599_v31  ;;  %v2598_v33 = vld [vmem:[#allocation4] sm:$0xff]  ;;  %vm6731_vm7 = vmmov %vm6727_vm0 }
 0x2ff   : > { %v2243_v27 = vpop.permute.xlu0 %2242  ;;  %v4254_v9 = vld [vmem:[%s6589_s3 + $0x174] ss:$8 sps:$4 sm:$0xff]  }
 0x300   : > { %2276 = vst.msk [vmem:[#allocation4 + $0x50] sm:$0xff] %vm6729_vm10, %v2243_v27  ;;  %3170 = vmatprep.mubr.bf16.mxu1 %v2659_v48  ;;  %vm6734_vm10 = vmmov %vm6727_vm0  ;;  %v4252_v27 = vld [vmem:[%s6589_s3 + $0x170] ss:$8 sps:$4 sm:$0xff]  }
 0x301   : > { %v2603_v28 = vld [vmem:[#allocation4 + $0x28] sm:$0xff] }
 0x302   : > { %v2245_v39 = vpop.permute.xlu1 %2244  ;;  %v2658_v42 = vpack.c.bf16 %v2603_v28, %v2598_v33  ;;  %v4257_v28 = vld [vmem:[%s6589_s3 + $0x184] ss:$8 sps:$4 sm:$0xff]  }
 0x303   : > { %2277 = vst.msk [vmem:[#allocation4 + $0x78] sm:$0xff] %vm6730_vm9, %v2245_v39  ;;  %v2343_v43 = vpop.permute.xlu0 %2342  ;;  %v2609_v24 = vld [vmem:[#allocation4 + $0x58] sm:$0xff]  ;;  %vm6735_vm9 = vmmov %vm6727_vm0 }
 0x304   : > { %2374 = vst.msk [vmem:[#allocation4 + $0xa8] sm:$0xff] %vm6727_vm0, %v2343_v43  ;;  %3171 = vmatmul.mubr.bf16.vlgmr.msra.gmra.mrb[0].mxu1 %v2658_v42 }
 0x305   : > { %3232 = vmatpush1.bf16.msra.mxu1 %v4231_v16  ;;  %v2614_v2 = vld [vmem:[#allocation4 + $0x80] sm:$0xff] }
 0x306   : > { %v2345_v45 = vpop.permute.xlu1 %2344  ;;  %3233 = vmatprep.subr.bf16.mxu1 %v4236_v8  ;;  %v2664_v61 = vpack.c.bf16 %v2614_v2, %v2609_v24 }
 0x307   : > { %2375 = vst.msk [vmem:[#allocation4 + $0xd0] sm:$0xff] %vm6731_vm7, %v2345_v45  ;;  %v2247_v12 = vpop.permute.xlu0 %2246  ;;  %v2608_v32 = vld [vmem:[#allocation4 + $0x50] sm:$0xff]  ;;  %vm6736_vm7 = vmmov %vm6727_vm0 }
 0x308   : > { %2278 = vst.msk [vmem:[#allocation4 + $0xa0] sm:$0xff] %vm6732_vm5, %v2247_v12  ;;  %3180 = vmatprep.mubr.bf16.mxu1 %v2664_v61  ;;  %vm6737_vm5 = vmmov %vm6727_vm0  ;;  %v4255_v45 = vld [vmem:[%s6589_s3 + $0x180] ss:$8 sps:$4 sm:$0xff]  }
 0x309   : > { %3234 = vmatpush1.bf16.msra.mxu1 %v4234_v38 }
 0x30a   : > { %v2249_v15 = vpop.permute.xlu1 %2248  ;;  %v2613_v3 = vld [vmem:[#allocation4 + $0x78] sm:$0xff]  ;;  %3235 = vmatprep.subr.bf16.mxu1 %v4239_v22 }
 0x30b   : > { %2279 = vst.msk [vmem:[#allocation4 + $0xc8] sm:$0xff] %vm6733_vm2, %v2249_v15  ;;  %v2663_v25 = vpack.c.bf16 %v2613_v3, %v2608_v32  ;;  %v2347_v17 = vpop.permute.xlu0 %2346  ;;  %v2619_v19 = vld [vmem:[#allocation4 + $0xa8] sm:$0xff]  ;;  %vm6738_vm2 = vmmov %vm6727_vm0  ;;  %v4260_v22 = vld [vmem:[%s6589_s3 + $0x194] ss:$8 sps:$4 sm:$0xff]  }
 0x30c   : > { %2376 = vst.msk [vmem:[#allocation4 + $0xf8] sm:$0xff] %vm6734_vm10, %v2347_v17  ;;  %vm6739_vm10 = vcmask 523264   ;;  %v4258_v15 = vld [vmem:[%s6589_s3 + $0x190] ss:$8 sps:$4 sm:$0xff]  }
 0x30d   : > { %3181 = vmatmul.mubr.bf16.gmra.mrb[4].mxu1 %v2663_v25  ;;  %2596 = vst.msk [vmem:[#allocation4 + $0x1b0] sm:$0xff] %vm6739_vm10, %v2584_v44  ;;  %vm6744_vm10 = vmmov %vm6727_vm0  ;;  %v4275_v44 = vld [vmem:[%s6589_s3 + $0x1e4] ss:$8 sps:$4 sm:$0xff]  }
 0x30e   : > { %3236 = vmatpush1.bf16.msra.mxu1 %v4237_v35  ;;  %v2349_v63 = vpop.permute.xlu1 %2348  ;;  %v2624_v34 = vld [vmem:[#allocation4 + $0xd0] sm:$0xff] }
 0x30f   : > { %2377 = vst.msk [vmem:[#allocation4 + $0x120] sm:$0xff] %vm6735_vm9, %v2349_v63  ;;  %3237 = vmatprep.subr.bf16.mxu1 %v4242_v56  ;;  %v2669_v10 = vpack.c.bf16 %v2624_v34, %v2619_v19  ;;  %v2251_v53 = vpop.permute.xlu0 %2250  ;;  %v2618_v47 = vld [vmem:[#allocation4 + $0xa0] sm:$0xff]  ;;  %vm6740_vm9 = vcmask 516096   ;;  %v4263_v56 = vld [vmem:[%s6589_s3 + $0x1a4] ss:$8 sps:$4 sm:$0xff]  }
 0x310   : > { %2280 = vst.msk [vmem:[#allocation4 + $0xf0] sm:$0xff] %vm6727_vm0, %v2251_v53  ;;  %v4261_v63 = vld [vmem:[%s6589_s3 + $0x1a0] ss:$8 sps:$4 sm:$0xff]  }
 0x311   : > { %3190 = vmatprep.mubr.bf16.mxu1 %v2669_v10  ;;  %2597 = vst.msk [vmem:[#allocation4 + $0x1d8] sm:$0x1] %vm6740_vm9, %v2585_v13 }
 0x312   : > { %3238 = vmatpush1.bf16.msra.mxu1 %v4240_v14  ;;  %v2623_v52 = vld [vmem:[#allocation4 + $0xc8] sm:$0xff] }
 0x313   : > { %v2253_v6 = vpop.permute.xlu1 %2252  ;;  %3239 = vmatprep.subr.bf16.mxu1 %v4245_v60  ;;  %v2668_v21 = vpack.c.bf16 %v2623_v52, %v2618_v47  ;;  %v2629_v23 = vld [vmem:[#allocation4 + $0xf8] sm:$0xff] }
 0x314   : > { %2281 = vst.msk [vmem:[#allocation4 + $0x118] sm:$0xff] %vm6736_vm7, %v2253_v6  ;;  %v2351_v41 = vpop.permute.xlu0 %2350  ;;  %vm6741_vm7 = vmmov %vm6727_vm0  ;;  %v4266_v60 = vld [vmem:[%s6589_s3 + $0x1b4] ss:$8 sps:$4 sm:$0xff]   ;;  %v4264_v6 = vld [vmem:[%s6589_s3 + $0x1b0] ss:$8 sps:$4 sm:$0xff]  }
 0x315   : > { %2378 = vst.msk [vmem:[#allocation4 + $0x148] sm:$0xff] %vm6737_vm5, %v2351_v41  ;;  %3191 = vmatmul.mubr.bf16.gmra.mrb[8].mxu1 %v2668_v21  ;;  %vm6742_vm5 = vmmov %vm6727_vm0 }
 0x316   : > { %3240 = vmatpush1.bf16.msra.mxu1 %v4243_v29  ;;  %v2634_v59 = vld [vmem:[#allocation4 + $0x120] sm:$0xff] }
 0x317   : > { %v2353_v20 = vpop.permute.xlu1 %2352  ;;  %3241 = vmatprep.subr.bf16.mxu1 %v4248_v49  ;;  %v2674_v37 = vpack.c.bf16 %v2634_v59, %v2629_v23  ;;  %v2628_v0 = vld [vmem:[#allocation4 + $0xf0] sm:$0xff]  ;;  %v4272_v59 = vld [vmem:[%s6589_s3 + $0x1d4] ss:$8 sps:$4 sm:$0xff]  }
 0x318   : > { %2379 = vst.msk [vmem:[#allocation4 + $0x170] sm:$0xff] %vm6738_vm2, %v2353_v20  ;;  %v2255_v40 = vpop.permute.xlu0 %2254  ;;  %vm6743_vm2 = vcmask 1040896   ;;  %v4269_v49 = vld [vmem:[%s6589_s3 + $0x1c4] ss:$8 sps:$4 sm:$0xff]  }
 0x319   : > { %2282 = vst.msk [vmem:[#allocation4 + $0x140] sm:$0xff] %vm6727_vm0, %v2255_v40  ;;  %3200 = vmatprep.mubr.bf16.mxu1 %v2674_v37  ;;  %vm6745_vm9 = vmmov %vm6743_vm2  ;;  %v4270_v37 = vld [vmem:[%s6589_s3 + $0x1d0] ss:$8 sps:$4 sm:$0xff]   ;;  %v4273_v40 = vld [vmem:[%s6589_s3 + $0x1e0] ss:$8 sps:$4 sm:$0xff]  }
 0x31a   : > { %3242 = vmatpush1.bf16.msra.mxu1 %v4246_v58  ;;  %v4267_v58 = vld [vmem:[%s6589_s3 + $0x1c0] ss:$8 sps:$4 sm:$0xff]  }
 0x31b   : > { %v2633_v30 = vld [vmem:[#allocation4 + $0x118] sm:$0xff]  ;;  %v2257_v7 = vpop.permute.xlu1 %2256  ;;  %3243 = vmatprep.subr.bf16.mxu1 %v4251_v50 }
 0x31c   : > { %v2673_v31 = vpack.c.bf16 %v2633_v30, %v2628_v0  ;;  %2283 = vst.msk [vmem:[#allocation4 + $0x168] sm:$0xff] %vm6741_vm7, %v2257_v7  ;;  %v2355_v48 = vpop.permute.xlu0 %2354  ;;  %v2639_v39 = vld [vmem:[#allocation4 + $0x148] sm:$0xff]  ;;  %vm6746_vm7 = vmmov %vm6727_vm0  ;;  %v4278_v0 = vld [vmem:[%s6589_s3 + $0x1f4] ss:$8 sps:$4 sm:$0xff]  }
 0x31d   : > { %2380 = vst.msk [vmem:[#allocation4 + $0x198] sm:$0xff] %vm6742_vm5, %v2355_v48  ;;  %vm6747_vm5 = vmmov %vm6727_vm0  ;;  %v4276_v7 = vld [vmem:[%s6589_s3 + $0x1f0] ss:$8 sps:$4 sm:$0xff]  }
 0x31e   : > { %3201 = vmatmul.mubr.bf16.gmra.mrb[12].mxu1 %v2673_v31 }
 0x31f   : > { %3244 = vmatpush1.bf16.msra.mxu1 %v4249_v1  ;;  %v2357_v33 = vpop.permute.xlu1 %2356  ;;  %v2644_v16 = vld [vmem:[#allocation4 + $0x170] sm:$0xff] }
 0x320   : > { %3245 = vmatprep.subr.bf16.mxu1 %v4254_v9  ;;  %2381 = vst.msk [vmem:[#allocation4 + $0x1c0] sm:$0x1] %vm6743_vm2, %v2357_v33  ;;  %v2259_v42 = vpop.permute.xlu0 %2258  ;;  %v2679_v8 = vpack.c.bf16 %v2644_v16, %v2639_v39  ;;  %v2638_v38 = vld [vmem:[#allocation4 + $0x140] sm:$0xff]  ;;  %vm6748_vm2 = vmmov %vm6727_vm0  ;;  %v4281_v9 = vld [vmem:[%s6589_s3 + $0x204] ss:$8 sps:$4 sm:$0xff]  }
 0x321   : > { %2284 = vst.msk [vmem:[#allocation4 + $0x190] sm:$0xff] %vm6744_vm10, %v2259_v42  ;;  %vm6749_vm10 = vmmov %vm6727_vm0  ;;  %v4279_v16 = vld [vmem:[%s6589_s3 + $0x200] ss:$8 sps:$4 sm:$0xff]  }
 0x322   : > { %3210 = vmatprep.mubr.bf16.mxu1 %v2679_v8 }
 0x323   : > { %3246 = vmatpush1.bf16.msra.mxu1 %v4252_v27  ;;  %v2261_v43 = vpop.permute.xlu1 %2260  ;;  %v2643_v24 = vld [vmem:[#allocation4 + $0x168] sm:$0xff] }
 0x324   : > { %3247 = vmatprep.subr.bf16.mxu1 %v4257_v28  ;;  %2285 = vst.msk [vmem:[#allocation4 + $0x1b8] sm:$0x1] %vm6745_vm9, %v2261_v43  ;;  %v2527_v2 = vpop.permute.xlu0 %2526  ;;  %v2678_v61 = vpack.c.bf16 %v2643_v24, %v2638_v38  ;;  %v2649_v35 = vld [vmem:[#allocation4 + $0x198] sm:$0xff]  ;;  %vm6750_vm9 = vmmov %vm6727_vm0 }
 0x325   : > { %2562 = vst.msk [vmem:[#allocation4 + $0x18] sm:$0xff] %vm6727_vm0, %v2527_v2  ;;  %v4284_v43 = vld [vmem:[%s6589_s3 + $0x214] ss:$8 sps:$4 sm:$0xff]   ;;  %v4282_v24 = vld [vmem:[%s6589_s3 + $0x210] ss:$8 sps:$4 sm:$0xff]  }
 0x326   : > { %3211 = vmatmul.mubr.bf16.gmra.mrb[16].mxu1 %v2678_v61  ;;  %v4287_v61 = vld [vmem:[%s6589_s3 + $0x224] ss:$8 sps:$4 sm:$0xff]  }
 0x327   : > { %3248 = vmatpush1.bf16.msra.mxu1 %v4255_v45  ;;  %v2529_v12 = vpop.permute.xlu1 %2528  ;;  %v2654_v32 = vld [vmem:[#allocation4 + $0x1c0] sm:$0x1] }
 0x328   : > { %2563 = vst.msk [vmem:[#allocation4 + $0x40] sm:$0xff] %vm6746_vm7, %v2529_v12  ;;  %v2431_v3 = vpop.permute.xlu0 %2430  ;;  %3249 = vmatprep.subr.bf16.mxu1 %v4260_v22  ;;  %v2684_v25 = vpack.c.bf16 %v2654_v32, %v2649_v35  ;;  %v2648_v14 = vld [vmem:[#allocation4 + $0x190] sm:$0xff]  ;;  %vm6751_vm7 = vmmov %vm6727_vm0 }
 0x329   : > { %2466 = vst.msk [vmem:[#allocation4 + $0x10] sm:$0xff] %vm6747_vm5, %v2431_v3  ;;  %vm6752_vm5 = vmmov %vm6727_vm0  ;;  %v4285_v32 = vld [vmem:[%s6589_s3 + $0x220] ss:$8 sps:$4 sm:$0xff]  }
 0x32a   : > { %3220 = vmatprep.mubr.bf16.mxu1 %v2684_v25 }
 0x32b   : > { %3250 = vmatpush1.bf16.msra.mxu1 %v4258_v15  ;;  %v2433_v17 = vpop.permute.xlu1 %2432  ;;  %v2653_v19 = vld [vmem:[#allocation4 + $0x1b8] sm:$0x1] }
 0x32c   : > { %2467 = vst.msk [vmem:[#allocation4 + $0x38] sm:$0xff] %vm6748_vm2, %v2433_v17  ;;  %v2531_v34 = vpop.permute.xlu0 %2530  ;;  %3251 = vmatprep.subr.bf16.mxu1 %v4263_v56  ;;  %v2683_v10 = vpack.c.bf16 %v2653_v19, %v2648_v14  ;;  %v2601_v29 = vld [vmem:[#allocation4 + $0x18] sm:$0xff]  ;;  %vm6753_vm2 = vmmov %vm6727_vm0 }
 0x32d   : > { %2564 = vst.msk [vmem:[#allocation4 + $0x68] sm:$0xff] %vm6749_vm10, %v2531_v34  ;;  %vm6754_vm10 = vmmov %vm6727_vm0  ;;  %v4290_v17 = vld [vmem:[%s6589_s3 + $0x234] ss:$8 sps:$4 sm:$0xff]   ;;  %v4288_v19 = vld [vmem:[%s6589_s3 + $0x230] ss:$8 sps:$4 sm:$0xff]  }
 0x32e   : > { %3221 = vmatmul.mubr.bf16.gmra.mrb[20].mxu1 %v2683_v10 }
 0x32f   : > { %3252 = vmatpush1.bf16.msra.mxu1 %v4261_v63  ;;  %v2533_v53 = vpop.permute.xlu1 %2532  ;;  %v2606_v47 = vld [vmem:[#allocation4 + $0x40] sm:$0xff] }
 0x330   : > { %2565 = vst.msk [vmem:[#allocation4 + $0x90] sm:$0xff] %vm6750_vm9, %v2533_v53  ;;  %v2435_v52 = vpop.permute.xlu0 %2434  ;;  %3253 = vmatprep.subr.bf16.mxu1 %v4266_v60  ;;  %v2661_v21 = vpack.c.bf16 %v2606_v47, %v2601_v29  ;;  %vm6755_vm9 = vmmov %vm6727_vm0  ;;  %v2600_v39 = vld [vmem:[#allocation4 + $0x10] sm:$0xff] }
 0x331   : > { %2468 = vst.msk [vmem:[#allocation4 + $0x60] sm:$0xff] %vm6727_vm0, %v2435_v52 }
 0x332   : > { %3263 = vmatprep.mubr.bf16.mxu1 %v2661_v21 }
 0x333   : > { %3254 = vmatpush1.bf16.msra.mxu1 %v4264_v6  ;;  %v2437_v41 = vpop.permute.xlu1 %2436  ;;  %v2605_v48 = vld [vmem:[#allocation4 + $0x38] sm:$0xff] }
 0x334   : > { %2469 = vst.msk [vmem:[#allocation4 + $0x88] sm:$0xff] %vm6751_vm7, %v2437_v41  ;;  %v2535_v23 = vpop.permute.xlu0 %2534  ;;  %3255 = vmatprep.subr.bf16.mxu1 %v4269_v49  ;;  %vm6756_vm7 = vmmov %vm6727_vm0  ;;  %v2660_v42 = vpack.c.bf16 %v2605_v48, %v2600_v39  ;;  %v2611_v8 = vld [vmem:[#allocation4 + $0x68] sm:$0xff] }
 0x335   : > { %2566 = vst.msk [vmem:[#allocation4 + $0xb8] sm:$0xff] %vm6752_vm5, %v2535_v23  ;;  %vm6757_vm5 = vmmov %vm6727_vm0 }
 0x337   : > { %3256 = vmatpush1.bf16.msra.mxu1 %v4267_v58  ;;  %v2537_v20 = vpop.permute.xlu1 %2536  ;;  %v2616_v27 = vld [vmem:[#allocation4 + $0x90] sm:$0xff] }
 0x338   : > { %2567 = vst.msk [vmem:[#allocation4 + $0xe0] sm:$0xff] %vm6753_vm2, %v2537_v20  ;;  %v2439_v50 = vpop.permute.xlu0 %2438  ;;  %3257 = vmatprep.subr.bf16.mxu1 %v4272_v59  ;;  %vm6758_vm2 = vmmov %vm6727_vm0  ;;  %v2666_v45 = vpack.c.bf16 %v2616_v27, %v2611_v8  ;;  %v2610_v35 = vld [vmem:[#allocation4 + $0x60] sm:$0xff]  ;;  %v2617_v27 = vld [vmem:[#allocation4 + $0x98] sm:$0xff] }
 0x339   : > { %2470 = vst.msk [vmem:[#allocation4 + $0xb0] sm:$0xff] %vm6754_vm10, %v2439_v50  ;;  %vm6759_vm10 = vmmov %vm6727_vm0  ;;  %v2637_v8 = vld [vmem:[#allocation4 + $0x138] sm:$0xff] }
 0x33b   : > { %3258 = vmatpush1.bf16.msra.mxu1 %v4270_v37  ;;  %v2441_v13 = vpop.permute.xlu1 %2440  ;;  %v2615_v22 = vld [vmem:[#allocation4 + $0x88] sm:$0xff] }
 0x33c   : > { %2471 = vst.msk [vmem:[#allocation4 + $0xd8] sm:$0xff] %vm6755_vm9, %v2441_v13  ;;  %v2539_v1 = vpop.permute.xlu0 %2538  ;;  %3259 = vmatprep.subr.bf16.mxu1 %v4275_v44  ;;  %vm6760_vm9 = vmmov %vm6727_vm0  ;;  %v2665_v25 = vpack.c.bf16 %v2615_v22, %v2610_v35  ;;  %v2621_v56 = vld [vmem:[#allocation4 + $0xb8] sm:$0xff] }
 0x33d   : > { %2568 = vst.msk [vmem:[#allocation4 + $0x108] sm:$0xff] %vm6727_vm0, %v2539_v1  ;;  %v2657_v22 = vld [vmem:[#allocation4 + $0x1d8] sm:$0x1] }
 0x33f   : > { %3260 = vmatpush1.bf16.msra.mxu1 %v4273_v40  ;;  %v2541_v30 = vpop.permute.xlu1 %2540  ;;  %v2626_v12 = vld [vmem:[#allocation4 + $0xe0] sm:$0xff] }
 0x340   : > { %2569 = vst.msk [vmem:[#allocation4 + $0x130] sm:$0xff] %vm6756_vm7, %v2541_v30  ;;  %v2443_v31 = vpop.permute.xlu0 %2442  ;;  %3261 = vmatprep.subr.bf16.mxu1 %v4278_v0  ;;  %vm6761_vm7 = vmmov %vm6727_vm0  ;;  %v2671_v63 = vpack.c.bf16 %v2626_v12, %v2621_v56  ;;  %v2620_v6 = vld [vmem:[#allocation4 + $0xb0] sm:$0xff] }
 0x341   : > { %2472 = vst.msk [vmem:[#allocation4 + $0x100] sm:$0xff] %vm6757_vm5, %v2443_v31  ;;  %vm6762_vm5 = vmmov %vm6727_vm0  ;;  %v2607_v31 = vld [vmem:[#allocation4 + $0x48] sm:$0xff] }
 0x343   : > { %3262 = vmatpush1.bf16.msra.mxu1 %v4276_v7  ;;  %v2445_v33 = vpop.permute.xlu1 %2444  ;;  %v2625_v10 = vld [vmem:[#allocation4 + $0xd8] sm:$0xff]  ;;  %v6766_v7 = vmov 0  }
 0x344   : > { %2473 = vst.msk [vmem:[#allocation4 + $0x128] sm:$0xff] %vm6758_vm2, %v2445_v33  ;;  %v2543_v28 = vpop.permute.xlu0 %2542  ;;  %3324 = vmatprep.subr.bf16.mxu1 %v4281_v9  ;;  %vm6763_vm2 = vcmask 1040896   ;;  %v2670_v29 = vpack.c.bf16 %v2625_v10, %v2620_v6  ;;  %v2631_v47 = vld [vmem:[#allocation4 + $0x108] sm:$0xff]  ;;  %v2602_v9 = vld [vmem:[#allocation4 + $0x20] sm:$0xff]  ;;  %v2612_v33 = vld [vmem:[#allocation4 + $0x70] sm:$0xff] }
 0x345   : > { %2570 = vst.msk [vmem:[#allocation4 + $0x158] sm:$0xff] %vm6759_vm10, %v2543_v28  ;;  %vm6764_vm10 = vmmov %vm6727_vm0  ;;  %v2662_v48 = vpack.c.bf16 %v2607_v31, %v2602_v9  ;;  %v2667_v39 = vpack.c.bf16 %v2617_v27, %v2612_v33  ;;  %v2622_v28 = vld [vmem:[#allocation4 + $0xc0] sm:$0xff] }
 0x346   : > { %3264 = vmatmul.mubr.bf16.vlgmr.msra.gmra.mrb[0].mxu1 %v2660_v42 }
 0x347   : > { %3273 = vmatprep.mubr.bf16.mxu1 %v2666_v45  ;;  %3325 = vmatpush1.bf16.msra.mxu1 %v4279_v16  ;;  %v2545_v38 = vpop.permute.xlu1 %2544  ;;  %v2636_v60 = vld [vmem:[#allocation4 + $0x130] sm:$0xff]  ;;  %v2627_v16 = vld [vmem:[#allocation4 + $0xe8] sm:$0xff] }
 0x348   : > { %2571 = vst.msk [vmem:[#allocation4 + $0x180] sm:$0xff] %vm6760_vm9, %v2545_v38  ;;  %v2447_v2 = vpop.permute.xlu0 %2446  ;;  %3326 = vmatprep.subr.bf16.mxu1 %v4284_v43  ;;  %vm6765_vm9 = vmmov %vm6763_vm2  ;;  %v2676_v52 = vpack.c.bf16 %v2636_v60, %v2631_v47  ;;  %v2630_v41 = vld [vmem:[#allocation4 + $0x100] sm:$0xff]  ;;  %v2672_v42 = vpack.c.bf16 %v2627_v16, %v2622_v28  ;;  %v2632_v43 = vld [vmem:[#allocation4 + $0x110] sm:$0xff] }
 0x349   : > { %2474 = vst.msk [vmem:[#allocation4 + $0x150] sm:$0xff] %vm6727_vm0, %v2447_v2  ;;  %vm6767_vm0 = vcmask 523264   ;;  %v2677_v45 = vpack.c.bf16 %v2637_v8, %v2632_v43  ;;  %v2647_v38 = vld [vmem:[#allocation4 + $0x188] sm:$0xff] }
 0x34b   : > { %v2449_v15 = vpop.permute.xlu1 %2448  ;;  %3327 = vmatpush1.bf16.msra.mxu1 %v4282_v24  ;;  %v2635_v21 = vld [vmem:[#allocation4 + $0x128] sm:$0xff]  ;;  %v2642_v24 = vld [vmem:[#allocation4 + $0x160] sm:$0xff] }
 0x34c   : > { %2475 = vst.msk [vmem:[#allocation4 + $0x178] sm:$0xff] %vm6761_vm7, %v2449_v15  ;;  %v2547_v3 = vpop.permute.xlu0 %2546  ;;  %3328 = vmatprep.subr.bf16.mxu1 %v4287_v61  ;;  %v2675_v58 = vpack.c.bf16 %v2635_v21, %v2630_v41  ;;  %v2641_v23 = vld [vmem:[#allocation4 + $0x158] sm:$0xff]  ;;  %vm6768_vm7 = vmmov %vm6767_vm0  ;;  %v2682_v2 = vpack.c.bf16 %v2647_v38, %v2642_v24  ;;  %v2652_v61 = vld [vmem:[#allocation4 + $0x1b0] sm:$0xff] }
 0x34d   : > { %2572 = vst.msk [vmem:[#allocation4 + $0x1a8] sm:$0xff] %vm6762_vm5, %v2547_v3  ;;  %vm6769_vm5 = vmmov %vm6767_vm0  ;;  %v2687_v12 = vpack.c.bf16 %v2657_v22, %v2652_v61 }
 0x34e   : > { %3274 = vmatmul.mubr.bf16.gmra.mrb[4].mxu1 %v2665_v25 }
 0x34f   : > { %3283 = vmatprep.mubr.bf16.mxu1 %v2671_v63  ;;  %v2549_v14 = vpop.permute.xlu1 %2548  ;;  %3329 = vmatpush1.bf16.msra.mxu1 %v4285_v32  ;;  %v2646_v49 = vld [vmem:[#allocation4 + $0x180] sm:$0xff] }
 0x350   : > { %2573 = vst.msk [vmem:[#allocation4 + $0x1d0] sm:$0x1] %vm6763_vm2, %v2549_v14  ;;  %v2451_v34 = vpop.permute.xlu0 %2450  ;;  %3330 = vmatprep.subr.bf16.mxu1 %v4290_v17  ;;  %v2681_v59 = vpack.c.bf16 %v2646_v49, %v2641_v23  ;;  %v2640_v44 = vld [vmem:[#allocation4 + $0x150] sm:$0xff]  ;;  %vm6770_vm2 = vmmov %vm6767_vm0 }
 0x351   : > { %2476 = vst.msk [vmem:[#allocation4 + $0x1a0] sm:$0xff] %vm6764_vm10, %v2451_v34  ;;  %vm6771_vm10 = vmmov %vm6767_vm0 }
 0x353   : > { %v2453_v53 = vpop.permute.xlu1 %2452  ;;  %3331 = vmatpush1.bf16.msra.mxu1 %v4288_v19  ;;  %v2645_v50 = vld [vmem:[#allocation4 + $0x178] sm:$0xff] }
 0x354   : > { %2477 = vst.msk [vmem:[#allocation4 + $0x1c8] sm:$0x1] %vm6765_vm9, %v2453_v53  ;;  %v2651_v20 = vld [vmem:[#allocation4 + $0x1a8] sm:$0xff]  ;;  %v2680_v40 = vpack.c.bf16 %v2645_v50, %v2640_v44  ;;  %vm6772_vm9 = vmmov %vm6767_vm0 }
 0x356   : > { %3284 = vmatmul.mubr.bf16.gmra.mrb[8].mxu1 %v2670_v29 }
 0x357   : > { %3293 = vmatprep.mubr.bf16.mxu1 %v2676_v52  ;;  %v2656_v37 = vld [vmem:[#allocation4 + $0x1d0] sm:$0x1] }
 0x358   : > { %v2686_v13 = vpack.c.bf16 %v2656_v37, %v2651_v20  ;;  %v2650_v0 = vld [vmem:[#allocation4 + $0x1a0] sm:$0xff] }
 0x35b   : > { %v2655_v1 = vld [vmem:[#allocation4 + $0x1c8] sm:$0x1] }
 0x35c   : > { %v2685_v30 = vpack.c.bf16 %v2655_v1, %v2650_v0 }
 0x35e   : > { %3294 = vmatmul.mubr.bf16.gmra.mrb[12].mxu1 %v2675_v58 }
 0x35f   : > { %3303 = vmatprep.mubr.bf16.mxu1 %v2681_v59 }
 0x366   : > { %3304 = vmatmul.mubr.bf16.gmra.mrb[16].mxu1 %v2680_v40  ;;  %v6435_v40 = vld [vmem:[%s6590_s4] ss:$0 sm:$0xff] }
 0x367   : > { %3313 = vmatprep.mubr.bf16.mxu1 %v2686_v13 }
 0x36e   : > { %3314 = vmatmul.mubr.bf16.gmra.mrb[20].mxu1 %v2685_v30 }
 0x36f   : > { %3356 = vmatprep.mubr.bf16.mxu1 %v6766_v7 }
 0x376   : > { %3913 = vmatmul.mubr.msk.bf16.vlgmr.msra.gmra.mrb[0].mxu1 %vm6767_vm0, %v2662_v48 }
 0x377   : > { %3366 = vmatprep.mubr.bf16.mxu1 %v6766_v7 }
 0x37e   : > { %3914 = vmatmul.mubr.msk.bf16.gmra.mrb[4].mxu1 %vm6768_vm7, %v2667_v39 }
 0x37f   : > { %3376 = vmatprep.mubr.bf16.mxu1 %v6766_v7 }
 0x386   : > { %3915 = vmatmul.mubr.msk.bf16.gmra.mrb[8].mxu1 %vm6769_vm5, %v2672_v42  ;;  %vm6773_vm5 = vmmov %vm6770_vm2 }
 0x387   : > { %3386 = vmatprep.mubr.bf16.mxu1 %v6766_v7 }
 0x38e   : > { %3916 = vmatmul.mubr.msk.bf16.gmra.mrb[12].mxu1 %vm6770_vm2, %v2677_v45 }
 0x38f   : > { %3396 = vmatprep.mubr.bf16.mxu1 %v6766_v7 }
 0x396   : > { %3917 = vmatmul.mubr.msk.bf16.gmra.mrb[16].mxu1 %vm6771_vm10, %v2682_v2 }
 0x397   : > { %3406 = vmatprep.mubr.bf16.mxu1 %v6766_v7 }
 0x39e   : > { %3918 = vmatmul.mubr.msk.bf16.gmra.mrb[20].mxu1 %vm6772_vm9, %v2687_v12 }
 0x449   : > { %v3358_v15 = vpop.f32.mrb[0].mxu1 }
 0x44a   : > { %3429 = vrot.lane.b32.xlu0 %v3358_v15, %s4395_s11  ;;  %v3360_v35 = vpop.f32.mrb[1].mxu1 }
 0x44b   : > { %v3362_v32 = vpop.f32.mrb[2].mxu1 }
 0x44c   : > { %3431 = vrot.lane.b32.xlu1 %v3362_v32, %s4395_s11  ;;  %v3364_v3 = vpop.f32.mrb[3].mxu1 }
 0x44e   : > { %3489 = vrot.lane.b32.xlu0 %v3360_v35, %s4395_s11 }
 0x450   : > { %3491 = vrot.lane.b32.xlu1 %v3364_v3, %s4395_s11 }
 0x451   : > { %v6352_v25 = vpop.f32.mrb[4].mxu1 }
 0x452   : > { %3433 = vrot.lane.b32.xlu0 %v6352_v25, %s4395_s11  ;;  %v6356_v56 = vpop.f32.mrb[5].mxu1 }
 0x453   : > { %v6358_v17 = vpop.f32.mrb[6].mxu1 }
 0x454   : > { %3435 = vrot.lane.b32.xlu1 %v6358_v17, %s4395_s11  ;;  %v6362_v63 = vpop.f32.mrb[7].mxu1 }
 0x456   : > { %3493 = vrot.lane.b32.xlu0 %v6356_v56, %s4395_s11 }
 0x458   : > { %3495 = vrot.lane.b32.xlu1 %v6362_v63, %s4395_s11 }
 0x459   : > { %v6368_v14 = vpop.f32.mrb[8].mxu1 }
 0x45a   : > { %3437 = vrot.lane.b32.xlu0 %v6368_v14, %s4395_s11  ;;  %v6372_v19 = vpop.f32.mrb[9].mxu1 }
 0x45b   : > { %v6374_v34 = vpop.f32.mrb[10].mxu1 }
 0x45c   : > { %3439 = vrot.lane.b32.xlu1 %v6374_v34, %s4395_s11  ;;  %v6378_v10 = vpop.f32.mrb[11].mxu1 }
 0x45e   : > { %3497 = vrot.lane.b32.xlu0 %v6372_v19, %s4395_s11 }
 0x460   : > { %3499 = vrot.lane.b32.xlu1 %v6378_v10, %s4395_s11 }
 0x461   : > { %v6384_v60 = vpop.f32.mrb[12].mxu1 }
 0x462   : > { %3441 = vrot.lane.b32.xlu0 %v6384_v60, %s4395_s11  ;;  %v6388_v53 = vpop.f32.mrb[13].mxu1 }
 0x463   : > { %v6390_v6 = vpop.f32.mrb[14].mxu1 }
 0x464   : > { %3443 = vrot.lane.b32.xlu1 %v6390_v6, %s4395_s11  ;;  %v6394_v29 = vpop.f32.mrb[15].mxu1 }
 0x466   : > { %3501 = vrot.lane.b32.xlu0 %v6388_v53, %s4395_s11 }
 0x468   : > { %3503 = vrot.lane.b32.xlu1 %v6394_v29, %s4395_s11 }
 0x469   : > { %v6400_v47 = vpop.f32.mrb[16].mxu1 }
 0x46a   : > { %3445 = vrot.lane.b32.xlu0 %v6400_v47, %s4395_s11  ;;  %v6404_v52 = vpop.f32.mrb[17].mxu1 }
 0x46b   : > { %v6406_v21 = vpop.f32.mrb[18].mxu1 }
 0x46c   : > { %3447 = vrot.lane.b32.xlu1 %v6406_v21, %s4395_s11  ;;  %v6410_v49 = vpop.f32.mrb[19].mxu1 }
 0x46e   : > { %3505 = vrot.lane.b32.xlu0 %v6404_v52, %s4395_s11 }
 0x470   : > { %3507 = vrot.lane.b32.xlu1 %v6410_v49, %s4395_s11 }
 0x471   : > { %v6416_v41 = vpop.f32.mrb[20].mxu1 }
 0x472   : > { %3449 = vrot.lane.b32.xlu0 %v6416_v41, %s4395_s11  ;;  %v6420_v58 = vpop.f32.mrb[21].mxu1 }
 0x473   : > { %v6422_v23 = vpop.f32.mrb[22].mxu1 }
 0x474   : > { %3451 = vrot.lane.b32.xlu1 %v6422_v23, %s4395_s11  ;;  %v6426_v59 = vpop.f32.mrb[23].mxu1 }
 0x476   : > { %3509 = vrot.lane.b32.xlu0 %v6420_v58, %s4395_s11 }
 0x478   : > { %3511 = vrot.lane.b32.xlu1 %v6426_v59, %s4395_s11  ;;  %s4019_s11 = smul.u32 96, %s6788_s19 }
 0x47a   : > { %s6487_s20 = scalar_lea.vmem %s6591_s5, %s4019_s11 }
 0x4bc   : > { %v3430_v20 = vpop.permute.xlu0 %3429 }
 0x4bd   : > { %v3465_v44 = vmax.f32 %v3358_v15, %v3430_v20 }
 0x4be   : > { %v3432_v37 = vpop.permute.xlu1 %3431 }
 0x4bf   : > { %v3466_v0 = vmax.f32 %v3362_v32, %v3432_v37 }
 0x4c0   : > { %v3490_v50 = vpop.permute.xlu0 %3489 }
 0x4c1   : > { %v3525_v13 = vmax.f32 %v3360_v35, %v3490_v50 }
 0x4c2   : > { %v3492_v1 = vpop.permute.xlu1 %3491 }
 0x4c3   : > { %v3537_v30 = vmax.f32 %v3465_v44, %v3525_v13  ;;  %v3526_v7 = vmax.f32 %v3364_v3, %v3492_v1 }
 0x4c4   : > { %v3434_v31 = vpop.permute.xlu0 %3433 }
 0x4c5   : > { %v6438_v9 = vadd.f32 %v6435_v40, %v3537_v30  ;;  %v3538_v48 = vmax.f32 %v3466_v0, %v3526_v7  ;;  %v3467_v8 = vmax.f32 %v6352_v25, %v3434_v31 }
 0x4c6   : > { %v3436_v27 = vpop.permute.xlu1 %3435 }
 0x4c7   : > { %v3580_v33 = vmin.f32 %v6438_v9, 20.0  ;;  %v6442_v39 = vadd.f32 %v6435_v40, %v3538_v48  ;;  %v3468_v45 = vmax.f32 %v6358_v17, %v3436_v27  ;;  %vm3568_vm0 = vcmp.gt.f32.partialorder %v6438_v9, 20.0 }
 0x4c8   : > { %v3494_v16 = vpop.permute.xlu0 %3493 }
 0x4c9   : > { %v3592_v28 = vmul.f32 1.442695, %v3580_v33  ;;  %v3581_v42 = vmin.f32 %v6442_v39, 20.0  ;;  %v3527_v43 = vmax.f32 %v6356_v56, %v3494_v16  ;;  %vm3569_vm7 = vcmp.gt.f32.partialorder %v6442_v39, 20.0 }
 0x4ca   : > { %v3496_v38 = vpop.permute.xlu1 %3495 }
 0x4cb   : > { %4339 = vpow2.f32 %v3592_v28  ;;  %v3594_v24 = vmul.f32 1.442695, %v3581_v42  ;;  %v3539_v2 = vmax.f32 %v3467_v8, %v3527_v43  ;;  %v3528_v61 = vmax.f32 %v6362_v63, %v3496_v38 }
 0x4cc   : > { %v3438_v22 = vpop.permute.xlu0 %3437 }
 0x4cd   : > { %4341 = vpow2.f32 %v3594_v24  ;;  %v6450_v12 = vadd.f32 %v6435_v40, %v3539_v2  ;;  %v3540_v15 = vmax.f32 %v3468_v45, %v3528_v61  ;;  %v3469_v20 = vmax.f32 %v6368_v14, %v3438_v22 }
 0x4ce   : > { %v3440_v35 = vpop.permute.xlu1 %3439 }
 0x4cf   : > { %v3582_v32 = vmin.f32 %v6450_v12, 20.0  ;;  %v6454_v3 = vadd.f32 %v6435_v40, %v3540_v15  ;;  %v3470_v37 = vmax.f32 %v6374_v34, %v3440_v35 }
 0x4d0   : > { %v3498_v25 = vpop.permute.xlu0 %3497 }
 0x4d1   : > { %v3596_v56 = vmul.f32 1.442695, %v3582_v32  ;;  %v3583_v17 = vmin.f32 %v6454_v3, 20.0  ;;  %v3529_v63 = vmax.f32 %v6372_v19, %v3498_v25 }
 0x4d2   : > { %v3500_v50 = vpop.permute.xlu1 %3499 }
 0x4d3   : > { %4343 = vpow2.f32 %v3596_v56  ;;  %v3598_v44 = vmul.f32 1.442695, %v3583_v17  ;;  %v3541_v13 = vmax.f32 %v3469_v20, %v3529_v63  ;;  %v3530_v1 = vmax.f32 %v6378_v10, %v3500_v50 }
 0x4d4   : > { %v3442_v0 = vpop.permute.xlu0 %3441 }
 0x4d5   : > { %v4340_v30 = vpop.eup %4339  ;;  %4345 = vpow2.f32 %v3598_v44  ;;  %v6462_v7 = vadd.f32 %v6435_v40, %v3541_v13  ;;  %v3542_v31 = vmax.f32 %v3470_v37, %v3530_v1  ;;  %v3471_v42 = vmax.f32 %v6384_v60, %v3442_v0 }
 0x4d6   : > { %v3616_v48 = vadd.f32 1.0, %v4340_v30  ;;  %v3444_v27 = vpop.permute.xlu1 %3443 }
 0x4d7   : > { %v4342_v14 = vpop.eup %4341  ;;  %v3584_v19 = vmin.f32 %v6462_v7, 20.0  ;;  %v6466_v34 = vadd.f32 %v6435_v40, %v3542_v31  ;;  %v3472_v43 = vmax.f32 %v6390_v6, %v3444_v27  ;;  %vm3572_vm9 = vcmp.gt.f32.partialorder %v6462_v7, 20.0 }
 0x4d8   : > { %4347 = vlog2.f32 %v3616_v48  ;;  %v3617_v33 = vadd.f32 1.0, %v4342_v14  ;;  %v3502_v16 = vpop.permute.xlu0 %3501 }
 0x4d9   : > { %v3600_v28 = vmul.f32 1.442695, %v3584_v19  ;;  %v3585_v10 = vmin.f32 %v6466_v34, 20.0  ;;  %v3531_v8 = vmax.f32 %v6388_v53, %v3502_v16 }
 0x4da   : > { %4349 = vlog2.f32 %v3617_v33  ;;  %v3504_v45 = vpop.permute.xlu1 %3503 }
 0x4db   : > { %4351 = vpow2.f32 %v3600_v28  ;;  %v3602_v38 = vmul.f32 1.442695, %v3585_v10  ;;  %v3543_v24 = vmax.f32 %v3471_v42, %v3531_v8  ;;  %v3532_v2 = vmax.f32 %v6394_v29, %v3504_v45 }
 0x4dc   : > { %v3446_v61 = vpop.permute.xlu0 %3445 }
 0x4dd   : > { %v4344_v22 = vpop.eup %4343  ;;  %4353 = vpow2.f32 %v3602_v38  ;;  %v6474_v15 = vadd.f32 %v6435_v40, %v3543_v24  ;;  %v3544_v35 = vmax.f32 %v3472_v43, %v3532_v2  ;;  %v3473_v63 = vmax.f32 %v6400_v47, %v3446_v61 }
 0x4de   : > { %v3618_v60 = vadd.f32 1.0, %v4344_v22  ;;  %v3448_v32 = vpop.permute.xlu1 %3447 }
 0x4df   : > { %v4346_v53 = vpop.eup %4345  ;;  %v3586_v25 = vmin.f32 %v6474_v15, 20.0  ;;  %v6478_v6 = vadd.f32 %v6435_v40, %v3544_v35  ;;  %v3474_v47 = vmax.f32 %v6406_v21, %v3448_v32 }
 0x4e0   : > { %4355 = vlog2.f32 %v3618_v60  ;;  %v3619_v56 = vadd.f32 1.0, %v4346_v53  ;;  %v3506_v17 = vpop.permute.xlu0 %3505 }
 0x4e1   : > { %v3604_v29 = vmul.f32 1.442695, %v3586_v25  ;;  %v3587_v20 = vmin.f32 %v6478_v6, 20.0  ;;  %v3533_v37 = vmax.f32 %v6404_v52, %v3506_v17 }
 0x4e2   : > { %v4348_v50 = vpop.eup %4347  ;;  %4357 = vlog2.f32 %v3619_v56  ;;  %v3508_v44 = vpop.permute.xlu1 %3507 }
 0x4e3   : > { %v3629_v13 = vmul.f32 0.6931472, %v4348_v50  ;;  %4359 = vpow2.f32 %v3604_v29  ;;  %v3606_v1 = vmul.f32 1.442695, %v3587_v20  ;;  %v3545_v0 = vmax.f32 %v3473_v63, %v3533_v37 }
 0x4e4   : > { %v4350_v30 = vpop.eup %4349  ;;  %v3534_v52 = vmax.f32 %v6410_v49, %v3508_v44  ;;  %v3450_v31 = vpop.permute.xlu0 %3449 }
 0x4e5   : > { %v4352_v48 = vpop.eup %4351  ;;  %v3652_v27 = vsel %vm3568_vm0, %v6438_v9, %v3629_v13  ;;  %v3631_v14 = vmul.f32 0.6931472, %v4350_v30  ;;  %4361 = vpow2.f32 %v3606_v1  ;;  %v6494_v19 = vadd.f32 %v6435_v40, %v3545_v0 }
 0x4e6   : > { %v3664_v33 = vsel %vm5649_vm3, %v3652_v27, 0.0  ;;  %v3620_v16 = vadd.f32 1.0, %v4352_v48  ;;  %v3546_v28 = vmax.f32 %v3474_v47, %v3534_v52  ;;  %v3452_v21 = vpop.permute.xlu1 %3451  ;;  %vm6774_vm3 = vmmov %vm6770_vm2  ;;  %v3475_v38 = vmax.f32 %v6416_v41, %v3450_v31 }
 0x4e7   : > { %v4354_v10 = vpop.eup %4353  ;;  %3676 = vst.msk [vmem:[%s6487_s20] sm:$0xff] %vm6773_vm5, %v3664_v33  ;;  %v3653_v49 = vsel %vm3569_vm7, %v6442_v39, %v3631_v14  ;;  %v3588_v9 = vmin.f32 %v6494_v19, 20.0  ;;  %v3476_v18 = vmax.f32 %v6422_v23, %v3452_v21  ;;  %vm3571_vm2 = vcmp.gt.f32.partialorder %v6454_v3, 20.0  ;;  %vm6775_vm10 = vmmov %vm6774_vm3 }
 0x4e8   : > { %v3665_v42 = vsel %vm5665_vm8, %v3653_v49, 0.0  ;;  %4363 = vlog2.f32 %v3620_v16  ;;  %v3621_v8 = vadd.f32 1.0, %v4354_v10  ;;  %v6506_v46 = vadd.f32 %v6435_v40, %v3546_v28  ;;  %v3510_v43 = vpop.permute.xlu0 %3509  ;;  %vm6777_vm0 = vmmov %vm6774_vm3 }
 0x4e9   : > { %3677 = vst.msk [vmem:[%s6487_s20 + $0x8] sm:$0xff] %vm6774_vm3, %v3665_v42  ;;  %v3608_v45 = vmul.f32 1.442695, %v3588_v9  ;;  %v3535_v24 = vmax.f32 %v6420_v58, %v3510_v43  ;;  %vm3570_vm8 = vcmp.gt.f32.partialorder %v6450_v12, 20.0  ;;  %vm6778_vm7 = vmmov %vm6777_vm0 }
 0x4ea   : > { %v4356_v2 = vpop.eup %4355  ;;  %4365 = vlog2.f32 %v3621_v8  ;;  %v3589_v39 = vmin.f32 %v6506_v46, 20.0  ;;  %v3512_v61 = vpop.permute.xlu1 %3511  ;;  %vm6779_vm5 = vmmov %vm6777_vm0 }
 0x4eb   : > { %v3633_v22 = vmul.f32 0.6931472, %v4356_v2  ;;  %4367 = vpow2.f32 %v3608_v45  ;;  %v3547_v35 = vmax.f32 %v3475_v38, %v3535_v24  ;;  %v3536_v60 = vmax.f32 %v6426_v59, %v3512_v61 }
 0x4ec   : > { %v4358_v32 = vpop.eup %4357  ;;  %v3610_v53 = vmul.f32 1.442695, %v3589_v39 }
 0x4ed   : > { %v4360_v41 = vpop.eup %4359  ;;  %v3654_v58 = vsel %vm3570_vm8, %v6450_v12, %v3633_v22  ;;  %v3635_v25 = vmul.f32 0.6931472, %v4358_v32  ;;  %v6518_v56 = vadd.f32 %v6435_v40, %v3547_v35  ;;  %v3548_v23 = vmax.f32 %v3476_v18, %v3536_v60  ;;  %vm6781_vm8 = vmmov %vm6777_vm0 }
 0x4ee   : > { %v3666_v17 = vsel %vm5734_vm12, %v3654_v58, 0.0  ;;  %v3622_v29 = vadd.f32 1.0, %v4360_v41  ;;  %4369 = vpow2.f32 %v3610_v53  ;;  %vm6776_vm12 = vmmov %vm6774_vm3  ;;  %vm6780_vm3 = vnez %v6694_v4 }
 0x4ef   : > { %v4362_v59 = vpop.eup %4361  ;;  %3678 = vst.msk [vmem:[%s6487_s20 + $0x10] sm:$0xff] %vm6775_vm10, %v3666_v17  ;;  %v3655_v20 = vsel %vm3571_vm2, %v6454_v3, %v3635_v25  ;;  %v3590_v12 = vmin.f32 %v6518_v56, 20.0  ;;  %v6528_v63 = vadd.f32 %v6435_v40, %v3548_v23  ;;  %vm6782_vm2 = vmmov %vm6777_vm0  ;;  %vm3577_vm10 = vcmp.gt.f32.partialorder %v6506_v46, 20.0 }
 0x4f0   : > { %v3667_v37 = vsel %vm5767_vm13, %v3655_v20, 0.0  ;;  %4371 = vlog2.f32 %v3622_v29  ;;  %v3623_v36 = vadd.f32 1.0, %v4362_v59  ;;  %vm3573_vm13 = vcmp.gt.f32.partialorder %v6466_v34, 20.0 }
 0x4f1   : > { %3679 = vst.msk [vmem:[%s6487_s20 + $0x18] sm:$0xff] %vm6776_vm12, %v3667_v37  ;;  %v3612_v50 = vmul.f32 1.442695, %v3590_v12  ;;  %v3591_v44 = vmin.f32 %v6528_v63, 20.0  ;;  %vm6783_vm12 = vmmov %vm6777_vm0 }
 0x4f2   : > { %v4364_v13 = vpop.eup %4363  ;;  %4373 = vlog2.f32 %v3623_v36 }
 0x4f3   : > { %v3637_v1 = vmul.f32 0.6931472, %v4364_v13  ;;  %4375 = vpow2.f32 %v3612_v50  ;;  %v3614_v3 = vmul.f32 1.442695, %v3591_v44 }
 0x4f4   : > { %v4366_v0 = vpop.eup %4365 }
 0x4f5   : > { %v4368_v40 = vpop.eup %4367  ;;  %v3656_v54 = vsel %vm3572_vm9, %v6462_v7, %v3637_v1  ;;  %v3639_v30 = vmul.f32 0.6931472, %v4366_v0  ;;  %4377 = vpow2.f32 %v3614_v3  ;;  %vm3578_vm9 = vcmp.gt.f32.partialorder %v6518_v56, 20.0 }
 0x4f6   : > { %v3668_v47 = vsel %vm5832_vm14, %v3656_v54, 0.0  ;;  %v3624_v52 = vadd.f32 1.0, %v4368_v40  ;;  %vm3574_vm14 = vcmp.gt.f32.partialorder %v6474_v15, 20.0 }
 0x4f7   : > { %3680 = vst.msk [vmem:[%s6487_s20 + $0x20] sm:$0xff] %vm6777_vm0, %v3668_v47  ;;  %v3657_v31 = vsel %vm3573_vm13, %v6466_v34, %v3639_v30  ;;  %vm6784_vm13 = vmmov %vm6777_vm0  ;;  %vm6786_vm0 = vcmask 516096  }
 0x4f8   : > { %v4370_v48 = vpop.eup %4369  ;;  %v3669_v27 = vsel %vm5854_vm6, %v3657_v31, 0.0  ;;  %4379 = vlog2.f32 %v3624_v52  ;;  %vm3575_vm6 = vcmp.gt.f32.partialorder %v6478_v6, 20.0 }
 0x4f9   : > { %3681 = vst.msk [vmem:[%s6487_s20 + $0x28] sm:$0xff] %vm6778_vm7, %v3669_v27  ;;  %v3625_v7 = vadd.f32 1.0, %v4370_v48 }
 0x4fa   : > { %v4372_v14 = vpop.eup %4371 }
 0x4fb   : > { %v3641_v33 = vmul.f32 0.6931472, %v4372_v14  ;;  %4381 = vlog2.f32 %v3625_v7 }
 0x4fc   : > { %v4374_v57 = vpop.eup %4373 }
 0x4fd   : > { %v4376_v16 = vpop.eup %4375  ;;  %v3658_v28 = vsel %vm3574_vm14, %v6474_v15, %v3641_v33  ;;  %v3643_v34 = vmul.f32 0.6931472, %v4374_v57 }
 0x4fe   : > { %v3670_v5 = vsel %vm5924_vm11, %v3658_v28, 0.0  ;;  %v3626_v21 = vadd.f32 1.0, %v4376_v16  ;;  %vm3576_vm11 = vcmp.gt.f32.partialorder %v6494_v19, 20.0 }
 0x4ff   : > { %v4378_v10 = vpop.eup %4377  ;;  %3682 = vst.msk [vmem:[%s6487_s20 + $0x30] sm:$0xff] %vm6779_vm5, %v3670_v5  ;;  %v3659_v49 = vsel %vm3575_vm6, %v6478_v6, %v3643_v34 }
 0x500   : > { %v3671_v9 = vsel %vm6780_vm3, %v3659_v49, 0.0  ;;  %4383 = vlog2.f32 %v3626_v21  ;;  %v3627_v42 = vadd.f32 1.0, %v4378_v10 }
 0x501   : > { %3683 = vst.msk [vmem:[%s6487_s20 + $0x38] sm:$0xff] %vm6781_vm8, %v3671_v9 }
 0x502   : > { %v4380_v15 = vpop.eup %4379  ;;  %4385 = vlog2.f32 %v3627_v42 }
 0x503   : > { %v3645_v62 = vmul.f32 0.6931472, %v4380_v15 }
 0x505   : > { %v4382_v8 = vpop.eup %4381  ;;  %v3660_v43 = vsel %vm3576_vm11, %v6494_v19, %v3645_v62 }
 0x506   : > { %v3672_v6 = vsel %vm6010_vm1, %v3660_v43, 0.0  ;;  %v3647_v45 = vmul.f32 0.6931472, %v4382_v8  ;;  %vm3579_vm1 = vcmp.gt.f32.partialorder %v6528_v63, 20.0 }
 0x507   : > { %3684 = vst.msk [vmem:[%s6487_s20 + $0x40] sm:$0xff] %vm6782_vm2, %v3672_v6 }
 0x508   : > { %v3661_v4 = vsel %vm3577_vm10, %v6506_v46, %v3647_v45 }
 0x509   : > { %v3673_v38 = vsel %vm6047_vm4, %v3661_v4, 0.0  ;;  %vm6785_vm4 = vnez %v6718_v51 }
 0x50a   : > { %v4384_v24 = vpop.eup %4383  ;;  %3685 = vst.msk [vmem:[%s6487_s20 + $0x48] sm:$0xff] %vm6783_vm12, %v3673_v38 }
 0x50b   : > { %v3649_v2 = vmul.f32 0.6931472, %v4384_v24 }
 0x50c   : > { %v4386_v19 = vpop.eup %4385 }
 0x50d   : > { %v3662_v55 = vsel %vm3578_vm9, %v6518_v56, %v3649_v2  ;;  %v3651_v39 = vmul.f32 0.6931472, %v4386_v19 }
 0x50e   : > { %v3674_v18 = vsel %vm6062_vm15, %v3662_v55, 0.0 }
 0x50f   : > { %3686 = vst.msk [vmem:[%s6487_s20 + $0x50] sm:$0xff] %vm6784_vm13, %v3674_v18  ;;  %v3663_v26 = vsel %vm3579_vm1, %v6528_v63, %v3651_v39 }
 0x510   : > { %v3675_v46 = vsel %vm6785_vm4, %v3663_v26, 0.0 }
 0x511   : > { %3687 = vst.msk [vmem:[%s6487_s20 + $0x58] sm:$0x1] %vm6786_vm0, %v3675_v46 }
 0x512 PF: > { %s15_s18 = sadd.s32 1, %s4393_s18  }
 0x513   : > { %p12_p4 = scmp.ge.s32.totalorder %s15_s18, 4  }
 0x515   :  { %14 = sbr.rel (!%p12_p4) target bundleno = 1 (0x1), region = 70 }

</bundles_post_ra>
